<compile_context>
chip_gen: v6e
topology: v6e:2x2x1
jax: 0.10.0
libtpu: 0.0.40
codegen_flags: <defaults>
</compile_context>

<pallas_src>
import functools

import jax
import jax.numpy as jnp
from jax import lax
from jax.experimental import pallas as pl
from jax.experimental.pallas import tpu as pltpu


# --------------------------------------------------------------------------
# Kernels
# --------------------------------------------------------------------------
def _conv1x1_kernel(has_prologue, *refs):
    """[optional BN-affine + ReLU] -> 1x1 conv -> per-step partial BN stats."""
    if has_prologue:
        scale_ref, bias_ref, x_ref, w_ref, y_ref, psum_ref, psq_ref = refs
    else:
        x_ref, w_ref, y_ref, psum_ref, psq_ref = refs

    x = x_ref[...]
    if has_prologue:
        x = jnp.maximum(x.astype(jnp.float32) * scale_ref[...] + bias_ref[...],
                        0.0)

    y = jnp.dot(x.astype(w_ref.dtype), w_ref[...],
                preferred_element_type=jnp.float32)
    y_ref[...] = y.astype(y_ref.dtype)

    # Per-grid-step partial statistics (summed in the wrapper).  Each step
    # writes its own block -> no revisit -> grid axis can be "parallel".
    psum_ref[...] = jnp.sum(y, axis=0).reshape(1, 1, -1)
    psq_ref[...] = jnp.sum(y * y, axis=0).reshape(1, 1, -1)


def _conv3x3_kernel(th, scale_ref, bias_ref, x_ref, w_ref,
                    y_ref, psum_ref, psq_ref, pad_ref, slab_ref):
    """BN1-affine + ReLU -> 3x3 conv (stride 1, pad 1) -> partial BN2 stats.

    Grid = (N, H // th).  Each step handles `th` output rows of one image.
    The 1-row halo is read with ref-level slices from the whole-image VMEM
    block (nothing large is materialized as a value).  The conv is ONE
    im2col slab (th*W, 9C) followed by a single K=9C matmul (no f32 VMEM
    accumulator).
    """
    hb = pl.program_id(1)
    nhb = pl.num_programs(1)
    _, H, W, C = x_ref.shape
    h0 = hb * th

    scale = scale_ref[...]                    # (1, C) float32
    bias = bias_ref[...]

    def bn_relu(v):                           # v: (..., C)
        a = v.astype(jnp.float32) * scale + bias
        return jnp.maximum(a, 0.0).astype(pad_ref.dtype)

    # Zero-fill the padded scratch (halo rows/cols + width rounding), then
    # write the rows this step owns.  Unconditional init => correct when the
    # grid axes are "parallel" (each core has its own scratch).
    pad_ref[...] = jnp.zeros_like(pad_ref)
    pad_ref[1:th + 1, 1:W + 1, :] = bn_relu(x_ref[0, pl.ds(h0, th), :, :])

    @pl.when(hb > 0)
    def _():                                  # top halo row (previous tile)
        pad_ref[0:1, 1:W + 1, :] = bn_relu(x_ref[0, pl.ds(h0 - 1, 1), :, :])

    @pl.when(hb < nhb - 1)
    def _():                                  # bottom halo row (next tile)
        pad_ref[th + 1:th + 2, 1:W + 1, :] = bn_relu(
            x_ref[0, pl.ds(h0 + th, 1), :, :])

    # im2col slab: 9 shifted ref-slice copies, then one big-K matmul.
    for dy in range(3):
        for dx in range(3):
            k = (dy * 3 + dx) * C
            slab_ref[:, k:k + C] = pad_ref[dy:dy + th, dx:dx + W, :].reshape(
                th * W, C)

    out = jnp.dot(slab_ref[...], w_ref[...],
                  preferred_element_type=jnp.float32)        # (th*W, C) f32
    y_ref[...] = out.reshape(1, th, W, C).astype(y_ref.dtype)

    psum_ref[...] = jnp.sum(out, axis=0).reshape(1, 1, 1, -1)
    psq_ref[...] = jnp.sum(out * out, axis=0).reshape(1, 1, 1, -1)


def _bn_add_relu_kernel(scale_ref, bias_ref, y_ref, res_ref, o_ref):
    """BN3 affine + residual add + ReLU (elementwise, row-tiled)."""
    y = y_ref[...].astype(jnp.float32) * scale_ref[...] + bias_ref[...]
    o_ref[...] = jnp.maximum(y + res_ref[...].astype(jnp.float32),
                             0.0).astype(o_ref.dtype)


# --------------------------------------------------------------------------
# Tiling helpers
# --------------------------------------------------------------------------
def _round_up(x, m):
    return (x + m - 1) // m * m


def _pick_row_tile(rows, target, pack):
    """Largest divisor of `rows` <= target that is a multiple of `pack`
    (dtype-aware sublane packing), else `rows` itself."""
    t = min(rows, target)
    for cand in range(t, 0, -1):
        if rows % cand == 0 and (cand % pack == 0 or cand == rows):
            return cand
    return rows


def _pick_h_tile(H, W, target_rows=512):
    """Largest divisor of H whose im2col M-dim (th*W) stays <= target_rows."""
    best = 1
    for th in range(1, H + 1):
        if H % th == 0 and th * W <= max(target_rows, W):
            best = th
    return best


# --------------------------------------------------------------------------
# Stage wrappers (pallas_call plumbing)
# --------------------------------------------------------------------------
def _conv1x1_stage(x2d, w, scale, bias, *, row_tile, out_dtype, vmem_limit):
    R, Cin = x2d.shape
    Cout = w.shape[1]
    ntiles = R // row_tile
    has_pro = scale is not None
    kernel = functools.partial(_conv1x1_kernel, has_pro)

    in_specs, args = [], []
    if has_pro:
        in_specs += [pl.BlockSpec((1, Cin), lambda i: (0, 0)),
                     pl.BlockSpec((1, Cin), lambda i: (0, 0))]
        args += [scale, bias]
    in_specs += [pl.BlockSpec((row_tile, Cin), lambda i: (i, 0)),
                 pl.BlockSpec((Cin, Cout), lambda i: (0, 0))]
    args += [x2d, w]

    out_shape = (jax.ShapeDtypeStruct((R, Cout), out_dtype),
                 jax.ShapeDtypeStruct((ntiles, 1, Cout), jnp.float32),
                 jax.ShapeDtypeStruct((ntiles, 1, Cout), jnp.float32))
    out_specs = (pl.BlockSpec((row_tile, Cout), lambda i: (i, 0)),
                 pl.BlockSpec((1, 1, Cout), lambda i: (i, 0, 0)),
                 pl.BlockSpec((1, 1, Cout), lambda i: (i, 0, 0)))

    y, ps, pq = pl.pallas_call(
        kernel,
        grid=(ntiles,),
        in_specs=in_specs,
        out_specs=out_specs,
        out_shape=out_shape,
        compiler_params=pltpu.CompilerParams(
            dimension_semantics=("parallel",),
            vmem_limit_bytes=vmem_limit),
    )(*args)
    return y, jnp.sum(ps, axis=0), jnp.sum(pq, axis=0)


def _conv3x3_stage(y1, w2r, scale, bias, *, h_tile, out_dtype, vmem_limit):
    N, H, W, C = y1.shape
    K = w2r.shape[0]                               # 9 * C
    nhb = H // h_tile
    w_pad = _round_up(W + 2, 8)                    # sublane-aligned pad width

    kernel = functools.partial(_conv3x3_kernel, h_tile)
    in_specs = [pl.BlockSpec((1, C), lambda n, h: (0, 0)),
                pl.BlockSpec((1, C), lambda n, h: (0, 0)),
                pl.BlockSpec((1, H, W, C), lambda n, h: (n, 0, 0, 0)),
                pl.BlockSpec((K, C), lambda n, h: (0, 0))]
    out_shape = (jax.ShapeDtypeStruct((N, H, W, C), out_dtype),
                 jax.ShapeDtypeStruct((N, nhb, 1, C), jnp.float32),
                 jax.ShapeDtypeStruct((N, nhb, 1, C), jnp.float32))
    out_specs = (pl.BlockSpec((1, h_tile, W, C), lambda n, h: (n, h, 0, 0)),
                 pl.BlockSpec((1, 1, 1, C), lambda n, h: (n, h, 0, 0)),
                 pl.BlockSpec((1, 1, 1, C), lambda n, h: (n, h, 0, 0)))
    scratch = [pltpu.VMEM((h_tile + 2, w_pad, C), out_dtype),   # padded rows
               pltpu.VMEM((h_tile * W, K), out_dtype)]          # im2col slab

    y, ps, pq = pl.pallas_call(
        kernel,
        grid=(N, nhb),
        in_specs=in_specs,
        out_specs=out_specs,
        out_shape=out_shape,
        scratch_shapes=scratch,
        compiler_params=pltpu.CompilerParams(
            dimension_semantics=("parallel", "parallel"),
            vmem_limit_bytes=vmem_limit),
    )(scale, bias, y1, w2r)
    return y, jnp.sum(ps, axis=(0, 1)), jnp.sum(pq, axis=(0, 1))


def _bn_add_relu_stage(y3, identity, scale, bias, *, row_tile, out_dtype,
                       vmem_limit):
    R, C = y3.shape
    grid = (R // row_tile,)
    in_specs = [pl.BlockSpec((1, C), lambda i: (0, 0)),
                pl.BlockSpec((1, C), lambda i: (0, 0)),
                pl.BlockSpec((row_tile, C), lambda i: (i, 0)),
                pl.BlockSpec((row_tile, C), lambda i: (i, 0))]
    out_specs = pl.BlockSpec((row_tile, C), lambda i: (i, 0))

    return pl.pallas_call(
        _bn_add_relu_kernel,
        grid=grid,
        in_specs=in_specs,
        out_specs=out_specs,
        out_shape=jax.ShapeDtypeStruct((R, C), out_dtype),
        compiler_params=pltpu.CompilerParams(
            dimension_semantics=("parallel",),
            vmem_limit_bytes=vmem_limit),
    )(scale, bias, y3, identity)


def _finalize_bn(ssum, ssq, gamma, beta, count, eps):
    """Fold batch mean/var + gamma/beta into a per-channel scale & bias."""
    mean = ssum / count
    var = jnp.maximum(ssq / count - mean * mean, 0.0)   # clamp cancellation
    scale = gamma.reshape(1, -1).astype(jnp.float32) * lax.rsqrt(var + eps)
    bias = beta.reshape(1, -1).astype(jnp.float32) - mean * scale
    return scale, bias


# --------------------------------------------------------------------------
# Full bottleneck forward
# --------------------------------------------------------------------------
def bottleneck_forward(x_nchw, params, stride=1, eps=1e-5,
                       carry_dtype=jnp.bfloat16, row_tile_target=512,
                       vmem_limit=40 * 1024 * 1024):
    """_Bottleneck forward (downsample=None, identity shortcut)."""
    w1, g1, b1, w2, g2, b2, w3, g3, b3 = params
    # TODO(synk): stride != 1 and the conv+BN downsample shortcut are not
    # implemented; the identity shortcut requires stride == 1 and Cin == Cout.
    assert stride == 1, "identity shortcut requires stride == 1"

    x = jnp.transpose(x_nchw, (0, 2, 3, 1))            # NCHW -> NHWC
    N, H, W, Cin = x.shape
    Cmid = w1.shape[1]
    Cout = w3.shape[1]
    assert Cin == Cout, "identity shortcut requires Cin == Cout"

    cdt = jnp.dtype(carry_dtype)
    pack = 16 if cdt.itemsize <= 2 else 8              # dtype-aware sublanes
    R = N * H * W
    tr = _pick_row_tile(R, row_tile_target, pack)
    th = _pick_h_tile(H, W)
    x2d = x.reshape(R, Cin)

    # stage 1: conv1 (1x1) + partial BN1 statistics
    y1, s1, q1 = _conv1x1_stage(x2d, w1.astype(cdt), None, None,
                                row_tile=tr, out_dtype=cdt,
                                vmem_limit=vmem_limit)
    sc1, bi1 = _finalize_bn(s1, q1, g1, b1, R, eps)

    # stage 2: BN1 + ReLU + conv2 (3x3, pad 1) + partial BN2 statistics
    w2r = w2.reshape(9 * Cmid, Cmid).astype(cdt)       # (dy,dx,ci) x co
    y2, s2, q2 = _conv3x3_stage(y1.reshape(N, H, W, Cmid), w2r, sc1, bi1,
                                h_tile=th, out_dtype=cdt,
                                vmem_limit=vmem_limit)
    sc2, bi2 = _finalize_bn(s2, q2, g2, b2, R, eps)

    # stage 3: BN2 + ReLU + conv3 (1x1) + partial BN3 statistics
    y3, s3, q3 = _conv1x1_stage(y2.reshape(R, Cmid), w3.astype(cdt), sc2, bi2,
                                row_tile=tr, out_dtype=cdt,
                                vmem_limit=vmem_limit)
    sc3, bi3 = _finalize_bn(s3, q3, g3, b3, R, eps)

    # stage 4: BN3 + residual add + ReLU (back to the input dtype)
    out2d = _bn_add_relu_stage(y3, x2d, sc3, bi3, row_tile=tr,
                               out_dtype=x.dtype, vmem_limit=vmem_limit)
    out = out2d.reshape(N, H, W, Cout)
    return jnp.transpose(out, (0, 3, 1, 2))            # NHWC -> NCHW


# --------------------------------------------------------------------------
# Pure-JAX reference & parameter construction
# --------------------------------------------------------------------------
def _bn_train(x2d, gamma, beta, eps=1e-5):
    mean = jnp.mean(x2d, axis=0, keepdims=True)
    var = jnp.mean(jnp.square(x2d - mean), axis=0, keepdims=True)
    return (x2d - mean) * lax.rsqrt(var + eps) * gamma + beta


def _reference_forward(x_nchw, params, stride=1):
    w1, g1, b1, w2, g2, b2, w3, g3, b3 = params
    x = jnp.transpose(x_nchw, (0, 2, 3, 1))

    def bn_relu(y, g, b, relu=True):
        n, h, w, c = y.shape
        y2 = _bn_train(y.reshape(n * h * w, c), g, b).reshape(n, h, w, c)
        return jnp.maximum(y2, 0.0) if relu else y2

    dn = lax.conv_dimension_numbers(x.shape, (1, 1, 1, 1),
                                    ("NHWC", "HWIO", "NHWC"))
    hp = lax.Precision.HIGHEST
    o = lax.conv_general_dilated(x, w1[None, None], (1, 1), "VALID",
                                 dimension_numbers=dn, precision=hp)
    o = bn_relu(o, g1, b1)
    o = lax.conv_general_dilated(o, w2, (stride, stride), ((1, 1), (1, 1)),
                                 dimension_numbers=dn, precision=hp)
    o = bn_relu(o, g2, b2)
    o = lax.conv_general_dilated(o, w3[None, None], (1, 1), "VALID",
                                 dimension_numbers=dn, precision=hp)
    o = bn_relu(o, g3, b3, relu=False)
    o = jnp.maximum(o + x, 0.0)
    return jnp.transpose(o, (0, 3, 1, 2))


def make_params(key, in_channels, out_channels, groups=1, base_channels=64):
    """Synthetic parameters matching _Bottleneck.__init__ shapes (pre-transposed)."""
    expansion = 4
    channels = int(out_channels * (base_channels / 64.0)) * groups
    cout = int(out_channels * expansion)
    ks = jax.random.split(key, 9)
    # PyTorch conv1 (channels, in_channels, 1, 1) -> (in_channels, channels)
    # PyTorch conv2 (channels, channels, 3, 3)    -> (3, 3, channels, channels)
    # PyTorch conv3 (cout, channels, 1, 1)        -> (channels, cout)
    w1 = jax.random.normal(ks[0], (in_channels, channels), jnp.float32) * 0.1
    w2 = jax.random.normal(ks[1], (3, 3, channels, channels), jnp.float32) * 0.1
    w3 = jax.random.normal(ks[2], (channels, cout), jnp.float32) * 0.1
    g1 = 1.0 + 0.1 * jax.random.normal(ks[3], (channels,), jnp.float32)
    b1 = 0.1 * jax.random.normal(ks[4], (channels,), jnp.float32)
    g2 = 1.0 + 0.1 * jax.random.normal(ks[5], (channels,), jnp.float32)
    b2 = 0.1 * jax.random.normal(ks[6], (channels,), jnp.float32)
    g3 = 1.0 + 0.1 * jax.random.normal(ks[7], (cout,), jnp.float32)
    b3 = 0.1 * jax.random.normal(ks[8], (cout,), jnp.float32)
    return (w1, g1, b1, w2, g2, b2, w3, g3, b3)


if __name__ == "__main__":
    # Lane-dense small config (downsample=None => in_channels == out_channels*4,
    # stride == 1).  Cmid=128 keeps all channel dims 128-aligned.
    batch, out_channels, spatial, stride = 2, 128, 16, 1
    in_channels = out_channels * 4

    key = jax.random.PRNGKey(0)
    kx, kp = jax.random.split(key)
    x = jax.random.normal(kx, (batch, in_channels, spatial, spatial), jnp.float32)
    params = make_params(kp, in_channels, out_channels)

    ref = _reference_forward(x, params, stride=stride)

    # Full-precision carry path: tight check against the f32 reference.
    fwd32 = jax.jit(functools.partial(bottleneck_forward, stride=stride,
                                      carry_dtype=jnp.float32))
    out32 = jax.block_until_ready(fwd32(x, params))
    assert out32.shape == (batch, out_channels * 4, spatial, spatial)
    assert jnp.allclose(out32, ref, rtol=2e-2, atol=2e-2), \
        float(jnp.max(jnp.abs(out32 - ref)))

    # Default (performance) path: bf16 intermediates/weights, bf16 MXU matmuls.
    fwd16 = jax.jit(functools.partial(bottleneck_forward, stride=stride))
    out16 = jax.block_until_ready(fwd16(x, params))
    assert out16.shape == ref.shape
    assert jnp.allclose(out16, ref, rtol=5e-2, atol=1e-1), \
        float(jnp.max(jnp.abs(out16 - ref)))

    print("KERNEL_OK")
</pallas_src>

<mosaic_0001>
module attributes {stable_mosaic.version = 11 : i64} {
  func.func @_conv1x1_kernel(%arg0: i32, %arg1: memref<512x512xf32, #tpu.memory_space<vmem>>, %arg2: memref<512x128xf32, #tpu.memory_space<vmem>>, %arg3: memref<512x128xf32, #tpu.memory_space<vmem>>, %arg4: memref<1x1x128xf32, #tpu.memory_space<vmem>>, %arg5: memref<1x1x128xf32, #tpu.memory_space<vmem>>) attributes {dimension_semantics = [#tpu.dimension_semantics<parallel>], iteration_bounds = array<i64: 1>, scalar_prefetch = 0 : i64, scratch_operands = 0 : i64, tpu.core_type = #tpu.core_type<tc>, window_params = [{transform_indices = @transform_0, window_bounds = array<i64: 512, 512>}, {pipeline_mode = #tpu.pipeline_mode<synchronous>, transform_indices = @transform_1, window_bounds = array<i64: 512, 128>}, {transform_indices = @transform_2, window_bounds = array<i64: 512, 128>}, {transform_indices = @transform_3, window_bounds = array<i64: 1, 1, 128>}, {transform_indices = @transform_4, window_bounds = array<i64: 1, 1, 128>}]} {
    %c0 = arith.constant 0 : index
    %c0_0 = arith.constant 0 : index
    %0 = vector.load %arg1[%c0, %c0_0] : memref<512x512xf32, #tpu.memory_space<vmem>>, vector<512x512xf32>
    %c0_1 = arith.constant 0 : index
    %c0_2 = arith.constant 0 : index
    %1 = vector.load %arg2[%c0_1, %c0_2] : memref<512x128xf32, #tpu.memory_space<vmem>>, vector<512x128xf32>
    %cst = arith.constant dense<0.000000e+00> : vector<512x128xf32>
    %2 = tpu.matmul %0, %1, %cst {dimension_numbers = #tpu.dot_dimension_numbers<[1], [0], [0], [1], [0, 0, 1, 1], [], []>} : vector<512x512xf32>, vector<512x128xf32>, vector<512x128xf32> -> vector<512x128xf32>
    %c0_3 = arith.constant 0 : index
    %c0_4 = arith.constant 0 : index
    %3 = vector.load %arg3[%c0_3, %c0_4] : memref<512x128xf32, #tpu.memory_space<vmem>>, vector<512x128xf32>
    tpu.vector_store %arg3[%c0_3, %c0_4], %2 {strides = array<i32>} : memref<512x128xf32, #tpu.memory_space<vmem>>, vector<512x128xf32>,
    %cst_5 = arith.constant dense<0.000000e+00> : vector<128xf32>
    %4 = vector.multi_reduction <add>, %2, %cst_5 [0] : vector<512x128xf32> to vector<128xf32>
    %5 = vector.shape_cast %4 : vector<128xf32> to vector<1x1x128xf32>
    %c0_6 = arith.constant 0 : index
    %c0_7 = arith.constant 0 : index
    %c0_8 = arith.constant 0 : index
    %6 = vector.load %arg4[%c0_6, %c0_7, %c0_8] : memref<1x1x128xf32, #tpu.memory_space<vmem>>, vector<1x1x128xf32>
    tpu.vector_store %arg4[%c0_6, %c0_7, %c0_8], %5 {strides = array<i32>} : memref<1x1x128xf32, #tpu.memory_space<vmem>>, vector<1x1x128xf32>,
    %7 = arith.mulf %2, %2 : vector<512x128xf32>
    %cst_9 = arith.constant dense<0.000000e+00> : vector<128xf32>
    %8 = vector.multi_reduction <add>, %7, %cst_9 [0] : vector<512x128xf32> to vector<128xf32>
    %9 = vector.shape_cast %8 : vector<128xf32> to vector<1x1x128xf32>
    %c0_10 = arith.constant 0 : index
    %c0_11 = arith.constant 0 : index
    %c0_12 = arith.constant 0 : index
    %10 = vector.load %arg5[%c0_10, %c0_11, %c0_12] : memref<1x1x128xf32, #tpu.memory_space<vmem>>, vector<1x1x128xf32>
    tpu.vector_store %arg5[%c0_10, %c0_11, %c0_12], %9 {strides = array<i32>} : memref<1x1x128xf32, #tpu.memory_space<vmem>>, vector<1x1x128xf32>,
    return
  }
  func.func @transform_0(%arg0: i32) -> (i32, i32) {
    %c0_i32 = arith.constant 0 : i32
    %c0_i32_0 = arith.constant 0 : i32
    return %arg0, %c0_i32 : i32, i32
  }
  func.func @transform_1(%arg0: i32) -> (i32, i32) {
    %c0_i32 = arith.constant 0 : i32
    %c0_i32_0 = arith.constant 0 : i32
    %c0_i32_1 = arith.constant 0 : i32
    return %c0_i32, %c0_i32_0 : i32, i32
  }
  func.func @transform_2(%arg0: i32) -> (i32, i32) {
    %c0_i32 = arith.constant 0 : i32
    %c0_i32_0 = arith.constant 0 : i32
    return %arg0, %c0_i32 : i32, i32
  }
  func.func @transform_3(%arg0: i32) -> (i32, i32, i32) {
    %c0_i32 = arith.constant 0 : i32
    %c0_i32_0 = arith.constant 0 : i32
    %c0_i32_1 = arith.constant 0 : i32
    return %arg0, %c0_i32, %c0_i32_0 : i32, i32, i32
  }
  func.func @transform_4(%arg0: i32) -> (i32, i32, i32) {
    %c0_i32 = arith.constant 0 : i32
    %c0_i32_0 = arith.constant 0 : i32
    %c0_i32_1 = arith.constant 0 : i32
    return %arg0, %c0_i32, %c0_i32_0 : i32, i32, i32
  }
}

module attributes {stable_mosaic.version = 11 : i64} {
  func.func @_conv3x3_kernel(%arg0: i32, %arg1: i32, %arg2: memref<1x128xf32, #tpu.memory_space<vmem>>, %arg3: memref<1x128xf32, #tpu.memory_space<vmem>>, %arg4: memref<1x16x16x128xf32, #tpu.memory_space<vmem>>, %arg5: memref<1152x128xf32, #tpu.memory_space<vmem>>, %arg6: memref<1x16x16x128xf32, #tpu.memory_space<vmem>>, %arg7: memref<1x1x1x128xf32, #tpu.memory_space<vmem>>, %arg8: memref<1x1x1x128xf32, #tpu.memory_space<vmem>>, %arg9: memref<18x24x128xf32, #tpu.memory_space<vmem>>, %arg10: memref<256x1152xf32, #tpu.memory_space<vmem>>) attributes {dimension_semantics = [#tpu.dimension_semantics<parallel>, #tpu.dimension_semantics<parallel>], iteration_bounds = array<i64: 2, 1>, scalar_prefetch = 0 : i64, scratch_operands = 2 : i64, tpu.core_type = #tpu.core_type<tc>, window_params = [{pipeline_mode = #tpu.pipeline_mode<synchronous>, transform_indices = @transform_0, window_bounds = array<i64: 1, 128>}, {pipeline_mode = #tpu.pipeline_mode<synchronous>, transform_indices = @transform_1, window_bounds = array<i64: 1, 128>}, {transform_indices = @transform_2, window_bounds = array<i64: 1, 16, 16, 128>}, {pipeline_mode = #tpu.pipeline_mode<synchronous>, transform_indices = @transform_3, window_bounds = array<i64: 1152, 128>}, {transform_indices = @transform_4, window_bounds = array<i64: 1, 16, 16, 128>}, {transform_indices = @transform_5, window_bounds = array<i64: 1, 1, 1, 128>}, {transform_indices = @transform_6, window_bounds = array<i64: 1, 1, 1, 128>}]} {
    %c16_i32 = arith.constant 16 : i32
    %0 = arith.muli %arg1, %c16_i32 : i32
    %c0 = arith.constant 0 : index
    %c0_0 = arith.constant 0 : index
    %1 = vector.load %arg2[%c0, %c0_0] : memref<1x128xf32, #tpu.memory_space<vmem>>, vector<1x128xf32>
    %c0_1 = arith.constant 0 : index
    %c0_2 = arith.constant 0 : index
    %2 = vector.load %arg3[%c0_1, %c0_2] : memref<1x128xf32, #tpu.memory_space<vmem>>, vector<1x128xf32>
    %cst = arith.constant 0.000000e+00 : f32
    %3 = vector.broadcast %cst : f32 to vector<18x24x128xf32>
    %c0_3 = arith.constant 0 : index
    %c0_4 = arith.constant 0 : index
    %c0_5 = arith.constant 0 : index
    %4 = vector.load %arg9[%c0_3, %c0_4, %c0_5] : memref<18x24x128xf32, #tpu.memory_space<vmem>>, vector<18x24x128xf32>
    tpu.vector_store %arg9[%c0_3, %c0_4, %c0_5], %3 {strides = array<i32>} : memref<18x24x128xf32, #tpu.memory_space<vmem>>, vector<18x24x128xf32>,
    %c0_6 = arith.constant 0 : index
    %5 = arith.index_cast %0 : i32 to index
    %c0_7 = arith.constant 0 : index
    %c0_8 = arith.constant 0 : index
    %6 = vector.load %arg4[%c0_6, %5, %c0_7, %c0_8] : memref<1x16x16x128xf32, #tpu.memory_space<vmem>>, vector<1x16x16x128xf32>
    %7 = vector.shape_cast %6 : vector<1x16x16x128xf32> to vector<16x16x128xf32>
    %8 = vector.shape_cast %1 : vector<1x128xf32> to vector<1x1x128xf32>
    %9 = vector.broadcast %8 : vector<1x1x128xf32> to vector<16x16x128xf32>
    %10 = arith.mulf %7, %9 : vector<16x16x128xf32>
    %11 = vector.shape_cast %2 : vector<1x128xf32> to vector<1x1x128xf32>
    %12 = vector.broadcast %11 : vector<1x1x128xf32> to vector<16x16x128xf32>
    %13 = arith.addf %10, %12 : vector<16x16x128xf32>
    %cst_9 = arith.constant 0.000000e+00 : f32
    %14 = vector.broadcast %cst_9 : f32 to vector<16x16x128xf32>
    %15 = arith.maximumf %13, %14 : vector<16x16x128xf32>
    %c1 = arith.constant 1 : index
    %c1_10 = arith.constant 1 : index
    %c0_11 = arith.constant 0 : index
    %16 = vector.load %arg9[%c1, %c1_10, %c0_11] : memref<18x24x128xf32, #tpu.memory_space<vmem>>, vector<16x16x128xf32>
    tpu.vector_store %arg9[%c1, %c1_10, %c0_11], %15 {strides = array<i32>} : memref<18x24x128xf32, #tpu.memory_space<vmem>>, vector<16x16x128xf32>,
    %c0_i32 = arith.constant 0 : i32
    %17 = arith.cmpi sgt, %arg1, %c0_i32 : i32
    %18 = arith.extui %17 : i1 to i32
    %c0_i32_12 = arith.constant 0 : i32
    %19 = arith.cmpi ne, %18, %c0_i32_12 : i32
    scf.if %19 {
      %c1_i32 = arith.constant 1 : i32
      %62 = arith.subi %0, %c1_i32 : i32
      %c0_70 = arith.constant 0 : index
      %63 = arith.index_cast %62 : i32 to index
      %c0_71 = arith.constant 0 : index
      %c0_72 = arith.constant 0 : index
      %64 = vector.load %arg4[%c0_70, %63, %c0_71, %c0_72] : memref<1x16x16x128xf32, #tpu.memory_space<vmem>>, vector<1x1x16x128xf32>
      %65 = vector.shape_cast %64 : vector<1x1x16x128xf32> to vector<1x16x128xf32>
      %66 = vector.shape_cast %1 : vector<1x128xf32> to vector<1x1x128xf32>
      %67 = vector.broadcast %66 : vector<1x1x128xf32> to vector<1x16x128xf32>
      %68 = arith.mulf %65, %67 : vector<1x16x128xf32>
      %69 = vector.shape_cast %2 : vector<1x128xf32> to vector<1x1x128xf32>
      %70 = vector.broadcast %69 : vector<1x1x128xf32> to vector<1x16x128xf32>
      %71 = arith.addf %68, %70 : vector<1x16x128xf32>
      %cst_73 = arith.constant 0.000000e+00 : f32
      %72 = vector.broadcast %cst_73 : f32 to vector<1x16x128xf32>
      %73 = arith.maximumf %71, %72 : vector<1x16x128xf32>
      %c0_74 = arith.constant 0 : index
      %c1_75 = arith.constant 1 : index
      %c0_76 = arith.constant 0 : index
      %74 = vector.load %arg9[%c0_74, %c1_75, %c0_76] : memref<18x24x128xf32, #tpu.memory_space<vmem>>, vector<1x16x128xf32>
      tpu.vector_store %arg9[%c0_74, %c1_75, %c0_76], %73 {strides = array<i32>} : memref<18x24x128xf32, #tpu.memory_space<vmem>>, vector<1x16x128xf32>,
    } else {
    }
    %c0_i32_13 = arith.constant 0 : i32
    %20 = arith.cmpi slt, %arg1, %c0_i32_13 : i32
    %21 = arith.extui %20 : i1 to i32
    %c0_i32_14 = arith.constant 0 : i32
    %22 = arith.cmpi ne, %21, %c0_i32_14 : i32
    scf.if %22 {
      %c16_i32_70 = arith.constant 16 : i32
      %62 = arith.addi %0, %c16_i32_70 : i32
      %c0_71 = arith.constant 0 : index
      %63 = arith.index_cast %62 : i32 to index
      %c0_72 = arith.constant 0 : index
      %c0_73 = arith.constant 0 : index
      %64 = vector.load %arg4[%c0_71, %63, %c0_72, %c0_73] : memref<1x16x16x128xf32, #tpu.memory_space<vmem>>, vector<1x1x16x128xf32>
      %65 = vector.shape_cast %64 : vector<1x1x16x128xf32> to vector<1x16x128xf32>
      %66 = vector.shape_cast %1 : vector<1x128xf32> to vector<1x1x128xf32>
      %67 = vector.broadcast %66 : vector<1x1x128xf32> to vector<1x16x128xf32>
      %68 = arith.mulf %65, %67 : vector<1x16x128xf32>
      %69 = vector.shape_cast %2 : vector<1x128xf32> to vector<1x1x128xf32>
      %70 = vector.broadcast %69 : vector<1x1x128xf32> to vector<1x16x128xf32>
      %71 = arith.addf %68, %70 : vector<1x16x128xf32>
      %cst_74 = arith.constant 0.000000e+00 : f32
      %72 = vector.broadcast %cst_74 : f32 to vector<1x16x128xf32>
      %73 = arith.maximumf %71, %72 : vector<1x16x128xf32>
      %c17 = arith.constant 17 : index
      %c1_75 = arith.constant 1 : index
      %c0_76 = arith.constant 0 : index
      %74 = vector.load %arg9[%c17, %c1_75, %c0_76] : memref<18x24x128xf32, #tpu.memory_space<vmem>>, vector<1x16x128xf32>
      tpu.vector_store %arg9[%c17, %c1_75, %c0_76], %73 {strides = array<i32>} : memref<18x24x128xf32, #tpu.memory_space<vmem>>, vector<1x16x128xf32>,
    } else {
    }
    %c0_15 = arith.constant 0 : index
    %c0_16 = arith.constant 0 : index
    %c0_17 = arith.constant 0 : index
    %23 = vector.load %arg9[%c0_15, %c0_16, %c0_17] : memref<18x24x128xf32, #tpu.memory_space<vmem>>, vector<16x16x128xf32>
    %24 = vector.shape_cast %23 : vector<16x16x128xf32> to vector<256x128xf32>
    %c0_18 = arith.constant 0 : index
    %c0_19 = arith.constant 0 : index
    %25 = vector.load %arg10[%c0_18, %c0_19] : memref<256x1152xf32, #tpu.memory_space<vmem>>, vector<256x128xf32>
    tpu.vector_store %arg10[%c0_18, %c0_19], %24 {strides = array<i32>} : memref<256x1152xf32, #tpu.memory_space<vmem>>, vector<256x128xf32>,
    %c0_20 = arith.constant 0 : index
    %c1_21 = arith.constant 1 : index
    %c0_22 = arith.constant 0 : index
    %26 = vector.load %arg9[%c0_20, %c1_21, %c0_22] : memref<18x24x128xf32, #tpu.memory_space<vmem>>, vector<16x16x128xf32>
    %27 = vector.shape_cast %26 : vector<16x16x128xf32> to vector<256x128xf32>
    %c0_23 = arith.constant 0 : index
    %c128 = arith.constant 128 : index
    %28 = vector.load %arg10[%c0_23, %c128] : memref<256x1152xf32, #tpu.memory_space<vmem>>, vector<256x128xf32>
    tpu.vector_store %arg10[%c0_23, %c128], %27 {strides = array<i32>} : memref<256x1152xf32, #tpu.memory_space<vmem>>, vector<256x128xf32>,
    %c0_24 = arith.constant 0 : index
    %c2 = arith.constant 2 : index
    %c0_25 = arith.constant 0 : index
    %29 = vector.load %arg9[%c0_24, %c2, %c0_25] : memref<18x24x128xf32, #tpu.memory_space<vmem>>, vector<16x16x128xf32>
    %30 = vector.shape_cast %29 : vector<16x16x128xf32> to vector<256x128xf32>
    %c0_26 = arith.constant 0 : index
    %c256 = arith.constant 256 : index
    %31 = vector.load %arg10[%c0_26, %c256] : memref<256x1152xf32, #tpu.memory_space<vmem>>, vector<256x128xf32>
    tpu.vector_store %arg10[%c0_26, %c256], %30 {strides = array<i32>} : memref<256x1152xf32, #tpu.memory_space<vmem>>, vector<256x128xf32>,
    %c1_27 = arith.constant 1 : index
    %c0_28 = arith.constant 0 : index
    %c0_29 = arith.constant 0 : index
    %32 = vector.load %arg9[%c1_27, %c0_28, %c0_29] : memref<18x24x128xf32, #tpu.memory_space<vmem>>, vector<16x16x128xf32>
    %33 = vector.shape_cast %32 : vector<16x16x128xf32> to vector<256x128xf32>
    %c0_30 = arith.constant 0 : index
    %c384 = arith.constant 384 : index
    %34 = vector.load %arg10[%c0_30, %c384] : memref<256x1152xf32, #tpu.memory_space<vmem>>, vector<256x128xf32>
    tpu.vector_store %arg10[%c0_30, %c384], %33 {strides = array<i32>} : memref<256x1152xf32, #tpu.memory_space<vmem>>, vector<256x128xf32>,
    %c1_31 = arith.constant 1 : index
    %c1_32 = arith.constant 1 : index
    %c0_33 = arith.constant 0 : index
    %35 = vector.load %arg9[%c1_31, %c1_32, %c0_33] : memref<18x24x128xf32, #tpu.memory_space<vmem>>, vector<16x16x128xf32>
    %36 = vector.shape_cast %35 : vector<16x16x128xf32> to vector<256x128xf32>
    %c0_34 = arith.constant 0 : index
    %c512 = arith.constant 512 : index
    %37 = vector.load %arg10[%c0_34, %c512] : memref<256x1152xf32, #tpu.memory_space<vmem>>, vector<256x128xf32>
    tpu.vector_store %arg10[%c0_34, %c512], %36 {strides = array<i32>} : memref<256x1152xf32, #tpu.memory_space<vmem>>, vector<256x128xf32>,
    %c1_35 = arith.constant 1 : index
    %c2_36 = arith.constant 2 : index
    %c0_37 = arith.constant 0 : index
    %38 = vector.load %arg9[%c1_35, %c2_36, %c0_37] : memref<18x24x128xf32, #tpu.memory_space<vmem>>, vector<16x16x128xf32>
    %39 = vector.shape_cast %38 : vector<16x16x128xf32> to vector<256x128xf32>
    %c0_38 = arith.constant 0 : index
    %c640 = arith.constant 640 : index
    %40 = vector.load %arg10[%c0_38, %c640] : memref<256x1152xf32, #tpu.memory_space<vmem>>, vector<256x128xf32>
    tpu.vector_store %arg10[%c0_38, %c640], %39 {strides = array<i32>} : memref<256x1152xf32, #tpu.memory_space<vmem>>, vector<256x128xf32>,
    %c2_39 = arith.constant 2 : index
    %c0_40 = arith.constant 0 : index
    %c0_41 = arith.constant 0 : index
    %41 = vector.load %arg9[%c2_39, %c0_40, %c0_41] : memref<18x24x128xf32, #tpu.memory_space<vmem>>, vector<16x16x128xf32>
    %42 = vector.shape_cast %41 : vector<16x16x128xf32> to vector<256x128xf32>
    %c0_42 = arith.constant 0 : index
    %c768 = arith.constant 768 : index
    %43 = vector.load %arg10[%c0_42, %c768] : memref<256x1152xf32, #tpu.memory_space<vmem>>, vector<256x128xf32>
    tpu.vector_store %arg10[%c0_42, %c768], %42 {strides = array<i32>} : memref<256x1152xf32, #tpu.memory_space<vmem>>, vector<256x128xf32>,
    %c2_43 = arith.constant 2 : index
    %c1_44 = arith.constant 1 : index
    %c0_45 = arith.constant 0 : index
    %44 = vector.load %arg9[%c2_43, %c1_44, %c0_45] : memref<18x24x128xf32, #tpu.memory_space<vmem>>, vector<16x16x128xf32>
    %45 = vector.shape_cast %44 : vector<16x16x128xf32> to vector<256x128xf32>
    %c0_46 = arith.constant 0 : index
    %c896 = arith.constant 896 : index
    %46 = vector.load %arg10[%c0_46, %c896] : memref<256x1152xf32, #tpu.memory_space<vmem>>, vector<256x128xf32>
    tpu.vector_store %arg10[%c0_46, %c896], %45 {strides = array<i32>} : memref<256x1152xf32, #tpu.memory_space<vmem>>, vector<256x128xf32>,
    %c2_47 = arith.constant 2 : index
    %c2_48 = arith.constant 2 : index
    %c0_49 = arith.constant 0 : index
    %47 = vector.load %arg9[%c2_47, %c2_48, %c0_49] : memref<18x24x128xf32, #tpu.memory_space<vmem>>, vector<16x16x128xf32>
    %48 = vector.shape_cast %47 : vector<16x16x128xf32> to vector<256x128xf32>
    %c0_50 = arith.constant 0 : index
    %c1024 = arith.constant 1024 : index
    %49 = vector.load %arg10[%c0_50, %c1024] : memref<256x1152xf32, #tpu.memory_space<vmem>>, vector<256x128xf32>
    tpu.vector_store %arg10[%c0_50, %c1024], %48 {strides = array<i32>} : memref<256x1152xf32, #tpu.memory_space<vmem>>, vector<256x128xf32>,
    %c0_51 = arith.constant 0 : index
    %c0_52 = arith.constant 0 : index
    %50 = vector.load %arg10[%c0_51, %c0_52] : memref<256x1152xf32, #tpu.memory_space<vmem>>, vector<256x1152xf32>
    %c0_53 = arith.constant 0 : index
    %c0_54 = arith.constant 0 : index
    %51 = vector.load %arg5[%c0_53, %c0_54] : memref<1152x128xf32, #tpu.memory_space<vmem>>, vector<1152x128xf32>
    %cst_55 = arith.constant dense<0.000000e+00> : vector<256x128xf32>
    %52 = tpu.matmul %50, %51, %cst_55 {dimension_numbers = #tpu.dot_dimension_numbers<[1], [0], [0], [1], [0, 0, 1, 1], [], []>} : vector<256x1152xf32>, vector<1152x128xf32>, vector<256x128xf32> -> vector<256x128xf32>
    %53 = vector.shape_cast %52 : vector<256x128xf32> to vector<1x16x16x128xf32>
    %c0_56 = arith.constant 0 : index
    %c0_57 = arith.constant 0 : index
    %c0_58 = arith.constant 0 : index
    %c0_59 = arith.constant 0 : index
    %54 = vector.load %arg6[%c0_56, %c0_57, %c0_58, %c0_59] : memref<1x16x16x128xf32, #tpu.memory_space<vmem>>, vector<1x16x16x128xf32>
    tpu.vector_store %arg6[%c0_56, %c0_57, %c0_58, %c0_59], %53 {strides = array<i32>} : memref<1x16x16x128xf32, #tpu.memory_space<vmem>>, vector<1x16x16x128xf32>,
    %cst_60 = arith.constant dense<0.000000e+00> : vector<128xf32>
    %55 = vector.multi_reduction <add>, %52, %cst_60 [0] : vector<256x128xf32> to vector<128xf32>
    %56 = vector.shape_cast %55 : vector<128xf32> to vector<1x1x1x128xf32>
    %c0_61 = arith.constant 0 : index
    %c0_62 = arith.constant 0 : index
    %c0_63 = arith.constant 0 : index
    %c0_64 = arith.constant 0 : index
    %57 = vector.load %arg7[%c0_61, %c0_62, %c0_63, %c0_64] : memref<1x1x1x128xf32, #tpu.memory_space<vmem>>, vector<1x1x1x128xf32>
    tpu.vector_store %arg7[%c0_61, %c0_62, %c0_63, %c0_64], %56 {strides = array<i32>} : memref<1x1x1x128xf32, #tpu.memory_space<vmem>>, vector<1x1x1x128xf32>,
    %58 = arith.mulf %52, %52 : vector<256x128xf32>
    %cst_65 = arith.constant dense<0.000000e+00> : vector<128xf32>
    %59 = vector.multi_reduction <add>, %58, %cst_65 [0] : vector<256x128xf32> to vector<128xf32>
    %60 = vector.shape_cast %59 : vector<128xf32> to vector<1x1x1x128xf32>
    %c0_66 = arith.constant 0 : index
    %c0_67 = arith.constant 0 : index
    %c0_68 = arith.constant 0 : index
    %c0_69 = arith.constant 0 : index
    %61 = vector.load %arg8[%c0_66, %c0_67, %c0_68, %c0_69] : memref<1x1x1x128xf32, #tpu.memory_space<vmem>>, vector<1x1x1x128xf32>
    tpu.vector_store %arg8[%c0_66, %c0_67, %c0_68, %c0_69], %60 {strides = array<i32>} : memref<1x1x1x128xf32, #tpu.memory_space<vmem>>, vector<1x1x1x128xf32>,
    return
  }
  func.func @transform_0(%arg0: i32, %arg1: i32) -> (i32, i32) {
    %c0_i32 = arith.constant 0 : i32
    %c0_i32_0 = arith.constant 0 : i32
    %c0_i32_1 = arith.constant 0 : i32
    return %c0_i32, %c0_i32_0 : i32, i32
  }
  func.func @transform_1(%arg0: i32, %arg1: i32) -> (i32, i32) {
    %c0_i32 = arith.constant 0 : i32
    %c0_i32_0 = arith.constant 0 : i32
    %c0_i32_1 = arith.constant 0 : i32
    return %c0_i32, %c0_i32_0 : i32, i32
  }
  func.func @transform_2(%arg0: i32, %arg1: i32) -> (i32, i32, i32, i32) {
    %c0_i32 = arith.constant 0 : i32
    %c0_i32_0 = arith.constant 0 : i32
    %c0_i32_1 = arith.constant 0 : i32
    %c0_i32_2 = arith.constant 0 : i32
    return %arg0, %c0_i32, %c0_i32_0, %c0_i32_1 : i32, i32, i32, i32
  }
  func.func @transform_3(%arg0: i32, %arg1: i32) -> (i32, i32) {
    %c0_i32 = arith.constant 0 : i32
    %c0_i32_0 = arith.constant 0 : i32
    %c0_i32_1 = arith.constant 0 : i32
    return %c0_i32, %c0_i32_0 : i32, i32
  }
  func.func @transform_4(%arg0: i32, %arg1: i32) -> (i32, i32, i32, i32) {
    %c0_i32 = arith.constant 0 : i32
    %c0_i32_0 = arith.constant 0 : i32
    %c0_i32_1 = arith.constant 0 : i32
    return %arg0, %arg1, %c0_i32, %c0_i32_0 : i32, i32, i32, i32
  }
  func.func @transform_5(%arg0: i32, %arg1: i32) -> (i32, i32, i32, i32) {
    %c0_i32 = arith.constant 0 : i32
    %c0_i32_0 = arith.constant 0 : i32
    %c0_i32_1 = arith.constant 0 : i32
    return %arg0, %arg1, %c0_i32, %c0_i32_0 : i32, i32, i32, i32
  }
  func.func @transform_6(%arg0: i32, %arg1: i32) -> (i32, i32, i32, i32) {
    %c0_i32 = arith.constant 0 : i32
    %c0_i32_0 = arith.constant 0 : i32
    %c0_i32_1 = arith.constant 0 : i32
    return %arg0, %arg1, %c0_i32, %c0_i32_0 : i32, i32, i32, i32
  }
}

module attributes {stable_mosaic.version = 11 : i64} {
  func.func @_conv1x1_kernel(%arg0: i32, %arg1: memref<1x128xf32, #tpu.memory_space<vmem>>, %arg2: memref<1x128xf32, #tpu.memory_space<vmem>>, %arg3: memref<512x128xf32, #tpu.memory_space<vmem>>, %arg4: memref<128x512xf32, #tpu.memory_space<vmem>>, %arg5: memref<512x512xf32, #tpu.memory_space<vmem>>, %arg6: memref<1x1x512xf32, #tpu.memory_space<vmem>>, %arg7: memref<1x1x512xf32, #tpu.memory_space<vmem>>) attributes {dimension_semantics = [#tpu.dimension_semantics<parallel>], iteration_bounds = array<i64: 1>, scalar_prefetch = 0 : i64, scratch_operands = 0 : i64, tpu.core_type = #tpu.core_type<tc>, window_params = [{pipeline_mode = #tpu.pipeline_mode<synchronous>, transform_indices = @transform_0, window_bounds = array<i64: 1, 128>}, {pipeline_mode = #tpu.pipeline_mode<synchronous>, transform_indices = @transform_1, window_bounds = array<i64: 1, 128>}, {transform_indices = @transform_2, window_bounds = array<i64: 512, 128>}, {pipeline_mode = #tpu.pipeline_mode<synchronous>, transform_indices = @transform_3, window_bounds = array<i64: 128, 512>}, {transform_indices = @transform_4, window_bounds = array<i64: 512, 512>}, {transform_indices = @transform_5, window_bounds = array<i64: 1, 1, 512>}, {transform_indices = @transform_6, window_bounds = array<i64: 1, 1, 512>}]} {
    %c0 = arith.constant 0 : index
    %c0_0 = arith.constant 0 : index
    %0 = vector.load %arg3[%c0, %c0_0] : memref<512x128xf32, #tpu.memory_space<vmem>>, vector<512x128xf32>
    %c0_1 = arith.constant 0 : index
    %c0_2 = arith.constant 0 : index
    %1 = vector.load %arg1[%c0_1, %c0_2] : memref<1x128xf32, #tpu.memory_space<vmem>>, vector<1x128xf32>
    %2 = vector.broadcast %1 : vector<1x128xf32> to vector<512x128xf32>
    %3 = arith.mulf %0, %2 : vector<512x128xf32>
    %c0_3 = arith.constant 0 : index
    %c0_4 = arith.constant 0 : index
    %4 = vector.load %arg2[%c0_3, %c0_4] : memref<1x128xf32, #tpu.memory_space<vmem>>, vector<1x128xf32>
    %5 = vector.broadcast %4 : vector<1x128xf32> to vector<512x128xf32>
    %6 = arith.addf %3, %5 : vector<512x128xf32>
    %cst = arith.constant 0.000000e+00 : f32
    %7 = vector.broadcast %cst : f32 to vector<512x128xf32>
    %8 = arith.maximumf %6, %7 : vector<512x128xf32>
    %c0_5 = arith.constant 0 : index
    %c0_6 = arith.constant 0 : index
    %9 = vector.load %arg4[%c0_5, %c0_6] : memref<128x512xf32, #tpu.memory_space<vmem>>, vector<128x512xf32>
    %cst_7 = arith.constant dense<0.000000e+00> : vector<512x512xf32>
    %10 = tpu.matmul %8, %9, %cst_7 {dimension_numbers = #tpu.dot_dimension_numbers<[1], [0], [0], [1], [0, 0, 1, 1], [], []>} : vector<512x128xf32>, vector<128x512xf32>, vector<512x512xf32> -> vector<512x512xf32>
    %c0_8 = arith.constant 0 : index
    %c0_9 = arith.constant 0 : index
    %11 = vector.load %arg5[%c0_8, %c0_9] : memref<512x512xf32, #tpu.memory_space<vmem>>, vector<512x512xf32>
    tpu.vector_store %arg5[%c0_8, %c0_9], %10 {strides = array<i32>} : memref<512x512xf32, #tpu.memory_space<vmem>>, vector<512x512xf32>,
    %cst_10 = arith.constant dense<0.000000e+00> : vector<512xf32>
    %12 = vector.multi_reduction <add>, %10, %cst_10 [0] : vector<512x512xf32> to vector<512xf32>
    %13 = vector.shape_cast %12 : vector<512xf32> to vector<1x1x512xf32>
    %c0_11 = arith.constant 0 : index
    %c0_12 = arith.constant 0 : index
    %c0_13 = arith.constant 0 : index
    %14 = vector.load %arg6[%c0_11, %c0_12, %c0_13] : memref<1x1x512xf32, #tpu.memory_space<vmem>>, vector<1x1x512xf32>
    tpu.vector_store %arg6[%c0_11, %c0_12, %c0_13], %13 {strides = array<i32>} : memref<1x1x512xf32, #tpu.memory_space<vmem>>, vector<1x1x512xf32>,
    %15 = arith.mulf %10, %10 : vector<512x512xf32>
    %cst_14 = arith.constant dense<0.000000e+00> : vector<512xf32>
    %16 = vector.multi_reduction <add>, %15, %cst_14 [0] : vector<512x512xf32> to vector<512xf32>
    %17 = vector.shape_cast %16 : vector<512xf32> to vector<1x1x512xf32>
    %c0_15 = arith.constant 0 : index
    %c0_16 = arith.constant 0 : index
    %c0_17 = arith.constant 0 : index
    %18 = vector.load %arg7[%c0_15, %c0_16, %c0_17] : memref<1x1x512xf32, #tpu.memory_space<vmem>>, vector<1x1x512xf32>
    tpu.vector_store %arg7[%c0_15, %c0_16, %c0_17], %17 {strides = array<i32>} : memref<1x1x512xf32, #tpu.memory_space<vmem>>, vector<1x1x512xf32>,
    return
  }
  func.func @transform_0(%arg0: i32) -> (i32, i32) {
    %c0_i32 = arith.constant 0 : i32
    %c0_i32_0 = arith.constant 0 : i32
    %c0_i32_1 = arith.constant 0 : i32
    return %c0_i32, %c0_i32_0 : i32, i32
  }
  func.func @transform_1(%arg0: i32) -> (i32, i32) {
    %c0_i32 = arith.constant 0 : i32
    %c0_i32_0 = arith.constant 0 : i32
    %c0_i32_1 = arith.constant 0 : i32
    return %c0_i32, %c0_i32_0 : i32, i32
  }
  func.func @transform_2(%arg0: i32) -> (i32, i32) {
    %c0_i32 = arith.constant 0 : i32
    %c0_i32_0 = arith.constant 0 : i32
    return %arg0, %c0_i32 : i32, i32
  }
  func.func @transform_3(%arg0: i32) -> (i32, i32) {
    %c0_i32 = arith.constant 0 : i32
    %c0_i32_0 = arith.constant 0 : i32
    %c0_i32_1 = arith.constant 0 : i32
    return %c0_i32, %c0_i32_0 : i32, i32
  }
  func.func @transform_4(%arg0: i32) -> (i32, i32) {
    %c0_i32 = arith.constant 0 : i32
    %c0_i32_0 = arith.constant 0 : i32
    return %arg0, %c0_i32 : i32, i32
  }
  func.func @transform_5(%arg0: i32) -> (i32, i32, i32) {
    %c0_i32 = arith.constant 0 : i32
    %c0_i32_0 = arith.constant 0 : i32
    %c0_i32_1 = arith.constant 0 : i32
    return %arg0, %c0_i32, %c0_i32_0 : i32, i32, i32
  }
  func.func @transform_6(%arg0: i32) -> (i32, i32, i32) {
    %c0_i32 = arith.constant 0 : i32
    %c0_i32_0 = arith.constant 0 : i32
    %c0_i32_1 = arith.constant 0 : i32
    return %arg0, %c0_i32, %c0_i32_0 : i32, i32, i32
  }
}

module attributes {stable_mosaic.version = 11 : i64} {
  func.func @_bn_add_relu_kernel(%arg0: i32, %arg1: memref<1x512xf32, #tpu.memory_space<vmem>>, %arg2: memref<1x512xf32, #tpu.memory_space<vmem>>, %arg3: memref<512x512xf32, #tpu.memory_space<vmem>>, %arg4: memref<512x512xf32, #tpu.memory_space<vmem>>, %arg5: memref<512x512xf32, #tpu.memory_space<vmem>>) attributes {dimension_semantics = [#tpu.dimension_semantics<parallel>], iteration_bounds = array<i64: 1>, scalar_prefetch = 0 : i64, scratch_operands = 0 : i64, tpu.core_type = #tpu.core_type<tc>, window_params = [{pipeline_mode = #tpu.pipeline_mode<synchronous>, transform_indices = @transform_0, window_bounds = array<i64: 1, 512>}, {pipeline_mode = #tpu.pipeline_mode<synchronous>, transform_indices = @transform_1, window_bounds = array<i64: 1, 512>}, {transform_indices = @transform_2, window_bounds = array<i64: 512, 512>}, {transform_indices = @transform_3, window_bounds = array<i64: 512, 512>}, {transform_indices = @transform_4, window_bounds = array<i64: 512, 512>}]} {
    %c0 = arith.constant 0 : index
    %c0_0 = arith.constant 0 : index
    %0 = vector.load %arg3[%c0, %c0_0] : memref<512x512xf32, #tpu.memory_space<vmem>>, vector<512x512xf32>
    %c0_1 = arith.constant 0 : index
    %c0_2 = arith.constant 0 : index
    %1 = vector.load %arg1[%c0_1, %c0_2] : memref<1x512xf32, #tpu.memory_space<vmem>>, vector<1x512xf32>
    %2 = vector.broadcast %1 : vector<1x512xf32> to vector<512x512xf32>
    %3 = arith.mulf %0, %2 : vector<512x512xf32>
    %c0_3 = arith.constant 0 : index
    %c0_4 = arith.constant 0 : index
    %4 = vector.load %arg2[%c0_3, %c0_4] : memref<1x512xf32, #tpu.memory_space<vmem>>, vector<1x512xf32>
    %5 = vector.broadcast %4 : vector<1x512xf32> to vector<512x512xf32>
    %6 = arith.addf %3, %5 : vector<512x512xf32>
    %c0_5 = arith.constant 0 : index
    %c0_6 = arith.constant 0 : index
    %7 = vector.load %arg4[%c0_5, %c0_6] : memref<512x512xf32, #tpu.memory_space<vmem>>, vector<512x512xf32>
    %8 = arith.addf %6, %7 : vector<512x512xf32>
    %cst = arith.constant 0.000000e+00 : f32
    %9 = vector.broadcast %cst : f32 to vector<512x512xf32>
    %10 = arith.maximumf %8, %9 : vector<512x512xf32>
    %c0_7 = arith.constant 0 : index
    %c0_8 = arith.constant 0 : index
    %11 = vector.load %arg5[%c0_7, %c0_8] : memref<512x512xf32, #tpu.memory_space<vmem>>, vector<512x512xf32>
    tpu.vector_store %arg5[%c0_7, %c0_8], %10 {strides = array<i32>} : memref<512x512xf32, #tpu.memory_space<vmem>>, vector<512x512xf32>,
    return
  }
  func.func @transform_0(%arg0: i32) -> (i32, i32) {
    %c0_i32 = arith.constant 0 : i32
    %c0_i32_0 = arith.constant 0 : i32
    %c0_i32_1 = arith.constant 0 : i32
    return %c0_i32, %c0_i32_0 : i32, i32
  }
  func.func @transform_1(%arg0: i32) -> (i32, i32) {
    %c0_i32 = arith.constant 0 : i32
    %c0_i32_0 = arith.constant 0 : i32
    %c0_i32_1 = arith.constant 0 : i32
    return %c0_i32, %c0_i32_0 : i32, i32
  }
  func.func @transform_2(%arg0: i32) -> (i32, i32) {
    %c0_i32 = arith.constant 0 : i32
    %c0_i32_0 = arith.constant 0 : i32
    return %arg0, %c0_i32 : i32, i32
  }
  func.func @transform_3(%arg0: i32) -> (i32, i32) {
    %c0_i32 = arith.constant 0 : i32
    %c0_i32_0 = arith.constant 0 : i32
    return %arg0, %c0_i32 : i32, i32
  }
  func.func @transform_4(%arg0: i32) -> (i32, i32) {
    %c0_i32 = arith.constant 0 : i32
    %c0_i32_0 = arith.constant 0 : i32
    return %arg0, %c0_i32 : i32, i32
  }
}

</mosaic_0001>

<bundles_post_ra>
// kernel: bottleneck_forward.4
= control target key start
LH: loop header
LB: loop body
LE: loop exit
PB: predicated region body
PF: predicated region fallthrough
CT: control target
= control target key end

     0   :  { %10 = vsyncpa [#allocation3], 0  ;;  %s1903_s0 = inlined_call_operand.hbm [shape: f32[512,512], index: 0, kind: input, shape index: {}]   ;;  %s1904_s1 = inlined_call_operand.hbm [shape: f32[512,128], index: 1, kind: input, shape index: {}]   ;;  %s1905_s2 = inlined_call_operand.vmem [shape: f32[512,128], index: 2, kind: output, shape index: {0}]   ;;  %s1906_s3 = inlined_call_operand.vmem [shape: f32[1,1,128], index: 3, kind: output, shape index: {1}]   ;;  %s1907_s4 = inlined_call_operand.vmem [shape: f32[1,1,128], index: 4, kind: output, shape index: {2}]  }
   0x1   :  { %11 = vsyncpa [#allocation5], 0  ;;  %s1465_s15 = smov [#allocation2]  }
   0x2   :  { %s17_s16 = sshll.u32 %s1465_s15, 4  ;;  %s18_s16 = int_to_ptr.vmem [resolvable:$true] %s17_s16 }
   0x3   :  { %s1429_s17 = scalar_lea.vmem %s18_s16, 32768  ;;  %p1434_p1 = scmp.lt.s32.totalorder %s18_s16, %s18_s16 }
   0x4   :  { %p1430_p0 = scmp.ne.s32.totalorder %s18_s16, %s1429_s17  ;;  %p1435_p2 = scmp.lt.s32.totalorder %s1429_s17, %s1429_s17 }
   0x6   :  { %p1436_p3 = por %p1435_p2, %p1434_p1 }
   0x8   :  { %p1437_p4 = pnand %p1436_p3, %p1430_p0 }
   0xa   :  { %1440 = shalt.err (!%p1437_p4)
}
   0xb   :  { %s1466_s18 = smov 512   ;;  %s1467_s19 = smov 32  }
   0xc   :  { %23 = dma.hbm_to_vmem [thread:$0]  %s1903_s0, 32768, %s18_s16, [#allocation3], %s1466_s18, %s1466_s18, %s1467_s19  }
   0xd   :  { %s1468_s22 = smov [#allocation4]  }
   0xe   :  { %s29_s23 = sshll.u32 %s1468_s22, 4  ;;  %s30_s23 = int_to_ptr.vmem [resolvable:$true] %s29_s23 }
   0xf   :  { %s1449_s24 = scalar_lea.vmem %s30_s23, 8192  ;;  %p1454_p6 = scmp.lt.s32.totalorder %s30_s23, %s30_s23 }
  0x10   :  { %p1450_p5 = scmp.ne.s32.totalorder %s30_s23, %s1449_s24  ;;  %p1455_p7 = scmp.lt.s32.totalorder %s1449_s24, %s1449_s24 }
  0x12   :  { %p1456_p8 = por %p1455_p7, %p1454_p6 }
  0x14   :  { %p1457_p9 = pnand %p1456_p8, %p1450_p5 }
  0x16   :  { %1460 = shalt.err (!%p1457_p9)
}
  0x17   :  { %s1469_s25 = smov 128   ;;  %s1470_s26 = smov 8  }
  0x18   :  { %35 = dma.hbm_to_vmem [thread:$0]  %s1904_s1, 8192, %s30_s23, [#allocation5], %s1469_s25, %s1469_s25, %s1470_s26  }
  0x19   :  { %1461 = dma.done.wait [#allocation3], 32768  }
  0x1a   :  { %1462 = vsyncadd [#allocation3], 4294934528 }
  0x1b   :  { %1463 = dma.done.wait [#allocation5], 8192  }
  0x1c   :  { %1464 = vsyncadd [#allocation5], 4294959104  ;;  %v1471_v0 = vmov 0.0   ;;  %v313_v1 = vld [vmem:[#allocation4 + $0x78] sm:$0xff]  ;;  %v312_v3 = vld [vmem:[#allocation4 + $0x70] sm:$0xff] }
  0x1d   :  { %362 = vmatprep.subr.mxu0 %v1471_v0  ;;  %747 = vmatprep.subr.mxu1 %v1471_v0  ;;  %v345_v2 = vld [vmem:[#allocation4 + $0x178] sm:$0xff]  ;;  %v344_v4 = vld [vmem:[#allocation4 + $0x170] sm:$0xff]  ;;  %v311_v5 = vld [vmem:[#allocation4 + $0x68] sm:$0xff] }
  0x1e   :  { %363 = vmatpush1.msra.mxu0 %v313_v1  ;;  %748 = vmatpush1.msra.mxu1 %v345_v2  ;;  %v343_v6 = vld [vmem:[#allocation4 + $0x168] sm:$0xff]  ;;  %v310_v7 = vld [vmem:[#allocation4 + $0x60] sm:$0xff]  ;;  %v309_v9 = vld [vmem:[#allocation4 + $0x58] sm:$0xff] }
  0x1f   :  { %364 = vmatprep.subr.mxu0 %v1471_v0  ;;  %749 = vmatprep.subr.mxu1 %v1471_v0  ;;  %v342_v8 = vld [vmem:[#allocation4 + $0x160] sm:$0xff]  ;;  %v341_v10 = vld [vmem:[#allocation4 + $0x158] sm:$0xff]  ;;  %v308_v11 = vld [vmem:[#allocation4 + $0x50] sm:$0xff] }
  0x20   :  { %365 = vmatpush1.msra.mxu0 %v312_v3  ;;  %750 = vmatpush1.msra.mxu1 %v344_v4  ;;  %v340_v12 = vld [vmem:[#allocation4 + $0x150] sm:$0xff]  ;;  %v307_v13 = vld [vmem:[#allocation4 + $0x48] sm:$0xff]  ;;  %v306_v15 = vld [vmem:[#allocation4 + $0x40] sm:$0xff] }
  0x21   :  { %366 = vmatprep.subr.mxu0 %v1471_v0  ;;  %751 = vmatprep.subr.mxu1 %v1471_v0  ;;  %v339_v14 = vld [vmem:[#allocation4 + $0x148] sm:$0xff]  ;;  %v338_v16 = vld [vmem:[#allocation4 + $0x140] sm:$0xff]  ;;  %v305_v17 = vld [vmem:[#allocation4 + $0x38] sm:$0xff] }
  0x22   :  { %367 = vmatpush1.msra.mxu0 %v311_v5  ;;  %752 = vmatpush1.msra.mxu1 %v343_v6  ;;  %v337_v18 = vld [vmem:[#allocation4 + $0x138] sm:$0xff]  ;;  %v304_v19 = vld [vmem:[#allocation4 + $0x30] sm:$0xff]  ;;  %v303_v21 = vld [vmem:[#allocation4 + $0x28] sm:$0xff] }
  0x23   :  { %368 = vmatprep.subr.mxu0 %v1471_v0  ;;  %753 = vmatprep.subr.mxu1 %v1471_v0  ;;  %v336_v20 = vld [vmem:[#allocation4 + $0x130] sm:$0xff]  ;;  %v335_v22 = vld [vmem:[#allocation4 + $0x128] sm:$0xff]  ;;  %v302_v23 = vld [vmem:[#allocation4 + $0x20] sm:$0xff] }
  0x24   :  { %369 = vmatpush1.msra.mxu0 %v310_v7  ;;  %754 = vmatpush1.msra.mxu1 %v342_v8  ;;  %v334_v24 = vld [vmem:[#allocation4 + $0x120] sm:$0xff]  ;;  %v301_v25 = vld [vmem:[#allocation4 + $0x18] sm:$0xff]  ;;  %v300_v27 = vld [vmem:[#allocation4 + $0x10] sm:$0xff] }
  0x25   :  { %370 = vmatprep.subr.mxu0 %v1471_v0  ;;  %755 = vmatprep.subr.mxu1 %v1471_v0  ;;  %v333_v26 = vld [vmem:[#allocation4 + $0x118] sm:$0xff]  ;;  %v332_v28 = vld [vmem:[#allocation4 + $0x110] sm:$0xff]  ;;  %v299_v29 = vld [vmem:[#allocation4 + $0x8] sm:$0xff] }
  0x26   :  { %371 = vmatpush1.msra.mxu0 %v309_v9  ;;  %756 = vmatpush1.msra.mxu1 %v341_v10  ;;  %v331_v30 = vld [vmem:[#allocation4 + $0x108] sm:$0xff]  ;;  %v298_v31 = vld [vmem:[#allocation4] sm:$0xff]  ;;  %v329_v33 = vld [vmem:[#allocation4 + $0xf8] sm:$0xff] }
  0x27   :  { %372 = vmatprep.subr.mxu0 %v1471_v0  ;;  %757 = vmatprep.subr.mxu1 %v1471_v0  ;;  %v330_v32 = vld [vmem:[#allocation4 + $0x100] sm:$0xff]  ;;  %v361_v34 = vld [vmem:[#allocation4 + $0x1f8] sm:$0xff]  ;;  %v328_v35 = vld [vmem:[#allocation4 + $0xf0] sm:$0xff] }
  0x28   :  { %373 = vmatpush1.msra.mxu0 %v308_v11  ;;  %758 = vmatpush1.msra.mxu1 %v340_v12  ;;  %v360_v36 = vld [vmem:[#allocation4 + $0x1f0] sm:$0xff]  ;;  %v327_v37 = vld [vmem:[#allocation4 + $0xe8] sm:$0xff]  ;;  %v326_v39 = vld [vmem:[#allocation4 + $0xe0] sm:$0xff] }
  0x29   :  { %374 = vmatprep.subr.mxu0 %v1471_v0  ;;  %759 = vmatprep.subr.mxu1 %v1471_v0  ;;  %v359_v38 = vld [vmem:[#allocation4 + $0x1e8] sm:$0xff]  ;;  %v358_v40 = vld [vmem:[#allocation4 + $0x1e0] sm:$0xff]  ;;  %v325_v41 = vld [vmem:[#allocation4 + $0xd8] sm:$0xff] }
  0x2a   :  { %375 = vmatpush1.msra.mxu0 %v307_v13  ;;  %760 = vmatpush1.msra.mxu1 %v339_v14  ;;  %v357_v42 = vld [vmem:[#allocation4 + $0x1d8] sm:$0xff]  ;;  %v324_v43 = vld [vmem:[#allocation4 + $0xd0] sm:$0xff]  ;;  %v323_v45 = vld [vmem:[#allocation4 + $0xc8] sm:$0xff] }
  0x2b   :  { %376 = vmatprep.subr.mxu0 %v1471_v0  ;;  %761 = vmatprep.subr.mxu1 %v1471_v0  ;;  %v356_v44 = vld [vmem:[#allocation4 + $0x1d0] sm:$0xff]  ;;  %v355_v46 = vld [vmem:[#allocation4 + $0x1c8] sm:$0xff]  ;;  %v322_v47 = vld [vmem:[#allocation4 + $0xc0] sm:$0xff] }
  0x2c   :  { %377 = vmatpush1.msra.mxu0 %v306_v15  ;;  %762 = vmatpush1.msra.mxu1 %v338_v16  ;;  %v354_v48 = vld [vmem:[#allocation4 + $0x1c0] sm:$0xff]  ;;  %v321_v49 = vld [vmem:[#allocation4 + $0xb8] sm:$0xff]  ;;  %v320_v51 = vld [vmem:[#allocation4 + $0xb0] sm:$0xff] }
  0x2d   :  { %378 = vmatprep.subr.mxu0 %v1471_v0  ;;  %763 = vmatprep.subr.mxu1 %v1471_v0  ;;  %v353_v50 = vld [vmem:[#allocation4 + $0x1b8] sm:$0xff]  ;;  %v352_v52 = vld [vmem:[#allocation4 + $0x1b0] sm:$0xff]  ;;  %v319_v53 = vld [vmem:[#allocation4 + $0xa8] sm:$0xff] }
  0x2e   :  { %379 = vmatpush1.msra.mxu0 %v305_v17  ;;  %764 = vmatpush1.msra.mxu1 %v337_v18  ;;  %v351_v54 = vld [vmem:[#allocation4 + $0x1a8] sm:$0xff]  ;;  %v318_v55 = vld [vmem:[#allocation4 + $0xa0] sm:$0xff]  ;;  %v317_v57 = vld [vmem:[#allocation4 + $0x98] sm:$0xff] }
  0x2f   :  { %380 = vmatprep.subr.mxu0 %v1471_v0  ;;  %765 = vmatprep.subr.mxu1 %v1471_v0  ;;  %v350_v56 = vld [vmem:[#allocation4 + $0x1a0] sm:$0xff]  ;;  %v349_v58 = vld [vmem:[#allocation4 + $0x198] sm:$0xff]  ;;  %v316_v59 = vld [vmem:[#allocation4 + $0x90] sm:$0xff] }
  0x30   :  { %381 = vmatpush1.msra.mxu0 %v304_v19  ;;  %766 = vmatpush1.msra.mxu1 %v336_v20  ;;  %v348_v60 = vld [vmem:[#allocation4 + $0x190] sm:$0xff]  ;;  %v315_v61 = vld [vmem:[#allocation4 + $0x88] sm:$0xff]  ;;  %v314_v63 = vld [vmem:[#allocation4 + $0x80] sm:$0xff] }
  0x31   :  { %382 = vmatprep.subr.mxu0 %v1471_v0  ;;  %767 = vmatprep.subr.mxu1 %v1471_v0  ;;  %v347_v62 = vld [vmem:[#allocation4 + $0x188] sm:$0xff]  ;;  %v346_v2 = vld [vmem:[#allocation4 + $0x180] sm:$0xff]  ;;  %v45_v3 = vld [vmem:[#allocation2 + $0x18] sm:$0xff] }
  0x32   :  { %383 = vmatpush1.msra.mxu0 %v303_v21  ;;  %768 = vmatpush1.msra.mxu1 %v335_v22  ;;  %v43_v1 = vld [vmem:[#allocation2 + $0x8] sm:$0xff]  ;;  %v42_v4 = vld [vmem:[#allocation2] sm:$0xff]  ;;  %v44_v5 = vld [vmem:[#allocation2 + $0x10] sm:$0xff] }
  0x33   :  { %384 = vmatprep.subr.mxu0 %v1471_v0  ;;  %769 = vmatprep.subr.mxu1 %v1471_v0  ;;  %v47_v6 = vld [vmem:[#allocation2 + $0x28] sm:$0xff]  ;;  %v49_v7 = vld [vmem:[#allocation2 + $0x38] sm:$0xff]  ;;  %v46_v8 = vld [vmem:[#allocation2 + $0x20] sm:$0xff] }
  0x34   :  { %385 = vmatpush1.msra.mxu0 %v302_v23  ;;  %770 = vmatpush1.msra.mxu1 %v334_v24  ;;  %v48_v9 = vld [vmem:[#allocation2 + $0x30] sm:$0xff]  ;;  %v51_v10 = vld [vmem:[#allocation2 + $0x48] sm:$0xff]  ;;  %v53_v11 = vld [vmem:[#allocation2 + $0x58] sm:$0xff] }
  0x35   :  { %386 = vmatprep.subr.mxu0 %v1471_v0  ;;  %771 = vmatprep.subr.mxu1 %v1471_v0  ;;  %v52_v12 = vld [vmem:[#allocation2 + $0x50] sm:$0xff]  ;;  %v55_v13 = vld [vmem:[#allocation2 + $0x68] sm:$0xff]  ;;  %v57_v14 = vld [vmem:[#allocation2 + $0x78] sm:$0xff] }
  0x36   :  { %387 = vmatpush1.msra.mxu0 %v301_v25  ;;  %772 = vmatpush1.msra.mxu1 %v333_v26  ;;  %v54_v15 = vld [vmem:[#allocation2 + $0x60] sm:$0xff]  ;;  %v56_v16 = vld [vmem:[#allocation2 + $0x70] sm:$0xff]  ;;  %v59_v17 = vld [vmem:[#allocation2 + $0x88] sm:$0xff] }
  0x37   :  { %388 = vmatprep.subr.mxu0 %v1471_v0  ;;  %773 = vmatprep.subr.mxu1 %v1471_v0  ;;  %v61_v18 = vld [vmem:[#allocation2 + $0x98] sm:$0xff]  ;;  %v58_v19 = vld [vmem:[#allocation2 + $0x80] sm:$0xff]  ;;  %v60_v20 = vld [vmem:[#allocation2 + $0x90] sm:$0xff] }
  0x38   :  { %389 = vmatpush1.msra.mxu0 %v300_v27  ;;  %774 = vmatpush1.msra.mxu1 %v332_v28  ;;  %v63_v21 = vld [vmem:[#allocation2 + $0xa8] sm:$0xff]  ;;  %v65_v22 = vld [vmem:[#allocation2 + $0xb8] sm:$0xff]  ;;  %v62_v23 = vld [vmem:[#allocation2 + $0xa0] sm:$0xff] }
  0x39   :  { %390 = vmatprep.subr.mxu0 %v1471_v0  ;;  %775 = vmatprep.subr.mxu1 %v1471_v0  ;;  %v64_v24 = vld [vmem:[#allocation2 + $0xb0] sm:$0xff]  ;;  %v67_v25 = vld [vmem:[#allocation2 + $0xc8] sm:$0xff]  ;;  %v69_v26 = vld [vmem:[#allocation2 + $0xd8] sm:$0xff] }
  0x3a   :  { %391 = vmatpush1.msra.mxu0 %v299_v29  ;;  %776 = vmatpush1.msra.mxu1 %v331_v30  ;;  %v66_v27 = vld [vmem:[#allocation2 + $0xc0] sm:$0xff]  ;;  %v68_v28 = vld [vmem:[#allocation2 + $0xd0] sm:$0xff]  ;;  %v71_v29 = vld [vmem:[#allocation2 + $0xe8] sm:$0xff] }
  0x3b   :  { %392 = vmatprep.subr.mxu0 %v1471_v0  ;;  %777 = vmatprep.subr.mxu1 %v1471_v0  ;;  %v73_v30 = vld [vmem:[#allocation2 + $0xf8] sm:$0xff] }
  0x3c   :  { %393 = vmatpush1.msra.mxu0 %v298_v31  ;;  %778 = vmatpush1.msra.mxu1 %v330_v32  ;;  %v70_v31 = vld [vmem:[#allocation2 + $0xe0] sm:$0xff]  ;;  %v72_v32 = vld [vmem:[#allocation2 + $0xf0] sm:$0xff] }
  0x3d   :  { %394 = vmatprep.subr.mxu0 %v1471_v0  ;;  %779 = vmatprep.subr.mxu1 %v1471_v0 }
  0x3e   :  { %395 = vmatpush2.msra.mxu0 %v329_v33  ;;  %780 = vmatpush2.msra.mxu1 %v361_v34  ;;  %v75_v33 = vld [vmem:[#allocation2 + $0x108] sm:$0xff]  ;;  %v77_v34 = vld [vmem:[#allocation2 + $0x118] sm:$0xff] }
  0x3f   :  { %396 = vmatprep.subr.mxu0 %v1471_v0  ;;  %781 = vmatprep.subr.mxu1 %v1471_v0 }
  0x40   :  { %397 = vmatpush2.msra.mxu0 %v328_v35  ;;  %782 = vmatpush2.msra.mxu1 %v360_v36  ;;  %v74_v35 = vld [vmem:[#allocation2 + $0x100] sm:$0xff]  ;;  %v76_v36 = vld [vmem:[#allocation2 + $0x110] sm:$0xff] }
  0x41   :  { %398 = vmatprep.subr.mxu0 %v1471_v0  ;;  %783 = vmatprep.subr.mxu1 %v1471_v0 }
  0x42   :  { %399 = vmatpush2.msra.mxu0 %v327_v37  ;;  %784 = vmatpush2.msra.mxu1 %v359_v38  ;;  %v79_v37 = vld [vmem:[#allocation2 + $0x128] sm:$0xff]  ;;  %v81_v38 = vld [vmem:[#allocation2 + $0x138] sm:$0xff] }
  0x43   :  { %400 = vmatprep.subr.mxu0 %v1471_v0  ;;  %785 = vmatprep.subr.mxu1 %v1471_v0 }
  0x44   :  { %401 = vmatpush2.msra.mxu0 %v326_v39  ;;  %786 = vmatpush2.msra.mxu1 %v358_v40  ;;  %v78_v39 = vld [vmem:[#allocation2 + $0x120] sm:$0xff]  ;;  %v80_v40 = vld [vmem:[#allocation2 + $0x130] sm:$0xff] }
  0x45   :  { %402 = vmatprep.subr.mxu0 %v1471_v0  ;;  %787 = vmatprep.subr.mxu1 %v1471_v0 }
  0x46   :  { %403 = vmatpush2.msra.mxu0 %v325_v41  ;;  %788 = vmatpush2.msra.mxu1 %v357_v42  ;;  %v83_v41 = vld [vmem:[#allocation2 + $0x148] sm:$0xff]  ;;  %v85_v42 = vld [vmem:[#allocation2 + $0x158] sm:$0xff] }
  0x47   :  { %404 = vmatprep.subr.mxu0 %v1471_v0  ;;  %789 = vmatprep.subr.mxu1 %v1471_v0 }
  0x48   :  { %405 = vmatpush2.msra.mxu0 %v324_v43  ;;  %790 = vmatpush2.msra.mxu1 %v356_v44  ;;  %v82_v43 = vld [vmem:[#allocation2 + $0x140] sm:$0xff]  ;;  %v84_v44 = vld [vmem:[#allocation2 + $0x150] sm:$0xff] }
  0x49   :  { %406 = vmatprep.subr.mxu0 %v1471_v0  ;;  %791 = vmatprep.subr.mxu1 %v1471_v0 }
  0x4a   :  { %407 = vmatpush2.msra.mxu0 %v323_v45  ;;  %792 = vmatpush2.msra.mxu1 %v355_v46  ;;  %v87_v45 = vld [vmem:[#allocation2 + $0x168] sm:$0xff]  ;;  %v89_v46 = vld [vmem:[#allocation2 + $0x178] sm:$0xff] }
  0x4b   :  { %408 = vmatprep.subr.mxu0 %v1471_v0  ;;  %793 = vmatprep.subr.mxu1 %v1471_v0 }
  0x4c   :  { %409 = vmatpush2.msra.mxu0 %v322_v47  ;;  %794 = vmatpush2.msra.mxu1 %v354_v48  ;;  %v86_v47 = vld [vmem:[#allocation2 + $0x160] sm:$0xff]  ;;  %v88_v48 = vld [vmem:[#allocation2 + $0x170] sm:$0xff] }
  0x4d   :  { %410 = vmatprep.subr.mxu0 %v1471_v0  ;;  %795 = vmatprep.subr.mxu1 %v1471_v0 }
  0x4e   :  { %411 = vmatpush2.msra.mxu0 %v321_v49  ;;  %796 = vmatpush2.msra.mxu1 %v353_v50  ;;  %v91_v49 = vld [vmem:[#allocation2 + $0x188] sm:$0xff]  ;;  %v93_v50 = vld [vmem:[#allocation2 + $0x198] sm:$0xff] }
  0x4f   :  { %412 = vmatprep.subr.mxu0 %v1471_v0  ;;  %797 = vmatprep.subr.mxu1 %v1471_v0 }
  0x50   :  { %413 = vmatpush2.msra.mxu0 %v320_v51  ;;  %798 = vmatpush2.msra.mxu1 %v352_v52  ;;  %v90_v51 = vld [vmem:[#allocation2 + $0x180] sm:$0xff]  ;;  %v92_v52 = vld [vmem:[#allocation2 + $0x190] sm:$0xff] }
  0x51   :  { %414 = vmatprep.subr.mxu0 %v1471_v0  ;;  %799 = vmatprep.subr.mxu1 %v1471_v0 }
  0x52   :  { %415 = vmatpush2.msra.mxu0 %v319_v53  ;;  %800 = vmatpush2.msra.mxu1 %v351_v54  ;;  %v95_v53 = vld [vmem:[#allocation2 + $0x1a8] sm:$0xff]  ;;  %v97_v54 = vld [vmem:[#allocation2 + $0x1b8] sm:$0xff] }
  0x53   :  { %416 = vmatprep.subr.mxu0 %v1471_v0  ;;  %801 = vmatprep.subr.mxu1 %v1471_v0 }
  0x54   :  { %417 = vmatpush2.msra.mxu0 %v318_v55  ;;  %802 = vmatpush2.msra.mxu1 %v350_v56  ;;  %v94_v55 = vld [vmem:[#allocation2 + $0x1a0] sm:$0xff]  ;;  %v96_v56 = vld [vmem:[#allocation2 + $0x1b0] sm:$0xff] }
  0x55   :  { %418 = vmatprep.subr.mxu0 %v1471_v0  ;;  %803 = vmatprep.subr.mxu1 %v1471_v0 }
  0x56   :  { %419 = vmatpush2.msra.mxu0 %v317_v57  ;;  %804 = vmatpush2.msra.mxu1 %v349_v58  ;;  %v99_v57 = vld [vmem:[#allocation2 + $0x1c8] sm:$0xff]  ;;  %v101_v58 = vld [vmem:[#allocation2 + $0x1d8] sm:$0xff] }
  0x57   :  { %420 = vmatprep.subr.mxu0 %v1471_v0  ;;  %805 = vmatprep.subr.mxu1 %v1471_v0 }
  0x58   :  { %421 = vmatpush2.msra.mxu0 %v316_v59  ;;  %806 = vmatpush2.msra.mxu1 %v348_v60  ;;  %v98_v59 = vld [vmem:[#allocation2 + $0x1c0] sm:$0xff]  ;;  %v100_v60 = vld [vmem:[#allocation2 + $0x1d0] sm:$0xff] }
  0x59   :  { %422 = vmatprep.subr.mxu0 %v1471_v0  ;;  %807 = vmatprep.subr.mxu1 %v1471_v0 }
  0x5a   :  { %423 = vmatpush2.msra.mxu0 %v315_v61  ;;  %808 = vmatpush2.msra.mxu1 %v347_v62  ;;  %v103_v61 = vld [vmem:[#allocation2 + $0x1e8] sm:$0xff]  ;;  %v105_v62 = vld [vmem:[#allocation2 + $0x1f8] sm:$0xff] }
  0x5b   :  { %424 = vmatprep.subr.mxu0 %v1471_v0  ;;  %809 = vmatprep.subr.mxu1 %v1471_v0  ;;  %v50_v0 = vld [vmem:[#allocation2 + $0x40] sm:$0xff] }
  0x5c   :  { %425 = vmatpush2.msra.mxu0 %v314_v63  ;;  %426 = vmatprep.mubr.f32.mxu0 %v43_v1  ;;  %v102_v63 = vld [vmem:[#allocation2 + $0x1e0] sm:$0xff]  ;;  %v104_v1 = vld [vmem:[#allocation2 + $0x1f0] sm:$0xff] }
  0x5d   :  { %810 = vmatpush2.msra.mxu1 %v346_v2  ;;  %811 = vmatprep.mubr.f32.mxu1 %v45_v3  ;;  %v107_v2 = vld [vmem:[#allocation2 + $0x208] sm:$0xff]  ;;  %v109_v3 = vld [vmem:[#allocation2 + $0x218] sm:$0xff] }
  0x5e   :  { %427 = vmatmul.mubr.f32.vlgmr.msra.gmra.mxu0 %v42_v4  ;;  %812 = vmatmul.mubr.f32.vlgmr.msra.gmra.mxu1 %v44_v5  ;;  %v106_v4 = vld [vmem:[#allocation2 + $0x200] sm:$0xff]  ;;  %v108_v5 = vld [vmem:[#allocation2 + $0x210] sm:$0xff] }
  0x5f   :  { %431 = vmatprep.mubr.f32.mxu0 %v47_v6  ;;  %816 = vmatprep.mubr.f32.mxu1 %v49_v7  ;;  %v111_v6 = vld [vmem:[#allocation2 + $0x228] sm:$0xff]  ;;  %v113_v7 = vld [vmem:[#allocation2 + $0x238] sm:$0xff] }
  0x62   :  { %432 = vmatmul.mubr.f32.gmra.mxu0 %v46_v8  ;;  %817 = vmatmul.mubr.f32.gmra.mxu1 %v48_v9  ;;  %v110_v8 = vld [vmem:[#allocation2 + $0x220] sm:$0xff]  ;;  %v112_v9 = vld [vmem:[#allocation2 + $0x230] sm:$0xff] }
  0x63   :  { %436 = vmatprep.mubr.f32.mxu0 %v51_v10  ;;  %821 = vmatprep.mubr.f32.mxu1 %v53_v11  ;;  %v115_v10 = vld [vmem:[#allocation2 + $0x248] sm:$0xff]  ;;  %v117_v11 = vld [vmem:[#allocation2 + $0x258] sm:$0xff] }
  0x66   :  { %437 = vmatmul.mubr.f32.gmra.mxu0 %v50_v0  ;;  %822 = vmatmul.mubr.f32.gmra.mxu1 %v52_v12  ;;  %v114_v0 = vld [vmem:[#allocation2 + $0x240] sm:$0xff]  ;;  %v116_v12 = vld [vmem:[#allocation2 + $0x250] sm:$0xff] }
  0x67   :  { %441 = vmatprep.mubr.f32.mxu0 %v55_v13  ;;  %826 = vmatprep.mubr.f32.mxu1 %v57_v14  ;;  %v119_v13 = vld [vmem:[#allocation2 + $0x268] sm:$0xff]  ;;  %v121_v14 = vld [vmem:[#allocation2 + $0x278] sm:$0xff] }
  0x6a   :  { %442 = vmatmul.mubr.f32.gmra.mxu0 %v54_v15  ;;  %827 = vmatmul.mubr.f32.gmra.mxu1 %v56_v16  ;;  %v118_v15 = vld [vmem:[#allocation2 + $0x260] sm:$0xff]  ;;  %v120_v16 = vld [vmem:[#allocation2 + $0x270] sm:$0xff] }
  0x6b   :  { %446 = vmatprep.mubr.f32.mxu0 %v59_v17  ;;  %831 = vmatprep.mubr.f32.mxu1 %v61_v18  ;;  %v123_v17 = vld [vmem:[#allocation2 + $0x288] sm:$0xff]  ;;  %v125_v18 = vld [vmem:[#allocation2 + $0x298] sm:$0xff] }
  0x6e   :  { %447 = vmatmul.mubr.f32.gmra.mxu0 %v58_v19  ;;  %832 = vmatmul.mubr.f32.gmra.mxu1 %v60_v20  ;;  %v122_v19 = vld [vmem:[#allocation2 + $0x280] sm:$0xff]  ;;  %v124_v20 = vld [vmem:[#allocation2 + $0x290] sm:$0xff] }
  0x6f   :  { %451 = vmatprep.mubr.f32.mxu0 %v63_v21  ;;  %836 = vmatprep.mubr.f32.mxu1 %v65_v22  ;;  %v127_v21 = vld [vmem:[#allocation2 + $0x2a8] sm:$0xff]  ;;  %v129_v22 = vld [vmem:[#allocation2 + $0x2b8] sm:$0xff] }
  0x72   :  { %452 = vmatmul.mubr.f32.gmra.mxu0 %v62_v23  ;;  %837 = vmatmul.mubr.f32.gmra.mxu1 %v64_v24  ;;  %v126_v23 = vld [vmem:[#allocation2 + $0x2a0] sm:$0xff]  ;;  %v128_v24 = vld [vmem:[#allocation2 + $0x2b0] sm:$0xff] }
  0x73   :  { %456 = vmatprep.mubr.f32.mxu0 %v67_v25  ;;  %841 = vmatprep.mubr.f32.mxu1 %v69_v26  ;;  %v131_v25 = vld [vmem:[#allocation2 + $0x2c8] sm:$0xff]  ;;  %v133_v26 = vld [vmem:[#allocation2 + $0x2d8] sm:$0xff] }
  0x76   :  { %457 = vmatmul.mubr.f32.gmra.mxu0 %v66_v27  ;;  %842 = vmatmul.mubr.f32.gmra.mxu1 %v68_v28  ;;  %v130_v27 = vld [vmem:[#allocation2 + $0x2c0] sm:$0xff]  ;;  %v132_v28 = vld [vmem:[#allocation2 + $0x2d0] sm:$0xff] }
  0x77   :  { %461 = vmatprep.mubr.f32.mxu0 %v71_v29  ;;  %846 = vmatprep.mubr.f32.mxu1 %v73_v30  ;;  %v135_v29 = vld [vmem:[#allocation2 + $0x2e8] sm:$0xff]  ;;  %v137_v30 = vld [vmem:[#allocation2 + $0x2f8] sm:$0xff] }
  0x7a   :  { %462 = vmatmul.mubr.f32.gmra.mxu0 %v70_v31  ;;  %847 = vmatmul.mubr.f32.gmra.mxu1 %v72_v32  ;;  %v134_v31 = vld [vmem:[#allocation2 + $0x2e0] sm:$0xff]  ;;  %v136_v32 = vld [vmem:[#allocation2 + $0x2f0] sm:$0xff] }
  0x7b   :  { %466 = vmatprep.mubr.f32.mxu0 %v75_v33  ;;  %851 = vmatprep.mubr.f32.mxu1 %v77_v34  ;;  %v139_v33 = vld [vmem:[#allocation2 + $0x308] sm:$0xff]  ;;  %v141_v34 = vld [vmem:[#allocation2 + $0x318] sm:$0xff] }
  0x7e   :  { %467 = vmatmul.mubr.f32.gmra.mxu0 %v74_v35  ;;  %852 = vmatmul.mubr.f32.gmra.mxu1 %v76_v36  ;;  %v138_v35 = vld [vmem:[#allocation2 + $0x300] sm:$0xff]  ;;  %v140_v36 = vld [vmem:[#allocation2 + $0x310] sm:$0xff] }
  0x7f   :  { %471 = vmatprep.mubr.f32.mxu0 %v79_v37  ;;  %856 = vmatprep.mubr.f32.mxu1 %v81_v38  ;;  %v143_v37 = vld [vmem:[#allocation2 + $0x328] sm:$0xff]  ;;  %v145_v38 = vld [vmem:[#allocation2 + $0x338] sm:$0xff] }
  0x82   :  { %472 = vmatmul.mubr.f32.gmra.mxu0 %v78_v39  ;;  %857 = vmatmul.mubr.f32.gmra.mxu1 %v80_v40  ;;  %v142_v39 = vld [vmem:[#allocation2 + $0x320] sm:$0xff]  ;;  %v144_v40 = vld [vmem:[#allocation2 + $0x330] sm:$0xff] }
  0x83   :  { %476 = vmatprep.mubr.f32.mxu0 %v83_v41  ;;  %861 = vmatprep.mubr.f32.mxu1 %v85_v42  ;;  %v147_v41 = vld [vmem:[#allocation2 + $0x348] sm:$0xff]  ;;  %v149_v42 = vld [vmem:[#allocation2 + $0x358] sm:$0xff] }
  0x86   :  { %477 = vmatmul.mubr.f32.gmra.mxu0 %v82_v43  ;;  %862 = vmatmul.mubr.f32.gmra.mxu1 %v84_v44  ;;  %v146_v43 = vld [vmem:[#allocation2 + $0x340] sm:$0xff]  ;;  %v148_v44 = vld [vmem:[#allocation2 + $0x350] sm:$0xff] }
  0x87   :  { %481 = vmatprep.mubr.f32.mxu0 %v87_v45  ;;  %866 = vmatprep.mubr.f32.mxu1 %v89_v46  ;;  %v151_v45 = vld [vmem:[#allocation2 + $0x368] sm:$0xff]  ;;  %v153_v46 = vld [vmem:[#allocation2 + $0x378] sm:$0xff] }
  0x8a   :  { %482 = vmatmul.mubr.f32.gmra.mxu0 %v86_v47  ;;  %867 = vmatmul.mubr.f32.gmra.mxu1 %v88_v48  ;;  %v150_v47 = vld [vmem:[#allocation2 + $0x360] sm:$0xff]  ;;  %v152_v48 = vld [vmem:[#allocation2 + $0x370] sm:$0xff] }
  0x8b   :  { %486 = vmatprep.mubr.f32.mxu0 %v91_v49  ;;  %871 = vmatprep.mubr.f32.mxu1 %v93_v50  ;;  %v155_v49 = vld [vmem:[#allocation2 + $0x388] sm:$0xff]  ;;  %v157_v50 = vld [vmem:[#allocation2 + $0x398] sm:$0xff] }
  0x8e   :  { %487 = vmatmul.mubr.f32.gmra.mxu0 %v90_v51  ;;  %872 = vmatmul.mubr.f32.gmra.mxu1 %v92_v52  ;;  %v154_v51 = vld [vmem:[#allocation2 + $0x380] sm:$0xff]  ;;  %v156_v52 = vld [vmem:[#allocation2 + $0x390] sm:$0xff] }
  0x8f   :  { %491 = vmatprep.mubr.f32.mxu0 %v95_v53  ;;  %876 = vmatprep.mubr.f32.mxu1 %v97_v54  ;;  %v159_v53 = vld [vmem:[#allocation2 + $0x3a8] sm:$0xff]  ;;  %v161_v54 = vld [vmem:[#allocation2 + $0x3b8] sm:$0xff] }
  0x92   :  { %492 = vmatmul.mubr.f32.gmra.mxu0 %v94_v55  ;;  %877 = vmatmul.mubr.f32.gmra.mxu1 %v96_v56  ;;  %v158_v55 = vld [vmem:[#allocation2 + $0x3a0] sm:$0xff]  ;;  %v160_v56 = vld [vmem:[#allocation2 + $0x3b0] sm:$0xff] }
  0x93   :  { %496 = vmatprep.mubr.f32.mxu0 %v99_v57  ;;  %881 = vmatprep.mubr.f32.mxu1 %v101_v58  ;;  %v163_v57 = vld [vmem:[#allocation2 + $0x3c8] sm:$0xff]  ;;  %v165_v58 = vld [vmem:[#allocation2 + $0x3d8] sm:$0xff] }
  0x96   :  { %497 = vmatmul.mubr.f32.gmra.mxu0 %v98_v59  ;;  %882 = vmatmul.mubr.f32.gmra.mxu1 %v100_v60  ;;  %v162_v59 = vld [vmem:[#allocation2 + $0x3c0] sm:$0xff]  ;;  %v164_v60 = vld [vmem:[#allocation2 + $0x3d0] sm:$0xff] }
  0x97   :  { %501 = vmatprep.mubr.f32.mxu0 %v103_v61  ;;  %886 = vmatprep.mubr.f32.mxu1 %v105_v62  ;;  %v167_v61 = vld [vmem:[#allocation2 + $0x3e8] sm:$0xff]  ;;  %v169_v62 = vld [vmem:[#allocation2 + $0x3f8] sm:$0xff] }
  0x9a   :  { %502 = vmatmul.mubr.f32.gmra.mxu0 %v102_v63  ;;  %887 = vmatmul.mubr.f32.gmra.mxu1 %v104_v1  ;;  %v166_v63 = vld [vmem:[#allocation2 + $0x3e0] sm:$0xff]  ;;  %v168_v1 = vld [vmem:[#allocation2 + $0x3f0] sm:$0xff] }
  0x9b   :  { %506 = vmatprep.mubr.f32.mxu0 %v107_v2  ;;  %891 = vmatprep.mubr.f32.mxu1 %v109_v3  ;;  %v171_v2 = vld [vmem:[#allocation2 + $0x408] sm:$0xff]  ;;  %v173_v3 = vld [vmem:[#allocation2 + $0x418] sm:$0xff] }
  0x9e   :  { %507 = vmatmul.mubr.f32.gmra.mxu0 %v106_v4  ;;  %892 = vmatmul.mubr.f32.gmra.mxu1 %v108_v5  ;;  %v170_v4 = vld [vmem:[#allocation2 + $0x400] sm:$0xff]  ;;  %v172_v5 = vld [vmem:[#allocation2 + $0x410] sm:$0xff] }
  0x9f   :  { %511 = vmatprep.mubr.f32.mxu0 %v111_v6  ;;  %896 = vmatprep.mubr.f32.mxu1 %v113_v7  ;;  %v175_v6 = vld [vmem:[#allocation2 + $0x428] sm:$0xff]  ;;  %v177_v7 = vld [vmem:[#allocation2 + $0x438] sm:$0xff] }
  0xa2   :  { %512 = vmatmul.mubr.f32.gmra.mxu0 %v110_v8  ;;  %897 = vmatmul.mubr.f32.gmra.mxu1 %v112_v9  ;;  %v174_v8 = vld [vmem:[#allocation2 + $0x420] sm:$0xff]  ;;  %v176_v9 = vld [vmem:[#allocation2 + $0x430] sm:$0xff] }
  0xa3   :  { %516 = vmatprep.mubr.f32.mxu0 %v115_v10  ;;  %901 = vmatprep.mubr.f32.mxu1 %v117_v11  ;;  %v179_v10 = vld [vmem:[#allocation2 + $0x448] sm:$0xff]  ;;  %v181_v11 = vld [vmem:[#allocation2 + $0x458] sm:$0xff] }
  0xa6   :  { %517 = vmatmul.mubr.f32.gmra.mxu0 %v114_v0  ;;  %902 = vmatmul.mubr.f32.gmra.mxu1 %v116_v12  ;;  %v178_v0 = vld [vmem:[#allocation2 + $0x440] sm:$0xff]  ;;  %v180_v12 = vld [vmem:[#allocation2 + $0x450] sm:$0xff] }
  0xa7   :  { %521 = vmatprep.mubr.f32.mxu0 %v119_v13  ;;  %906 = vmatprep.mubr.f32.mxu1 %v121_v14  ;;  %v183_v13 = vld [vmem:[#allocation2 + $0x468] sm:$0xff]  ;;  %v185_v14 = vld [vmem:[#allocation2 + $0x478] sm:$0xff] }
  0xaa   :  { %522 = vmatmul.mubr.f32.gmra.mxu0 %v118_v15  ;;  %907 = vmatmul.mubr.f32.gmra.mxu1 %v120_v16  ;;  %v182_v15 = vld [vmem:[#allocation2 + $0x460] sm:$0xff]  ;;  %v184_v16 = vld [vmem:[#allocation2 + $0x470] sm:$0xff] }
  0xab   :  { %526 = vmatprep.mubr.f32.mxu0 %v123_v17  ;;  %911 = vmatprep.mubr.f32.mxu1 %v125_v18  ;;  %v187_v17 = vld [vmem:[#allocation2 + $0x488] sm:$0xff]  ;;  %v189_v18 = vld [vmem:[#allocation2 + $0x498] sm:$0xff] }
  0xae   :  { %527 = vmatmul.mubr.f32.gmra.mxu0 %v122_v19  ;;  %912 = vmatmul.mubr.f32.gmra.mxu1 %v124_v20  ;;  %v186_v19 = vld [vmem:[#allocation2 + $0x480] sm:$0xff]  ;;  %v188_v20 = vld [vmem:[#allocation2 + $0x490] sm:$0xff] }
  0xaf   :  { %531 = vmatprep.mubr.f32.mxu0 %v127_v21  ;;  %916 = vmatprep.mubr.f32.mxu1 %v129_v22  ;;  %v191_v21 = vld [vmem:[#allocation2 + $0x4a8] sm:$0xff]  ;;  %v193_v22 = vld [vmem:[#allocation2 + $0x4b8] sm:$0xff] }
  0xb2   :  { %532 = vmatmul.mubr.f32.gmra.mxu0 %v126_v23  ;;  %917 = vmatmul.mubr.f32.gmra.mxu1 %v128_v24  ;;  %v190_v23 = vld [vmem:[#allocation2 + $0x4a0] sm:$0xff]  ;;  %v192_v24 = vld [vmem:[#allocation2 + $0x4b0] sm:$0xff] }
  0xb3   :  { %536 = vmatprep.mubr.f32.mxu0 %v131_v25  ;;  %921 = vmatprep.mubr.f32.mxu1 %v133_v26  ;;  %v195_v25 = vld [vmem:[#allocation2 + $0x4c8] sm:$0xff]  ;;  %v197_v26 = vld [vmem:[#allocation2 + $0x4d8] sm:$0xff] }
  0xb6   :  { %537 = vmatmul.mubr.f32.gmra.mxu0 %v130_v27  ;;  %922 = vmatmul.mubr.f32.gmra.mxu1 %v132_v28  ;;  %v194_v27 = vld [vmem:[#allocation2 + $0x4c0] sm:$0xff]  ;;  %v196_v28 = vld [vmem:[#allocation2 + $0x4d0] sm:$0xff] }
  0xb7   :  { %541 = vmatprep.mubr.f32.mxu0 %v135_v29  ;;  %926 = vmatprep.mubr.f32.mxu1 %v137_v30  ;;  %v199_v29 = vld [vmem:[#allocation2 + $0x4e8] sm:$0xff]  ;;  %v201_v30 = vld [vmem:[#allocation2 + $0x4f8] sm:$0xff] }
  0xba   :  { %542 = vmatmul.mubr.f32.gmra.mxu0 %v134_v31  ;;  %927 = vmatmul.mubr.f32.gmra.mxu1 %v136_v32  ;;  %v198_v31 = vld [vmem:[#allocation2 + $0x4e0] sm:$0xff]  ;;  %v200_v32 = vld [vmem:[#allocation2 + $0x4f0] sm:$0xff] }
  0xbb   :  { %546 = vmatprep.mubr.f32.mxu0 %v139_v33  ;;  %931 = vmatprep.mubr.f32.mxu1 %v141_v34  ;;  %v203_v33 = vld [vmem:[#allocation2 + $0x508] sm:$0xff]  ;;  %v205_v34 = vld [vmem:[#allocation2 + $0x518] sm:$0xff] }
  0xbe   :  { %547 = vmatmul.mubr.f32.gmra.mxu0 %v138_v35  ;;  %932 = vmatmul.mubr.f32.gmra.mxu1 %v140_v36  ;;  %v202_v35 = vld [vmem:[#allocation2 + $0x500] sm:$0xff]  ;;  %v204_v36 = vld [vmem:[#allocation2 + $0x510] sm:$0xff] }
  0xbf   :  { %551 = vmatprep.mubr.f32.mxu0 %v143_v37  ;;  %936 = vmatprep.mubr.f32.mxu1 %v145_v38  ;;  %v207_v37 = vld [vmem:[#allocation2 + $0x528] sm:$0xff]  ;;  %v209_v38 = vld [vmem:[#allocation2 + $0x538] sm:$0xff] }
  0xc2   :  { %552 = vmatmul.mubr.f32.gmra.mxu0 %v142_v39  ;;  %937 = vmatmul.mubr.f32.gmra.mxu1 %v144_v40  ;;  %v206_v39 = vld [vmem:[#allocation2 + $0x520] sm:$0xff]  ;;  %v208_v40 = vld [vmem:[#allocation2 + $0x530] sm:$0xff] }
  0xc3   :  { %556 = vmatprep.mubr.f32.mxu0 %v147_v41  ;;  %941 = vmatprep.mubr.f32.mxu1 %v149_v42  ;;  %v211_v41 = vld [vmem:[#allocation2 + $0x548] sm:$0xff]  ;;  %v213_v42 = vld [vmem:[#allocation2 + $0x558] sm:$0xff] }
  0xc6   :  { %557 = vmatmul.mubr.f32.gmra.mxu0 %v146_v43  ;;  %942 = vmatmul.mubr.f32.gmra.mxu1 %v148_v44  ;;  %v210_v43 = vld [vmem:[#allocation2 + $0x540] sm:$0xff]  ;;  %v212_v44 = vld [vmem:[#allocation2 + $0x550] sm:$0xff] }
  0xc7   :  { %561 = vmatprep.mubr.f32.mxu0 %v151_v45  ;;  %946 = vmatprep.mubr.f32.mxu1 %v153_v46  ;;  %v215_v45 = vld [vmem:[#allocation2 + $0x568] sm:$0xff]  ;;  %v217_v46 = vld [vmem:[#allocation2 + $0x578] sm:$0xff] }
  0xca   :  { %562 = vmatmul.mubr.f32.gmra.mxu0 %v150_v47  ;;  %947 = vmatmul.mubr.f32.gmra.mxu1 %v152_v48  ;;  %v214_v47 = vld [vmem:[#allocation2 + $0x560] sm:$0xff]  ;;  %v216_v48 = vld [vmem:[#allocation2 + $0x570] sm:$0xff] }
  0xcb   :  { %566 = vmatprep.mubr.f32.mxu0 %v155_v49  ;;  %951 = vmatprep.mubr.f32.mxu1 %v157_v50  ;;  %v219_v49 = vld [vmem:[#allocation2 + $0x588] sm:$0xff]  ;;  %v221_v50 = vld [vmem:[#allocation2 + $0x598] sm:$0xff] }
  0xce   :  { %567 = vmatmul.mubr.f32.gmra.mxu0 %v154_v51  ;;  %952 = vmatmul.mubr.f32.gmra.mxu1 %v156_v52  ;;  %v218_v51 = vld [vmem:[#allocation2 + $0x580] sm:$0xff]  ;;  %v220_v52 = vld [vmem:[#allocation2 + $0x590] sm:$0xff] }
  0xcf   :  { %571 = vmatprep.mubr.f32.mxu0 %v159_v53  ;;  %956 = vmatprep.mubr.f32.mxu1 %v161_v54  ;;  %v223_v53 = vld [vmem:[#allocation2 + $0x5a8] sm:$0xff]  ;;  %v225_v54 = vld [vmem:[#allocation2 + $0x5b8] sm:$0xff] }
  0xd2   :  { %572 = vmatmul.mubr.f32.gmra.mxu0 %v158_v55  ;;  %957 = vmatmul.mubr.f32.gmra.mxu1 %v160_v56  ;;  %v222_v55 = vld [vmem:[#allocation2 + $0x5a0] sm:$0xff]  ;;  %v224_v56 = vld [vmem:[#allocation2 + $0x5b0] sm:$0xff] }
  0xd3   :  { %576 = vmatprep.mubr.f32.mxu0 %v163_v57  ;;  %961 = vmatprep.mubr.f32.mxu1 %v165_v58  ;;  %v227_v57 = vld [vmem:[#allocation2 + $0x5c8] sm:$0xff]  ;;  %v229_v58 = vld [vmem:[#allocation2 + $0x5d8] sm:$0xff] }
  0xd6   :  { %577 = vmatmul.mubr.f32.gmra.mxu0 %v162_v59  ;;  %962 = vmatmul.mubr.f32.gmra.mxu1 %v164_v60  ;;  %v226_v59 = vld [vmem:[#allocation2 + $0x5c0] sm:$0xff]  ;;  %v228_v60 = vld [vmem:[#allocation2 + $0x5d0] sm:$0xff] }
  0xd7   :  { %581 = vmatprep.mubr.f32.mxu0 %v167_v61  ;;  %966 = vmatprep.mubr.f32.mxu1 %v169_v62  ;;  %v231_v61 = vld [vmem:[#allocation2 + $0x5e8] sm:$0xff]  ;;  %v233_v62 = vld [vmem:[#allocation2 + $0x5f8] sm:$0xff] }
  0xda   :  { %582 = vmatmul.mubr.f32.gmra.mxu0 %v166_v63  ;;  %967 = vmatmul.mubr.f32.gmra.mxu1 %v168_v1  ;;  %v230_v63 = vld [vmem:[#allocation2 + $0x5e0] sm:$0xff]  ;;  %v232_v1 = vld [vmem:[#allocation2 + $0x5f0] sm:$0xff] }
  0xdb   :  { %586 = vmatprep.mubr.f32.mxu0 %v171_v2  ;;  %971 = vmatprep.mubr.f32.mxu1 %v173_v3  ;;  %v235_v2 = vld [vmem:[#allocation2 + $0x608] sm:$0xff]  ;;  %v237_v3 = vld [vmem:[#allocation2 + $0x618] sm:$0xff] }
  0xde   :  { %587 = vmatmul.mubr.f32.gmra.mxu0 %v170_v4  ;;  %972 = vmatmul.mubr.f32.gmra.mxu1 %v172_v5  ;;  %v234_v4 = vld [vmem:[#allocation2 + $0x600] sm:$0xff]  ;;  %v236_v5 = vld [vmem:[#allocation2 + $0x610] sm:$0xff] }
  0xdf   :  { %591 = vmatprep.mubr.f32.mxu0 %v175_v6  ;;  %976 = vmatprep.mubr.f32.mxu1 %v177_v7  ;;  %v239_v6 = vld [vmem:[#allocation2 + $0x628] sm:$0xff]  ;;  %v241_v7 = vld [vmem:[#allocation2 + $0x638] sm:$0xff] }
  0xe2   :  { %592 = vmatmul.mubr.f32.gmra.mxu0 %v174_v8  ;;  %977 = vmatmul.mubr.f32.gmra.mxu1 %v176_v9 }
  0xe3   :  { %596 = vmatprep.mubr.f32.mxu0 %v179_v10  ;;  %981 = vmatprep.mubr.f32.mxu1 %v181_v11  ;;  %v238_v11 = vld [vmem:[#allocation2 + $0x620] sm:$0xff] }
  0xe6   :  { %597 = vmatmul.mubr.f32.gmra.mxu0 %v178_v0  ;;  %982 = vmatmul.mubr.f32.gmra.mxu1 %v180_v12  ;;  %v240_v0 = vld [vmem:[#allocation2 + $0x630] sm:$0xff] }
  0xe7   :  { %601 = vmatprep.mubr.f32.mxu0 %v183_v13  ;;  %986 = vmatprep.mubr.f32.mxu1 %v185_v14  ;;  %v243_v14 = vld [vmem:[#allocation2 + $0x648] sm:$0xff] }
  0xea   :  { %602 = vmatmul.mubr.f32.gmra.mxu0 %v182_v15  ;;  %987 = vmatmul.mubr.f32.gmra.mxu1 %v184_v16  ;;  %v245_v15 = vld [vmem:[#allocation2 + $0x658] sm:$0xff] }
  0xeb   :  { %606 = vmatprep.mubr.f32.mxu0 %v187_v17  ;;  %991 = vmatprep.mubr.f32.mxu1 %v189_v18 }
  0xee   :  { %607 = vmatmul.mubr.f32.gmra.mxu0 %v186_v19  ;;  %992 = vmatmul.mubr.f32.gmra.mxu1 %v188_v20  ;;  %v242_v19 = vld [vmem:[#allocation2 + $0x640] sm:$0xff]  ;;  %v244_v20 = vld [vmem:[#allocation2 + $0x650] sm:$0xff] }
  0xef   :  { %611 = vmatprep.mubr.f32.mxu0 %v191_v21  ;;  %996 = vmatprep.mubr.f32.mxu1 %v193_v22 }
  0xf2   :  { %612 = vmatmul.mubr.f32.gmra.mxu0 %v190_v23  ;;  %997 = vmatmul.mubr.f32.gmra.mxu1 %v192_v24  ;;  %v247_v23 = vld [vmem:[#allocation2 + $0x668] sm:$0xff]  ;;  %v249_v24 = vld [vmem:[#allocation2 + $0x678] sm:$0xff] }
  0xf3   :  { %616 = vmatprep.mubr.f32.mxu0 %v195_v25  ;;  %1001 = vmatprep.mubr.f32.mxu1 %v197_v26 }
  0xf6   :  { %617 = vmatmul.mubr.f32.gmra.mxu0 %v194_v27  ;;  %1002 = vmatmul.mubr.f32.gmra.mxu1 %v196_v28 }
  0xf7   :  { %621 = vmatprep.mubr.f32.mxu0 %v199_v29  ;;  %1006 = vmatprep.mubr.f32.mxu1 %v201_v30 }
  0xfa   :  { %622 = vmatmul.mubr.f32.gmra.mxu0 %v198_v31  ;;  %1007 = vmatmul.mubr.f32.gmra.mxu1 %v200_v32  ;;  %v246_v32 = vld [vmem:[#allocation2 + $0x660] sm:$0xff] }
  0xfb   :  { %626 = vmatprep.mubr.f32.mxu0 %v203_v33  ;;  %1011 = vmatprep.mubr.f32.mxu1 %v205_v34  ;;  %v248_v33 = vld [vmem:[#allocation2 + $0x670] sm:$0xff] }
  0xfe   :  { %627 = vmatmul.mubr.f32.gmra.mxu0 %v202_v35  ;;  %1012 = vmatmul.mubr.f32.gmra.mxu1 %v204_v36  ;;  %v251_v36 = vld [vmem:[#allocation2 + $0x688] sm:$0xff] }
  0xff   :  { %631 = vmatprep.mubr.f32.mxu0 %v207_v37  ;;  %1016 = vmatprep.mubr.f32.mxu1 %v209_v38  ;;  %v253_v37 = vld [vmem:[#allocation2 + $0x698] sm:$0xff] }
 0x102   :  { %632 = vmatmul.mubr.f32.gmra.mxu0 %v206_v39  ;;  %1017 = vmatmul.mubr.f32.gmra.mxu1 %v208_v40 }
 0x103   :  { %636 = vmatprep.mubr.f32.mxu0 %v211_v41  ;;  %1021 = vmatprep.mubr.f32.mxu1 %v213_v42 }
 0x106   :  { %637 = vmatmul.mubr.f32.gmra.mxu0 %v210_v43  ;;  %1022 = vmatmul.mubr.f32.gmra.mxu1 %v212_v44  ;;  %v250_v44 = vld [vmem:[#allocation2 + $0x680] sm:$0xff] }
 0x107   :  { %641 = vmatprep.mubr.f32.mxu0 %v215_v45  ;;  %1026 = vmatprep.mubr.f32.mxu1 %v217_v46  ;;  %v252_v45 = vld [vmem:[#allocation2 + $0x690] sm:$0xff] }
 0x10a   :  { %642 = vmatmul.mubr.f32.gmra.mxu0 %v214_v47  ;;  %1027 = vmatmul.mubr.f32.gmra.mxu1 %v216_v48  ;;  %v255_v48 = vld [vmem:[#allocation2 + $0x6a8] sm:$0xff] }
 0x10b   :  { %646 = vmatprep.mubr.f32.mxu0 %v219_v49  ;;  %1031 = vmatprep.mubr.f32.mxu1 %v221_v50  ;;  %v257_v49 = vld [vmem:[#allocation2 + $0x6b8] sm:$0xff] }
 0x10e   :  { %647 = vmatmul.mubr.f32.gmra.mxu0 %v218_v51  ;;  %1032 = vmatmul.mubr.f32.gmra.mxu1 %v220_v52 }
 0x10f   :  { %651 = vmatprep.mubr.f32.mxu0 %v223_v53  ;;  %1036 = vmatprep.mubr.f32.mxu1 %v225_v54 }
 0x112   :  { %652 = vmatmul.mubr.f32.gmra.mxu0 %v222_v55  ;;  %1037 = vmatmul.mubr.f32.gmra.mxu1 %v224_v56  ;;  %v254_v56 = vld [vmem:[#allocation2 + $0x6a0] sm:$0xff] }
 0x113   :  { %656 = vmatprep.mubr.f32.mxu0 %v227_v57  ;;  %1041 = vmatprep.mubr.f32.mxu1 %v229_v58  ;;  %v256_v57 = vld [vmem:[#allocation2 + $0x6b0] sm:$0xff] }
 0x116   :  { %657 = vmatmul.mubr.f32.gmra.mxu0 %v226_v59  ;;  %1042 = vmatmul.mubr.f32.gmra.mxu1 %v228_v60  ;;  %v259_v60 = vld [vmem:[#allocation2 + $0x6c8] sm:$0xff] }
 0x117   :  { %661 = vmatprep.mubr.f32.mxu0 %v231_v61  ;;  %1046 = vmatprep.mubr.f32.mxu1 %v233_v62  ;;  %v261_v61 = vld [vmem:[#allocation2 + $0x6d8] sm:$0xff] }
 0x11a   :  { %662 = vmatmul.mubr.f32.gmra.mxu0 %v230_v63  ;;  %1047 = vmatmul.mubr.f32.gmra.mxu1 %v232_v1 }
 0x11b   :  { %666 = vmatprep.mubr.f32.mxu0 %v235_v2  ;;  %1051 = vmatprep.mubr.f32.mxu1 %v237_v3 }
 0x11e   :  { %v428_v8 = vpop.f32.mrf.mxu0  ;;  %667 = vmatmul.mubr.f32.gmra.mxu0 %v234_v4  ;;  %v813_v9 = vpop.f32.mrf.mxu1  ;;  %1052 = vmatmul.mubr.f32.gmra.mxu1 %v236_v5  ;;  %v258_v5 = vld [vmem:[#allocation2 + $0x6c0] sm:$0xff] }
 0x11f   :  { %v814_v10 = vadd.f32 %v813_v9, %v428_v8  ;;  %671 = vmatprep.mubr.f32.mxu0 %v239_v6  ;;  %1056 = vmatprep.mubr.f32.mxu1 %v241_v7  ;;  %v260_v6 = vld [vmem:[#allocation2 + $0x6d0] sm:$0xff]  ;;  %v263_v9 = vld [vmem:[#allocation2 + $0x6e8] sm:$0xff] }
 0x120   :  { %v430_v12 = vpop.f32.mrf.mxu0  ;;  %v815_v13 = vpop.f32.mrf.mxu1 }
 0x121   :  { %1132 = vst [vmem:[%s1905_s2] sm:$0xff] %v814_v10  ;;  %v1266_v25 = vmul.f32 %v814_v10, %v814_v10 }
 0x122   :  { %v433_v16 = vpop.f32.mrf.mxu0  ;;  %672 = vmatmul.mubr.f32.gmra.mxu0 %v238_v11  ;;  %v818_v17 = vpop.f32.mrf.mxu1  ;;  %1057 = vmatmul.mubr.f32.gmra.mxu1 %v240_v0 }
 0x123   :  { %v819_v18 = vadd.f32 %v818_v17, %v433_v16  ;;  %676 = vmatprep.mubr.f32.mxu0 %v243_v14  ;;  %1061 = vmatprep.mubr.f32.mxu1 %v245_v15  ;;  %v262_v16 = vld [vmem:[#allocation2 + $0x6e0] sm:$0xff]  ;;  %v264_v17 = vld [vmem:[#allocation2 + $0x6f0] sm:$0xff] }
 0x124   :  { %v435_v21 = vpop.f32.mrf.mxu0  ;;  %v820_v22 = vpop.f32.mrf.mxu1 }
 0x125   :  { %1133 = vst [vmem:[%s1905_s2 + $0x8] sm:$0xff] %v819_v18  ;;  %v1196_v26 = vadd.f32 %v819_v18, %v814_v10  ;;  %v1267_v27 = vmul.f32 %v819_v18, %v819_v18  ;;  %v265_v10 = vld [vmem:[#allocation2 + $0x6f8] sm:$0xff] }
 0x126   :  { %v438_v28 = vpop.f32.mrf.mxu0  ;;  %677 = vmatmul.mubr.f32.gmra.mxu0 %v242_v19  ;;  %v823_v29 = vpop.f32.mrf.mxu1  ;;  %1062 = vmatmul.mubr.f32.gmra.mxu1 %v244_v20  ;;  %v267_v20 = vld [vmem:[#allocation2 + $0x708] sm:$0xff]  ;;  %v269_v21 = vld [vmem:[#allocation2 + $0x718] sm:$0xff] }
 0x127   :  { %v1330_v30 = vadd.f32 %v1267_v27, %v1266_v25  ;;  %v824_v31 = vadd.f32 %v823_v29, %v438_v28  ;;  %681 = vmatprep.mubr.f32.mxu0 %v247_v23  ;;  %1066 = vmatprep.mubr.f32.mxu1 %v249_v24  ;;  %v266_v28 = vld [vmem:[#allocation2 + $0x700] sm:$0xff]  ;;  %v268_v29 = vld [vmem:[#allocation2 + $0x710] sm:$0xff] }
 0x128   :  { %v440_v34 = vpop.f32.mrf.mxu0  ;;  %v825_v35 = vpop.f32.mrf.mxu1 }
 0x129   :  { %1134 = vst [vmem:[%s1905_s2 + $0x10] sm:$0xff] %v824_v31  ;;  %v1197_v38 = vadd.f32 %v1196_v26, %v824_v31  ;;  %v1268_v39 = vmul.f32 %v824_v31, %v824_v31 }
 0x12a   :  { %v443_v40 = vpop.f32.mrf.mxu0  ;;  %682 = vmatmul.mubr.f32.gmra.mxu0 %v246_v32  ;;  %v828_v41 = vpop.f32.mrf.mxu1  ;;  %1067 = vmatmul.mubr.f32.gmra.mxu1 %v248_v33  ;;  %v271_v32 = vld [vmem:[#allocation2 + $0x728] sm:$0xff]  ;;  %v273_v33 = vld [vmem:[#allocation2 + $0x738] sm:$0xff] }
 0x12b   :  { %v1331_v42 = vadd.f32 %v1330_v30, %v1268_v39  ;;  %v829_v43 = vadd.f32 %v828_v41, %v443_v40  ;;  %686 = vmatprep.mubr.f32.mxu0 %v251_v36  ;;  %1071 = vmatprep.mubr.f32.mxu1 %v253_v37  ;;  %v270_v40 = vld [vmem:[#allocation2 + $0x720] sm:$0xff]  ;;  %v272_v41 = vld [vmem:[#allocation2 + $0x730] sm:$0xff] }
 0x12c   :  { %v445_v46 = vpop.f32.mrf.mxu0  ;;  %v830_v47 = vpop.f32.mrf.mxu1 }
 0x12d   :  { %1135 = vst [vmem:[%s1905_s2 + $0x18] sm:$0xff] %v829_v43  ;;  %v1198_v50 = vadd.f32 %v1197_v38, %v829_v43  ;;  %v1269_v51 = vmul.f32 %v829_v43, %v829_v43 }
 0x12e   :  { %v448_v52 = vpop.f32.mrf.mxu0  ;;  %687 = vmatmul.mubr.f32.gmra.mxu0 %v250_v44  ;;  %v833_v53 = vpop.f32.mrf.mxu1  ;;  %1072 = vmatmul.mubr.f32.gmra.mxu1 %v252_v45  ;;  %v275_v44 = vld [vmem:[#allocation2 + $0x748] sm:$0xff]  ;;  %v277_v45 = vld [vmem:[#allocation2 + $0x758] sm:$0xff] }
 0x12f   :  { %v1332_v54 = vadd.f32 %v1331_v42, %v1269_v51  ;;  %v834_v55 = vadd.f32 %v833_v53, %v448_v52  ;;  %691 = vmatprep.mubr.f32.mxu0 %v255_v48  ;;  %1076 = vmatprep.mubr.f32.mxu1 %v257_v49  ;;  %v274_v52 = vld [vmem:[#allocation2 + $0x740] sm:$0xff]  ;;  %v276_v53 = vld [vmem:[#allocation2 + $0x750] sm:$0xff] }
 0x130   :  { %v450_v58 = vpop.f32.mrf.mxu0  ;;  %v835_v59 = vpop.f32.mrf.mxu1 }
 0x131   :  { %1136 = vst [vmem:[%s1905_s2 + $0x20] sm:$0xff] %v834_v55  ;;  %v1199_v62 = vadd.f32 %v1198_v50, %v834_v55  ;;  %v1270_v63 = vmul.f32 %v834_v55, %v834_v55 }
 0x132   :  { %v453_v1 = vpop.f32.mrf.mxu0  ;;  %692 = vmatmul.mubr.f32.gmra.mxu0 %v254_v56  ;;  %v838_v2 = vpop.f32.mrf.mxu1  ;;  %1077 = vmatmul.mubr.f32.gmra.mxu1 %v256_v57  ;;  %v279_v56 = vld [vmem:[#allocation2 + $0x768] sm:$0xff]  ;;  %v281_v57 = vld [vmem:[#allocation2 + $0x778] sm:$0xff] }
 0x133   :  { %v1333_v3 = vadd.f32 %v1332_v54, %v1270_v63  ;;  %v839_v4 = vadd.f32 %v838_v2, %v453_v1  ;;  %696 = vmatprep.mubr.f32.mxu0 %v259_v60  ;;  %1081 = vmatprep.mubr.f32.mxu1 %v261_v61  ;;  %v278_v1 = vld [vmem:[#allocation2 + $0x760] sm:$0xff]  ;;  %v280_v2 = vld [vmem:[#allocation2 + $0x770] sm:$0xff] }
 0x134   :  { %v455_v7 = vpop.f32.mrf.mxu0  ;;  %v840_v8 = vpop.f32.mrf.mxu1 }
 0x135   :  { %1137 = vst [vmem:[%s1905_s2 + $0x28] sm:$0xff] %v839_v4  ;;  %v1200_v11 = vadd.f32 %v1199_v62, %v839_v4  ;;  %v1271_v0 = vmul.f32 %v839_v4, %v839_v4 }
 0x136   :  { %v458_v12 = vpop.f32.mrf.mxu0  ;;  %697 = vmatmul.mubr.f32.gmra.mxu0 %v258_v5  ;;  %v843_v13 = vpop.f32.mrf.mxu1  ;;  %1082 = vmatmul.mubr.f32.gmra.mxu1 %v260_v6  ;;  %v283_v5 = vld [vmem:[#allocation2 + $0x788] sm:$0xff]  ;;  %v285_v6 = vld [vmem:[#allocation2 + $0x798] sm:$0xff] }
 0x137   :  { %v1334_v14 = vadd.f32 %v1333_v3, %v1271_v0  ;;  %v844_v15 = vadd.f32 %v843_v13, %v458_v12  ;;  %701 = vmatprep.mubr.f32.mxu0 %v263_v9  ;;  %1086 = vmatprep.mubr.f32.mxu1 %v265_v10  ;;  %v282_v12 = vld [vmem:[#allocation2 + $0x780] sm:$0xff]  ;;  %v284_v13 = vld [vmem:[#allocation2 + $0x790] sm:$0xff] }
 0x138   :  { %v460_v18 = vpop.f32.mrf.mxu0  ;;  %v845_v19 = vpop.f32.mrf.mxu1 }
 0x139   :  { %1138 = vst [vmem:[%s1905_s2 + $0x30] sm:$0xff] %v844_v15  ;;  %v1201_v22 = vadd.f32 %v1200_v11, %v844_v15  ;;  %v1272_v23 = vmul.f32 %v844_v15, %v844_v15 }
 0x13a   :  { %v463_v24 = vpop.f32.mrf.mxu0  ;;  %702 = vmatmul.mubr.f32.gmra.mxu0 %v262_v16  ;;  %v848_v25 = vpop.f32.mrf.mxu1  ;;  %1087 = vmatmul.mubr.f32.gmra.mxu1 %v264_v17  ;;  %v287_v16 = vld [vmem:[#allocation2 + $0x7a8] sm:$0xff]  ;;  %v289_v17 = vld [vmem:[#allocation2 + $0x7b8] sm:$0xff] }
 0x13b   :  { %v1335_v26 = vadd.f32 %v1334_v14, %v1272_v23  ;;  %v849_v27 = vadd.f32 %v848_v25, %v463_v24  ;;  %706 = vmatprep.mubr.f32.mxu0 %v267_v20  ;;  %1091 = vmatprep.mubr.f32.mxu1 %v269_v21  ;;  %v286_v24 = vld [vmem:[#allocation2 + $0x7a0] sm:$0xff]  ;;  %v288_v25 = vld [vmem:[#allocation2 + $0x7b0] sm:$0xff] }
 0x13c   :  { %v465_v30 = vpop.f32.mrf.mxu0  ;;  %v850_v31 = vpop.f32.mrf.mxu1 }
 0x13d   :  { %1139 = vst [vmem:[%s1905_s2 + $0x38] sm:$0xff] %v849_v27  ;;  %v1202_v34 = vadd.f32 %v1201_v22, %v849_v27  ;;  %v1273_v35 = vmul.f32 %v849_v27, %v849_v27 }
 0x13e   :  { %v468_v36 = vpop.f32.mrf.mxu0  ;;  %707 = vmatmul.mubr.f32.gmra.mxu0 %v266_v28  ;;  %v853_v37 = vpop.f32.mrf.mxu1  ;;  %1092 = vmatmul.mubr.f32.gmra.mxu1 %v268_v29  ;;  %v291_v28 = vld [vmem:[#allocation2 + $0x7c8] sm:$0xff]  ;;  %v293_v29 = vld [vmem:[#allocation2 + $0x7d8] sm:$0xff] }
 0x13f   :  { %v1336_v38 = vadd.f32 %v1335_v26, %v1273_v35  ;;  %v854_v39 = vadd.f32 %v853_v37, %v468_v36  ;;  %711 = vmatprep.mubr.f32.mxu0 %v271_v32  ;;  %1096 = vmatprep.mubr.f32.mxu1 %v273_v33  ;;  %v290_v36 = vld [vmem:[#allocation2 + $0x7c0] sm:$0xff]  ;;  %v292_v37 = vld [vmem:[#allocation2 + $0x7d0] sm:$0xff] }
 0x140   :  { %v470_v42 = vpop.f32.mrf.mxu0  ;;  %v855_v43 = vpop.f32.mrf.mxu1 }
 0x141   :  { %1140 = vst [vmem:[%s1905_s2 + $0x40] sm:$0xff] %v854_v39  ;;  %v1203_v46 = vadd.f32 %v1202_v34, %v854_v39  ;;  %v1274_v47 = vmul.f32 %v854_v39, %v854_v39 }
 0x142   :  { %v473_v48 = vpop.f32.mrf.mxu0  ;;  %712 = vmatmul.mubr.f32.gmra.mxu0 %v270_v40  ;;  %v858_v49 = vpop.f32.mrf.mxu1  ;;  %1097 = vmatmul.mubr.f32.gmra.mxu1 %v272_v41  ;;  %v295_v40 = vld [vmem:[#allocation2 + $0x7e8] sm:$0xff]  ;;  %v297_v41 = vld [vmem:[#allocation2 + $0x7f8] sm:$0xff] }
 0x143   :  { %v1337_v50 = vadd.f32 %v1336_v38, %v1274_v47  ;;  %v859_v51 = vadd.f32 %v858_v49, %v473_v48  ;;  %716 = vmatprep.mubr.f32.mxu0 %v275_v44  ;;  %1101 = vmatprep.mubr.f32.mxu1 %v277_v45  ;;  %v294_v48 = vld [vmem:[#allocation2 + $0x7e0] sm:$0xff]  ;;  %v296_v49 = vld [vmem:[#allocation2 + $0x7f0] sm:$0xff] }
 0x144   :  { %v475_v54 = vpop.f32.mrf.mxu0  ;;  %v860_v55 = vpop.f32.mrf.mxu1 }
 0x145   :  { %1141 = vst [vmem:[%s1905_s2 + $0x48] sm:$0xff] %v859_v51  ;;  %v1204_v58 = vadd.f32 %v1203_v46, %v859_v51  ;;  %v1275_v59 = vmul.f32 %v859_v51, %v859_v51 }
 0x146   :  { %v478_v60 = vpop.f32.mrf.mxu0  ;;  %717 = vmatmul.mubr.f32.gmra.mxu0 %v274_v52  ;;  %v863_v61 = vpop.f32.mrf.mxu1  ;;  %1102 = vmatmul.mubr.f32.gmra.mxu1 %v276_v53 }
 0x147   :  { %v1338_v62 = vadd.f32 %v1337_v50, %v1275_v59  ;;  %v864_v63 = vadd.f32 %v863_v61, %v478_v60  ;;  %721 = vmatprep.mubr.f32.mxu0 %v279_v56  ;;  %1106 = vmatprep.mubr.f32.mxu1 %v281_v57 }
 0x148   :  { %v480_v3 = vpop.f32.mrf.mxu0  ;;  %v865_v4 = vpop.f32.mrf.mxu1 }
 0x149   :  { %1142 = vst [vmem:[%s1905_s2 + $0x50] sm:$0xff] %v864_v63  ;;  %v1205_v7 = vadd.f32 %v1204_v58, %v864_v63  ;;  %v1276_v8 = vmul.f32 %v864_v63, %v864_v63 }
 0x14a   :  { %v483_v9 = vpop.f32.mrf.mxu0  ;;  %722 = vmatmul.mubr.f32.gmra.mxu0 %v278_v1  ;;  %v868_v10 = vpop.f32.mrf.mxu1  ;;  %1107 = vmatmul.mubr.f32.gmra.mxu1 %v280_v2 }
 0x14b   :  { %v1339_v11 = vadd.f32 %v1338_v62, %v1276_v8  ;;  %v869_v0 = vadd.f32 %v868_v10, %v483_v9  ;;  %726 = vmatprep.mubr.f32.mxu0 %v283_v5  ;;  %1111 = vmatprep.mubr.f32.mxu1 %v285_v6 }
 0x14c   :  { %v485_v14 = vpop.f32.mrf.mxu0  ;;  %v870_v15 = vpop.f32.mrf.mxu1 }
 0x14d   :  { %1143 = vst [vmem:[%s1905_s2 + $0x58] sm:$0xff] %v869_v0  ;;  %v1206_v18 = vadd.f32 %v1205_v7, %v869_v0  ;;  %v1277_v19 = vmul.f32 %v869_v0, %v869_v0 }
 0x14e   :  { %v488_v20 = vpop.f32.mrf.mxu0  ;;  %727 = vmatmul.mubr.f32.gmra.mxu0 %v282_v12  ;;  %v873_v21 = vpop.f32.mrf.mxu1  ;;  %1112 = vmatmul.mubr.f32.gmra.mxu1 %v284_v13 }
 0x14f   :  { %v1340_v22 = vadd.f32 %v1339_v11, %v1277_v19  ;;  %v874_v23 = vadd.f32 %v873_v21, %v488_v20  ;;  %731 = vmatprep.mubr.f32.mxu0 %v287_v16  ;;  %1116 = vmatprep.mubr.f32.mxu1 %v289_v17 }
 0x150   :  { %v490_v26 = vpop.f32.mrf.mxu0  ;;  %v875_v27 = vpop.f32.mrf.mxu1 }
 0x151   :  { %1144 = vst [vmem:[%s1905_s2 + $0x60] sm:$0xff] %v874_v23  ;;  %v1207_v30 = vadd.f32 %v1206_v18, %v874_v23  ;;  %v1278_v31 = vmul.f32 %v874_v23, %v874_v23 }
 0x152   :  { %v493_v32 = vpop.f32.mrf.mxu0  ;;  %732 = vmatmul.mubr.f32.gmra.mxu0 %v286_v24  ;;  %v878_v33 = vpop.f32.mrf.mxu1  ;;  %1117 = vmatmul.mubr.f32.gmra.mxu1 %v288_v25 }
 0x153   :  { %v1341_v34 = vadd.f32 %v1340_v22, %v1278_v31  ;;  %v879_v35 = vadd.f32 %v878_v33, %v493_v32  ;;  %736 = vmatprep.mubr.f32.mxu0 %v291_v28  ;;  %1121 = vmatprep.mubr.f32.mxu1 %v293_v29 }
 0x154   :  { %v495_v38 = vpop.f32.mrf.mxu0  ;;  %v880_v39 = vpop.f32.mrf.mxu1 }
 0x155   :  { %1145 = vst [vmem:[%s1905_s2 + $0x68] sm:$0xff] %v879_v35  ;;  %v1208_v42 = vadd.f32 %v1207_v30, %v879_v35  ;;  %v1279_v43 = vmul.f32 %v879_v35, %v879_v35 }
 0x156   :  { %v498_v44 = vpop.f32.mrf.mxu0  ;;  %737 = vmatmul.mubr.f32.gmra.mxu0 %v290_v36  ;;  %v883_v45 = vpop.f32.mrf.mxu1  ;;  %1122 = vmatmul.mubr.f32.gmra.mxu1 %v292_v37 }
 0x157   :  { %v1342_v46 = vadd.f32 %v1341_v34, %v1279_v43  ;;  %v884_v47 = vadd.f32 %v883_v45, %v498_v44  ;;  %741 = vmatprep.mubr.f32.mxu0 %v295_v40  ;;  %1126 = vmatprep.mubr.f32.mxu1 %v297_v41 }
 0x158   :  { %v500_v50 = vpop.f32.mrf.mxu0  ;;  %v885_v51 = vpop.f32.mrf.mxu1 }
 0x159   :  { %1146 = vst [vmem:[%s1905_s2 + $0x70] sm:$0xff] %v884_v47  ;;  %v1209_v52 = vadd.f32 %v1208_v42, %v884_v47  ;;  %v1280_v53 = vmul.f32 %v884_v47, %v884_v47 }
 0x15a   :  { %v503_v54 = vpop.f32.mrf.mxu0  ;;  %742 = vmatmul.mubr.f32.gmra.mxu0 %v294_v48  ;;  %v888_v55 = vpop.f32.mrf.mxu1  ;;  %1127 = vmatmul.mubr.f32.gmra.mxu1 %v296_v49 }
 0x15b   :  { %v1343_v56 = vadd.f32 %v1342_v46, %v1280_v53  ;;  %v889_v57 = vadd.f32 %v888_v55, %v503_v54 }
 0x15c   :  { %v505_v58 = vpop.f32.mrf.mxu0  ;;  %v890_v59 = vpop.f32.mrf.mxu1 }
 0x15d   :  { %1147 = vst [vmem:[%s1905_s2 + $0x78] sm:$0xff] %v889_v57  ;;  %v1210_v60 = vadd.f32 %v1209_v52, %v889_v57  ;;  %v1281_v61 = vmul.f32 %v889_v57, %v889_v57 }
 0x15e   :  { %v508_v62 = vpop.f32.mrf.mxu0  ;;  %v893_v63 = vpop.f32.mrf.mxu1 }
 0x15f   :  { %v1344_v1 = vadd.f32 %v1343_v56, %v1281_v61  ;;  %v894_v2 = vadd.f32 %v893_v63, %v508_v62 }
 0x160   :  { %v510_v3 = vpop.f32.mrf.mxu0  ;;  %v895_v4 = vpop.f32.mrf.mxu1 }
 0x161   :  { %1148 = vst [vmem:[%s1905_s2 + $0x80] sm:$0xff] %v894_v2  ;;  %v1211_v5 = vadd.f32 %v1210_v60, %v894_v2  ;;  %v1282_v6 = vmul.f32 %v894_v2, %v894_v2 }
 0x162   :  { %v513_v7 = vpop.f32.mrf.mxu0  ;;  %v898_v8 = vpop.f32.mrf.mxu1 }
 0x163   :  { %v1345_v9 = vadd.f32 %v1344_v1, %v1282_v6  ;;  %v899_v10 = vadd.f32 %v898_v8, %v513_v7 }
 0x164   :  { %v515_v11 = vpop.f32.mrf.mxu0  ;;  %v900_v0 = vpop.f32.mrf.mxu1 }
 0x165   :  { %1149 = vst [vmem:[%s1905_s2 + $0x88] sm:$0xff] %v899_v10  ;;  %v1212_v12 = vadd.f32 %v1211_v5, %v899_v10  ;;  %v1283_v13 = vmul.f32 %v899_v10, %v899_v10 }
 0x166   :  { %v518_v14 = vpop.f32.mrf.mxu0  ;;  %v903_v15 = vpop.f32.mrf.mxu1 }
 0x167   :  { %v1346_v16 = vadd.f32 %v1345_v9, %v1283_v13  ;;  %v904_v17 = vadd.f32 %v903_v15, %v518_v14 }
 0x168   :  { %v520_v18 = vpop.f32.mrf.mxu0  ;;  %v905_v19 = vpop.f32.mrf.mxu1 }
 0x169   :  { %1150 = vst [vmem:[%s1905_s2 + $0x90] sm:$0xff] %v904_v17  ;;  %v1213_v20 = vadd.f32 %v1212_v12, %v904_v17  ;;  %v1284_v21 = vmul.f32 %v904_v17, %v904_v17 }
 0x16a   :  { %v523_v22 = vpop.f32.mrf.mxu0  ;;  %v908_v23 = vpop.f32.mrf.mxu1 }
 0x16b   :  { %v1347_v24 = vadd.f32 %v1346_v16, %v1284_v21  ;;  %v909_v25 = vadd.f32 %v908_v23, %v523_v22 }
 0x16c   :  { %v525_v26 = vpop.f32.mrf.mxu0  ;;  %v910_v27 = vpop.f32.mrf.mxu1 }
 0x16d   :  { %1151 = vst [vmem:[%s1905_s2 + $0x98] sm:$0xff] %v909_v25  ;;  %v1214_v28 = vadd.f32 %v1213_v20, %v909_v25  ;;  %v1285_v29 = vmul.f32 %v909_v25, %v909_v25 }
 0x16e   :  { %v528_v30 = vpop.f32.mrf.mxu0  ;;  %v913_v31 = vpop.f32.mrf.mxu1 }
 0x16f   :  { %v1348_v32 = vadd.f32 %v1347_v24, %v1285_v29  ;;  %v914_v33 = vadd.f32 %v913_v31, %v528_v30 }
 0x170   :  { %v530_v34 = vpop.f32.mrf.mxu0  ;;  %v915_v35 = vpop.f32.mrf.mxu1 }
 0x171   :  { %1152 = vst [vmem:[%s1905_s2 + $0xa0] sm:$0xff] %v914_v33  ;;  %v1215_v36 = vadd.f32 %v1214_v28, %v914_v33  ;;  %v1286_v37 = vmul.f32 %v914_v33, %v914_v33 }
 0x172   :  { %v533_v38 = vpop.f32.mrf.mxu0  ;;  %v918_v39 = vpop.f32.mrf.mxu1 }
 0x173   :  { %v1349_v40 = vadd.f32 %v1348_v32, %v1286_v37  ;;  %v919_v41 = vadd.f32 %v918_v39, %v533_v38 }
 0x174   :  { %v535_v42 = vpop.f32.mrf.mxu0  ;;  %v920_v43 = vpop.f32.mrf.mxu1 }
 0x175   :  { %1153 = vst [vmem:[%s1905_s2 + $0xa8] sm:$0xff] %v919_v41  ;;  %v1216_v44 = vadd.f32 %v1215_v36, %v919_v41  ;;  %v1287_v45 = vmul.f32 %v919_v41, %v919_v41 }
 0x176   :  { %v538_v46 = vpop.f32.mrf.mxu0  ;;  %v923_v47 = vpop.f32.mrf.mxu1 }
 0x177   :  { %v1350_v48 = vadd.f32 %v1349_v40, %v1287_v45  ;;  %v924_v49 = vadd.f32 %v923_v47, %v538_v46 }
 0x178   :  { %v540_v50 = vpop.f32.mrf.mxu0  ;;  %v925_v51 = vpop.f32.mrf.mxu1 }
 0x179   :  { %1154 = vst [vmem:[%s1905_s2 + $0xb0] sm:$0xff] %v924_v49  ;;  %v1217_v52 = vadd.f32 %v1216_v44, %v924_v49  ;;  %v1288_v53 = vmul.f32 %v924_v49, %v924_v49 }
 0x17a   :  { %v543_v54 = vpop.f32.mrf.mxu0  ;;  %v928_v55 = vpop.f32.mrf.mxu1 }
 0x17b   :  { %v1351_v56 = vadd.f32 %v1350_v48, %v1288_v53  ;;  %v929_v57 = vadd.f32 %v928_v55, %v543_v54 }
 0x17c   :  { %v545_v58 = vpop.f32.mrf.mxu0  ;;  %v930_v59 = vpop.f32.mrf.mxu1 }
 0x17d   :  { %1155 = vst [vmem:[%s1905_s2 + $0xb8] sm:$0xff] %v929_v57  ;;  %v1218_v60 = vadd.f32 %v1217_v52, %v929_v57  ;;  %v1289_v61 = vmul.f32 %v929_v57, %v929_v57 }
 0x17e   :  { %v548_v62 = vpop.f32.mrf.mxu0  ;;  %v933_v63 = vpop.f32.mrf.mxu1 }
 0x17f   :  { %v1352_v1 = vadd.f32 %v1351_v56, %v1289_v61  ;;  %v934_v2 = vadd.f32 %v933_v63, %v548_v62 }
 0x180   :  { %v550_v3 = vpop.f32.mrf.mxu0  ;;  %v935_v4 = vpop.f32.mrf.mxu1 }
 0x181   :  { %1156 = vst [vmem:[%s1905_s2 + $0xc0] sm:$0xff] %v934_v2  ;;  %v1219_v5 = vadd.f32 %v1218_v60, %v934_v2  ;;  %v1290_v6 = vmul.f32 %v934_v2, %v934_v2 }
 0x182   :  { %v553_v7 = vpop.f32.mrf.mxu0  ;;  %v938_v8 = vpop.f32.mrf.mxu1 }
 0x183   :  { %v1353_v9 = vadd.f32 %v1352_v1, %v1290_v6  ;;  %v939_v10 = vadd.f32 %v938_v8, %v553_v7 }
 0x184   :  { %v555_v11 = vpop.f32.mrf.mxu0  ;;  %v940_v0 = vpop.f32.mrf.mxu1 }
 0x185   :  { %1157 = vst [vmem:[%s1905_s2 + $0xc8] sm:$0xff] %v939_v10  ;;  %v1220_v12 = vadd.f32 %v1219_v5, %v939_v10  ;;  %v1291_v13 = vmul.f32 %v939_v10, %v939_v10 }
 0x186   :  { %v558_v14 = vpop.f32.mrf.mxu0  ;;  %v943_v15 = vpop.f32.mrf.mxu1 }
 0x187   :  { %v1354_v16 = vadd.f32 %v1353_v9, %v1291_v13  ;;  %v944_v17 = vadd.f32 %v943_v15, %v558_v14 }
 0x188   :  { %v560_v18 = vpop.f32.mrf.mxu0  ;;  %v945_v19 = vpop.f32.mrf.mxu1 }
 0x189   :  { %1158 = vst [vmem:[%s1905_s2 + $0xd0] sm:$0xff] %v944_v17  ;;  %v1221_v20 = vadd.f32 %v1220_v12, %v944_v17  ;;  %v1292_v21 = vmul.f32 %v944_v17, %v944_v17 }
 0x18a   :  { %v563_v22 = vpop.f32.mrf.mxu0  ;;  %v948_v23 = vpop.f32.mrf.mxu1 }
 0x18b   :  { %v1355_v24 = vadd.f32 %v1354_v16, %v1292_v21  ;;  %v949_v25 = vadd.f32 %v948_v23, %v563_v22 }
 0x18c   :  { %v565_v26 = vpop.f32.mrf.mxu0  ;;  %v950_v27 = vpop.f32.mrf.mxu1 }
 0x18d   :  { %1159 = vst [vmem:[%s1905_s2 + $0xd8] sm:$0xff] %v949_v25  ;;  %v1222_v28 = vadd.f32 %v1221_v20, %v949_v25  ;;  %v1293_v29 = vmul.f32 %v949_v25, %v949_v25 }
 0x18e   :  { %v568_v30 = vpop.f32.mrf.mxu0  ;;  %v953_v31 = vpop.f32.mrf.mxu1 }
 0x18f   :  { %v1356_v32 = vadd.f32 %v1355_v24, %v1293_v29  ;;  %v954_v33 = vadd.f32 %v953_v31, %v568_v30 }
 0x190   :  { %v570_v34 = vpop.f32.mrf.mxu0  ;;  %v955_v35 = vpop.f32.mrf.mxu1 }
 0x191   :  { %1160 = vst [vmem:[%s1905_s2 + $0xe0] sm:$0xff] %v954_v33  ;;  %v1223_v36 = vadd.f32 %v1222_v28, %v954_v33  ;;  %v1294_v37 = vmul.f32 %v954_v33, %v954_v33 }
 0x192   :  { %v573_v38 = vpop.f32.mrf.mxu0  ;;  %v958_v39 = vpop.f32.mrf.mxu1 }
 0x193   :  { %v1357_v40 = vadd.f32 %v1356_v32, %v1294_v37  ;;  %v959_v41 = vadd.f32 %v958_v39, %v573_v38 }
 0x194   :  { %v575_v42 = vpop.f32.mrf.mxu0  ;;  %v960_v43 = vpop.f32.mrf.mxu1 }
 0x195   :  { %1161 = vst [vmem:[%s1905_s2 + $0xe8] sm:$0xff] %v959_v41  ;;  %v1224_v44 = vadd.f32 %v1223_v36, %v959_v41  ;;  %v1295_v45 = vmul.f32 %v959_v41, %v959_v41 }
 0x196   :  { %v578_v46 = vpop.f32.mrf.mxu0  ;;  %v963_v47 = vpop.f32.mrf.mxu1 }
 0x197   :  { %v1358_v48 = vadd.f32 %v1357_v40, %v1295_v45  ;;  %v964_v49 = vadd.f32 %v963_v47, %v578_v46 }
 0x198   :  { %v580_v50 = vpop.f32.mrf.mxu0  ;;  %v965_v51 = vpop.f32.mrf.mxu1 }
 0x199   :  { %1162 = vst [vmem:[%s1905_s2 + $0xf0] sm:$0xff] %v964_v49  ;;  %v1225_v52 = vadd.f32 %v1224_v44, %v964_v49  ;;  %v1296_v53 = vmul.f32 %v964_v49, %v964_v49 }
 0x19a   :  { %v583_v54 = vpop.f32.mrf.mxu0  ;;  %v968_v55 = vpop.f32.mrf.mxu1 }
 0x19b   :  { %v1359_v56 = vadd.f32 %v1358_v48, %v1296_v53  ;;  %v969_v57 = vadd.f32 %v968_v55, %v583_v54 }
 0x19c   :  { %v585_v58 = vpop.f32.mrf.mxu0  ;;  %v970_v59 = vpop.f32.mrf.mxu1 }
 0x19d   :  { %1163 = vst [vmem:[%s1905_s2 + $0xf8] sm:$0xff] %v969_v57  ;;  %v1663_v60 = vadd.f32 %v1225_v52, %v969_v57  ;;  %v1297_v61 = vmul.f32 %v969_v57, %v969_v57 }
 0x19e   :  { %v588_v62 = vpop.f32.mrf.mxu0  ;;  %v973_v63 = vpop.f32.mrf.mxu1 }
 0x19f   :  { %v1665_v1 = vadd.f32 %v1359_v56, %v1297_v61  ;;  %v1667_v2 = vadd.f32 %v973_v63, %v588_v62 }
 0x1a0   :  { %v590_v3 = vpop.f32.mrf.mxu0  ;;  %v975_v4 = vpop.f32.mrf.mxu1 }
 0x1a1   :  { %1164 = vst [vmem:[%s1905_s2 + $0x100] sm:$0xff] %v1667_v2 }
 0x1a2   :  { %v593_v5 = vpop.f32.mrf.mxu0  ;;  %v978_v6 = vpop.f32.mrf.mxu1 }
 0x1a3   :  { %v1673_v7 = vadd.f32 %v978_v6, %v593_v5 }
 0x1a4   :  { %v595_v8 = vpop.f32.mrf.mxu0  ;;  %v980_v9 = vpop.f32.mrf.mxu1 }
 0x1a5   :  { %1165 = vst [vmem:[%s1905_s2 + $0x108] sm:$0xff] %v1673_v7 }
 0x1a6   :  { %v598_v10 = vpop.f32.mrf.mxu0  ;;  %v983_v11 = vpop.f32.mrf.mxu1 }
 0x1a7   :  { %v1679_v0 = vadd.f32 %v983_v11, %v598_v10 }
 0x1a8   :  { %v600_v12 = vpop.f32.mrf.mxu0  ;;  %v985_v13 = vpop.f32.mrf.mxu1 }
 0x1a9   :  { %1166 = vst [vmem:[%s1905_s2 + $0x110] sm:$0xff] %v1679_v0 }
 0x1aa   :  { %v603_v14 = vpop.f32.mrf.mxu0  ;;  %v988_v15 = vpop.f32.mrf.mxu1 }
 0x1ab   :  { %v1685_v16 = vadd.f32 %v988_v15, %v603_v14 }
 0x1ac   :  { %v605_v17 = vpop.f32.mrf.mxu0  ;;  %v990_v18 = vpop.f32.mrf.mxu1 }
 0x1ad   :  { %1167 = vst [vmem:[%s1905_s2 + $0x118] sm:$0xff] %v1685_v16 }
 0x1ae   :  { %v608_v19 = vpop.f32.mrf.mxu0  ;;  %v993_v20 = vpop.f32.mrf.mxu1 }
 0x1af   :  { %v1691_v21 = vadd.f32 %v993_v20, %v608_v19 }
 0x1b0   :  { %v610_v22 = vpop.f32.mrf.mxu0  ;;  %v995_v23 = vpop.f32.mrf.mxu1 }
 0x1b1   :  { %1168 = vst [vmem:[%s1905_s2 + $0x120] sm:$0xff] %v1691_v21  ;;  %v1298_v22 = vmul.f32 %v1667_v2, %v1667_v2 }
 0x1b2   :  { %v613_v24 = vpop.f32.mrf.mxu0  ;;  %v998_v25 = vpop.f32.mrf.mxu1 }
 0x1b3   :  { %v1697_v26 = vadd.f32 %v998_v25, %v613_v24  ;;  %v1227_v25 = vadd.f32 %v1663_v60, %v1667_v2 }
 0x1b4   :  { %v615_v27 = vpop.f32.mrf.mxu0  ;;  %v1000_v28 = vpop.f32.mrf.mxu1 }
 0x1b5   :  { %1169 = vst [vmem:[%s1905_s2 + $0x128] sm:$0xff] %v1697_v26  ;;  %v1299_v27 = vmul.f32 %v1673_v7, %v1673_v7 }
 0x1b6   :  { %v618_v29 = vpop.f32.mrf.mxu0  ;;  %v1003_v30 = vpop.f32.mrf.mxu1 }
 0x1b7   :  { %v1703_v31 = vadd.f32 %v1003_v30, %v618_v29 }
 0x1b8   :  { %v620_v32 = vpop.f32.mrf.mxu0  ;;  %v1005_v33 = vpop.f32.mrf.mxu1 }
 0x1b9   :  { %1170 = vst [vmem:[%s1905_s2 + $0x130] sm:$0xff] %v1703_v31  ;;  %v1361_v32 = vadd.f32 %v1665_v1, %v1298_v22  ;;  %v1228_v33 = vadd.f32 %v1227_v25, %v1673_v7 }
 0x1ba   :  { %v623_v34 = vpop.f32.mrf.mxu0  ;;  %v1008_v35 = vpop.f32.mrf.mxu1 }
 0x1bb   :  { %v1709_v36 = vadd.f32 %v1008_v35, %v623_v34  ;;  %v1300_v34 = vmul.f32 %v1679_v0, %v1679_v0  ;;  %v1362_v35 = vadd.f32 %v1361_v32, %v1299_v27 }
 0x1bc   :  { %v625_v37 = vpop.f32.mrf.mxu0  ;;  %v1010_v38 = vpop.f32.mrf.mxu1 }
 0x1bd   :  { %1171 = vst [vmem:[%s1905_s2 + $0x138] sm:$0xff] %v1709_v36  ;;  %v1229_v37 = vadd.f32 %v1228_v33, %v1679_v0  ;;  %v1301_v38 = vmul.f32 %v1685_v16, %v1685_v16 }
 0x1be   :  { %v628_v39 = vpop.f32.mrf.mxu0  ;;  %v1013_v40 = vpop.f32.mrf.mxu1 }
 0x1bf   :  { %v1715_v41 = vadd.f32 %v1013_v40, %v628_v39  ;;  %v1363_v40 = vadd.f32 %v1362_v35, %v1300_v34 }
 0x1c0   :  { %v630_v42 = vpop.f32.mrf.mxu0  ;;  %v1015_v43 = vpop.f32.mrf.mxu1 }
 0x1c1   :  { %1172 = vst [vmem:[%s1905_s2 + $0x140] sm:$0xff] %v1715_v41  ;;  %v1230_v42 = vadd.f32 %v1229_v37, %v1685_v16  ;;  %v1302_v43 = vmul.f32 %v1691_v21, %v1691_v21 }
 0x1c2   :  { %v633_v44 = vpop.f32.mrf.mxu0  ;;  %v1018_v45 = vpop.f32.mrf.mxu1 }
 0x1c3   :  { %v1721_v46 = vadd.f32 %v1018_v45, %v633_v44  ;;  %v1364_v45 = vadd.f32 %v1363_v40, %v1301_v38 }
 0x1c4   :  { %v635_v47 = vpop.f32.mrf.mxu0  ;;  %v1020_v48 = vpop.f32.mrf.mxu1 }
 0x1c5   :  { %1173 = vst [vmem:[%s1905_s2 + $0x148] sm:$0xff] %v1721_v46  ;;  %v1231_v47 = vadd.f32 %v1230_v42, %v1691_v21  ;;  %v1303_v48 = vmul.f32 %v1697_v26, %v1697_v26 }
 0x1c6   :  { %v638_v49 = vpop.f32.mrf.mxu0  ;;  %v1023_v50 = vpop.f32.mrf.mxu1 }
 0x1c7   :  { %v1727_v51 = vadd.f32 %v1023_v50, %v638_v49 }
 0x1c8   :  { %v640_v52 = vpop.f32.mrf.mxu0  ;;  %v1025_v53 = vpop.f32.mrf.mxu1 }
 0x1c9   :  { %1174 = vst [vmem:[%s1905_s2 + $0x150] sm:$0xff] %v1727_v51  ;;  %v1365_v52 = vadd.f32 %v1364_v45, %v1302_v43  ;;  %v1232_v53 = vadd.f32 %v1231_v47, %v1697_v26 }
 0x1ca   :  { %v643_v54 = vpop.f32.mrf.mxu0  ;;  %v1028_v55 = vpop.f32.mrf.mxu1 }
 0x1cb   :  { %v1733_v56 = vadd.f32 %v1028_v55, %v643_v54  ;;  %v1304_v54 = vmul.f32 %v1703_v31, %v1703_v31 }
 0x1cc   :  { %v645_v57 = vpop.f32.mrf.mxu0  ;;  %v1030_v58 = vpop.f32.mrf.mxu1 }
 0x1cd   :  { %1175 = vst [vmem:[%s1905_s2 + $0x158] sm:$0xff] %v1733_v56  ;;  %v1366_v57 = vadd.f32 %v1365_v52, %v1303_v48  ;;  %v1233_v58 = vadd.f32 %v1232_v53, %v1703_v31 }
 0x1ce   :  { %v648_v59 = vpop.f32.mrf.mxu0  ;;  %v1033_v61 = vpop.f32.mrf.mxu1 }
 0x1cf   :  { %v1739_v62 = vadd.f32 %v1033_v61, %v648_v59  ;;  %v1305_v59 = vmul.f32 %v1709_v36, %v1709_v36 }
 0x1d0   :  { %v650_v63 = vpop.f32.mrf.mxu0  ;;  %v1035_v3 = vpop.f32.mrf.mxu1 }
 0x1d1   :  { %1176 = vst [vmem:[%s1905_s2 + $0x160] sm:$0xff] %v1739_v62  ;;  %v1367_v3 = vadd.f32 %v1366_v57, %v1304_v54  ;;  %v1310_v32 = vmul.f32 %v1739_v62, %v1739_v62 }
 0x1d2   :  { %v653_v4 = vpop.f32.mrf.mxu0  ;;  %v1038_v5 = vpop.f32.mrf.mxu1 }
 0x1d3   :  { %v1745_v6 = vadd.f32 %v1038_v5, %v653_v4  ;;  %v1234_v4 = vadd.f32 %v1233_v58, %v1709_v36  ;;  %v1306_v5 = vmul.f32 %v1715_v41, %v1715_v41 }
 0x1d4   :  { %v655_v8 = vpop.f32.mrf.mxu0  ;;  %v1040_v9 = vpop.f32.mrf.mxu1 }
 0x1d5   :  { %1177 = vst [vmem:[%s1905_s2 + $0x168] sm:$0xff] %v1745_v6  ;;  %v1368_v9 = vadd.f32 %v1367_v3, %v1305_v59 }
 0x1d6   :  { %v658_v10 = vpop.f32.mrf.mxu0  ;;  %v1043_v11 = vpop.f32.mrf.mxu1 }
 0x1d7   :  { %v1751_v12 = vadd.f32 %v1043_v11, %v658_v10  ;;  %v1235_v10 = vadd.f32 %v1234_v4, %v1715_v41  ;;  %v1307_v11 = vmul.f32 %v1721_v46, %v1721_v46 }
 0x1d8   :  { %v660_v13 = vpop.f32.mrf.mxu0  ;;  %v1045_v14 = vpop.f32.mrf.mxu1 }
 0x1d9   :  { %1178 = vst [vmem:[%s1905_s2 + $0x170] sm:$0xff] %v1751_v12 }
 0x1da   :  { %v663_v15 = vpop.f32.mrf.mxu0  ;;  %v1048_v17 = vpop.f32.mrf.mxu1 }
 0x1db   :  { %v1757_v18 = vadd.f32 %v1048_v17, %v663_v15  ;;  %v1369_v15 = vadd.f32 %v1368_v9, %v1306_v5  ;;  %v1236_v17 = vadd.f32 %v1235_v10, %v1721_v46 }
 0x1dc   :  { %v665_v19 = vpop.f32.mrf.mxu0  ;;  %v1050_v20 = vpop.f32.mrf.mxu1 }
 0x1dd   :  { %1179 = vst [vmem:[%s1905_s2 + $0x178] sm:$0xff] %v1757_v18  ;;  %v1308_v19 = vmul.f32 %v1727_v51, %v1727_v51  ;;  %v1370_v22 = vadd.f32 %v1369_v15, %v1307_v11 }
 0x1de   :  { %v668_v23 = vpop.f32.mrf.mxu0  ;;  %v1053_v24 = vpop.f32.mrf.mxu1 }
 0x1df   :  { %v1769_v28 = vadd.f32 %v1053_v24, %v668_v23  ;;  %v1237_v23 = vadd.f32 %v1236_v17, %v1727_v51  ;;  %v1309_v24 = vmul.f32 %v1733_v56, %v1733_v56 }
 0x1e0   :  { %v670_v29 = vpop.f32.mrf.mxu0  ;;  %v1055_v30 = vpop.f32.mrf.mxu1 }
 0x1e1   :  { %1180 = vst [vmem:[%s1905_s2 + $0x180] sm:$0xff] %v1769_v28  ;;  %v1371_v29 = vadd.f32 %v1370_v22, %v1308_v19  ;;  %v1238_v30 = vadd.f32 %v1237_v23, %v1733_v56 }
 0x1e2   :  { %v673_v60 = vpop.f32.mrf.mxu0  ;;  %v1058_v2 = vpop.f32.mrf.mxu1 }
 0x1e3   :  { %v1782_v39 = vadd.f32 %v1058_v2, %v673_v60  ;;  %v1372_v34 = vadd.f32 %v1371_v29, %v1309_v24  ;;  %v1239_v60 = vadd.f32 %v1238_v30, %v1739_v62  ;;  %v1311_v2 = vmul.f32 %v1745_v6, %v1745_v6 }
 0x1e4   :  { %v675_v1 = vpop.f32.mrf.mxu0  ;;  %v1060_v7 = vpop.f32.mrf.mxu1 }
 0x1e5   :  { %1181 = vst [vmem:[%s1905_s2 + $0x188] sm:$0xff] %v1782_v39  ;;  %v1373_v56 = vadd.f32 %v1372_v34, %v1310_v32  ;;  %v1240_v1 = vadd.f32 %v1239_v60, %v1745_v6  ;;  %v1312_v7 = vmul.f32 %v1751_v12, %v1751_v12  ;;  %v1315_v54 = vmul.f32 %v1782_v39, %v1782_v39 }
 0x1e6   :  { %v678_v44 = vpop.f32.mrf.mxu0  ;;  %v1063_v0 = vpop.f32.mrf.mxu1 }
 0x1e7   :  { %v1794_v49 = vadd.f32 %v1063_v0, %v678_v44  ;;  %v1374_v43 = vadd.f32 %v1373_v56, %v1311_v2  ;;  %v1241_v62 = vadd.f32 %v1240_v1, %v1751_v12  ;;  %v1313_v44 = vmul.f32 %v1757_v18, %v1757_v18 }
 0x1e8   :  { %v680_v50 = vpop.f32.mrf.mxu0  ;;  %v1065_v16 = vpop.f32.mrf.mxu1 }
 0x1e9   :  { %1182 = vst [vmem:[%s1905_s2 + $0x190] sm:$0xff] %v1794_v49  ;;  %v1375_v48 = vadd.f32 %v1374_v43, %v1312_v7  ;;  %v1242_v6 = vadd.f32 %v1241_v62, %v1757_v18  ;;  %v1314_v50 = vmul.f32 %v1769_v28, %v1769_v28  ;;  %v1316_v59 = vmul.f32 %v1794_v49, %v1794_v49 }
 0x1ea   :  { %v683_v55 = vpop.f32.mrf.mxu0  ;;  %v1068_v21 = vpop.f32.mrf.mxu1 }
 0x1eb   :  { %v1806_v61 = vadd.f32 %v1068_v21, %v683_v55  ;;  %v1376_v53 = vadd.f32 %v1375_v48, %v1313_v44  ;;  %v1243_v12 = vadd.f32 %v1242_v6, %v1769_v28 }
 0x1ec   :  { %v685_v63 = vpop.f32.mrf.mxu0  ;;  %v1070_v26 = vpop.f32.mrf.mxu1 }
 0x1ed   :  { %1183 = vst [vmem:[%s1905_s2 + $0x198] sm:$0xff] %v1806_v61  ;;  %v1377_v58 = vadd.f32 %v1376_v53, %v1314_v50  ;;  %v1244_v18 = vadd.f32 %v1243_v12, %v1782_v39  ;;  %v1317_v4 = vmul.f32 %v1806_v61, %v1806_v61 }
 0x1ee   :  { %v688_v8 = vpop.f32.mrf.mxu0  ;;  %v1073_v31 = vpop.f32.mrf.mxu1 }
 0x1ef   :  { %v1818_v13 = vadd.f32 %v1073_v31, %v688_v8  ;;  %v1378_v3 = vadd.f32 %v1377_v58, %v1315_v54  ;;  %v1245_v28 = vadd.f32 %v1244_v18, %v1794_v49 }
 0x1f0   :  { %v690_v14 = vpop.f32.mrf.mxu0  ;;  %v1075_v36 = vpop.f32.mrf.mxu1 }
 0x1f1   :  { %1184 = vst [vmem:[%s1905_s2 + $0x1a0] sm:$0xff] %v1818_v13  ;;  %v1379_v9 = vadd.f32 %v1378_v3, %v1316_v59  ;;  %v1246_v39 = vadd.f32 %v1245_v28, %v1806_v61  ;;  %v1318_v10 = vmul.f32 %v1818_v13, %v1818_v13 }
 0x1f2   :  { %v693_v20 = vpop.f32.mrf.mxu0  ;;  %v1078_v41 = vpop.f32.mrf.mxu1 }
 0x1f3   :  { %v1830_v25 = vadd.f32 %v1078_v41, %v693_v20  ;;  %v1380_v36 = vadd.f32 %v1379_v9, %v1317_v4  ;;  %v1247_v49 = vadd.f32 %v1246_v39, %v1818_v13 }
 0x1f4   :  { %v695_v27 = vpop.f32.mrf.mxu0  ;;  %v1080_v46 = vpop.f32.mrf.mxu1 }
 0x1f5   :  { %1185 = vst [vmem:[%s1905_s2 + $0x1a8] sm:$0xff] %v1830_v25  ;;  %v1319_v15 = vmul.f32 %v1830_v25, %v1830_v25  ;;  %v1381_v41 = vadd.f32 %v1380_v36, %v1318_v10  ;;  %v1248_v61 = vadd.f32 %v1247_v49, %v1830_v25 }
 0x1f6   :  { %v698_v33 = vpop.f32.mrf.mxu0  ;;  %v1083_v51 = vpop.f32.mrf.mxu1 }
 0x1f7   :  { %v1084_v35 = vadd.f32 %v1083_v51, %v698_v33  ;;  %v1382_v27 = vadd.f32 %v1381_v41, %v1319_v15 }
 0x1f8   :  { %v700_v37 = vpop.f32.mrf.mxu0  ;;  %v1085_v38 = vpop.f32.mrf.mxu1 }
 0x1f9   :  { %1186 = vst [vmem:[%s1905_s2 + $0x1b0] sm:$0xff] %v1084_v35  ;;  %v1320_v22 = vmul.f32 %v1084_v35, %v1084_v35  ;;  %v1249_v46 = vadd.f32 %v1248_v61, %v1084_v35 }
 0x1fa   :  { %v703_v40 = vpop.f32.mrf.mxu0  ;;  %v1088_v42 = vpop.f32.mrf.mxu1 }
 0x1fb   :  { %v1089_v0 = vadd.f32 %v1088_v42, %v703_v40  ;;  %v1383_v33 = vadd.f32 %v1382_v27, %v1320_v22 }
 0x1fc   :  { %v705_v45 = vpop.f32.mrf.mxu0  ;;  %v1090_v47 = vpop.f32.mrf.mxu1 }
 0x1fd   :  { %1187 = vst [vmem:[%s1905_s2 + $0x1b8] sm:$0xff] %v1089_v0  ;;  %v1321_v29 = vmul.f32 %v1089_v0, %v1089_v0  ;;  %v1250_v51 = vadd.f32 %v1249_v46, %v1089_v0 }
 0x1fe   :  { %v708_v16 = vpop.f32.mrf.mxu0  ;;  %v1093_v52 = vpop.f32.mrf.mxu1 }
 0x1ff   :  { %v1094_v55 = vadd.f32 %v1093_v52, %v708_v16  ;;  %v1384_v2 = vadd.f32 %v1383_v33, %v1321_v29 }
 0x200   :  { %v710_v21 = vpop.f32.mrf.mxu0  ;;  %v1095_v57 = vpop.f32.mrf.mxu1 }
 0x201   :  { %1188 = vst [vmem:[%s1905_s2 + $0x1c0] sm:$0xff] %v1094_v55  ;;  %v1322_v34 = vmul.f32 %v1094_v55, %v1094_v55  ;;  %v1251_v37 = vadd.f32 %v1250_v51, %v1094_v55 }
 0x202   :  { %v713_v63 = vpop.f32.mrf.mxu0  ;;  %v1098_v26 = vpop.f32.mrf.mxu1 }
 0x203   :  { %v1099_v5 = vadd.f32 %v1098_v26, %v713_v63  ;;  %v1385_v35 = vadd.f32 %v1384_v2, %v1322_v34 }
 0x204   :  { %v715_v8 = vpop.f32.mrf.mxu0  ;;  %v1100_v31 = vpop.f32.mrf.mxu1 }
 0x205   :  { %1189 = vst [vmem:[%s1905_s2 + $0x1c8] sm:$0xff] %v1099_v5  ;;  %v1323_v38 = vmul.f32 %v1099_v5, %v1099_v5  ;;  %v1252_v40 = vadd.f32 %v1251_v37, %v1099_v5 }
 0x206   :  { %v718_v11 = vpop.f32.mrf.mxu0  ;;  %v1103_v14 = vpop.f32.mrf.mxu1 }
 0x207   :  { %v1104_v17 = vadd.f32 %v1103_v14, %v718_v11  ;;  %v1386_v44 = vadd.f32 %v1385_v35, %v1323_v38 }
 0x208   :  { %v720_v19 = vpop.f32.mrf.mxu0  ;;  %v1105_v20 = vpop.f32.mrf.mxu1 }
 0x209   :  { %1190 = vst [vmem:[%s1905_s2 + $0x1d0] sm:$0xff] %v1104_v17  ;;  %v1324_v42 = vmul.f32 %v1104_v17, %v1104_v17  ;;  %v1253_v0 = vadd.f32 %v1252_v40, %v1104_v17 }
 0x20a   :  { %v723_v23 = vpop.f32.mrf.mxu0  ;;  %v1108_v24 = vpop.f32.mrf.mxu1 }
 0x20b   :  { %v1109_v13 = vadd.f32 %v1108_v24, %v723_v23  ;;  %v1387_v50 = vadd.f32 %v1386_v44, %v1324_v42 }
 0x20c   :  { %v725_v30 = vpop.f32.mrf.mxu0  ;;  %v1110_v32 = vpop.f32.mrf.mxu1 }
 0x20d   :  { %1191 = vst [vmem:[%s1905_s2 + $0x1d8] sm:$0xff] %v1109_v13  ;;  %v1325_v45 = vmul.f32 %v1109_v13, %v1109_v13  ;;  %v1254_v16 = vadd.f32 %v1253_v0, %v1109_v13 }
 0x20e   :  { %v728_v25 = vpop.f32.mrf.mxu0  ;;  %v1113_v60 = vpop.f32.mrf.mxu1 }
 0x20f   :  { %v1114_v56 = vadd.f32 %v1113_v60, %v728_v25  ;;  %v1388_v54 = vadd.f32 %v1387_v50, %v1325_v45 }
 0x210   :  { %v730_v1 = vpop.f32.mrf.mxu0  ;;  %v1115_v7 = vpop.f32.mrf.mxu1 }
 0x211   :  { %1192 = vst [vmem:[%s1905_s2 + $0x1e0] sm:$0xff] %v1114_v56  ;;  %v1326_v52 = vmul.f32 %v1114_v56, %v1114_v56  ;;  %v1255_v55 = vadd.f32 %v1254_v16, %v1114_v56 }
 0x212   :  { %v733_v43 = vpop.f32.mrf.mxu0  ;;  %v1118_v62 = vpop.f32.mrf.mxu1 }
 0x213   :  { %v1119_v47 = vadd.f32 %v1118_v62, %v733_v43  ;;  %v1389_v59 = vadd.f32 %v1388_v54, %v1326_v52 }
 0x214   :  { %v735_v48 = vpop.f32.mrf.mxu0  ;;  %v1120_v6 = vpop.f32.mrf.mxu1 }
 0x215   :  { %1193 = vst [vmem:[%s1905_s2 + $0x1e8] sm:$0xff] %v1119_v47  ;;  %v1327_v21 = vmul.f32 %v1119_v47, %v1119_v47  ;;  %v1256_v63 = vadd.f32 %v1255_v55, %v1119_v47 }
 0x216   :  { %v738_v53 = vpop.f32.mrf.mxu0  ;;  %v1123_v12 = vpop.f32.mrf.mxu1 }
 0x217   :  { %v1124_v57 = vadd.f32 %v1123_v12, %v738_v53  ;;  %v1390_v4 = vadd.f32 %v1389_v59, %v1327_v21 }
 0x218   :  { %v740_v58 = vpop.f32.mrf.mxu0  ;;  %v1125_v18 = vpop.f32.mrf.mxu1 }
 0x219   :  { %1194 = vst [vmem:[%s1905_s2 + $0x1f0] sm:$0xff] %v1124_v57  ;;  %v1328_v26 = vmul.f32 %v1124_v57, %v1124_v57  ;;  %v1257_v5 = vadd.f32 %v1256_v63, %v1124_v57 }
 0x21a   :  { %v743_v3 = vpop.f32.mrf.mxu0  ;;  %v1128_v28 = vpop.f32.mrf.mxu1 }
 0x21b   :  { %v1129_v8 = vadd.f32 %v1128_v28, %v743_v3  ;;  %v1391_v39 = vadd.f32 %v1390_v4, %v1328_v26 }
 0x21c   :  { %v745_v31 = vpop.f32.mrf.mxu0  ;;  %v1130_v9 = vpop.f32.mrf.mxu1 }
 0x21d   :  { %1195 = vst [vmem:[%s1905_s2 + $0x1f8] sm:$0xff] %v1129_v8  ;;  %v1258_v10 = vadd.f32 %v1257_v5, %v1129_v8  ;;  %v1329_v11 = vmul.f32 %v1129_v8, %v1129_v8 }
 0x21f   :  { %v1259_v14 = vrot.slane %v1258_v10, 4  ;;  %v1392_v36 = vadd.f32 %v1391_v39, %v1329_v11 }
 0x221   :  { %v1260_v49 = vadd.f32 %v1259_v14, %v1258_v10  ;;  %v1393_v15 = vrot.slane %v1392_v36, 4 }
 0x223   :  { %v1261_v17 = vrot.slane %v1260_v49, 2  ;;  %v1394_v19 = vadd.f32 %v1393_v15, %v1392_v36 }
 0x225   :  { %v1262_v20 = vadd.f32 %v1261_v17, %v1260_v49  ;;  %v1395_v41 = vrot.slane %v1394_v19, 2 }
 0x227   :  { %v1263_v61 = vrot.slane %v1262_v20, 1  ;;  %v1396_v22 = vadd.f32 %v1395_v41, %v1394_v19 }
 0x229   :  { %v1264_v23 = vadd.f32 %v1263_v61, %v1262_v20  ;;  %v1397_v24 = vrot.slane %v1396_v22, 1 }
 0x22b   :  { %1265 = vst [vmem:[%s1906_s3] sm:$0x1] %v1264_v23  ;;  %v1398_v27 = vadd.f32 %v1397_v24, %v1396_v22 }
 0x22d   :  { %1399 = vst [vmem:[%s1907_s4] sm:$0x1] %v1398_v27 }
 0x22e   :  { %1412 = vsyncpa [#allocation3], 1 }
 0x22f   :  { %1413 = vsyncpa [#allocation5], 1 }

// kernel: bottleneck_forward.6
= control target key start
LH: loop header
LB: loop body
LE: loop exit
PB: predicated region body
PF: predicated region fallthrough
CT: control target
= control target key end

     0   :  { %v2398_v3 = vmov 0.0   ;;  %s4461_s3 = inlined_call_operand.vmem [shape: f32[128,512], index: 3, kind: input, shape index: {}]   ;;  %s4462_s0 = inlined_call_operand.vmem [shape: f32[1,128], index: 0, kind: input, shape index: {}]   ;;  %s4463_s2 = inlined_call_operand.vmem [shape: f32[512,128], index: 2, kind: input, shape index: {}]   ;;  %s4464_s1 = inlined_call_operand.vmem [shape: f32[1,128], index: 1, kind: input, shape index: {}]   ;;  %s4465_s4 = inlined_call_operand.vmem [shape: f32[512,512], index: 4, kind: output, shape index: {0}]   ;;  %s4466_s5 = inlined_call_operand.vmem [shape: f32[1,1,512], index: 5, kind: output, shape index: {1}]   ;;  %s4467_s6 = inlined_call_operand.vmem [shape: f32[1,1,512], index: 6, kind: output, shape index: {2}]  }
   0x1   :  { %v351_v0 = vld [vmem:[%s4461_s3 + $0x1e8] sm:$0xff]  ;;  %v353_v1 = vld [vmem:[%s4461_s3 + $0x1f8] sm:$0xff]  ;;  %v350_v2 = vld [vmem:[%s4461_s3 + $0x1e0] sm:$0xff]  ;;  %418 = vmatprep.mubr.f32.mxu0 %v2398_v3  ;;  %867 = vmatprep.mubr.f32.mxu1 %v2398_v3 }
   0x2   :  { %354 = vmatprep.subr.mxu0 %v351_v0  ;;  %803 = vmatprep.subr.mxu1 %v353_v1  ;;  %v352_v4 = vld [vmem:[%s4461_s3 + $0x1f0] sm:$0xff]  ;;  %v347_v5 = vld [vmem:[%s4461_s3 + $0x1c8] sm:$0xff]  ;;  %v349_v6 = vld [vmem:[%s4461_s3 + $0x1d8] sm:$0xff] }
   0x3   :  { %355 = vmatpush1.msra.mxu0 %v350_v2  ;;  %804 = vmatpush1.msra.mxu1 %v352_v4  ;;  %v346_v7 = vld [vmem:[%s4461_s3 + $0x1c0] sm:$0xff]  ;;  %v348_v8 = vld [vmem:[%s4461_s3 + $0x1d0] sm:$0xff]  ;;  %v343_v9 = vld [vmem:[%s4461_s3 + $0x1a8] sm:$0xff] }
   0x4   :  { %356 = vmatprep.subr.mxu0 %v347_v5  ;;  %805 = vmatprep.subr.mxu1 %v349_v6  ;;  %v345_v10 = vld [vmem:[%s4461_s3 + $0x1b8] sm:$0xff]  ;;  %v342_v11 = vld [vmem:[%s4461_s3 + $0x1a0] sm:$0xff]  ;;  %v344_v12 = vld [vmem:[%s4461_s3 + $0x1b0] sm:$0xff] }
   0x5   :  { %357 = vmatpush1.msra.mxu0 %v346_v7  ;;  %806 = vmatpush1.msra.mxu1 %v348_v8  ;;  %v339_v13 = vld [vmem:[%s4461_s3 + $0x188] sm:$0xff]  ;;  %v341_v14 = vld [vmem:[%s4461_s3 + $0x198] sm:$0xff]  ;;  %v338_v15 = vld [vmem:[%s4461_s3 + $0x180] sm:$0xff] }
   0x6   :  { %358 = vmatprep.subr.mxu0 %v343_v9  ;;  %807 = vmatprep.subr.mxu1 %v345_v10  ;;  %v340_v16 = vld [vmem:[%s4461_s3 + $0x190] sm:$0xff]  ;;  %v335_v17 = vld [vmem:[%s4461_s3 + $0x168] sm:$0xff]  ;;  %v337_v18 = vld [vmem:[%s4461_s3 + $0x178] sm:$0xff] }
   0x7   :  { %359 = vmatpush1.msra.mxu0 %v342_v11  ;;  %808 = vmatpush1.msra.mxu1 %v344_v12  ;;  %v334_v19 = vld [vmem:[%s4461_s3 + $0x160] sm:$0xff]  ;;  %v336_v20 = vld [vmem:[%s4461_s3 + $0x170] sm:$0xff]  ;;  %v331_v21 = vld [vmem:[%s4461_s3 + $0x148] sm:$0xff] }
   0x8   :  { %360 = vmatprep.subr.mxu0 %v339_v13  ;;  %809 = vmatprep.subr.mxu1 %v341_v14  ;;  %v333_v22 = vld [vmem:[%s4461_s3 + $0x158] sm:$0xff]  ;;  %v330_v23 = vld [vmem:[%s4461_s3 + $0x140] sm:$0xff]  ;;  %v332_v24 = vld [vmem:[%s4461_s3 + $0x150] sm:$0xff] }
   0x9   :  { %361 = vmatpush1.msra.mxu0 %v338_v15  ;;  %810 = vmatpush1.msra.mxu1 %v340_v16  ;;  %v327_v25 = vld [vmem:[%s4461_s3 + $0x128] sm:$0xff]  ;;  %v329_v26 = vld [vmem:[%s4461_s3 + $0x138] sm:$0xff]  ;;  %v326_v27 = vld [vmem:[%s4461_s3 + $0x120] sm:$0xff] }
   0xa   :  { %362 = vmatprep.subr.mxu0 %v335_v17  ;;  %811 = vmatprep.subr.mxu1 %v337_v18  ;;  %v328_v28 = vld [vmem:[%s4461_s3 + $0x130] sm:$0xff]  ;;  %v323_v29 = vld [vmem:[%s4461_s3 + $0x108] sm:$0xff]  ;;  %v325_v30 = vld [vmem:[%s4461_s3 + $0x118] sm:$0xff] }
   0xb   :  { %363 = vmatpush1.msra.mxu0 %v334_v19  ;;  %812 = vmatpush1.msra.mxu1 %v336_v20  ;;  %v322_v31 = vld [vmem:[%s4461_s3 + $0x100] sm:$0xff]  ;;  %v324_v32 = vld [vmem:[%s4461_s3 + $0x110] sm:$0xff]  ;;  %v319_v33 = vld [vmem:[%s4461_s3 + $0xe8] sm:$0xff] }
   0xc   :  { %364 = vmatprep.subr.mxu0 %v331_v21  ;;  %813 = vmatprep.subr.mxu1 %v333_v22  ;;  %v321_v34 = vld [vmem:[%s4461_s3 + $0xf8] sm:$0xff]  ;;  %v318_v35 = vld [vmem:[%s4461_s3 + $0xe0] sm:$0xff]  ;;  %v320_v36 = vld [vmem:[%s4461_s3 + $0xf0] sm:$0xff] }
   0xd   :  { %365 = vmatpush1.msra.mxu0 %v330_v23  ;;  %814 = vmatpush1.msra.mxu1 %v332_v24  ;;  %v315_v37 = vld [vmem:[%s4461_s3 + $0xc8] sm:$0xff]  ;;  %v317_v38 = vld [vmem:[%s4461_s3 + $0xd8] sm:$0xff]  ;;  %v314_v39 = vld [vmem:[%s4461_s3 + $0xc0] sm:$0xff] }
   0xe   :  { %366 = vmatprep.subr.mxu0 %v327_v25  ;;  %815 = vmatprep.subr.mxu1 %v329_v26  ;;  %v316_v40 = vld [vmem:[%s4461_s3 + $0xd0] sm:$0xff]  ;;  %v311_v41 = vld [vmem:[%s4461_s3 + $0xa8] sm:$0xff]  ;;  %v313_v42 = vld [vmem:[%s4461_s3 + $0xb8] sm:$0xff] }
   0xf   :  { %367 = vmatpush1.msra.mxu0 %v326_v27  ;;  %816 = vmatpush1.msra.mxu1 %v328_v28  ;;  %v310_v43 = vld [vmem:[%s4461_s3 + $0xa0] sm:$0xff]  ;;  %v312_v44 = vld [vmem:[%s4461_s3 + $0xb0] sm:$0xff]  ;;  %v307_v45 = vld [vmem:[%s4461_s3 + $0x88] sm:$0xff] }
  0x10   :  { %368 = vmatprep.subr.mxu0 %v323_v29  ;;  %817 = vmatprep.subr.mxu1 %v325_v30  ;;  %v309_v46 = vld [vmem:[%s4461_s3 + $0x98] sm:$0xff]  ;;  %v306_v47 = vld [vmem:[%s4461_s3 + $0x80] sm:$0xff]  ;;  %v308_v48 = vld [vmem:[%s4461_s3 + $0x90] sm:$0xff] }
  0x11   :  { %369 = vmatpush1.msra.mxu0 %v322_v31  ;;  %818 = vmatpush1.msra.mxu1 %v324_v32  ;;  %v303_v49 = vld [vmem:[%s4461_s3 + $0x68] sm:$0xff]  ;;  %v20_v50 = vld [vmem:[%s4463_s2] sm:$0xff]  ;;  %v305_v52 = vld [vmem:[%s4461_s3 + $0x78] sm:$0xff] }
  0x12   :  { %370 = vmatprep.subr.mxu0 %v319_v33  ;;  %819 = vmatprep.subr.mxu1 %v321_v34  ;;  %v2590_v51 = vld [vmem:[%s4462_s0] ss:$0 sm:$0xff]  ;;  %v21_v55 = vld [vmem:[%s4463_s2 + $0x8] sm:$0xff]  ;;  %v304_v57 = vld [vmem:[%s4461_s3 + $0x70] sm:$0xff] }
  0x13   :  { %371 = vmatpush1.msra.mxu0 %v318_v35  ;;  %820 = vmatpush1.msra.mxu1 %v320_v36  ;;  %v91_v53 = vmul.f32 %v2590_v51, %v20_v50  ;;  %v2599_v54 = vld [vmem:[%s4464_s1] ss:$0 sm:$0xff]  ;;  %v299_v58 = vld [vmem:[%s4461_s3 + $0x48] sm:$0xff]  ;;  %v301_v59 = vld [vmem:[%s4461_s3 + $0x58] sm:$0xff]  ;;  %v92_v63 = vmul.f32 %v2590_v51, %v21_v55 }
  0x14   :  { %372 = vmatprep.subr.mxu0 %v315_v37  ;;  %821 = vmatprep.subr.mxu1 %v317_v38  ;;  %v302_v56 = vld [vmem:[%s4461_s3 + $0x60] sm:$0xff]  ;;  %v300_v61 = vld [vmem:[%s4461_s3 + $0x50] sm:$0xff]  ;;  %v295_v0 = vld [vmem:[%s4461_s3 + $0x28] sm:$0xff] }
  0x15   :  { %373 = vmatpush1.msra.mxu0 %v314_v39  ;;  %822 = vmatpush1.msra.mxu1 %v316_v40  ;;  %v298_v60 = vld [vmem:[%s4461_s3 + $0x40] sm:$0xff]  ;;  %v162_v62 = vadd.f32 %v2599_v54, %v91_v53  ;;  %v297_v1 = vld [vmem:[%s4461_s3 + $0x38] sm:$0xff]  ;;  %v22_v2 = vld [vmem:[%s4463_s2 + $0x10] sm:$0xff]  ;;  %v163_v11 = vadd.f32 %v2599_v54, %v92_v63 }
  0x16   :  { %374 = vmatprep.subr.mxu0 %v311_v41  ;;  %823 = vmatprep.subr.mxu1 %v313_v42  ;;  %v294_v4 = vld [vmem:[%s4461_s3 + $0x20] sm:$0xff]  ;;  %v296_v5 = vld [vmem:[%s4461_s3 + $0x30] sm:$0xff]  ;;  %v291_v6 = vld [vmem:[%s4461_s3 + $0x8] sm:$0xff]  ;;  %v93_v12 = vmul.f32 %v2590_v51, %v22_v2 }
  0x17   :  { %375 = vmatpush1.msra.mxu0 %v310_v43  ;;  %824 = vmatpush1.msra.mxu1 %v312_v44  ;;  %v293_v7 = vld [vmem:[%s4461_s3 + $0x18] sm:$0xff]  ;;  %v290_v8 = vld [vmem:[%s4461_s3] sm:$0xff]  ;;  %v292_v9 = vld [vmem:[%s4461_s3 + $0x10] sm:$0xff]  ;;  %v226_v10 = vmax.f32 %v162_v62, 0.0  ;;  %v227_v14 = vmax.f32 %v163_v11, 0.0 }
  0x18   :  { %376 = vmatprep.subr.mxu0 %v307_v45  ;;  %825 = vmatprep.subr.mxu1 %v309_v46  ;;  %v23_v13 = vld [vmem:[%s4463_s2 + $0x18] sm:$0xff]  ;;  %v164_v15 = vadd.f32 %v2599_v54, %v93_v12  ;;  %v24_v17 = vld [vmem:[%s4463_s2 + $0x20] sm:$0xff]  ;;  %v25_v21 = vld [vmem:[%s4463_s2 + $0x28] sm:$0xff] }
  0x19   :  { %377 = vmatpush1.msra.mxu0 %v306_v47  ;;  %826 = vmatpush1.msra.mxu1 %v308_v48  ;;  %v94_v16 = vmul.f32 %v2590_v51, %v23_v13  ;;  %v95_v20 = vmul.f32 %v2590_v51, %v24_v17  ;;  %v96_v24 = vmul.f32 %v2590_v51, %v25_v21  ;;  %v26_v25 = vld [vmem:[%s4463_s2 + $0x30] sm:$0xff]  ;;  %v27_v29 = vld [vmem:[%s4463_s2 + $0x38] sm:$0xff]  ;;  %v28_v33 = vld [vmem:[%s4463_s2 + $0x40] sm:$0xff] }
  0x1a   :  { %378 = vmatprep.subr.mxu0 %v303_v49  ;;  %827 = vmatprep.subr.mxu1 %v305_v52  ;;  %v228_v18 = vmax.f32 %v164_v15, 0.0  ;;  %v97_v28 = vmul.f32 %v2590_v51, %v26_v25  ;;  %v98_v32 = vmul.f32 %v2590_v51, %v27_v29  ;;  %v99_v36 = vmul.f32 %v2590_v51, %v28_v33  ;;  %v29_v37 = vld [vmem:[%s4463_s2 + $0x48] sm:$0xff]  ;;  %v30_v41 = vld [vmem:[%s4463_s2 + $0x50] sm:$0xff]  ;;  %v31_v45 = vld [vmem:[%s4463_s2 + $0x58] sm:$0xff] }
  0x1b   :  { %379 = vmatpush1.msra.mxu0 %v302_v56  ;;  %828 = vmatpush1.msra.mxu1 %v304_v57  ;;  %v165_v19 = vadd.f32 %v2599_v54, %v94_v16  ;;  %v166_v23 = vadd.f32 %v2599_v54, %v95_v20  ;;  %v167_v27 = vadd.f32 %v2599_v54, %v96_v24  ;;  %v32_v49 = vld [vmem:[%s4463_s2 + $0x60] sm:$0xff]  ;;  %v33_v55 = vld [vmem:[%s4463_s2 + $0x68] sm:$0xff]  ;;  %v35_v63 = vld [vmem:[%s4463_s2 + $0x78] sm:$0xff] }
  0x1c   :  { %380 = vmatprep.subr.mxu0 %v299_v58  ;;  %829 = vmatprep.subr.mxu1 %v301_v59  ;;  %v168_v31 = vadd.f32 %v2599_v54, %v97_v28  ;;  %v169_v35 = vadd.f32 %v2599_v54, %v98_v32  ;;  %v170_v39 = vadd.f32 %v2599_v54, %v99_v36  ;;  %v34_v59 = vld [vmem:[%s4463_s2 + $0x70] sm:$0xff]  ;;  %v39_v16 = vld [vmem:[%s4463_s2 + $0x98] sm:$0xff]  ;;  %v40_v20 = vld [vmem:[%s4463_s2 + $0xa0] sm:$0xff] }
  0x1d   :  { %381 = vmatpush1.msra.mxu0 %v298_v60  ;;  %830 = vmatpush1.msra.mxu1 %v300_v61  ;;  %v229_v22 = vmax.f32 %v165_v19, 0.0  ;;  %v230_v26 = vmax.f32 %v166_v23, 0.0  ;;  %v231_v30 = vmax.f32 %v167_v27, 0.0  ;;  %v100_v40 = vmul.f32 %v2590_v51, %v29_v37  ;;  %v38_v12 = vld [vmem:[%s4463_s2 + $0x90] sm:$0xff]  ;;  %v41_v24 = vld [vmem:[%s4463_s2 + $0xa8] sm:$0xff]  ;;  %v43_v32 = vld [vmem:[%s4463_s2 + $0xb8] sm:$0xff] }
  0x1e   :  { %382 = vmatprep.subr.mxu0 %v295_v0  ;;  %831 = vmatprep.subr.mxu1 %v297_v1  ;;  %v232_v34 = vmax.f32 %v168_v31, 0.0  ;;  %v233_v38 = vmax.f32 %v169_v35, 0.0  ;;  %v234_v42 = vmax.f32 %v170_v39, 0.0  ;;  %v101_v44 = vmul.f32 %v2590_v51, %v30_v41  ;;  %v42_v28 = vld [vmem:[%s4463_s2 + $0xb0] sm:$0xff]  ;;  %v44_v36 = vld [vmem:[%s4463_s2 + $0xc0] sm:$0xff] }
  0x1f   :  { %383 = vmatpush1.msra.mxu0 %v294_v4  ;;  %832 = vmatpush1.msra.mxu1 %v296_v5  ;;  %v171_v43 = vadd.f32 %v2599_v54, %v100_v40  ;;  %v102_v48 = vmul.f32 %v2590_v51, %v31_v45  ;;  %v103_v53 = vmul.f32 %v2590_v51, %v32_v49  ;;  %v36_v4 = vld [vmem:[%s4463_s2 + $0x80] sm:$0xff]  ;;  %v45_v40 = vld [vmem:[%s4463_s2 + $0xc8] sm:$0xff] }
  0x20   :  { %384 = vmatprep.subr.mxu0 %v291_v6  ;;  %833 = vmatprep.subr.mxu1 %v293_v7  ;;  %v172_v47 = vadd.f32 %v2599_v54, %v101_v44  ;;  %v104_v58 = vmul.f32 %v2590_v51, %v33_v55  ;;  %v105_v62 = vmul.f32 %v2590_v51, %v34_v59  ;;  %v46_v44 = vld [vmem:[%s4463_s2 + $0xd0] sm:$0xff] }
  0x21   :  { %385 = vmatpush1.msra.mxu0 %v290_v8  ;;  %834 = vmatpush1.msra.mxu1 %v292_v9  ;;  %v235_v46 = vmax.f32 %v171_v43, 0.0  ;;  %v173_v52 = vadd.f32 %v2599_v54, %v102_v48  ;;  %v174_v57 = vadd.f32 %v2599_v54, %v103_v53  ;;  %v106_v2 = vmul.f32 %v2590_v51, %v35_v63  ;;  %v37_v8 = vld [vmem:[%s4463_s2 + $0x88] sm:$0xff]  ;;  %v47_v48 = vld [vmem:[%s4463_s2 + $0xd8] sm:$0xff]  ;;  %v48_v53 = vld [vmem:[%s4463_s2 + $0xe0] sm:$0xff] }
  0x22   :  { %419 = vmatmul.mubr.f32.vlgmr.msra.gmra.mxu0 %v226_v10  ;;  %868 = vmatmul.mubr.f32.vlgmr.msra.gmra.mxu1 %v226_v10  ;;  %v236_v50 = vmax.f32 %v172_v47, 0.0  ;;  %v175_v61 = vadd.f32 %v2599_v54, %v104_v58  ;;  %v176_v1 = vadd.f32 %v2599_v54, %v105_v62  ;;  %v107_v7 = vmul.f32 %v2590_v51, %v36_v4  ;;  %v49_v58 = vld [vmem:[%s4463_s2 + $0xe8] sm:$0xff]  ;;  %v50_v62 = vld [vmem:[%s4463_s2 + $0xf0] sm:$0xff] }
  0x23   :  { %424 = vmatprep.mubr.f32.mxu0 %v2398_v3  ;;  %873 = vmatprep.mubr.f32.mxu1 %v2398_v3  ;;  %v237_v56 = vmax.f32 %v173_v52, 0.0  ;;  %v238_v60 = vmax.f32 %v174_v57, 0.0  ;;  %v177_v6 = vadd.f32 %v2599_v54, %v106_v2  ;;  %v108_v11 = vmul.f32 %v2590_v51, %v37_v8  ;;  %v51_v2 = vld [vmem:[%s4463_s2 + $0xf8] sm:$0xff] }
  0x24   :  { %v239_v0 = vmax.f32 %v175_v61, 0.0  ;;  %v240_v5 = vmax.f32 %v176_v1, 0.0  ;;  %v178_v10 = vadd.f32 %v2599_v54, %v107_v7  ;;  %v109_v15 = vmul.f32 %v2590_v51, %v38_v12  ;;  %v52_v7 = vld [vmem:[%s4463_s2 + $0x100] sm:$0xff] }
  0x25   :  { %v241_v9 = vmax.f32 %v177_v6, 0.0  ;;  %v110_v19 = vmul.f32 %v2590_v51, %v39_v16  ;;  %v111_v23 = vmul.f32 %v2590_v51, %v40_v20  ;;  %v112_v27 = vmul.f32 %v2590_v51, %v41_v24 }
  0x26   :  { %425 = vmatmul.mubr.f32.gmra.mxu0 %v227_v14  ;;  %874 = vmatmul.mubr.f32.gmra.mxu1 %v227_v14  ;;  %v242_v13 = vmax.f32 %v178_v10, 0.0  ;;  %v179_v14 = vadd.f32 %v2599_v54, %v108_v11  ;;  %v113_v31 = vmul.f32 %v2590_v51, %v42_v28  ;;  %v114_v35 = vmul.f32 %v2590_v51, %v43_v32  ;;  %v53_v11 = vld [vmem:[%s4463_s2 + $0x108] sm:$0xff] }
  0x27   :  { %430 = vmatprep.mubr.f32.mxu0 %v2398_v3  ;;  %879 = vmatprep.mubr.f32.mxu1 %v2398_v3  ;;  %v115_v39 = vmul.f32 %v2590_v51, %v44_v36  ;;  %v116_v43 = vmul.f32 %v2590_v51, %v45_v40  ;;  %v117_v47 = vmul.f32 %v2590_v51, %v46_v44 }
  0x28   :  { %v243_v17 = vmax.f32 %v179_v14, 0.0  ;;  %v118_v52 = vmul.f32 %v2590_v51, %v47_v48  ;;  %v119_v57 = vmul.f32 %v2590_v51, %v48_v53  ;;  %v120_v61 = vmul.f32 %v2590_v51, %v49_v58 }
  0x29   :  { %v121_v1 = vmul.f32 %v2590_v51, %v50_v62  ;;  %v122_v6 = vmul.f32 %v2590_v51, %v51_v2  ;;  %v123_v10 = vmul.f32 %v2590_v51, %v52_v7  ;;  %v124_v14 = vmul.f32 %v2590_v51, %v53_v11 }
  0x2a   :  { %431 = vmatmul.mubr.f32.gmra.mxu0 %v228_v18  ;;  %880 = vmatmul.mubr.f32.gmra.mxu1 %v228_v18  ;;  %v180_v18 = vadd.f32 %v2599_v54, %v109_v15  ;;  %v54_v15 = vld [vmem:[%s4463_s2 + $0x110] sm:$0xff] }
  0x2b   :  { %436 = vmatprep.mubr.f32.mxu0 %v2398_v3  ;;  %885 = vmatprep.mubr.f32.mxu1 %v2398_v3 }
  0x2c   :  { %v244_v21 = vmax.f32 %v180_v18, 0.0  ;;  %v125_v18 = vmul.f32 %v2590_v51, %v54_v15 }
  0x2e   :  { %437 = vmatmul.mubr.f32.gmra.mxu0 %v229_v22  ;;  %886 = vmatmul.mubr.f32.gmra.mxu1 %v229_v22  ;;  %v181_v22 = vadd.f32 %v2599_v54, %v110_v19  ;;  %v55_v19 = vld [vmem:[%s4463_s2 + $0x118] sm:$0xff] }
  0x2f   :  { %442 = vmatprep.mubr.f32.mxu0 %v2398_v3  ;;  %891 = vmatprep.mubr.f32.mxu1 %v2398_v3 }
  0x30   :  { %v245_v25 = vmax.f32 %v181_v22, 0.0  ;;  %v126_v22 = vmul.f32 %v2590_v51, %v55_v19 }
  0x32   :  { %443 = vmatmul.mubr.f32.gmra.mxu0 %v230_v26  ;;  %892 = vmatmul.mubr.f32.gmra.mxu1 %v230_v26  ;;  %v182_v26 = vadd.f32 %v2599_v54, %v111_v23  ;;  %v56_v23 = vld [vmem:[%s4463_s2 + $0x120] sm:$0xff] }
  0x33   :  { %448 = vmatprep.mubr.f32.mxu0 %v2398_v3  ;;  %897 = vmatprep.mubr.f32.mxu1 %v2398_v3 }
  0x34   :  { %v246_v29 = vmax.f32 %v182_v26, 0.0  ;;  %v127_v26 = vmul.f32 %v2590_v51, %v56_v23  ;;  %v72_v23 = vld [vmem:[%s4463_s2 + $0x1a0] sm:$0xff] }
  0x36   :  { %449 = vmatmul.mubr.f32.gmra.mxu0 %v231_v30  ;;  %898 = vmatmul.mubr.f32.gmra.mxu1 %v231_v30  ;;  %v183_v30 = vadd.f32 %v2599_v54, %v112_v27  ;;  %v57_v27 = vld [vmem:[%s4463_s2 + $0x128] sm:$0xff] }
  0x37   :  { %454 = vmatprep.mubr.f32.mxu0 %v2398_v3  ;;  %903 = vmatprep.mubr.f32.mxu1 %v2398_v3 }
  0x38   :  { %v247_v33 = vmax.f32 %v183_v30, 0.0  ;;  %v128_v30 = vmul.f32 %v2590_v51, %v57_v27 }
  0x3a   :  { %455 = vmatmul.mubr.f32.gmra.mxu0 %v232_v34  ;;  %904 = vmatmul.mubr.f32.gmra.mxu1 %v232_v34  ;;  %v184_v34 = vadd.f32 %v2599_v54, %v113_v31  ;;  %v58_v31 = vld [vmem:[%s4463_s2 + $0x130] sm:$0xff] }
  0x3b   :  { %460 = vmatprep.mubr.f32.mxu0 %v2398_v3  ;;  %909 = vmatprep.mubr.f32.mxu1 %v2398_v3 }
  0x3c   :  { %v248_v37 = vmax.f32 %v184_v34, 0.0  ;;  %v129_v34 = vmul.f32 %v2590_v51, %v58_v31  ;;  %v143_v31 = vmul.f32 %v2590_v51, %v72_v23 }
  0x3e   :  { %461 = vmatmul.mubr.f32.gmra.mxu0 %v233_v38  ;;  %910 = vmatmul.mubr.f32.gmra.mxu1 %v233_v38  ;;  %v185_v38 = vadd.f32 %v2599_v54, %v114_v35  ;;  %v59_v35 = vld [vmem:[%s4463_s2 + $0x138] sm:$0xff] }
  0x3f   :  { %466 = vmatprep.mubr.f32.mxu0 %v2398_v3  ;;  %915 = vmatprep.mubr.f32.mxu1 %v2398_v3 }
  0x40   :  { %v249_v41 = vmax.f32 %v185_v38, 0.0  ;;  %v130_v38 = vmul.f32 %v2590_v51, %v59_v35 }
  0x42   :  { %467 = vmatmul.mubr.f32.gmra.mxu0 %v234_v42  ;;  %916 = vmatmul.mubr.f32.gmra.mxu1 %v234_v42  ;;  %v186_v42 = vadd.f32 %v2599_v54, %v115_v39  ;;  %v60_v39 = vld [vmem:[%s4463_s2 + $0x140] sm:$0xff] }
  0x43   :  { %472 = vmatprep.mubr.f32.mxu0 %v2398_v3  ;;  %921 = vmatprep.mubr.f32.mxu1 %v2398_v3 }
  0x44   :  { %v250_v45 = vmax.f32 %v186_v42, 0.0  ;;  %v131_v42 = vmul.f32 %v2590_v51, %v60_v39 }
  0x46   :  { %473 = vmatmul.mubr.f32.gmra.mxu0 %v235_v46  ;;  %922 = vmatmul.mubr.f32.gmra.mxu1 %v235_v46  ;;  %v187_v46 = vadd.f32 %v2599_v54, %v116_v43  ;;  %v61_v43 = vld [vmem:[%s4463_s2 + $0x148] sm:$0xff] }
  0x47   :  { %478 = vmatprep.mubr.f32.mxu0 %v2398_v3  ;;  %927 = vmatprep.mubr.f32.mxu1 %v2398_v3 }
  0x48   :  { %v251_v49 = vmax.f32 %v187_v46, 0.0  ;;  %v132_v46 = vmul.f32 %v2590_v51, %v61_v43 }
  0x4a   :  { %479 = vmatmul.mubr.f32.gmra.mxu0 %v236_v50  ;;  %928 = vmatmul.mubr.f32.gmra.mxu1 %v236_v50  ;;  %v188_v50 = vadd.f32 %v2599_v54, %v117_v47  ;;  %v62_v47 = vld [vmem:[%s4463_s2 + $0x150] sm:$0xff] }
  0x4b   :  { %484 = vmatprep.mubr.f32.mxu0 %v2398_v3  ;;  %933 = vmatprep.mubr.f32.mxu1 %v2398_v3 }
  0x4c   :  { %v252_v55 = vmax.f32 %v188_v50, 0.0  ;;  %v133_v50 = vmul.f32 %v2590_v51, %v62_v47 }
  0x4e   :  { %485 = vmatmul.mubr.f32.gmra.mxu0 %v237_v56  ;;  %934 = vmatmul.mubr.f32.gmra.mxu1 %v237_v56  ;;  %v189_v56 = vadd.f32 %v2599_v54, %v118_v52  ;;  %v63_v52 = vld [vmem:[%s4463_s2 + $0x158] sm:$0xff] }
  0x4f   :  { %490 = vmatprep.mubr.f32.mxu0 %v2398_v3  ;;  %939 = vmatprep.mubr.f32.mxu1 %v2398_v3 }
  0x50   :  { %v253_v59 = vmax.f32 %v189_v56, 0.0  ;;  %v134_v56 = vmul.f32 %v2590_v51, %v63_v52 }
  0x52   :  { %491 = vmatmul.mubr.f32.gmra.mxu0 %v238_v60  ;;  %940 = vmatmul.mubr.f32.gmra.mxu1 %v238_v60  ;;  %v190_v60 = vadd.f32 %v2599_v54, %v119_v57  ;;  %v64_v57 = vld [vmem:[%s4463_s2 + $0x160] sm:$0xff] }
  0x53   :  { %496 = vmatprep.mubr.f32.mxu0 %v2398_v3  ;;  %945 = vmatprep.mubr.f32.mxu1 %v2398_v3 }
  0x54   :  { %v254_v63 = vmax.f32 %v190_v60, 0.0  ;;  %v135_v60 = vmul.f32 %v2590_v51, %v64_v57 }
  0x56   :  { %497 = vmatmul.mubr.f32.gmra.mxu0 %v239_v0  ;;  %946 = vmatmul.mubr.f32.gmra.mxu1 %v239_v0  ;;  %v191_v0 = vadd.f32 %v2599_v54, %v120_v61  ;;  %v65_v61 = vld [vmem:[%s4463_s2 + $0x168] sm:$0xff] }
  0x57   :  { %502 = vmatprep.mubr.f32.mxu0 %v2398_v3  ;;  %951 = vmatprep.mubr.f32.mxu1 %v2398_v3 }
  0x58   :  { %v255_v4 = vmax.f32 %v191_v0, 0.0  ;;  %v136_v0 = vmul.f32 %v2590_v51, %v65_v61 }
  0x5a   :  { %503 = vmatmul.mubr.f32.gmra.mxu0 %v240_v5  ;;  %952 = vmatmul.mubr.f32.gmra.mxu1 %v240_v5  ;;  %v192_v5 = vadd.f32 %v2599_v54, %v121_v1  ;;  %v66_v1 = vld [vmem:[%s4463_s2 + $0x170] sm:$0xff] }
  0x5b   :  { %508 = vmatprep.mubr.f32.mxu0 %v2398_v3  ;;  %957 = vmatprep.mubr.f32.mxu1 %v2398_v3 }
  0x5c   :  { %v256_v8 = vmax.f32 %v192_v5, 0.0  ;;  %v137_v5 = vmul.f32 %v2590_v51, %v66_v1 }
  0x5e   :  { %509 = vmatmul.mubr.f32.gmra.mxu0 %v241_v9  ;;  %958 = vmatmul.mubr.f32.gmra.mxu1 %v241_v9  ;;  %v193_v9 = vadd.f32 %v2599_v54, %v122_v6  ;;  %v67_v6 = vld [vmem:[%s4463_s2 + $0x178] sm:$0xff] }
  0x5f   :  { %514 = vmatprep.mubr.f32.mxu0 %v2398_v3  ;;  %963 = vmatprep.mubr.f32.mxu1 %v2398_v3 }
  0x60   :  { %v257_v12 = vmax.f32 %v193_v9, 0.0  ;;  %v138_v9 = vmul.f32 %v2590_v51, %v67_v6 }
  0x62   :  { %515 = vmatmul.mubr.f32.gmra.mxu0 %v242_v13  ;;  %964 = vmatmul.mubr.f32.gmra.mxu1 %v242_v13  ;;  %v194_v13 = vadd.f32 %v2599_v54, %v123_v10  ;;  %v68_v10 = vld [vmem:[%s4463_s2 + $0x180] sm:$0xff] }
  0x63   :  { %520 = vmatprep.mubr.f32.mxu0 %v2398_v3  ;;  %969 = vmatprep.mubr.f32.mxu1 %v2398_v3 }
  0x64   :  { %v258_v16 = vmax.f32 %v194_v13, 0.0  ;;  %v139_v13 = vmul.f32 %v2590_v51, %v68_v10 }
  0x66   :  { %521 = vmatmul.mubr.f32.gmra.mxu0 %v243_v17  ;;  %970 = vmatmul.mubr.f32.gmra.mxu1 %v243_v17  ;;  %v195_v17 = vadd.f32 %v2599_v54, %v124_v14  ;;  %v69_v14 = vld [vmem:[%s4463_s2 + $0x188] sm:$0xff] }
  0x67   :  { %526 = vmatprep.mubr.f32.mxu0 %v2398_v3  ;;  %975 = vmatprep.mubr.f32.mxu1 %v2398_v3 }
  0x68   :  { %v259_v20 = vmax.f32 %v195_v17, 0.0  ;;  %v140_v17 = vmul.f32 %v2590_v51, %v69_v14 }
  0x6a   :  { %527 = vmatmul.mubr.f32.gmra.mxu0 %v244_v21  ;;  %976 = vmatmul.mubr.f32.gmra.mxu1 %v244_v21  ;;  %v196_v21 = vadd.f32 %v2599_v54, %v125_v18  ;;  %v70_v18 = vld [vmem:[%s4463_s2 + $0x190] sm:$0xff] }
  0x6b   :  { %532 = vmatprep.mubr.f32.mxu0 %v2398_v3  ;;  %981 = vmatprep.mubr.f32.mxu1 %v2398_v3 }
  0x6c   :  { %v260_v24 = vmax.f32 %v196_v21, 0.0  ;;  %v141_v21 = vmul.f32 %v2590_v51, %v70_v18 }
  0x6e   :  { %533 = vmatmul.mubr.f32.gmra.mxu0 %v245_v25  ;;  %982 = vmatmul.mubr.f32.gmra.mxu1 %v245_v25  ;;  %v197_v25 = vadd.f32 %v2599_v54, %v126_v22  ;;  %v71_v22 = vld [vmem:[%s4463_s2 + $0x198] sm:$0xff]  ;;  %v212_v27 = vadd.f32 %v2599_v54, %v141_v21 }
  0x6f   :  { %538 = vmatprep.mubr.f32.mxu0 %v2398_v3  ;;  %987 = vmatprep.mubr.f32.mxu1 %v2398_v3 }
  0x70   :  { %v261_v28 = vmax.f32 %v197_v25, 0.0 }
  0x72   :  { %539 = vmatmul.mubr.f32.gmra.mxu0 %v246_v29  ;;  %988 = vmatmul.mubr.f32.gmra.mxu1 %v246_v29  ;;  %v198_v29 = vadd.f32 %v2599_v54, %v127_v26 }
  0x73   :  { %544 = vmatprep.mubr.f32.mxu0 %v2398_v3  ;;  %993 = vmatprep.mubr.f32.mxu1 %v2398_v3 }
  0x74   :  { %v262_v32 = vmax.f32 %v198_v29, 0.0 }
  0x76   :  { %545 = vmatmul.mubr.f32.gmra.mxu0 %v247_v33  ;;  %994 = vmatmul.mubr.f32.gmra.mxu1 %v247_v33  ;;  %v199_v33 = vadd.f32 %v2599_v54, %v128_v30 }
  0x77   :  { %550 = vmatprep.mubr.f32.mxu0 %v2398_v3  ;;  %999 = vmatprep.mubr.f32.mxu1 %v2398_v3 }
  0x78   :  { %v263_v36 = vmax.f32 %v199_v33, 0.0 }
  0x7a   :  { %551 = vmatmul.mubr.f32.gmra.mxu0 %v248_v37  ;;  %1000 = vmatmul.mubr.f32.gmra.mxu1 %v248_v37  ;;  %v200_v37 = vadd.f32 %v2599_v54, %v129_v34 }
  0x7b   :  { %556 = vmatprep.mubr.f32.mxu0 %v2398_v3  ;;  %1005 = vmatprep.mubr.f32.mxu1 %v2398_v3 }
  0x7c   :  { %v264_v40 = vmax.f32 %v200_v37, 0.0  ;;  %v276_v37 = vmax.f32 %v212_v27, 0.0 }
  0x7e   :  { %557 = vmatmul.mubr.f32.gmra.mxu0 %v249_v41  ;;  %1006 = vmatmul.mubr.f32.gmra.mxu1 %v249_v41  ;;  %v201_v41 = vadd.f32 %v2599_v54, %v130_v38 }
  0x7f   :  { %562 = vmatprep.mubr.f32.mxu0 %v2398_v3  ;;  %1011 = vmatprep.mubr.f32.mxu1 %v2398_v3 }
  0x80   :  { %v265_v44 = vmax.f32 %v201_v41, 0.0 }
  0x82   :  { %563 = vmatmul.mubr.f32.gmra.mxu0 %v250_v45  ;;  %1012 = vmatmul.mubr.f32.gmra.mxu1 %v250_v45  ;;  %v202_v45 = vadd.f32 %v2599_v54, %v131_v42 }
  0x83   :  { %568 = vmatprep.mubr.f32.mxu0 %v2398_v3  ;;  %1017 = vmatprep.mubr.f32.mxu1 %v2398_v3 }
  0x84   :  { %v266_v48 = vmax.f32 %v202_v45, 0.0 }
  0x86   :  { %569 = vmatmul.mubr.f32.gmra.mxu0 %v251_v49  ;;  %1018 = vmatmul.mubr.f32.gmra.mxu1 %v251_v49  ;;  %v203_v49 = vadd.f32 %v2599_v54, %v132_v46  ;;  %v3025_v46 = vadd.f32 %v2599_v54, %v143_v31 }
  0x87   :  { %574 = vmatprep.mubr.f32.mxu0 %v2398_v3  ;;  %1023 = vmatprep.mubr.f32.mxu1 %v2398_v3 }
  0x88   :  { %v267_v53 = vmax.f32 %v203_v49, 0.0 }
  0x8a   :  { %575 = vmatmul.mubr.f32.gmra.mxu0 %v252_v55  ;;  %1024 = vmatmul.mubr.f32.gmra.mxu1 %v252_v55  ;;  %v204_v55 = vadd.f32 %v2599_v54, %v133_v50 }
  0x8b   :  { %580 = vmatprep.mubr.f32.mxu0 %v2398_v3  ;;  %1029 = vmatprep.mubr.f32.mxu1 %v2398_v3 }
  0x8c   :  { %v268_v58 = vmax.f32 %v204_v55, 0.0 }
  0x8e   :  { %581 = vmatmul.mubr.f32.gmra.mxu0 %v253_v59  ;;  %1030 = vmatmul.mubr.f32.gmra.mxu1 %v253_v59  ;;  %v205_v59 = vadd.f32 %v2599_v54, %v134_v56 }
  0x8f   :  { %586 = vmatprep.mubr.f32.mxu0 %v2398_v3  ;;  %1035 = vmatprep.mubr.f32.mxu1 %v2398_v3 }
  0x90   :  { %v269_v62 = vmax.f32 %v205_v59, 0.0 }
  0x92   :  { %587 = vmatmul.mubr.f32.gmra.mxu0 %v254_v63  ;;  %1036 = vmatmul.mubr.f32.gmra.mxu1 %v254_v63  ;;  %v206_v63 = vadd.f32 %v2599_v54, %v135_v60 }
  0x93   :  { %592 = vmatprep.mubr.f32.mxu0 %v2398_v3  ;;  %1041 = vmatprep.mubr.f32.mxu1 %v2398_v3 }
  0x94   :  { %v270_v2 = vmax.f32 %v206_v63, 0.0 }
  0x96   :  { %593 = vmatmul.mubr.f32.gmra.mxu0 %v255_v4  ;;  %1042 = vmatmul.mubr.f32.gmra.mxu1 %v255_v4  ;;  %v207_v4 = vadd.f32 %v2599_v54, %v136_v0 }
  0x97   :  { %598 = vmatprep.mubr.f32.mxu0 %v2398_v3  ;;  %1047 = vmatprep.mubr.f32.mxu1 %v2398_v3 }
  0x98   :  { %v271_v7 = vmax.f32 %v207_v4, 0.0 }
  0x9a   :  { %599 = vmatmul.mubr.f32.gmra.mxu0 %v256_v8  ;;  %1048 = vmatmul.mubr.f32.gmra.mxu1 %v256_v8  ;;  %v208_v8 = vadd.f32 %v2599_v54, %v137_v5 }
  0x9b   :  { %604 = vmatprep.mubr.f32.mxu0 %v2398_v3  ;;  %1053 = vmatprep.mubr.f32.mxu1 %v2398_v3 }
  0x9c   :  { %v272_v11 = vmax.f32 %v208_v8, 0.0 }
  0x9e   :  { %605 = vmatmul.mubr.f32.gmra.mxu0 %v257_v12  ;;  %1054 = vmatmul.mubr.f32.gmra.mxu1 %v257_v12  ;;  %v209_v12 = vadd.f32 %v2599_v54, %v138_v9 }
  0x9f   :  { %610 = vmatprep.mubr.f32.mxu0 %v2398_v3  ;;  %1059 = vmatprep.mubr.f32.mxu1 %v2398_v3 }
  0xa0   :  { %v273_v15 = vmax.f32 %v209_v12, 0.0 }
  0xa2   :  { %611 = vmatmul.mubr.f32.gmra.mxu0 %v258_v16  ;;  %1060 = vmatmul.mubr.f32.gmra.mxu1 %v258_v16  ;;  %v210_v16 = vadd.f32 %v2599_v54, %v139_v13 }
  0xa3   :  { %616 = vmatprep.mubr.f32.mxu0 %v2398_v3  ;;  %1065 = vmatprep.mubr.f32.mxu1 %v2398_v3 }
  0xa4   :  { %v274_v19 = vmax.f32 %v210_v16, 0.0 }
  0xa6   :  { %617 = vmatmul.mubr.f32.gmra.mxu0 %v259_v20  ;;  %1066 = vmatmul.mubr.f32.gmra.mxu1 %v259_v20  ;;  %v211_v20 = vadd.f32 %v2599_v54, %v140_v17 }
  0xa7   :  { %622 = vmatprep.mubr.f32.mxu0 %v2398_v3  ;;  %1071 = vmatprep.mubr.f32.mxu1 %v2398_v3 }
  0xa8   :  { %v275_v26 = vmax.f32 %v211_v20, 0.0  ;;  %v75_v20 = vld [vmem:[%s4463_s2 + $0x1b8] sm:$0xff] }
  0xaa   :  { %623 = vmatmul.mubr.f32.gmra.mxu0 %v260_v24  ;;  %1072 = vmatmul.mubr.f32.gmra.mxu1 %v260_v24 }
  0xab   :  { %628 = vmatprep.mubr.f32.mxu0 %v2398_v3  ;;  %1077 = vmatprep.mubr.f32.mxu1 %v2398_v3 }
  0xae   :  { %629 = vmatmul.mubr.f32.gmra.mxu0 %v261_v28  ;;  %1078 = vmatmul.mubr.f32.gmra.mxu1 %v261_v28  ;;  %v142_v28 = vmul.f32 %v2590_v51, %v71_v22 }
  0xaf   :  { %634 = vmatprep.mubr.f32.mxu0 %v2398_v3  ;;  %1083 = vmatprep.mubr.f32.mxu1 %v2398_v3 }
  0xb0   :  { %v213_v38 = vadd.f32 %v2599_v54, %v142_v28 }
  0xb2   :  { %635 = vmatmul.mubr.f32.gmra.mxu0 %v262_v32  ;;  %1084 = vmatmul.mubr.f32.gmra.mxu1 %v262_v32  ;;  %v73_v32 = vld [vmem:[%s4463_s2 + $0x1a8] sm:$0xff]  ;;  %v277_v60 = vmax.f32 %v213_v38, 0.0 }
  0xb3   :  { %640 = vmatprep.mubr.f32.mxu0 %v2398_v3  ;;  %1089 = vmatprep.mubr.f32.mxu1 %v2398_v3  ;;  %v144_v47 = vmul.f32 %v2590_v51, %v73_v32 }
  0xb6   :  { %641 = vmatmul.mubr.f32.gmra.mxu0 %v263_v36  ;;  %1090 = vmatmul.mubr.f32.gmra.mxu1 %v263_v36 }
  0xb7   :  { %646 = vmatprep.mubr.f32.mxu0 %v2398_v3  ;;  %1095 = vmatprep.mubr.f32.mxu1 %v2398_v3 }
  0xba   :  { %647 = vmatmul.mubr.f32.gmra.mxu0 %v264_v40  ;;  %1096 = vmatmul.mubr.f32.gmra.mxu1 %v264_v40 }
  0xbb   :  { %652 = vmatprep.mubr.f32.mxu0 %v2398_v3  ;;  %1101 = vmatprep.mubr.f32.mxu1 %v2398_v3 }
  0xbe   :  { %653 = vmatmul.mubr.f32.gmra.mxu0 %v265_v44  ;;  %1102 = vmatmul.mubr.f32.gmra.mxu1 %v265_v44 }
  0xbf   :  { %658 = vmatprep.mubr.f32.mxu0 %v2398_v3  ;;  %1107 = vmatprep.mubr.f32.mxu1 %v2398_v3 }
  0xc2   :  { %659 = vmatmul.mubr.f32.gmra.mxu0 %v266_v48  ;;  %1108 = vmatmul.mubr.f32.gmra.mxu1 %v266_v48 }
  0xc3   :  { %664 = vmatprep.mubr.f32.mxu0 %v2398_v3  ;;  %1113 = vmatprep.mubr.f32.mxu1 %v2398_v3 }
  0xc6   :  { %665 = vmatmul.mubr.f32.gmra.mxu0 %v267_v53  ;;  %1114 = vmatmul.mubr.f32.gmra.mxu1 %v267_v53  ;;  %v74_v53 = vld [vmem:[%s4463_s2 + $0x1b0] sm:$0xff] }
  0xc7   :  { %670 = vmatprep.mubr.f32.mxu0 %v2398_v3  ;;  %1119 = vmatprep.mubr.f32.mxu1 %v2398_v3  ;;  %v145_v6 = vmul.f32 %v2590_v51, %v74_v53  ;;  %v278_v51 = vmax.f32 %v3025_v46, 0.0 }
  0xca   :  { %671 = vmatmul.mubr.f32.gmra.mxu0 %v268_v58  ;;  %1120 = vmatmul.mubr.f32.gmra.mxu1 %v268_v58 }
  0xcb   :  { %676 = vmatprep.mubr.f32.mxu0 %v2398_v3  ;;  %1125 = vmatprep.mubr.f32.mxu1 %v2398_v3 }
  0xce   :  { %677 = vmatmul.mubr.f32.gmra.mxu0 %v269_v62  ;;  %1126 = vmatmul.mubr.f32.gmra.mxu1 %v269_v62 }
  0xcf   :  { %682 = vmatprep.mubr.f32.mxu0 %v2398_v3  ;;  %1131 = vmatprep.mubr.f32.mxu1 %v2398_v3 }
  0xd2   :  { %683 = vmatmul.mubr.f32.gmra.mxu0 %v270_v2  ;;  %1132 = vmatmul.mubr.f32.gmra.mxu1 %v270_v2 }
  0xd3   :  { %688 = vmatprep.mubr.f32.mxu0 %v2398_v3  ;;  %1137 = vmatprep.mubr.f32.mxu1 %v2398_v3 }
  0xd6   :  { %689 = vmatmul.mubr.f32.gmra.mxu0 %v271_v7  ;;  %1138 = vmatmul.mubr.f32.gmra.mxu1 %v271_v7 }
  0xd7   :  { %694 = vmatprep.mubr.f32.mxu0 %v2398_v3  ;;  %1143 = vmatprep.mubr.f32.mxu1 %v2398_v3 }
  0xda   :  { %695 = vmatmul.mubr.f32.gmra.mxu0 %v272_v11  ;;  %1144 = vmatmul.mubr.f32.gmra.mxu1 %v272_v11 }
  0xdb   :  { %700 = vmatprep.mubr.f32.mxu0 %v2398_v3  ;;  %1149 = vmatprep.mubr.f32.mxu1 %v2398_v3 }
  0xde   :  { %701 = vmatmul.mubr.f32.gmra.mxu0 %v273_v15  ;;  %1150 = vmatmul.mubr.f32.gmra.mxu1 %v273_v15  ;;  %v215_v15 = vadd.f32 %v2599_v54, %v144_v47 }
  0xdf   :  { %706 = vmatprep.mubr.f32.mxu0 %v2398_v3  ;;  %1155 = vmatprep.mubr.f32.mxu1 %v2398_v3 }
  0xe2   :  { %v420_v24 = vpop.f32.mrf.mxu0  ;;  %707 = vmatmul.mubr.f32.gmra.mxu0 %v274_v19  ;;  %v869_v25 = vpop.f32.mrf.mxu1  ;;  %1156 = vmatmul.mubr.f32.gmra.mxu1 %v274_v19 }
  0xe3   :  { %1252 = vst [vmem:[%s4465_s4] sm:$0xff] %v420_v24  ;;  %1254 = vst [vmem:[%s4465_s4 + $0x10] sm:$0xff] %v869_v25  ;;  %712 = vmatprep.mubr.f32.mxu0 %v2398_v3  ;;  %1161 = vmatprep.mubr.f32.mxu1 %v2398_v3  ;;  %v1818_v33 = vmul.f32 %v420_v24, %v420_v24  ;;  %v1820_v34 = vmul.f32 %v869_v25, %v869_v25 }
  0xe4   :  { %v422_v29 = vpop.f32.mrf.mxu0  ;;  %v871_v30 = vpop.f32.mrf.mxu1 }
  0xe5   :  { %1253 = vst [vmem:[%s4465_s4 + $0x8] sm:$0xff] %v422_v29  ;;  %1255 = vst [vmem:[%s4465_s4 + $0x18] sm:$0xff] %v871_v30  ;;  %v1819_v43 = vmul.f32 %v422_v29, %v422_v29  ;;  %v1821_v55 = vmul.f32 %v871_v30, %v871_v30 }
  0xe6   :  { %v426_v35 = vpop.f32.mrf.mxu0  ;;  %713 = vmatmul.mubr.f32.gmra.mxu0 %v275_v26  ;;  %v875_v36 = vpop.f32.mrf.mxu1  ;;  %1162 = vmatmul.mubr.f32.gmra.mxu1 %v275_v26 }
  0xe7   :  { %1256 = vst [vmem:[%s4465_s4 + $0x20] sm:$0xff] %v426_v35  ;;  %v1508_v39 = vadd.f32 %v426_v35, %v420_v24  ;;  %v1822_v40 = vmul.f32 %v426_v35, %v426_v35  ;;  %1258 = vst [vmem:[%s4465_s4 + $0x30] sm:$0xff] %v875_v36  ;;  %v1646_v41 = vadd.f32 %v875_v36, %v869_v25  ;;  %718 = vmatprep.mubr.f32.mxu0 %v2398_v3  ;;  %v3068_v24 = vld [vmem:[%s4464_s1] ss:$0 sm:$0xff] }
  0xe8   :  { %v1824_v42 = vmul.f32 %v875_v36, %v875_v36  ;;  %v428_v44 = vpop.f32.mrf.mxu0  ;;  %v877_v45 = vpop.f32.mrf.mxu1  ;;  %1167 = vmatprep.mubr.f32.mxu1 %v2398_v3  ;;  %v3071_v25 = vadd.f32 %v3068_v24, %v145_v6  ;;  %v279_v35 = vmax.f32 %v215_v15, 0.0  ;;  %v3085_v36 = vld [vmem:[%s4462_s0] ss:$0 sm:$0xff] }
  0xe9   :  { %v2074_v48 = vadd.f32 %v1822_v40, %v1818_v33  ;;  %1257 = vst [vmem:[%s4465_s4 + $0x28] sm:$0xff] %v428_v44  ;;  %v1577_v50 = vadd.f32 %v428_v44, %v422_v29  ;;  %v1823_v52 = vmul.f32 %v428_v44, %v428_v44  ;;  %1259 = vst [vmem:[%s4465_s4 + $0x38] sm:$0xff] %v877_v45 }
  0xea   :  { %v2212_v49 = vadd.f32 %v1824_v42, %v1820_v34  ;;  %v1715_v56 = vadd.f32 %v877_v45, %v871_v30  ;;  %v1825_v57 = vmul.f32 %v877_v45, %v877_v45  ;;  %v432_v58 = vpop.f32.mrf.mxu0  ;;  %719 = vmatmul.mubr.f32.gmra.mxu0 %v276_v37  ;;  %v881_v59 = vpop.f32.mrf.mxu1  ;;  %1168 = vmatmul.mubr.f32.gmra.mxu1 %v276_v37  ;;  %v76_v30 = vld [vmem:[%s4463_s2 + $0x1c0] sm:$0xff] }
  0xeb   :  { %v2143_v61 = vadd.f32 %v1823_v52, %v1819_v43  ;;  %1260 = vst [vmem:[%s4465_s4 + $0x40] sm:$0xff] %v432_v58  ;;  %v1509_v62 = vadd.f32 %v1508_v39, %v432_v58  ;;  %v1826_v63 = vmul.f32 %v432_v58, %v432_v58  ;;  %1262 = vst [vmem:[%s4465_s4 + $0x50] sm:$0xff] %v881_v59  ;;  %724 = vmatprep.mubr.f32.mxu0 %v2398_v3 }
  0xec   :  { %v1647_v0 = vadd.f32 %v1646_v41, %v881_v59  ;;  %v2281_v1 = vadd.f32 %v1825_v57, %v1821_v55  ;;  %v1828_v2 = vmul.f32 %v881_v59, %v881_v59  ;;  %v434_v4 = vpop.f32.mrf.mxu0  ;;  %v883_v5 = vpop.f32.mrf.mxu1  ;;  %1173 = vmatprep.mubr.f32.mxu1 %v2398_v3  ;;  %v146_v37 = vmul.f32 %v3085_v36, %v75_v20 }
  0xed   :  { %v2075_v7 = vadd.f32 %v2074_v48, %v1826_v63  ;;  %1261 = vst [vmem:[%s4465_s4 + $0x48] sm:$0xff] %v434_v4  ;;  %v1578_v8 = vadd.f32 %v1577_v50, %v434_v4  ;;  %v1827_v9 = vmul.f32 %v434_v4, %v434_v4  ;;  %1263 = vst [vmem:[%s4465_s4 + $0x58] sm:$0xff] %v883_v5  ;;  %v280_v57 = vmax.f32 %v3071_v25, 0.0  ;;  %v77_v63 = vld [vmem:[%s4463_s2 + $0x1c8] sm:$0xff] }
  0xee   :  { %v1716_v10 = vadd.f32 %v1715_v56, %v883_v5  ;;  %v2213_v11 = vadd.f32 %v2212_v49, %v1828_v2  ;;  %v1829_v12 = vmul.f32 %v883_v5, %v883_v5  ;;  %v438_v13 = vpop.f32.mrf.mxu0  ;;  %725 = vmatmul.mubr.f32.gmra.mxu0 %v277_v60  ;;  %v887_v14 = vpop.f32.mrf.mxu1  ;;  %1174 = vmatmul.mubr.f32.gmra.mxu1 %v277_v60 }
  0xef   :  { %v2144_v16 = vadd.f32 %v2143_v61, %v1827_v9  ;;  %1264 = vst [vmem:[%s4465_s4 + $0x60] sm:$0xff] %v438_v13  ;;  %v1510_v17 = vadd.f32 %v1509_v62, %v438_v13  ;;  %v1830_v18 = vmul.f32 %v438_v13, %v438_v13  ;;  %1266 = vst [vmem:[%s4465_s4 + $0x70] sm:$0xff] %v887_v14  ;;  %730 = vmatprep.mubr.f32.mxu0 %v2398_v3 }
  0xf0   :  { %v1648_v19 = vadd.f32 %v1647_v0, %v887_v14  ;;  %v2282_v21 = vadd.f32 %v2281_v1, %v1829_v12  ;;  %v1832_v54 = vmul.f32 %v887_v14, %v887_v14  ;;  %v440_v22 = vpop.f32.mrf.mxu0  ;;  %v889_v23 = vpop.f32.mrf.mxu1  ;;  %1179 = vmatprep.mubr.f32.mxu1 %v2398_v3  ;;  %v147_v46 = vmul.f32 %v3085_v36, %v76_v30 }
  0xf1   :  { %v2076_v26 = vadd.f32 %v2075_v7, %v1830_v18  ;;  %1265 = vst [vmem:[%s4465_s4 + $0x68] sm:$0xff] %v440_v22  ;;  %v1579_v27 = vadd.f32 %v1578_v8, %v440_v22  ;;  %v1831_v28 = vmul.f32 %v440_v22, %v440_v22  ;;  %1267 = vst [vmem:[%s4465_s4 + $0x78] sm:$0xff] %v889_v23 }
  0xf2   :  { %v1717_v29 = vadd.f32 %v1716_v10, %v889_v23  ;;  %v2214_v31 = vadd.f32 %v2213_v11, %v1832_v54  ;;  %v1833_v32 = vmul.f32 %v889_v23, %v889_v23  ;;  %v444_v33 = vpop.f32.mrf.mxu0  ;;  %731 = vmatmul.mubr.f32.gmra.mxu0 %v278_v51  ;;  %v893_v34 = vpop.f32.mrf.mxu1  ;;  %1180 = vmatmul.mubr.f32.gmra.mxu1 %v278_v51  ;;  %v78_v10 = vld [vmem:[%s4463_s2 + $0x1d0] sm:$0xff] }
  0xf3   :  { %v2145_v38 = vadd.f32 %v2144_v16, %v1831_v28  ;;  %1268 = vst [vmem:[%s4465_s4 + $0x80] sm:$0xff] %v444_v33  ;;  %v1511_v39 = vadd.f32 %v1510_v17, %v444_v33  ;;  %v1834_v40 = vmul.f32 %v444_v33, %v444_v33  ;;  %1270 = vst [vmem:[%s4465_s4 + $0x90] sm:$0xff] %v893_v34  ;;  %736 = vmatprep.mubr.f32.mxu0 %v2398_v3 }
  0xf4   :  { %v1649_v41 = vadd.f32 %v1648_v19, %v893_v34  ;;  %v2283_v42 = vadd.f32 %v2282_v21, %v1833_v32  ;;  %v1836_v43 = vmul.f32 %v893_v34, %v893_v34  ;;  %v446_v44 = vpop.f32.mrf.mxu0  ;;  %v895_v45 = vpop.f32.mrf.mxu1  ;;  %1185 = vmatprep.mubr.f32.mxu1 %v2398_v3  ;;  %v217_v58 = vadd.f32 %v3068_v24, %v146_v37 }
  0xf5   :  { %v2077_v47 = vadd.f32 %v2076_v26, %v1834_v40  ;;  %1269 = vst [vmem:[%s4465_s4 + $0x88] sm:$0xff] %v446_v44  ;;  %v1580_v48 = vadd.f32 %v1579_v27, %v446_v44  ;;  %v1835_v49 = vmul.f32 %v446_v44, %v446_v44  ;;  %1271 = vst [vmem:[%s4465_s4 + $0x98] sm:$0xff] %v895_v45  ;;  %v79_v40 = vld [vmem:[%s4463_s2 + $0x1d8] sm:$0xff] }
  0xf6   :  { %v1718_v50 = vadd.f32 %v1717_v29, %v895_v45  ;;  %v2215_v52 = vadd.f32 %v2214_v31, %v1836_v43  ;;  %v1837_v53 = vmul.f32 %v895_v45, %v895_v45  ;;  %v450_v55 = vpop.f32.mrf.mxu0  ;;  %737 = vmatmul.mubr.f32.gmra.mxu0 %v279_v35  ;;  %v899_v56 = vpop.f32.mrf.mxu1  ;;  %1186 = vmatmul.mubr.f32.gmra.mxu1 %v279_v35  ;;  %v281_v51 = vmax.f32 %v217_v58, 0.0 }
  0xf7   :  { %v2146_v59 = vadd.f32 %v2145_v38, %v1835_v49  ;;  %1272 = vst [vmem:[%s4465_s4 + $0xa0] sm:$0xff] %v450_v55  ;;  %v1512_v60 = vadd.f32 %v1511_v39, %v450_v55  ;;  %v1838_v61 = vmul.f32 %v450_v55, %v450_v55  ;;  %1274 = vst [vmem:[%s4465_s4 + $0xb0] sm:$0xff] %v899_v56  ;;  %742 = vmatprep.mubr.f32.mxu0 %v2398_v3 }
  0xf8   :  { %v1650_v62 = vadd.f32 %v1649_v41, %v899_v56  ;;  %v2284_v0 = vadd.f32 %v2283_v42, %v1837_v53  ;;  %v1840_v1 = vmul.f32 %v899_v56, %v899_v56  ;;  %v452_v2 = vpop.f32.mrf.mxu0  ;;  %v901_v4 = vpop.f32.mrf.mxu1  ;;  %1191 = vmatprep.mubr.f32.mxu1 %v2398_v3  ;;  %v3117_v5 = vadd.f32 %v3068_v24, %v147_v46 }
  0xf9   :  { %v2078_v6 = vadd.f32 %v2077_v47, %v1838_v61  ;;  %1273 = vst [vmem:[%s4465_s4 + $0xa8] sm:$0xff] %v452_v2  ;;  %v1581_v7 = vadd.f32 %v1580_v48, %v452_v2  ;;  %v1839_v8 = vmul.f32 %v452_v2, %v452_v2  ;;  %1275 = vst [vmem:[%s4465_s4 + $0xb8] sm:$0xff] %v901_v4 }
  0xfa   :  { %v1719_v9 = vadd.f32 %v1718_v50, %v901_v4  ;;  %v2216_v11 = vadd.f32 %v2215_v52, %v1840_v1  ;;  %v1841_v12 = vmul.f32 %v901_v4, %v901_v4  ;;  %v456_v13 = vpop.f32.mrf.mxu0  ;;  %743 = vmatmul.mubr.f32.gmra.mxu0 %v280_v57  ;;  %v905_v14 = vpop.f32.mrf.mxu1  ;;  %1192 = vmatmul.mubr.f32.gmra.mxu1 %v280_v57  ;;  %v282_v33 = vmax.f32 %v3117_v5, 0.0  ;;  %v80_v50 = vld [vmem:[%s4463_s2 + $0x1e0] sm:$0xff] }
  0xfb   :  { %v148_v15 = vmul.f32 %v3085_v36, %v77_v63  ;;  %v2147_v16 = vadd.f32 %v2146_v59, %v1839_v8  ;;  %1276 = vst [vmem:[%s4465_s4 + $0xc0] sm:$0xff] %v456_v13  ;;  %v1513_v17 = vadd.f32 %v1512_v60, %v456_v13  ;;  %v1842_v18 = vmul.f32 %v456_v13, %v456_v13 }
  0xfc   :  { %1278 = vst [vmem:[%s4465_s4 + $0xd0] sm:$0xff] %v905_v14  ;;  %v1651_v19 = vadd.f32 %v1650_v62, %v905_v14  ;;  %748 = vmatprep.mubr.f32.mxu0 %v2398_v3  ;;  %v2285_v20 = vadd.f32 %v2284_v0, %v1841_v12  ;;  %v1844_v21 = vmul.f32 %v905_v14, %v905_v14  ;;  %v458_v54 = vpop.f32.mrf.mxu0  ;;  %v907_v22 = vpop.f32.mrf.mxu1 }
  0xfd   :  { %1197 = vmatprep.mubr.f32.mxu1 %v2398_v3  ;;  %v149_v23 = vmul.f32 %v3085_v36, %v78_v10  ;;  %v2079_v25 = vadd.f32 %v2078_v6, %v1842_v18  ;;  %1277 = vst [vmem:[%s4465_s4 + $0xc8] sm:$0xff] %v458_v54  ;;  %v1582_v26 = vadd.f32 %v1581_v7, %v458_v54  ;;  %1279 = vst [vmem:[%s4465_s4 + $0xd8] sm:$0xff] %v907_v22  ;;  %v81_v18 = vld [vmem:[%s4463_s2 + $0x1e8] sm:$0xff] }
  0xfe   :  { %v1843_v27 = vmul.f32 %v458_v54, %v458_v54  ;;  %v1720_v28 = vadd.f32 %v1719_v9, %v907_v22  ;;  %v2217_v29 = vadd.f32 %v2216_v11, %v1844_v21  ;;  %v1845_v30 = vmul.f32 %v907_v22, %v907_v22  ;;  %v462_v31 = vpop.f32.mrf.mxu0  ;;  %749 = vmatmul.mubr.f32.gmra.mxu0 %v281_v51  ;;  %v911_v32 = vpop.f32.mrf.mxu1 }
  0xff   :  { %1198 = vmatmul.mubr.f32.gmra.mxu1 %v281_v51  ;;  %v219_v34 = vadd.f32 %v3068_v24, %v148_v15  ;;  %1280 = vst [vmem:[%s4465_s4 + $0xe0] sm:$0xff] %v462_v31  ;;  %v1514_v37 = vadd.f32 %v1513_v17, %v462_v31  ;;  %v1846_v38 = vmul.f32 %v462_v31, %v462_v31  ;;  %1282 = vst [vmem:[%s4465_s4 + $0xf0] sm:$0xff] %v911_v32 }
 0x100   :  { %v2148_v35 = vadd.f32 %v2147_v16, %v1843_v27  ;;  %v1652_v39 = vadd.f32 %v1651_v19, %v911_v32  ;;  %754 = vmatprep.mubr.f32.mxu0 %v2398_v3  ;;  %v2286_v41 = vadd.f32 %v2285_v20, %v1845_v30  ;;  %v1848_v42 = vmul.f32 %v911_v32, %v911_v32  ;;  %v464_v43 = vpop.f32.mrf.mxu0  ;;  %v913_v44 = vpop.f32.mrf.mxu1 }
 0x101   :  { %1203 = vmatprep.mubr.f32.mxu1 %v2398_v3  ;;  %v3158_v45 = vadd.f32 %v3068_v24, %v149_v23  ;;  %v2080_v46 = vadd.f32 %v2079_v25, %v1846_v38  ;;  %1281 = vst [vmem:[%s4465_s4 + $0xe8] sm:$0xff] %v464_v43  ;;  %v1583_v47 = vadd.f32 %v1582_v26, %v464_v43  ;;  %1283 = vst [vmem:[%s4465_s4 + $0xf8] sm:$0xff] %v913_v44 }
 0x102   :  { %v1847_v48 = vmul.f32 %v464_v43, %v464_v43  ;;  %v1721_v49 = vadd.f32 %v1720_v28, %v913_v44  ;;  %v2218_v52 = vadd.f32 %v2217_v29, %v1848_v42  ;;  %v1849_v53 = vmul.f32 %v913_v44, %v913_v44  ;;  %v468_v55 = vpop.f32.mrf.mxu0  ;;  %755 = vmatmul.mubr.f32.gmra.mxu0 %v282_v33  ;;  %v917_v56 = vpop.f32.mrf.mxu1  ;;  %v82_v28 = vld [vmem:[%s4463_s2 + $0x1f0] sm:$0xff] }
 0x103   :  { %1204 = vmatmul.mubr.f32.gmra.mxu1 %v282_v33  ;;  %v283_v57 = vmax.f32 %v219_v34, 0.0  ;;  %v150_v58 = vmul.f32 %v3085_v36, %v79_v40  ;;  %1284 = vst [vmem:[%s4465_s4 + $0x100] sm:$0xff] %v468_v55  ;;  %v1515_v60 = vadd.f32 %v1514_v37, %v468_v55  ;;  %v1850_v61 = vmul.f32 %v468_v55, %v468_v55 }
 0x104   :  { %v2149_v59 = vadd.f32 %v2148_v35, %v1847_v48  ;;  %1286 = vst [vmem:[%s4465_s4 + $0x110] sm:$0xff] %v917_v56  ;;  %v1653_v62 = vadd.f32 %v1652_v39, %v917_v56  ;;  %760 = vmatprep.mubr.f32.mxu0 %v2398_v3  ;;  %v2287_v63 = vadd.f32 %v2286_v41, %v1849_v53  ;;  %v470_v1 = vpop.f32.mrf.mxu0  ;;  %v919_v2 = vpop.f32.mrf.mxu1  ;;  %v284_v13 = vmax.f32 %v3158_v45, 0.0 }
 0x105   :  { %v1852_v0 = vmul.f32 %v917_v56, %v917_v56  ;;  %1209 = vmatprep.mubr.f32.mxu1 %v2398_v3  ;;  %v151_v4 = vmul.f32 %v3085_v36, %v80_v50  ;;  %v2081_v5 = vadd.f32 %v2080_v46, %v1850_v61  ;;  %1285 = vst [vmem:[%s4465_s4 + $0x108] sm:$0xff] %v470_v1  ;;  %1287 = vst [vmem:[%s4465_s4 + $0x118] sm:$0xff] %v919_v2  ;;  %v83_v61 = vld [vmem:[%s4463_s2 + $0x1f8] sm:$0xff] }
 0x106   :  { %v1584_v6 = vadd.f32 %v1583_v47, %v470_v1  ;;  %v1851_v7 = vmul.f32 %v470_v1, %v470_v1  ;;  %v1722_v8 = vadd.f32 %v1721_v49, %v919_v2  ;;  %v1853_v10 = vmul.f32 %v919_v2, %v919_v2  ;;  %v474_v11 = vpop.f32.mrf.mxu0  ;;  %761 = vmatmul.mubr.f32.gmra.mxu0 %v283_v57  ;;  %v923_v12 = vpop.f32.mrf.mxu1 }
 0x107   :  { %v2219_v9 = vadd.f32 %v2218_v52, %v1852_v0  ;;  %1210 = vmatmul.mubr.f32.gmra.mxu1 %v283_v57  ;;  %v221_v14 = vadd.f32 %v3068_v24, %v150_v58  ;;  %1288 = vst [vmem:[%s4465_s4 + $0x120] sm:$0xff] %v474_v11  ;;  %v1516_v15 = vadd.f32 %v1515_v60, %v474_v11  ;;  %1290 = vst [vmem:[%s4465_s4 + $0x130] sm:$0xff] %v923_v12 }
 0x108   :  { %v2150_v51 = vadd.f32 %v2149_v59, %v1851_v7  ;;  %v1854_v16 = vmul.f32 %v474_v11, %v474_v11  ;;  %v1654_v17 = vadd.f32 %v1653_v62, %v923_v12  ;;  %766 = vmatprep.mubr.f32.mxu0 %v2398_v3  ;;  %v2288_v19 = vadd.f32 %v2287_v63, %v1853_v10  ;;  %v476_v21 = vpop.f32.mrf.mxu0  ;;  %v925_v54 = vpop.f32.mrf.mxu1 }
 0x109   :  { %v1856_v20 = vmul.f32 %v923_v12, %v923_v12  ;;  %1215 = vmatprep.mubr.f32.mxu1 %v2398_v3  ;;  %v3199_v22 = vadd.f32 %v3068_v24, %v151_v4  ;;  %1289 = vst [vmem:[%s4465_s4 + $0x128] sm:$0xff] %v476_v21  ;;  %v1585_v25 = vadd.f32 %v1584_v6, %v476_v21  ;;  %1291 = vst [vmem:[%s4465_s4 + $0x138] sm:$0xff] %v925_v54 }
 0x10a   :  { %v2082_v23 = vadd.f32 %v2081_v5, %v1854_v16  ;;  %v1855_v26 = vmul.f32 %v476_v21, %v476_v21  ;;  %v1723_v27 = vadd.f32 %v1722_v8, %v925_v54  ;;  %v1857_v30 = vmul.f32 %v925_v54, %v925_v54  ;;  %v480_v31 = vpop.f32.mrf.mxu0  ;;  %767 = vmatmul.mubr.f32.gmra.mxu0 %v284_v13  ;;  %v929_v32 = vpop.f32.mrf.mxu1 }
 0x10b   :  { %v2220_v29 = vadd.f32 %v2219_v9, %v1856_v20  ;;  %1216 = vmatmul.mubr.f32.gmra.mxu1 %v284_v13  ;;  %v285_v33 = vmax.f32 %v221_v14, 0.0  ;;  %v152_v34 = vmul.f32 %v3085_v36, %v81_v18  ;;  %1292 = vst [vmem:[%s4465_s4 + $0x140] sm:$0xff] %v480_v31  ;;  %v1517_v37 = vadd.f32 %v1516_v15, %v480_v31 }
 0x10c   :  { %v2151_v35 = vadd.f32 %v2150_v51, %v1855_v26  ;;  %v1858_v38 = vmul.f32 %v480_v31, %v480_v31  ;;  %1294 = vst [vmem:[%s4465_s4 + $0x150] sm:$0xff] %v929_v32  ;;  %v1655_v39 = vadd.f32 %v1654_v17, %v929_v32  ;;  %772 = vmatprep.mubr.f32.mxu0 %v2398_v3  ;;  %v482_v42 = vpop.f32.mrf.mxu0  ;;  %v931_v43 = vpop.f32.mrf.mxu1  ;;  %v286_v55 = vmax.f32 %v3199_v22, 0.0 }
 0x10d   :  { %v2289_v40 = vadd.f32 %v2288_v19, %v1857_v30  ;;  %v1860_v41 = vmul.f32 %v929_v32, %v929_v32  ;;  %1221 = vmatprep.mubr.f32.mxu1 %v2398_v3  ;;  %v153_v44 = vmul.f32 %v3085_v36, %v82_v28  ;;  %1293 = vst [vmem:[%s4465_s4 + $0x148] sm:$0xff] %v482_v42  ;;  %1295 = vst [vmem:[%s4465_s4 + $0x158] sm:$0xff] %v931_v43 }
 0x10e   :  { %v2083_v45 = vadd.f32 %v2082_v23, %v1858_v38  ;;  %v1586_v46 = vadd.f32 %v1585_v25, %v482_v42  ;;  %v1859_v47 = vmul.f32 %v482_v42, %v482_v42  ;;  %v1724_v48 = vadd.f32 %v1723_v27, %v931_v43  ;;  %v486_v52 = vpop.f32.mrf.mxu0  ;;  %773 = vmatmul.mubr.f32.gmra.mxu0 %v285_v33  ;;  %v935_v53 = vpop.f32.mrf.mxu1 }
 0x10f   :  { %v2221_v49 = vadd.f32 %v2220_v29, %v1860_v41  ;;  %v1861_v50 = vmul.f32 %v931_v43, %v931_v43  ;;  %1222 = vmatmul.mubr.f32.gmra.mxu1 %v285_v33  ;;  %v223_v56 = vadd.f32 %v3068_v24, %v152_v34  ;;  %1296 = vst [vmem:[%s4465_s4 + $0x160] sm:$0xff] %v486_v52  ;;  %1298 = vst [vmem:[%s4465_s4 + $0x170] sm:$0xff] %v935_v53 }
 0x110   :  { %v2152_v57 = vadd.f32 %v2151_v35, %v1859_v47  ;;  %v1518_v58 = vadd.f32 %v1517_v37, %v486_v52  ;;  %v1862_v59 = vmul.f32 %v486_v52, %v486_v52  ;;  %v1656_v60 = vadd.f32 %v1655_v39, %v935_v53  ;;  %778 = vmatprep.mubr.f32.mxu0 %v2398_v3  ;;  %v488_v0 = vpop.f32.mrf.mxu0  ;;  %v937_v1 = vpop.f32.mrf.mxu1 }
 0x111   :  { %v2290_v62 = vadd.f32 %v2289_v40, %v1861_v50  ;;  %v1864_v63 = vmul.f32 %v935_v53, %v935_v53  ;;  %1227 = vmatprep.mubr.f32.mxu1 %v2398_v3  ;;  %v3240_v2 = vadd.f32 %v3068_v24, %v153_v44  ;;  %1297 = vst [vmem:[%s4465_s4 + $0x168] sm:$0xff] %v488_v0  ;;  %1299 = vst [vmem:[%s4465_s4 + $0x178] sm:$0xff] %v937_v1 }
 0x112   :  { %v2084_v4 = vadd.f32 %v2083_v45, %v1862_v59  ;;  %v1587_v5 = vadd.f32 %v1586_v46, %v488_v0  ;;  %v1863_v6 = vmul.f32 %v488_v0, %v488_v0  ;;  %v1725_v7 = vadd.f32 %v1724_v48, %v937_v1  ;;  %v492_v10 = vpop.f32.mrf.mxu0  ;;  %779 = vmatmul.mubr.f32.gmra.mxu0 %v286_v55  ;;  %v941_v11 = vpop.f32.mrf.mxu1 }
 0x113   :  { %v2222_v8 = vadd.f32 %v2221_v49, %v1864_v63  ;;  %v1865_v9 = vmul.f32 %v937_v1, %v937_v1  ;;  %1228 = vmatmul.mubr.f32.gmra.mxu1 %v286_v55  ;;  %v287_v12 = vmax.f32 %v223_v56, 0.0  ;;  %v154_v13 = vmul.f32 %v3085_v36, %v83_v61  ;;  %1300 = vst [vmem:[%s4465_s4 + $0x180] sm:$0xff] %v492_v10 }
 0x114   :  { %v2153_v14 = vadd.f32 %v2152_v57, %v1863_v6  ;;  %v1519_v51 = vadd.f32 %v1518_v58, %v492_v10  ;;  %v1866_v15 = vmul.f32 %v492_v10, %v492_v10  ;;  %1302 = vst [vmem:[%s4465_s4 + $0x190] sm:$0xff] %v941_v11  ;;  %v1657_v16 = vadd.f32 %v1656_v60, %v941_v11  ;;  %v494_v19 = vpop.f32.mrf.mxu0  ;;  %v943_v20 = vpop.f32.mrf.mxu1 }
 0x115   :  { %784 = vmatprep.mubr.f32.mxu0 %v2398_v3  ;;  %v2291_v17 = vadd.f32 %v2290_v62, %v1865_v9  ;;  %v1868_v18 = vmul.f32 %v941_v11, %v941_v11  ;;  %1233 = vmatprep.mubr.f32.mxu1 %v2398_v3  ;;  %1301 = vst [vmem:[%s4465_s4 + $0x188] sm:$0xff] %v494_v19  ;;  %1303 = vst [vmem:[%s4465_s4 + $0x198] sm:$0xff] %v943_v20  ;;  %v288_v28 = vmax.f32 %v3240_v2, 0.0 }
 0x116   :  { %v2085_v36 = vadd.f32 %v2084_v4, %v1866_v15  ;;  %v1588_v21 = vadd.f32 %v1587_v5, %v494_v19  ;;  %v1867_v54 = vmul.f32 %v494_v19, %v494_v19  ;;  %v1726_v22 = vadd.f32 %v1725_v7, %v943_v20  ;;  %v498_v26 = vpop.f32.mrf.mxu0  ;;  %785 = vmatmul.mubr.f32.gmra.mxu0 %v287_v12  ;;  %v947_v27 = vpop.f32.mrf.mxu1 }
 0x117   :  { %v2223_v23 = vadd.f32 %v2222_v8, %v1868_v18  ;;  %v1869_v25 = vmul.f32 %v943_v20, %v943_v20  ;;  %1234 = vmatmul.mubr.f32.gmra.mxu1 %v287_v12  ;;  %v225_v29 = vadd.f32 %v3068_v24, %v154_v13  ;;  %1304 = vst [vmem:[%s4465_s4 + $0x1a0] sm:$0xff] %v498_v26  ;;  %1306 = vst [vmem:[%s4465_s4 + $0x1b0] sm:$0xff] %v947_v27 }
 0x118   :  { %v2154_v30 = vadd.f32 %v2153_v14, %v1867_v54  ;;  %v1520_v31 = vadd.f32 %v1519_v51, %v498_v26  ;;  %v1870_v32 = vmul.f32 %v498_v26, %v498_v26  ;;  %v1658_v33 = vadd.f32 %v1657_v16, %v947_v27  ;;  %790 = vmatprep.mubr.f32.mxu0 %v2398_v3  ;;  %v500_v37 = vpop.f32.mrf.mxu0  ;;  %v949_v38 = vpop.f32.mrf.mxu1 }
 0x119   :  { %v2292_v34 = vadd.f32 %v2291_v17, %v1869_v25  ;;  %v1872_v35 = vmul.f32 %v947_v27, %v947_v27  ;;  %1239 = vmatprep.mubr.f32.mxu1 %v2398_v3  ;;  %1305 = vst [vmem:[%s4465_s4 + $0x1a8] sm:$0xff] %v500_v37  ;;  %v1589_v39 = vadd.f32 %v1588_v21, %v500_v37  ;;  %1307 = vst [vmem:[%s4465_s4 + $0x1b8] sm:$0xff] %v949_v38 }
 0x11a   :  { %v2086_v24 = vadd.f32 %v2085_v36, %v1870_v32  ;;  %v1871_v40 = vmul.f32 %v500_v37, %v500_v37  ;;  %v1727_v41 = vadd.f32 %v1726_v22, %v949_v38  ;;  %v1873_v43 = vmul.f32 %v949_v38, %v949_v38  ;;  %v504_v44 = vpop.f32.mrf.mxu0  ;;  %791 = vmatmul.mubr.f32.gmra.mxu0 %v288_v28  ;;  %v953_v45 = vpop.f32.mrf.mxu1 }
 0x11b   :  { %v2224_v42 = vadd.f32 %v2223_v23, %v1872_v35  ;;  %1240 = vmatmul.mubr.f32.gmra.mxu1 %v288_v28  ;;  %v289_v46 = vmax.f32 %v225_v29, 0.0  ;;  %1308 = vst [vmem:[%s4465_s4 + $0x1c0] sm:$0xff] %v504_v44  ;;  %v1521_v48 = vadd.f32 %v1520_v31, %v504_v44  ;;  %v1874_v49 = vmul.f32 %v504_v44, %v504_v44 }
 0x11c   :  { %v2155_v47 = vadd.f32 %v2154_v30, %v1871_v40  ;;  %1310 = vst [vmem:[%s4465_s4 + $0x1d0] sm:$0xff] %v953_v45  ;;  %v1659_v50 = vadd.f32 %v1658_v33, %v953_v45  ;;  %796 = vmatprep.mubr.f32.mxu0 %v2398_v3  ;;  %v2293_v52 = vadd.f32 %v2292_v34, %v1873_v43  ;;  %v506_v55 = vpop.f32.mrf.mxu0  ;;  %v955_v56 = vpop.f32.mrf.mxu1 }
 0x11d   :  { %v1876_v53 = vmul.f32 %v953_v45, %v953_v45  ;;  %1245 = vmatprep.mubr.f32.mxu1 %v2398_v3  ;;  %v2087_v57 = vadd.f32 %v2086_v24, %v1874_v49  ;;  %1309 = vst [vmem:[%s4465_s4 + $0x1c8] sm:$0xff] %v506_v55  ;;  %v1590_v58 = vadd.f32 %v1589_v39, %v506_v55  ;;  %1311 = vst [vmem:[%s4465_s4 + $0x1d8] sm:$0xff] %v955_v56 }
 0x11e   :  { %v1875_v59 = vmul.f32 %v506_v55, %v506_v55  ;;  %v1728_v60 = vadd.f32 %v1727_v41, %v955_v56  ;;  %v1877_v62 = vmul.f32 %v955_v56, %v955_v56  ;;  %v510_v63 = vpop.f32.mrf.mxu0  ;;  %797 = vmatmul.mubr.f32.gmra.mxu0 %v289_v46  ;;  %v959_v0 = vpop.f32.mrf.mxu1 }
 0x11f   :  { %v2225_v61 = vadd.f32 %v2224_v42, %v1876_v53  ;;  %1246 = vmatmul.mubr.f32.gmra.mxu1 %v289_v46  ;;  %1312 = vst [vmem:[%s4465_s4 + $0x1e0] sm:$0xff] %v510_v63  ;;  %v1522_v3 = vadd.f32 %v1521_v48, %v510_v63  ;;  %v1878_v2 = vmul.f32 %v510_v63, %v510_v63  ;;  %1314 = vst [vmem:[%s4465_s4 + $0x1f0] sm:$0xff] %v959_v0 }
 0x120   :  { %v2156_v1 = vadd.f32 %v2155_v47, %v1875_v59  ;;  %v1660_v4 = vadd.f32 %v1659_v50, %v959_v0  ;;  %v2294_v5 = vadd.f32 %v2293_v52, %v1877_v62  ;;  %v1880_v6 = vmul.f32 %v959_v0, %v959_v0  ;;  %v512_v7 = vpop.f32.mrf.mxu0  ;;  %v961_v8 = vpop.f32.mrf.mxu1 }
 0x121   :  { %v2088_v9 = vadd.f32 %v2087_v57, %v1878_v2  ;;  %1313 = vst [vmem:[%s4465_s4 + $0x1e8] sm:$0xff] %v512_v7  ;;  %v1591_v10 = vadd.f32 %v1590_v58, %v512_v7  ;;  %v1879_v11 = vmul.f32 %v512_v7, %v512_v7  ;;  %1315 = vst [vmem:[%s4465_s4 + $0x1f8] sm:$0xff] %v961_v8 }
 0x122   :  { %v1729_v12 = vadd.f32 %v1728_v60, %v961_v8  ;;  %v2226_v13 = vadd.f32 %v2225_v61, %v1880_v6  ;;  %v1881_v14 = vmul.f32 %v961_v8, %v961_v8  ;;  %v516_v51 = vpop.f32.mrf.mxu0  ;;  %v965_v15 = vpop.f32.mrf.mxu1 }
 0x123   :  { %v2157_v16 = vadd.f32 %v2156_v1, %v1879_v11  ;;  %1316 = vst [vmem:[%s4465_s4 + $0x200] sm:$0xff] %v516_v51  ;;  %v1523_v17 = vadd.f32 %v1522_v3, %v516_v51  ;;  %v1882_v18 = vmul.f32 %v516_v51, %v516_v51  ;;  %1318 = vst [vmem:[%s4465_s4 + $0x210] sm:$0xff] %v965_v15 }
 0x124   :  { %v1661_v19 = vadd.f32 %v1660_v4, %v965_v15  ;;  %v2295_v20 = vadd.f32 %v2294_v5, %v1881_v14  ;;  %v1884_v36 = vmul.f32 %v965_v15, %v965_v15  ;;  %v518_v21 = vpop.f32.mrf.mxu0  ;;  %v967_v54 = vpop.f32.mrf.mxu1 }
 0x125   :  { %v2089_v22 = vadd.f32 %v2088_v9, %v1882_v18  ;;  %1317 = vst [vmem:[%s4465_s4 + $0x208] sm:$0xff] %v518_v21  ;;  %v1592_v23 = vadd.f32 %v1591_v10, %v518_v21  ;;  %v1883_v25 = vmul.f32 %v518_v21, %v518_v21  ;;  %1319 = vst [vmem:[%s4465_s4 + $0x218] sm:$0xff] %v967_v54 }
 0x126   :  { %v1730_v26 = vadd.f32 %v1729_v12, %v967_v54  ;;  %v2227_v27 = vadd.f32 %v2226_v13, %v1884_v36  ;;  %v1885_v28 = vmul.f32 %v967_v54, %v967_v54  ;;  %v522_v29 = vpop.f32.mrf.mxu0  ;;  %v971_v30 = vpop.f32.mrf.mxu1 }
 0x127   :  { %v2158_v31 = vadd.f32 %v2157_v16, %v1883_v25  ;;  %1320 = vst [vmem:[%s4465_s4 + $0x220] sm:$0xff] %v522_v29  ;;  %v1524_v32 = vadd.f32 %v1523_v17, %v522_v29  ;;  %v1886_v33 = vmul.f32 %v522_v29, %v522_v29  ;;  %1322 = vst [vmem:[%s4465_s4 + $0x230] sm:$0xff] %v971_v30 }
 0x128   :  { %v1662_v34 = vadd.f32 %v1661_v19, %v971_v30  ;;  %v2296_v35 = vadd.f32 %v2295_v20, %v1885_v28  ;;  %v1888_v37 = vmul.f32 %v971_v30, %v971_v30  ;;  %v524_v38 = vpop.f32.mrf.mxu0  ;;  %v973_v24 = vpop.f32.mrf.mxu1 }
 0x129   :  { %v2090_v39 = vadd.f32 %v2089_v22, %v1886_v33  ;;  %1321 = vst [vmem:[%s4465_s4 + $0x228] sm:$0xff] %v524_v38  ;;  %v1593_v40 = vadd.f32 %v1592_v23, %v524_v38  ;;  %v1887_v41 = vmul.f32 %v524_v38, %v524_v38  ;;  %1323 = vst [vmem:[%s4465_s4 + $0x238] sm:$0xff] %v973_v24 }
 0x12a   :  { %v1731_v42 = vadd.f32 %v1730_v26, %v973_v24  ;;  %v2228_v43 = vadd.f32 %v2227_v27, %v1888_v37  ;;  %v1889_v44 = vmul.f32 %v973_v24, %v973_v24  ;;  %v528_v45 = vpop.f32.mrf.mxu0  ;;  %v977_v46 = vpop.f32.mrf.mxu1 }
 0x12b   :  { %v2159_v47 = vadd.f32 %v2158_v31, %v1887_v41  ;;  %1324 = vst [vmem:[%s4465_s4 + $0x240] sm:$0xff] %v528_v45  ;;  %v1525_v48 = vadd.f32 %v1524_v32, %v528_v45  ;;  %v1890_v49 = vmul.f32 %v528_v45, %v528_v45  ;;  %1326 = vst [vmem:[%s4465_s4 + $0x250] sm:$0xff] %v977_v46 }
 0x12c   :  { %v1663_v50 = vadd.f32 %v1662_v34, %v977_v46  ;;  %v2297_v52 = vadd.f32 %v2296_v35, %v1889_v44  ;;  %v1892_v53 = vmul.f32 %v977_v46, %v977_v46  ;;  %v530_v55 = vpop.f32.mrf.mxu0  ;;  %v979_v56 = vpop.f32.mrf.mxu1 }
 0x12d   :  { %v2091_v57 = vadd.f32 %v2090_v39, %v1890_v49  ;;  %1325 = vst [vmem:[%s4465_s4 + $0x248] sm:$0xff] %v530_v55  ;;  %v1594_v58 = vadd.f32 %v1593_v40, %v530_v55  ;;  %v1891_v59 = vmul.f32 %v530_v55, %v530_v55  ;;  %1327 = vst [vmem:[%s4465_s4 + $0x258] sm:$0xff] %v979_v56 }
 0x12e   :  { %v1732_v60 = vadd.f32 %v1731_v42, %v979_v56  ;;  %v2229_v61 = vadd.f32 %v2228_v43, %v1892_v53  ;;  %v1893_v62 = vmul.f32 %v979_v56, %v979_v56  ;;  %v534_v63 = vpop.f32.mrf.mxu0  ;;  %v983_v0 = vpop.f32.mrf.mxu1 }
 0x12f   :  { %v2160_v1 = vadd.f32 %v2159_v47, %v1891_v59  ;;  %1328 = vst [vmem:[%s4465_s4 + $0x260] sm:$0xff] %v534_v63  ;;  %v1526_v3 = vadd.f32 %v1525_v48, %v534_v63  ;;  %v1894_v2 = vmul.f32 %v534_v63, %v534_v63  ;;  %1330 = vst [vmem:[%s4465_s4 + $0x270] sm:$0xff] %v983_v0 }
 0x130   :  { %v1664_v4 = vadd.f32 %v1663_v50, %v983_v0  ;;  %v2298_v5 = vadd.f32 %v2297_v52, %v1893_v62  ;;  %v1896_v6 = vmul.f32 %v983_v0, %v983_v0  ;;  %v536_v7 = vpop.f32.mrf.mxu0  ;;  %v985_v8 = vpop.f32.mrf.mxu1 }
 0x131   :  { %v2092_v9 = vadd.f32 %v2091_v57, %v1894_v2  ;;  %1329 = vst [vmem:[%s4465_s4 + $0x268] sm:$0xff] %v536_v7  ;;  %v1595_v10 = vadd.f32 %v1594_v58, %v536_v7  ;;  %v1895_v11 = vmul.f32 %v536_v7, %v536_v7  ;;  %1331 = vst [vmem:[%s4465_s4 + $0x278] sm:$0xff] %v985_v8 }
 0x132   :  { %v1733_v12 = vadd.f32 %v1732_v60, %v985_v8  ;;  %v2230_v13 = vadd.f32 %v2229_v61, %v1896_v6  ;;  %v1897_v14 = vmul.f32 %v985_v8, %v985_v8  ;;  %v540_v51 = vpop.f32.mrf.mxu0  ;;  %v989_v15 = vpop.f32.mrf.mxu1 }
 0x133   :  { %v2161_v16 = vadd.f32 %v2160_v1, %v1895_v11  ;;  %1332 = vst [vmem:[%s4465_s4 + $0x280] sm:$0xff] %v540_v51  ;;  %v1527_v17 = vadd.f32 %v1526_v3, %v540_v51  ;;  %v1898_v18 = vmul.f32 %v540_v51, %v540_v51  ;;  %1334 = vst [vmem:[%s4465_s4 + $0x290] sm:$0xff] %v989_v15 }
 0x134   :  { %v1665_v19 = vadd.f32 %v1664_v4, %v989_v15  ;;  %v2299_v20 = vadd.f32 %v2298_v5, %v1897_v14  ;;  %v1900_v36 = vmul.f32 %v989_v15, %v989_v15  ;;  %v542_v21 = vpop.f32.mrf.mxu0  ;;  %v991_v54 = vpop.f32.mrf.mxu1 }
 0x135   :  { %v2093_v22 = vadd.f32 %v2092_v9, %v1898_v18  ;;  %1333 = vst [vmem:[%s4465_s4 + $0x288] sm:$0xff] %v542_v21  ;;  %v1596_v23 = vadd.f32 %v1595_v10, %v542_v21  ;;  %v1899_v25 = vmul.f32 %v542_v21, %v542_v21  ;;  %1335 = vst [vmem:[%s4465_s4 + $0x298] sm:$0xff] %v991_v54 }
 0x136   :  { %v1734_v26 = vadd.f32 %v1733_v12, %v991_v54  ;;  %v2231_v27 = vadd.f32 %v2230_v13, %v1900_v36  ;;  %v1901_v28 = vmul.f32 %v991_v54, %v991_v54  ;;  %v546_v29 = vpop.f32.mrf.mxu0  ;;  %v995_v30 = vpop.f32.mrf.mxu1 }
 0x137   :  { %v2162_v31 = vadd.f32 %v2161_v16, %v1899_v25  ;;  %1336 = vst [vmem:[%s4465_s4 + $0x2a0] sm:$0xff] %v546_v29  ;;  %v1528_v32 = vadd.f32 %v1527_v17, %v546_v29  ;;  %v1902_v33 = vmul.f32 %v546_v29, %v546_v29  ;;  %1338 = vst [vmem:[%s4465_s4 + $0x2b0] sm:$0xff] %v995_v30 }
 0x138   :  { %v1666_v34 = vadd.f32 %v1665_v19, %v995_v30  ;;  %v2300_v35 = vadd.f32 %v2299_v20, %v1901_v28  ;;  %v1904_v37 = vmul.f32 %v995_v30, %v995_v30  ;;  %v548_v38 = vpop.f32.mrf.mxu0  ;;  %v997_v24 = vpop.f32.mrf.mxu1 }
 0x139   :  { %v2094_v39 = vadd.f32 %v2093_v22, %v1902_v33  ;;  %1337 = vst [vmem:[%s4465_s4 + $0x2a8] sm:$0xff] %v548_v38  ;;  %v1597_v40 = vadd.f32 %v1596_v23, %v548_v38  ;;  %v1903_v41 = vmul.f32 %v548_v38, %v548_v38  ;;  %1339 = vst [vmem:[%s4465_s4 + $0x2b8] sm:$0xff] %v997_v24 }
 0x13a   :  { %v1735_v42 = vadd.f32 %v1734_v26, %v997_v24  ;;  %v2232_v43 = vadd.f32 %v2231_v27, %v1904_v37  ;;  %v1905_v44 = vmul.f32 %v997_v24, %v997_v24  ;;  %v552_v45 = vpop.f32.mrf.mxu0  ;;  %v1001_v46 = vpop.f32.mrf.mxu1 }
 0x13b   :  { %v2163_v47 = vadd.f32 %v2162_v31, %v1903_v41  ;;  %1340 = vst [vmem:[%s4465_s4 + $0x2c0] sm:$0xff] %v552_v45  ;;  %v1529_v48 = vadd.f32 %v1528_v32, %v552_v45  ;;  %v1906_v49 = vmul.f32 %v552_v45, %v552_v45  ;;  %1342 = vst [vmem:[%s4465_s4 + $0x2d0] sm:$0xff] %v1001_v46 }
 0x13c   :  { %v1667_v50 = vadd.f32 %v1666_v34, %v1001_v46  ;;  %v2301_v52 = vadd.f32 %v2300_v35, %v1905_v44  ;;  %v1908_v53 = vmul.f32 %v1001_v46, %v1001_v46  ;;  %v554_v55 = vpop.f32.mrf.mxu0  ;;  %v1003_v56 = vpop.f32.mrf.mxu1 }
 0x13d   :  { %v2095_v57 = vadd.f32 %v2094_v39, %v1906_v49  ;;  %1341 = vst [vmem:[%s4465_s4 + $0x2c8] sm:$0xff] %v554_v55  ;;  %v1598_v58 = vadd.f32 %v1597_v40, %v554_v55  ;;  %v1907_v59 = vmul.f32 %v554_v55, %v554_v55  ;;  %1343 = vst [vmem:[%s4465_s4 + $0x2d8] sm:$0xff] %v1003_v56 }
 0x13e   :  { %v1736_v60 = vadd.f32 %v1735_v42, %v1003_v56  ;;  %v2233_v61 = vadd.f32 %v2232_v43, %v1908_v53  ;;  %v1909_v62 = vmul.f32 %v1003_v56, %v1003_v56  ;;  %v558_v63 = vpop.f32.mrf.mxu0  ;;  %v1007_v0 = vpop.f32.mrf.mxu1 }
 0x13f   :  { %v2164_v1 = vadd.f32 %v2163_v47, %v1907_v59  ;;  %1344 = vst [vmem:[%s4465_s4 + $0x2e0] sm:$0xff] %v558_v63  ;;  %v1530_v3 = vadd.f32 %v1529_v48, %v558_v63  ;;  %v1910_v2 = vmul.f32 %v558_v63, %v558_v63  ;;  %1346 = vst [vmem:[%s4465_s4 + $0x2f0] sm:$0xff] %v1007_v0 }
 0x140   :  { %v1668_v4 = vadd.f32 %v1667_v50, %v1007_v0  ;;  %v2302_v5 = vadd.f32 %v2301_v52, %v1909_v62  ;;  %v1912_v6 = vmul.f32 %v1007_v0, %v1007_v0  ;;  %v560_v7 = vpop.f32.mrf.mxu0  ;;  %v1009_v8 = vpop.f32.mrf.mxu1 }
 0x141   :  { %v2096_v9 = vadd.f32 %v2095_v57, %v1910_v2  ;;  %1345 = vst [vmem:[%s4465_s4 + $0x2e8] sm:$0xff] %v560_v7  ;;  %v1599_v10 = vadd.f32 %v1598_v58, %v560_v7  ;;  %v1911_v11 = vmul.f32 %v560_v7, %v560_v7  ;;  %1347 = vst [vmem:[%s4465_s4 + $0x2f8] sm:$0xff] %v1009_v8 }
 0x142   :  { %v1737_v12 = vadd.f32 %v1736_v60, %v1009_v8  ;;  %v2234_v13 = vadd.f32 %v2233_v61, %v1912_v6  ;;  %v1913_v14 = vmul.f32 %v1009_v8, %v1009_v8  ;;  %v564_v51 = vpop.f32.mrf.mxu0  ;;  %v1013_v15 = vpop.f32.mrf.mxu1 }
 0x143   :  { %v2165_v16 = vadd.f32 %v2164_v1, %v1911_v11  ;;  %1348 = vst [vmem:[%s4465_s4 + $0x300] sm:$0xff] %v564_v51  ;;  %v1531_v17 = vadd.f32 %v1530_v3, %v564_v51  ;;  %v1914_v18 = vmul.f32 %v564_v51, %v564_v51  ;;  %1350 = vst [vmem:[%s4465_s4 + $0x310] sm:$0xff] %v1013_v15 }
 0x144   :  { %v1669_v19 = vadd.f32 %v1668_v4, %v1013_v15  ;;  %v2303_v20 = vadd.f32 %v2302_v5, %v1913_v14  ;;  %v1916_v36 = vmul.f32 %v1013_v15, %v1013_v15  ;;  %v566_v21 = vpop.f32.mrf.mxu0  ;;  %v1015_v54 = vpop.f32.mrf.mxu1 }
 0x145   :  { %v2097_v22 = vadd.f32 %v2096_v9, %v1914_v18  ;;  %1349 = vst [vmem:[%s4465_s4 + $0x308] sm:$0xff] %v566_v21  ;;  %v1600_v23 = vadd.f32 %v1599_v10, %v566_v21  ;;  %v1915_v25 = vmul.f32 %v566_v21, %v566_v21  ;;  %1351 = vst [vmem:[%s4465_s4 + $0x318] sm:$0xff] %v1015_v54 }
 0x146   :  { %v1738_v26 = vadd.f32 %v1737_v12, %v1015_v54  ;;  %v2235_v27 = vadd.f32 %v2234_v13, %v1916_v36  ;;  %v1917_v28 = vmul.f32 %v1015_v54, %v1015_v54  ;;  %v570_v29 = vpop.f32.mrf.mxu0  ;;  %v1019_v30 = vpop.f32.mrf.mxu1 }
 0x147   :  { %v2166_v31 = vadd.f32 %v2165_v16, %v1915_v25  ;;  %1352 = vst [vmem:[%s4465_s4 + $0x320] sm:$0xff] %v570_v29  ;;  %v1532_v32 = vadd.f32 %v1531_v17, %v570_v29  ;;  %v1918_v33 = vmul.f32 %v570_v29, %v570_v29  ;;  %1354 = vst [vmem:[%s4465_s4 + $0x330] sm:$0xff] %v1019_v30 }
 0x148   :  { %v1670_v34 = vadd.f32 %v1669_v19, %v1019_v30  ;;  %v2304_v35 = vadd.f32 %v2303_v20, %v1917_v28  ;;  %v1920_v37 = vmul.f32 %v1019_v30, %v1019_v30  ;;  %v572_v38 = vpop.f32.mrf.mxu0  ;;  %v1021_v24 = vpop.f32.mrf.mxu1 }
 0x149   :  { %v2098_v39 = vadd.f32 %v2097_v22, %v1918_v33  ;;  %1353 = vst [vmem:[%s4465_s4 + $0x328] sm:$0xff] %v572_v38  ;;  %v1601_v40 = vadd.f32 %v1600_v23, %v572_v38  ;;  %v1919_v41 = vmul.f32 %v572_v38, %v572_v38  ;;  %1355 = vst [vmem:[%s4465_s4 + $0x338] sm:$0xff] %v1021_v24 }
 0x14a   :  { %v1739_v42 = vadd.f32 %v1738_v26, %v1021_v24  ;;  %v2236_v43 = vadd.f32 %v2235_v27, %v1920_v37  ;;  %v1921_v44 = vmul.f32 %v1021_v24, %v1021_v24  ;;  %v576_v45 = vpop.f32.mrf.mxu0  ;;  %v1025_v46 = vpop.f32.mrf.mxu1 }
 0x14b   :  { %v2167_v47 = vadd.f32 %v2166_v31, %v1919_v41  ;;  %1356 = vst [vmem:[%s4465_s4 + $0x340] sm:$0xff] %v576_v45  ;;  %v1533_v48 = vadd.f32 %v1532_v32, %v576_v45  ;;  %v1922_v49 = vmul.f32 %v576_v45, %v576_v45  ;;  %1358 = vst [vmem:[%s4465_s4 + $0x350] sm:$0xff] %v1025_v46 }
 0x14c   :  { %v1671_v50 = vadd.f32 %v1670_v34, %v1025_v46  ;;  %v2305_v52 = vadd.f32 %v2304_v35, %v1921_v44  ;;  %v1924_v53 = vmul.f32 %v1025_v46, %v1025_v46  ;;  %v578_v55 = vpop.f32.mrf.mxu0  ;;  %v1027_v56 = vpop.f32.mrf.mxu1 }
 0x14d   :  { %v2099_v57 = vadd.f32 %v2098_v39, %v1922_v49  ;;  %1357 = vst [vmem:[%s4465_s4 + $0x348] sm:$0xff] %v578_v55  ;;  %v1602_v58 = vadd.f32 %v1601_v40, %v578_v55  ;;  %v1923_v59 = vmul.f32 %v578_v55, %v578_v55  ;;  %1359 = vst [vmem:[%s4465_s4 + $0x358] sm:$0xff] %v1027_v56 }
 0x14e   :  { %v1740_v60 = vadd.f32 %v1739_v42, %v1027_v56  ;;  %v2237_v61 = vadd.f32 %v2236_v43, %v1924_v53  ;;  %v1925_v62 = vmul.f32 %v1027_v56, %v1027_v56  ;;  %v582_v63 = vpop.f32.mrf.mxu0  ;;  %v1031_v0 = vpop.f32.mrf.mxu1 }
 0x14f   :  { %v2168_v1 = vadd.f32 %v2167_v47, %v1923_v59  ;;  %1360 = vst [vmem:[%s4465_s4 + $0x360] sm:$0xff] %v582_v63  ;;  %v1534_v3 = vadd.f32 %v1533_v48, %v582_v63  ;;  %v1926_v2 = vmul.f32 %v582_v63, %v582_v63  ;;  %1362 = vst [vmem:[%s4465_s4 + $0x370] sm:$0xff] %v1031_v0 }
 0x150   :  { %v1672_v4 = vadd.f32 %v1671_v50, %v1031_v0  ;;  %v2306_v5 = vadd.f32 %v2305_v52, %v1925_v62  ;;  %v1928_v6 = vmul.f32 %v1031_v0, %v1031_v0  ;;  %v584_v7 = vpop.f32.mrf.mxu0  ;;  %v1033_v8 = vpop.f32.mrf.mxu1 }
 0x151   :  { %v2100_v9 = vadd.f32 %v2099_v57, %v1926_v2  ;;  %1361 = vst [vmem:[%s4465_s4 + $0x368] sm:$0xff] %v584_v7  ;;  %v1603_v10 = vadd.f32 %v1602_v58, %v584_v7  ;;  %v1927_v11 = vmul.f32 %v584_v7, %v584_v7  ;;  %1363 = vst [vmem:[%s4465_s4 + $0x378] sm:$0xff] %v1033_v8 }
 0x152   :  { %v1741_v12 = vadd.f32 %v1740_v60, %v1033_v8  ;;  %v2238_v13 = vadd.f32 %v2237_v61, %v1928_v6  ;;  %v1929_v14 = vmul.f32 %v1033_v8, %v1033_v8  ;;  %v588_v51 = vpop.f32.mrf.mxu0  ;;  %v1037_v15 = vpop.f32.mrf.mxu1 }
 0x153   :  { %v2169_v16 = vadd.f32 %v2168_v1, %v1927_v11  ;;  %1364 = vst [vmem:[%s4465_s4 + $0x380] sm:$0xff] %v588_v51  ;;  %v1535_v17 = vadd.f32 %v1534_v3, %v588_v51  ;;  %v1930_v18 = vmul.f32 %v588_v51, %v588_v51  ;;  %1366 = vst [vmem:[%s4465_s4 + $0x390] sm:$0xff] %v1037_v15 }
 0x154   :  { %v1673_v19 = vadd.f32 %v1672_v4, %v1037_v15  ;;  %v2307_v20 = vadd.f32 %v2306_v5, %v1929_v14  ;;  %v1932_v36 = vmul.f32 %v1037_v15, %v1037_v15  ;;  %v590_v21 = vpop.f32.mrf.mxu0  ;;  %v1039_v54 = vpop.f32.mrf.mxu1 }
 0x155   :  { %v2101_v22 = vadd.f32 %v2100_v9, %v1930_v18  ;;  %1365 = vst [vmem:[%s4465_s4 + $0x388] sm:$0xff] %v590_v21  ;;  %v1604_v23 = vadd.f32 %v1603_v10, %v590_v21  ;;  %v1931_v25 = vmul.f32 %v590_v21, %v590_v21  ;;  %1367 = vst [vmem:[%s4465_s4 + $0x398] sm:$0xff] %v1039_v54 }
 0x156   :  { %v1742_v26 = vadd.f32 %v1741_v12, %v1039_v54  ;;  %v2239_v27 = vadd.f32 %v2238_v13, %v1932_v36  ;;  %v1933_v28 = vmul.f32 %v1039_v54, %v1039_v54  ;;  %v594_v29 = vpop.f32.mrf.mxu0  ;;  %v1043_v30 = vpop.f32.mrf.mxu1 }
 0x157   :  { %v2170_v31 = vadd.f32 %v2169_v16, %v1931_v25  ;;  %1368 = vst [vmem:[%s4465_s4 + $0x3a0] sm:$0xff] %v594_v29  ;;  %v1536_v32 = vadd.f32 %v1535_v17, %v594_v29  ;;  %v1934_v33 = vmul.f32 %v594_v29, %v594_v29  ;;  %1370 = vst [vmem:[%s4465_s4 + $0x3b0] sm:$0xff] %v1043_v30 }
 0x158   :  { %v1674_v34 = vadd.f32 %v1673_v19, %v1043_v30  ;;  %v2308_v35 = vadd.f32 %v2307_v20, %v1933_v28  ;;  %v1936_v37 = vmul.f32 %v1043_v30, %v1043_v30  ;;  %v596_v38 = vpop.f32.mrf.mxu0  ;;  %v1045_v24 = vpop.f32.mrf.mxu1 }
 0x159   :  { %v2102_v39 = vadd.f32 %v2101_v22, %v1934_v33  ;;  %1369 = vst [vmem:[%s4465_s4 + $0x3a8] sm:$0xff] %v596_v38  ;;  %v1605_v40 = vadd.f32 %v1604_v23, %v596_v38  ;;  %v1935_v41 = vmul.f32 %v596_v38, %v596_v38  ;;  %1371 = vst [vmem:[%s4465_s4 + $0x3b8] sm:$0xff] %v1045_v24 }
 0x15a   :  { %v1743_v42 = vadd.f32 %v1742_v26, %v1045_v24  ;;  %v2240_v43 = vadd.f32 %v2239_v27, %v1936_v37  ;;  %v1937_v44 = vmul.f32 %v1045_v24, %v1045_v24  ;;  %v600_v45 = vpop.f32.mrf.mxu0  ;;  %v1049_v46 = vpop.f32.mrf.mxu1 }
 0x15b   :  { %v2171_v47 = vadd.f32 %v2170_v31, %v1935_v41  ;;  %1372 = vst [vmem:[%s4465_s4 + $0x3c0] sm:$0xff] %v600_v45  ;;  %v1537_v48 = vadd.f32 %v1536_v32, %v600_v45  ;;  %v1938_v49 = vmul.f32 %v600_v45, %v600_v45  ;;  %1374 = vst [vmem:[%s4465_s4 + $0x3d0] sm:$0xff] %v1049_v46 }
 0x15c   :  { %v1675_v50 = vadd.f32 %v1674_v34, %v1049_v46  ;;  %v2309_v52 = vadd.f32 %v2308_v35, %v1937_v44  ;;  %v1940_v53 = vmul.f32 %v1049_v46, %v1049_v46  ;;  %v602_v55 = vpop.f32.mrf.mxu0  ;;  %v1051_v56 = vpop.f32.mrf.mxu1 }
 0x15d   :  { %v2103_v57 = vadd.f32 %v2102_v39, %v1938_v49  ;;  %1373 = vst [vmem:[%s4465_s4 + $0x3c8] sm:$0xff] %v602_v55  ;;  %v1606_v58 = vadd.f32 %v1605_v40, %v602_v55  ;;  %v1939_v59 = vmul.f32 %v602_v55, %v602_v55  ;;  %1375 = vst [vmem:[%s4465_s4 + $0x3d8] sm:$0xff] %v1051_v56 }
 0x15e   :  { %v1744_v60 = vadd.f32 %v1743_v42, %v1051_v56  ;;  %v2241_v61 = vadd.f32 %v2240_v43, %v1940_v53  ;;  %v1941_v62 = vmul.f32 %v1051_v56, %v1051_v56  ;;  %v606_v63 = vpop.f32.mrf.mxu0  ;;  %v1055_v0 = vpop.f32.mrf.mxu1 }
 0x15f   :  { %v2172_v1 = vadd.f32 %v2171_v47, %v1939_v59  ;;  %1376 = vst [vmem:[%s4465_s4 + $0x3e0] sm:$0xff] %v606_v63  ;;  %v1538_v3 = vadd.f32 %v1537_v48, %v606_v63  ;;  %v1942_v2 = vmul.f32 %v606_v63, %v606_v63  ;;  %1378 = vst [vmem:[%s4465_s4 + $0x3f0] sm:$0xff] %v1055_v0 }
 0x160   :  { %v1676_v4 = vadd.f32 %v1675_v50, %v1055_v0  ;;  %v2310_v5 = vadd.f32 %v2309_v52, %v1941_v62  ;;  %v1944_v6 = vmul.f32 %v1055_v0, %v1055_v0  ;;  %v608_v7 = vpop.f32.mrf.mxu0  ;;  %v1057_v8 = vpop.f32.mrf.mxu1 }
 0x161   :  { %v2104_v9 = vadd.f32 %v2103_v57, %v1942_v2  ;;  %1377 = vst [vmem:[%s4465_s4 + $0x3e8] sm:$0xff] %v608_v7  ;;  %v3494_v10 = vadd.f32 %v1606_v58, %v608_v7  ;;  %v1943_v11 = vmul.f32 %v608_v7, %v608_v7  ;;  %1379 = vst [vmem:[%s4465_s4 + $0x3f8] sm:$0xff] %v1057_v8 }
 0x162   :  { %v3499_v12 = vadd.f32 %v1744_v60, %v1057_v8  ;;  %v2242_v13 = vadd.f32 %v2241_v61, %v1944_v6  ;;  %v1945_v14 = vmul.f32 %v1057_v8, %v1057_v8  ;;  %v612_v51 = vpop.f32.mrf.mxu0  ;;  %v1061_v15 = vpop.f32.mrf.mxu1 }
 0x163   :  { %v3501_v16 = vadd.f32 %v2172_v1, %v1943_v11  ;;  %1380 = vst [vmem:[%s4465_s4 + $0x400] sm:$0xff] %v612_v51  ;;  %v3506_v17 = vadd.f32 %v1538_v3, %v612_v51  ;;  %v1946_v18 = vmul.f32 %v612_v51, %v612_v51  ;;  %1382 = vst [vmem:[%s4465_s4 + $0x410] sm:$0xff] %v1061_v15 }
 0x164   :  { %v3511_v19 = vadd.f32 %v1676_v4, %v1061_v15  ;;  %v3513_v20 = vadd.f32 %v2310_v5, %v1945_v14  ;;  %v1948_v36 = vmul.f32 %v1061_v15, %v1061_v15  ;;  %v3515_v21 = vpop.f32.mrf.mxu0  ;;  %v3517_v54 = vpop.f32.mrf.mxu1  ;;  %v1793_v14 = vlaneseq }
 0x165   :  { %v3519_v22 = vadd.f32 %v2104_v9, %v1946_v18  ;;  %1381 = vst [vmem:[%s4465_s4 + $0x408] sm:$0xff] %v3515_v21  ;;  %1383 = vst [vmem:[%s4465_s4 + $0x418] sm:$0xff] %v3517_v54  ;;  %v1947_v55 = vmul.f32 %v3515_v21, %v3515_v21  ;;  %v1949_v56 = vmul.f32 %v3517_v54, %v3517_v54 }
 0x166   :  { %v3529_v23 = vadd.f32 %v2242_v13, %v1948_v36  ;;  %v3531_v25 = vpop.f32.mrf.mxu0  ;;  %v3533_v26 = vpop.f32.mrf.mxu1  ;;  %v1608_v60 = vadd.f32 %v3494_v10, %v3515_v21  ;;  %v1746_v61 = vadd.f32 %v3499_v12, %v3517_v54  ;;  %v2399_v54 = vmov 1966171168  }
 0x167   :  { %1384 = vst [vmem:[%s4465_s4 + $0x420] sm:$0xff] %v3531_v25  ;;  %1386 = vst [vmem:[%s4465_s4 + $0x430] sm:$0xff] %v3533_v26  ;;  %v1950_v57 = vmul.f32 %v3531_v25, %v3531_v25  ;;  %v1952_v62 = vmul.f32 %v3533_v26, %v3533_v26  ;;  %v2174_v3 = vadd.f32 %v3501_v16, %v1947_v55  ;;  %vm1815_vm0 = vcmp.lt.s32.totalorder %v1793_v14, 512 }
 0x168   :  { %v3543_v27 = vpop.f32.mrf.mxu0  ;;  %v3545_v28 = vpop.f32.mrf.mxu1  ;;  %v2312_v2 = vadd.f32 %v3513_v20, %v1949_v56  ;;  %v1540_v4 = vadd.f32 %v3506_v17, %v3531_v25  ;;  %v1678_v5 = vadd.f32 %v3511_v19, %v3533_v26 }
 0x169   :  { %1385 = vst [vmem:[%s4465_s4 + $0x428] sm:$0xff] %v3543_v27  ;;  %1387 = vst [vmem:[%s4465_s4 + $0x438] sm:$0xff] %v3545_v28  ;;  %v1951_v63 = vmul.f32 %v3543_v27, %v3543_v27  ;;  %v2106_v6 = vadd.f32 %v3519_v22, %v1950_v57  ;;  %v1953_v7 = vmul.f32 %v3545_v28, %v3545_v28  ;;  %v3785_v22 = vunpack.c.l.s4 %v2399_v54 }
 0x16a   :  { %v3555_v29 = vpop.f32.mrf.mxu0  ;;  %v3557_v30 = vpop.f32.mrf.mxu1  ;;  %v1609_v11 = vadd.f32 %v1608_v60, %v3543_v27  ;;  %v1747_v12 = vadd.f32 %v1746_v61, %v3545_v28  ;;  %v2244_v51 = vadd.f32 %v3529_v23, %v1952_v62 }
 0x16b   :  { %1388 = vst [vmem:[%s4465_s4 + $0x440] sm:$0xff] %v3555_v29  ;;  %1390 = vst [vmem:[%s4465_s4 + $0x450] sm:$0xff] %v3557_v30  ;;  %v1954_v8 = vmul.f32 %v3555_v29, %v3555_v29  ;;  %v1956_v13 = vmul.f32 %v3557_v30, %v3557_v30  ;;  %v2175_v15 = vadd.f32 %v2174_v3, %v1951_v63 }
 0x16c   :  { %v3567_v31 = vpop.f32.mrf.mxu0  ;;  %v3569_v32 = vpop.f32.mrf.mxu1  ;;  %v1541_v16 = vadd.f32 %v1540_v4, %v3555_v29  ;;  %v1679_v20 = vadd.f32 %v1678_v5, %v3557_v30  ;;  %v2313_v23 = vadd.f32 %v2312_v2, %v1953_v7 }
 0x16d   :  { %1389 = vst [vmem:[%s4465_s4 + $0x448] sm:$0xff] %v3567_v31  ;;  %1391 = vst [vmem:[%s4465_s4 + $0x458] sm:$0xff] %v3569_v32  ;;  %v1955_v17 = vmul.f32 %v3567_v31, %v3567_v31  ;;  %v1957_v36 = vmul.f32 %v3569_v32, %v3569_v32  ;;  %v2107_v25 = vadd.f32 %v2106_v6, %v1954_v8 }
 0x16e   :  { %v3579_v33 = vpop.f32.mrf.mxu0  ;;  %v3581_v34 = vpop.f32.mrf.mxu1  ;;  %v1610_v26 = vadd.f32 %v1609_v11, %v3567_v31  ;;  %v1748_v27 = vadd.f32 %v1747_v12, %v3569_v32  ;;  %v2245_v30 = vadd.f32 %v2244_v51, %v1956_v13  ;;  %v3806_v31 = vshrl.u32 %v1793_v14, 7 }
 0x16f   :  { %1392 = vst [vmem:[%s4465_s4 + $0x460] sm:$0xff] %v3579_v33  ;;  %1394 = vst [vmem:[%s4465_s4 + $0x470] sm:$0xff] %v3581_v34  ;;  %v1958_v21 = vmul.f32 %v3579_v33, %v3579_v33  ;;  %v1960_v55 = vmul.f32 %v3581_v34, %v3581_v34  ;;  %v2176_v32 = vadd.f32 %v2175_v15, %v1955_v17 }
 0x170   :  { %v3591_v35 = vpop.f32.mrf.mxu0  ;;  %v3593_v37 = vpop.f32.mrf.mxu1  ;;  %v1542_v57 = vadd.f32 %v1541_v16, %v3579_v33  ;;  %v2314_v3 = vadd.f32 %v2313_v23, %v1957_v36  ;;  %v1680_v4 = vadd.f32 %v1679_v20, %v3581_v34  ;;  %v1792_v33 = vunpack.c.0.s8 %v3785_v22 }
 0x171   :  { %1393 = vst [vmem:[%s4465_s4 + $0x468] sm:$0xff] %v3591_v35  ;;  %1395 = vst [vmem:[%s4465_s4 + $0x478] sm:$0xff] %v3593_v37  ;;  %v1959_v56 = vmul.f32 %v3591_v35, %v3591_v35  ;;  %v1961_v60 = vmul.f32 %v3593_v37, %v3593_v37  ;;  %v2108_v2 = vadd.f32 %v2107_v25, %v1958_v21 }
 0x172   :  { %v3603_v38 = vpop.f32.mrf.mxu0  ;;  %v3605_v24 = vpop.f32.mrf.mxu1  ;;  %v1611_v5 = vadd.f32 %v1610_v26, %v3591_v35  ;;  %v1749_v6 = vadd.f32 %v1748_v27, %v3593_v37  ;;  %v2246_v12 = vadd.f32 %v2245_v30, %v1960_v55 }
 0x173   :  { %1396 = vst [vmem:[%s4465_s4 + $0x480] sm:$0xff] %v3603_v38  ;;  %1398 = vst [vmem:[%s4465_s4 + $0x490] sm:$0xff] %v3605_v24  ;;  %v1962_v61 = vmul.f32 %v3603_v38, %v3603_v38  ;;  %v1964_v7 = vmul.f32 %v3605_v24, %v3605_v24  ;;  %v2177_v13 = vadd.f32 %v2176_v32, %v1959_v56 }
 0x174   :  { %v3615_v39 = vpop.f32.mrf.mxu0  ;;  %v3617_v40 = vpop.f32.mrf.mxu1  ;;  %v2315_v37 = vadd.f32 %v2314_v3, %v1961_v60  ;;  %v1543_v15 = vadd.f32 %v1542_v57, %v3603_v38  ;;  %v1681_v17 = vadd.f32 %v1680_v4, %v3605_v24 }
 0x175   :  { %1397 = vst [vmem:[%s4465_s4 + $0x488] sm:$0xff] %v3615_v39  ;;  %1399 = vst [vmem:[%s4465_s4 + $0x498] sm:$0xff] %v3617_v40  ;;  %v1963_v34 = vmul.f32 %v3615_v39, %v3615_v39  ;;  %v1965_v51 = vmul.f32 %v3617_v40, %v3617_v40  ;;  %v2109_v16 = vadd.f32 %v2108_v2, %v1962_v61 }
 0x176   :  { %v3627_v41 = vpop.f32.mrf.mxu0  ;;  %v3629_v42 = vpop.f32.mrf.mxu1  ;;  %v1612_v21 = vadd.f32 %v1611_v5, %v3615_v39  ;;  %v1750_v54 = vadd.f32 %v1749_v6, %v3617_v40  ;;  %v2247_v38 = vadd.f32 %v2246_v12, %v1964_v7 }
 0x177   :  { %1400 = vst [vmem:[%s4465_s4 + $0x4a0] sm:$0xff] %v3627_v41  ;;  %1402 = vst [vmem:[%s4465_s4 + $0x4b0] sm:$0xff] %v3629_v42  ;;  %v1966_v35 = vmul.f32 %v3627_v41, %v3627_v41  ;;  %v1968_v23 = vmul.f32 %v3629_v42, %v3629_v42  ;;  %v2178_v24 = vadd.f32 %v2177_v13, %v1963_v34 }
 0x178   :  { %v3639_v43 = vpop.f32.mrf.mxu0  ;;  %v3641_v44 = vpop.f32.mrf.mxu1  ;;  %v2316_v30 = vadd.f32 %v2315_v37, %v1965_v51  ;;  %v1544_v55 = vadd.f32 %v1543_v15, %v3627_v41  ;;  %v1682_v32 = vadd.f32 %v1681_v17, %v3629_v42 }
 0x179   :  { %1401 = vst [vmem:[%s4465_s4 + $0x4a8] sm:$0xff] %v3639_v43  ;;  %1403 = vst [vmem:[%s4465_s4 + $0x4b8] sm:$0xff] %v3641_v44  ;;  %v1967_v25 = vmul.f32 %v3639_v43, %v3639_v43  ;;  %v1969_v39 = vmul.f32 %v3641_v44, %v3641_v44  ;;  %v2110_v56 = vadd.f32 %v2109_v16, %v1966_v35 }
 0x17a   :  { %v3651_v45 = vpop.f32.mrf.mxu0  ;;  %v3653_v46 = vpop.f32.mrf.mxu1  ;;  %v1613_v57 = vadd.f32 %v1612_v21, %v3639_v43  ;;  %v1751_v60 = vadd.f32 %v1750_v54, %v3641_v44  ;;  %v2248_v2 = vadd.f32 %v2247_v38, %v1968_v23 }
 0x17b   :  { %1404 = vst [vmem:[%s4465_s4 + $0x4c0] sm:$0xff] %v3651_v45  ;;  %1406 = vst [vmem:[%s4465_s4 + $0x4d0] sm:$0xff] %v3653_v46  ;;  %v1970_v40 = vmul.f32 %v3651_v45, %v3651_v45  ;;  %v1972_v41 = vmul.f32 %v3653_v46, %v3653_v46  ;;  %v2179_v4 = vadd.f32 %v2178_v24, %v1967_v25 }
 0x17c   :  { %v3663_v47 = vpop.f32.mrf.mxu0  ;;  %v3665_v48 = vpop.f32.mrf.mxu1  ;;  %v2317_v44 = vadd.f32 %v2316_v30, %v1969_v39  ;;  %v1545_v6 = vadd.f32 %v1544_v55, %v3651_v45  ;;  %v1683_v34 = vadd.f32 %v1682_v32, %v3653_v46 }
 0x17d   :  { %1405 = vst [vmem:[%s4465_s4 + $0x4c8] sm:$0xff] %v3663_v47  ;;  %1407 = vst [vmem:[%s4465_s4 + $0x4d8] sm:$0xff] %v3665_v48  ;;  %v1971_v42 = vmul.f32 %v3663_v47, %v3663_v47  ;;  %v1973_v5 = vmul.f32 %v3665_v48, %v3665_v48  ;;  %v2111_v7 = vadd.f32 %v2110_v56, %v1970_v40 }
 0x17e   :  { %v3675_v49 = vpop.f32.mrf.mxu0  ;;  %v3677_v50 = vpop.f32.mrf.mxu1  ;;  %v1614_v51 = vadd.f32 %v1613_v57, %v3663_v47  ;;  %v1752_v35 = vadd.f32 %v1751_v60, %v3665_v48  ;;  %v2249_v45 = vadd.f32 %v2248_v2, %v1972_v41 }
 0x17f   :  { %1408 = vst [vmem:[%s4465_s4 + $0x4e0] sm:$0xff] %v3675_v49  ;;  %1410 = vst [vmem:[%s4465_s4 + $0x4f0] sm:$0xff] %v3677_v50  ;;  %v1974_v43 = vmul.f32 %v3675_v49, %v3675_v49  ;;  %v1976_v37 = vmul.f32 %v3677_v50, %v3677_v50  ;;  %v2180_v46 = vadd.f32 %v2179_v4, %v1971_v42 }
 0x180   :  { %v3687_v52 = vpop.f32.mrf.mxu0  ;;  %v3689_v53 = vpop.f32.mrf.mxu1  ;;  %v2318_v21 = vadd.f32 %v2317_v44, %v1973_v5  ;;  %v1546_v54 = vadd.f32 %v1545_v6, %v3675_v49  ;;  %v1684_v25 = vadd.f32 %v1683_v34, %v3677_v50 }
 0x181   :  { %1409 = vst [vmem:[%s4465_s4 + $0x4e8] sm:$0xff] %v3687_v52  ;;  %1411 = vst [vmem:[%s4465_s4 + $0x4f8] sm:$0xff] %v3689_v53  ;;  %v1975_v15 = vmul.f32 %v3687_v52, %v3687_v52  ;;  %v1977_v47 = vmul.f32 %v3689_v53, %v3689_v53  ;;  %v2112_v23 = vadd.f32 %v2111_v7, %v1974_v43 }
 0x182   :  { %v3705_v58 = vpop.f32.mrf.mxu0  ;;  %v3707_v59 = vpop.f32.mrf.mxu1  ;;  %v1615_v38 = vadd.f32 %v1614_v51, %v3687_v52  ;;  %v1753_v24 = vadd.f32 %v1752_v35, %v3689_v53  ;;  %v2250_v30 = vadd.f32 %v2249_v45, %v1976_v37 }
 0x183   :  { %1412 = vst [vmem:[%s4465_s4 + $0x500] sm:$0xff] %v3705_v58  ;;  %1414 = vst [vmem:[%s4465_s4 + $0x510] sm:$0xff] %v3707_v59  ;;  %v1978_v48 = vmul.f32 %v3705_v58, %v3705_v58  ;;  %v1980_v49 = vmul.f32 %v3707_v59, %v3707_v59  ;;  %v2181_v55 = vadd.f32 %v2180_v46, %v1975_v15 }
 0x184   :  { %v3725_v0 = vpop.f32.mrf.mxu0  ;;  %v3727_v1 = vpop.f32.mrf.mxu1  ;;  %v2319_v53 = vadd.f32 %v2318_v21, %v1977_v47  ;;  %v1547_v32 = vadd.f32 %v1546_v54, %v3705_v58  ;;  %v1685_v60 = vadd.f32 %v1684_v25, %v3707_v59 }
 0x185   :  { %1413 = vst [vmem:[%s4465_s4 + $0x508] sm:$0xff] %v3725_v0  ;;  %1415 = vst [vmem:[%s4465_s4 + $0x518] sm:$0xff] %v3727_v1  ;;  %v1979_v50 = vmul.f32 %v3725_v0, %v3725_v0  ;;  %v1981_v56 = vmul.f32 %v3727_v1, %v3727_v1  ;;  %v2113_v57 = vadd.f32 %v2112_v23, %v1978_v48 }
 0x186   :  { %v3748_v9 = vpop.f32.mrf.mxu0  ;;  %v3750_v10 = vpop.f32.mrf.mxu1  ;;  %v1616_v2 = vadd.f32 %v1615_v38, %v3725_v0  ;;  %v1754_v4 = vadd.f32 %v1753_v24, %v3727_v1  ;;  %v2251_v58 = vadd.f32 %v2250_v30, %v1980_v49 }
 0x187   :  { %1416 = vst [vmem:[%s4465_s4 + $0x520] sm:$0xff] %v3748_v9  ;;  %1418 = vst [vmem:[%s4465_s4 + $0x530] sm:$0xff] %v3750_v10  ;;  %v1982_v52 = vmul.f32 %v3748_v9, %v3748_v9  ;;  %v1984_v5 = vmul.f32 %v3750_v10, %v3750_v10  ;;  %v2182_v59 = vadd.f32 %v2181_v55, %v1979_v50 }
 0x188   :  { %v3768_v18 = vpop.f32.mrf.mxu0  ;;  %v3770_v19 = vpop.f32.mrf.mxu1  ;;  %v2320_v7 = vadd.f32 %v2319_v53, %v1981_v56  ;;  %v1548_v34 = vadd.f32 %v1547_v32, %v3748_v9  ;;  %v1686_v35 = vadd.f32 %v1685_v60, %v3750_v10 }
 0x189   :  { %1417 = vst [vmem:[%s4465_s4 + $0x528] sm:$0xff] %v3768_v18  ;;  %1419 = vst [vmem:[%s4465_s4 + $0x538] sm:$0xff] %v3770_v19  ;;  %v1983_v43 = vmul.f32 %v3768_v18, %v3768_v18  ;;  %v1985_v0 = vmul.f32 %v3770_v19, %v3770_v19  ;;  %v2114_v51 = vadd.f32 %v2113_v57, %v1982_v52 }
 0x18a   :  { %v3789_v28 = vpop.f32.mrf.mxu0  ;;  %v3791_v29 = vpop.f32.mrf.mxu1  ;;  %v1617_v37 = vadd.f32 %v1616_v2, %v3768_v18  ;;  %v1755_v15 = vadd.f32 %v1754_v4, %v3770_v19  ;;  %v2252_v47 = vadd.f32 %v2251_v58, %v1984_v5 }
 0x18b   :  { %1420 = vst [vmem:[%s4465_s4 + $0x540] sm:$0xff] %v3789_v28  ;;  %1422 = vst [vmem:[%s4465_s4 + $0x550] sm:$0xff] %v3791_v29  ;;  %v1986_v1 = vmul.f32 %v3789_v28, %v3789_v28  ;;  %v1988_v9 = vmul.f32 %v3791_v29, %v3791_v29  ;;  %v2183_v48 = vadd.f32 %v2182_v59, %v1983_v43 }
 0x18c   :  { %v3813_v62 = vpop.f32.mrf.mxu0  ;;  %v3815_v63 = vpop.f32.mrf.mxu1  ;;  %v2321_v19 = vadd.f32 %v2320_v7, %v1985_v0  ;;  %v1549_v54 = vadd.f32 %v1548_v34, %v3789_v28  ;;  %v1687_v25 = vadd.f32 %v1686_v35, %v3791_v29 }
 0x18d   :  { %1421 = vst [vmem:[%s4465_s4 + $0x548] sm:$0xff] %v3813_v62  ;;  %1423 = vst [vmem:[%s4465_s4 + $0x558] sm:$0xff] %v3815_v63  ;;  %v1987_v10 = vmul.f32 %v3813_v62, %v3813_v62  ;;  %v1989_v21 = vmul.f32 %v3815_v63, %v3815_v63  ;;  %v2115_v23 = vadd.f32 %v2114_v51, %v1986_v1 }
 0x18e   :  { %v3833_v8 = vpop.f32.mrf.mxu0  ;;  %v3835_v11 = vpop.f32.mrf.mxu1  ;;  %v1618_v49 = vadd.f32 %v1617_v37, %v3813_v62  ;;  %v1756_v50 = vadd.f32 %v1755_v15, %v3815_v63  ;;  %v2253_v28 = vadd.f32 %v2252_v47, %v1988_v9 }
 0x18f   :  { %1424 = vst [vmem:[%s4465_s4 + $0x560] sm:$0xff] %v3833_v8  ;;  %1426 = vst [vmem:[%s4465_s4 + $0x570] sm:$0xff] %v3835_v11  ;;  %v1990_v18 = vmul.f32 %v3833_v8, %v3833_v8  ;;  %v1992_v30 = vmul.f32 %v3835_v11, %v3835_v11  ;;  %v2184_v29 = vadd.f32 %v2183_v48, %v1987_v10 }
 0x190   :  { %v3851_v20 = vpop.f32.mrf.mxu0  ;;  %v3853_v36 = vpop.f32.mrf.mxu1  ;;  %v2322_v53 = vadd.f32 %v2321_v19, %v1989_v21  ;;  %v1550_v32 = vadd.f32 %v1549_v54, %v3833_v8  ;;  %v1688_v60 = vadd.f32 %v1687_v25, %v3835_v11 }
 0x191   :  { %1425 = vst [vmem:[%s4465_s4 + $0x568] sm:$0xff] %v3851_v20  ;;  %1427 = vst [vmem:[%s4465_s4 + $0x578] sm:$0xff] %v3853_v36  ;;  %v1991_v55 = vmul.f32 %v3851_v20, %v3851_v20  ;;  %v1993_v62 = vmul.f32 %v3853_v36, %v3853_v36  ;;  %v2116_v57 = vadd.f32 %v2115_v23, %v1990_v18 }
 0x192   :  { %v3873_v26 = vpop.f32.mrf.mxu0  ;;  %v3875_v27 = vpop.f32.mrf.mxu1  ;;  %v1619_v2 = vadd.f32 %v1618_v49, %v3851_v20  ;;  %v1757_v4 = vadd.f32 %v1756_v50, %v3853_v36  ;;  %v2254_v58 = vadd.f32 %v2253_v28, %v1992_v30 }
 0x193   :  { %1428 = vst [vmem:[%s4465_s4 + $0x580] sm:$0xff] %v3873_v26  ;;  %1430 = vst [vmem:[%s4465_s4 + $0x590] sm:$0xff] %v3875_v27  ;;  %v1994_v63 = vmul.f32 %v3873_v26, %v3873_v26  ;;  %v1996_v8 = vmul.f32 %v3875_v27, %v3875_v27  ;;  %v2185_v59 = vadd.f32 %v2184_v29, %v1991_v55 }
 0x194   :  { %v3893_v61 = vpop.f32.mrf.mxu0  ;;  %v3895_v3 = vpop.f32.mrf.mxu1  ;;  %v2323_v36 = vadd.f32 %v2322_v53, %v1993_v62  ;;  %v1551_v1 = vadd.f32 %v1550_v32, %v3873_v26  ;;  %v1689_v34 = vadd.f32 %v1688_v60, %v3875_v27 }
 0x195   :  { %1429 = vst [vmem:[%s4465_s4 + $0x588] sm:$0xff] %v3893_v61  ;;  %1431 = vst [vmem:[%s4465_s4 + $0x598] sm:$0xff] %v3895_v3  ;;  %v1995_v11 = vmul.f32 %v3893_v61, %v3893_v61  ;;  %v1997_v0 = vmul.f32 %v3895_v3, %v3895_v3  ;;  %v2117_v7 = vadd.f32 %v2116_v57, %v1994_v63 }
 0x196   :  { %v3911_v12 = vpop.f32.mrf.mxu0  ;;  %v3913_v13 = vpop.f32.mrf.mxu1  ;;  %v1620_v37 = vadd.f32 %v1619_v2, %v3893_v61  ;;  %v1758_v15 = vadd.f32 %v1757_v4, %v3895_v3  ;;  %v2255_v26 = vadd.f32 %v2254_v58, %v1996_v8 }
 0x197   :  { %1432 = vst [vmem:[%s4465_s4 + $0x5a0] sm:$0xff] %v3911_v12  ;;  %1434 = vst [vmem:[%s4465_s4 + $0x5b0] sm:$0xff] %v3913_v13  ;;  %v1998_v20 = vmul.f32 %v3911_v12, %v3911_v12  ;;  %v2000_v9 = vmul.f32 %v3913_v13, %v3913_v13  ;;  %v2186_v27 = vadd.f32 %v2185_v59, %v1995_v11 }
 0x198   :  { %v3933_v16 = vpop.f32.mrf.mxu0  ;;  %v3935_v17 = vpop.f32.mrf.mxu1  ;;  %v2324_v21 = vadd.f32 %v2323_v36, %v1997_v0  ;;  %v1552_v18 = vadd.f32 %v1551_v1, %v3911_v12  ;;  %v1690_v54 = vadd.f32 %v1689_v34, %v3913_v13 }
 0x199   :  { %1433 = vst [vmem:[%s4465_s4 + $0x5a8] sm:$0xff] %v3933_v16  ;;  %1435 = vst [vmem:[%s4465_s4 + $0x5b8] sm:$0xff] %v3935_v17  ;;  %v1999_v10 = vmul.f32 %v3933_v16, %v3933_v16  ;;  %v2001_v61 = vmul.f32 %v3935_v17, %v3935_v17  ;;  %v2118_v19 = vadd.f32 %v2117_v7, %v1998_v20 }
 0x19a   :  { %v3953_v39 = vpop.f32.mrf.mxu0  ;;  %v3955_v40 = vpop.f32.mrf.mxu1  ;;  %v1621_v23 = vadd.f32 %v1620_v37, %v3933_v16  ;;  %v1759_v25 = vadd.f32 %v1758_v15, %v3935_v17  ;;  %v2256_v30 = vadd.f32 %v2255_v26, %v2000_v9 }
 0x19b   :  { %1436 = vst [vmem:[%s4465_s4 + $0x5c0] sm:$0xff] %v3953_v39  ;;  %1438 = vst [vmem:[%s4465_s4 + $0x5d0] sm:$0xff] %v3955_v40  ;;  %v2002_v3 = vmul.f32 %v3953_v39, %v3953_v39  ;;  %v2004_v12 = vmul.f32 %v3955_v40, %v3955_v40  ;;  %v2187_v55 = vadd.f32 %v2186_v27, %v1999_v10 }
 0x19c   :  { %v3971_v41 = vpop.f32.mrf.mxu0  ;;  %v3973_v42 = vpop.f32.mrf.mxu1  ;;  %v2325_v17 = vadd.f32 %v2324_v21, %v2001_v61  ;;  %v1553_v29 = vadd.f32 %v1552_v18, %v3953_v39  ;;  %v1691_v63 = vadd.f32 %v1690_v54, %v3955_v40 }
 0x19d   :  { %1437 = vst [vmem:[%s4465_s4 + $0x5c8] sm:$0xff] %v3971_v41  ;;  %1439 = vst [vmem:[%s4465_s4 + $0x5d8] sm:$0xff] %v3973_v42  ;;  %v2003_v13 = vmul.f32 %v3971_v41, %v3971_v41  ;;  %v2005_v28 = vmul.f32 %v3973_v42, %v3973_v42  ;;  %v2119_v62 = vadd.f32 %v2118_v19, %v2002_v3 }
 0x19e   :  { %v3993_v44 = vpop.f32.mrf.mxu0  ;;  %v3995_v6 = vpop.f32.mrf.mxu1  ;;  %v1622_v57 = vadd.f32 %v1621_v23, %v3971_v41  ;;  %v1760_v60 = vadd.f32 %v1759_v25, %v3973_v42  ;;  %v2257_v39 = vadd.f32 %v2256_v30, %v2004_v12 }
 0x19f   :  { %1440 = vst [vmem:[%s4465_s4 + $0x5e0] sm:$0xff] %v3993_v44  ;;  %1442 = vst [vmem:[%s4465_s4 + $0x5f0] sm:$0xff] %v3995_v6  ;;  %v2006_v16 = vmul.f32 %v3993_v44, %v3993_v44  ;;  %v2008_v2 = vmul.f32 %v3995_v6, %v3995_v6  ;;  %v2188_v40 = vadd.f32 %v2187_v55, %v2003_v13 }
 0x1a0   :  { %v4013_v45 = vpop.f32.mrf.mxu0  ;;  %v4015_v46 = vpop.f32.mrf.mxu1  ;;  %v2326_v58 = vadd.f32 %v2325_v17, %v2005_v28  ;;  %v1554_v59 = vadd.f32 %v1553_v29, %v3993_v44  ;;  %v1692_v20 = vadd.f32 %v1691_v63, %v3995_v6 }
 0x1a1   :  { %1441 = vst [vmem:[%s4465_s4 + $0x5e8] sm:$0xff] %v4013_v45  ;;  %1443 = vst [vmem:[%s4465_s4 + $0x5f8] sm:$0xff] %v4015_v46  ;;  %v2007_v4 = vmul.f32 %v4013_v45, %v4013_v45  ;;  %v2009_v41 = vmul.f32 %v4015_v46, %v4015_v46  ;;  %v2120_v0 = vadd.f32 %v2119_v62, %v2006_v16 }
 0x1a2   :  { %v4031_v38 = vpop.f32.mrf.mxu0  ;;  %v4033_v24 = vpop.f32.mrf.mxu1  ;;  %v1623_v36 = vadd.f32 %v1622_v57, %v4013_v45  ;;  %v1761_v1 = vadd.f32 %v1760_v60, %v4015_v46  ;;  %v2258_v37 = vadd.f32 %v2257_v39, %v2008_v2 }
 0x1a3   :  { %1444 = vst [vmem:[%s4465_s4 + $0x600] sm:$0xff] %v4031_v38  ;;  %1446 = vst [vmem:[%s4465_s4 + $0x610] sm:$0xff] %v4033_v24  ;;  %v2010_v42 = vmul.f32 %v4031_v38, %v4031_v38  ;;  %v2012_v44 = vmul.f32 %v4033_v24, %v4033_v24  ;;  %v2189_v15 = vadd.f32 %v2188_v40, %v2007_v4 }
 0x1a4   :  { %v4053_v56 = vpop.f32.mrf.mxu0  ;;  %v4055_v52 = vpop.f32.mrf.mxu1  ;;  %v2327_v46 = vadd.f32 %v2326_v58, %v2009_v41  ;;  %v1555_v10 = vadd.f32 %v1554_v59, %v4031_v38  ;;  %v1693_v27 = vadd.f32 %v1692_v20, %v4033_v24 }
 0x1a5   :  { %1445 = vst [vmem:[%s4465_s4 + $0x608] sm:$0xff] %v4053_v56  ;;  %1447 = vst [vmem:[%s4465_s4 + $0x618] sm:$0xff] %v4055_v52  ;;  %v2011_v6 = vmul.f32 %v4053_v56, %v4053_v56  ;;  %v2013_v9 = vmul.f32 %v4055_v52, %v4055_v52  ;;  %v2121_v26 = vadd.f32 %v2120_v0, %v2010_v42 }
 0x1a6   :  { %v4073_v5 = vpop.f32.mrf.mxu0  ;;  %v4075_v43 = vpop.f32.mrf.mxu1  ;;  %v1624_v21 = vadd.f32 %v1623_v36, %v4053_v56  ;;  %v1762_v18 = vadd.f32 %v1761_v1, %v4055_v52  ;;  %v2259_v38 = vadd.f32 %v2258_v37, %v2012_v44 }
 0x1a7   :  { %1448 = vst [vmem:[%s4465_s4 + $0x620] sm:$0xff] %v4073_v5  ;;  %1450 = vst [vmem:[%s4465_s4 + $0x630] sm:$0xff] %v4075_v43  ;;  %v2014_v45 = vmul.f32 %v4073_v5, %v4073_v5  ;;  %v2016_v19 = vmul.f32 %v4075_v43, %v4075_v43  ;;  %v2190_v24 = vadd.f32 %v2189_v15, %v2011_v6 }
 0x1a8   :  { %v4091_v51 = vpop.f32.mrf.mxu0  ;;  %v4093_v35 = vpop.f32.mrf.mxu1  ;;  %v2328_v12 = vadd.f32 %v2327_v46, %v2013_v9  ;;  %v1556_v13 = vadd.f32 %v1555_v10, %v4073_v5  ;;  %v1694_v55 = vadd.f32 %v1693_v27, %v4075_v43 }
 0x1a9   :  { %1449 = vst [vmem:[%s4465_s4 + $0x628] sm:$0xff] %v4091_v51  ;;  %1451 = vst [vmem:[%s4465_s4 + $0x638] sm:$0xff] %v4093_v35  ;;  %v2015_v54 = vmul.f32 %v4091_v51, %v4091_v51  ;;  %v2017_v56 = vmul.f32 %v4093_v35, %v4093_v35  ;;  %v2122_v30 = vadd.f32 %v2121_v26, %v2014_v45 }
 0x1aa   :  { %v4113_v47 = vpop.f32.mrf.mxu0  ;;  %v4115_v48 = vpop.f32.mrf.mxu1  ;;  %v1625_v28 = vadd.f32 %v1624_v21, %v4091_v51  ;;  %v1763_v16 = vadd.f32 %v1762_v18, %v4093_v35  ;;  %v2260_v62 = vadd.f32 %v2259_v38, %v2016_v19 }
 0x1ab   :  { %1452 = vst [vmem:[%s4465_s4 + $0x640] sm:$0xff] %v4113_v47  ;;  %1454 = vst [vmem:[%s4465_s4 + $0x650] sm:$0xff] %v4115_v48  ;;  %v2018_v52 = vmul.f32 %v4113_v47, %v4113_v47  ;;  %v2020_v5 = vmul.f32 %v4115_v48, %v4115_v48  ;;  %v2191_v63 = vadd.f32 %v2190_v24, %v2015_v54 }
 0x1ac   :  { %v4133_v49 = vpop.f32.mrf.mxu0  ;;  %v4135_v50 = vpop.f32.mrf.mxu1  ;;  %v2329_v35 = vadd.f32 %v2328_v12, %v2017_v56  ;;  %v1557_v60 = vadd.f32 %v1556_v13, %v4113_v47  ;;  %v1695_v4 = vadd.f32 %v1694_v55, %v4115_v48 }
 0x1ad   :  { %1453 = vst [vmem:[%s4465_s4 + $0x648] sm:$0xff] %v4133_v49  ;;  %1455 = vst [vmem:[%s4465_s4 + $0x658] sm:$0xff] %v4135_v50  ;;  %v2019_v43 = vmul.f32 %v4133_v49, %v4133_v49  ;;  %v2021_v57 = vmul.f32 %v4135_v50, %v4135_v50  ;;  %v2123_v2 = vadd.f32 %v2122_v30, %v2018_v52 }
 0x1ae   :  { %v4151_v53 = vpop.f32.mrf.mxu0  ;;  %v4153_v32 = vpop.f32.mrf.mxu1  ;;  %v1626_v41 = vadd.f32 %v1625_v28, %v4133_v49  ;;  %v1764_v42 = vadd.f32 %v1763_v16, %v4135_v50  ;;  %v2261_v47 = vadd.f32 %v2260_v62, %v2020_v5 }
 0x1af   :  { %1456 = vst [vmem:[%s4465_s4 + $0x660] sm:$0xff] %v4151_v53  ;;  %1458 = vst [vmem:[%s4465_s4 + $0x670] sm:$0xff] %v4153_v32  ;;  %v2022_v51 = vmul.f32 %v4151_v53, %v4151_v53  ;;  %v2024_v58 = vmul.f32 %v4153_v32, %v4153_v32  ;;  %v2192_v48 = vadd.f32 %v2191_v63, %v2019_v43 }
 0x1b0   :  { %v4173_v8 = vpop.f32.mrf.mxu0  ;;  %v4175_v11 = vpop.f32.mrf.mxu1  ;;  %v2330_v36 = vadd.f32 %v2329_v35, %v2021_v57  ;;  %v1558_v1 = vadd.f32 %v1557_v60, %v4151_v53  ;;  %v1696_v6 = vadd.f32 %v1695_v4, %v4153_v32 }
 0x1b1   :  { %1457 = vst [vmem:[%s4465_s4 + $0x668] sm:$0xff] %v4173_v8  ;;  %1459 = vst [vmem:[%s4465_s4 + $0x678] sm:$0xff] %v4175_v11  ;;  %v2023_v59 = vmul.f32 %v4173_v8, %v4173_v8  ;;  %v2025_v49 = vmul.f32 %v4175_v11, %v4175_v11  ;;  %v2124_v44 = vadd.f32 %v2123_v2, %v2022_v51 }
 0x1b2   :  { %v4193_v7 = vpop.f32.mrf.mxu0  ;;  %v4195_v34 = vpop.f32.mrf.mxu1  ;;  %v1627_v37 = vadd.f32 %v1626_v41, %v4173_v8  ;;  %v1765_v15 = vadd.f32 %v1764_v42, %v4175_v11  ;;  %v2262_v46 = vadd.f32 %v2261_v47, %v2024_v58 }
 0x1b3   :  { %1460 = vst [vmem:[%s4465_s4 + $0x680] sm:$0xff] %v4193_v7  ;;  %1462 = vst [vmem:[%s4465_s4 + $0x690] sm:$0xff] %v4195_v34  ;;  %v2026_v50 = vmul.f32 %v4193_v7, %v4193_v7  ;;  %v2028_v9 = vmul.f32 %v4195_v34, %v4195_v34  ;;  %v2193_v10 = vadd.f32 %v2192_v48, %v2023_v59 }
 0x1b4   :  { %v4211_v61 = vpop.f32.mrf.mxu0  ;;  %v4213_v3 = vpop.f32.mrf.mxu1  ;;  %v2331_v11 = vadd.f32 %v2330_v36, %v2025_v49  ;;  %v1559_v27 = vadd.f32 %v1558_v1, %v4193_v7  ;;  %v1697_v18 = vadd.f32 %v1696_v6, %v4195_v34 }
 0x1b5   :  { %1461 = vst [vmem:[%s4465_s4 + $0x688] sm:$0xff] %v4211_v61  ;;  %1463 = vst [vmem:[%s4465_s4 + $0x698] sm:$0xff] %v4213_v3  ;;  %v2027_v53 = vmul.f32 %v4211_v61, %v4211_v61  ;;  %v2029_v26 = vmul.f32 %v4213_v3, %v4213_v3  ;;  %v2125_v21 = vadd.f32 %v2124_v44, %v2026_v50 }
 0x1b6   :  { %v4233_v23 = vpop.f32.mrf.mxu0  ;;  %v4235_v25 = vpop.f32.mrf.mxu1  ;;  %v1628_v38 = vadd.f32 %v1627_v37, %v4211_v61  ;;  %v1766_v24 = vadd.f32 %v1765_v15, %v4213_v3  ;;  %v2263_v7 = vadd.f32 %v2262_v46, %v2028_v9 }
 0x1b7   :  { %1464 = vst [vmem:[%s4465_s4 + $0x6a0] sm:$0xff] %v4233_v23  ;;  %1466 = vst [vmem:[%s4465_s4 + $0x6b0] sm:$0xff] %v4235_v25  ;;  %v2030_v8 = vmul.f32 %v4233_v23, %v4233_v23  ;;  %v2032_v56 = vmul.f32 %v4235_v25, %v4235_v25  ;;  %v2194_v34 = vadd.f32 %v2193_v10, %v2027_v53 }
 0x1b8   :  { %v4253_v17 = vpop.f32.mrf.mxu0  ;;  %v4255_v29 = vpop.f32.mrf.mxu1  ;;  %v2332_v30 = vadd.f32 %v2331_v11, %v2029_v26  ;;  %v1560_v55 = vadd.f32 %v1559_v27, %v4233_v23  ;;  %v1698_v16 = vadd.f32 %v1697_v18, %v4235_v25 }
 0x1b9   :  { %1465 = vst [vmem:[%s4465_s4 + $0x6a8] sm:$0xff] %v4253_v17  ;;  %1467 = vst [vmem:[%s4465_s4 + $0x6b8] sm:$0xff] %v4255_v29  ;;  %v2031_v52 = vmul.f32 %v4253_v17, %v4253_v17  ;;  %v2033_v61 = vmul.f32 %v4255_v29, %v4255_v29  ;;  %v2126_v28 = vadd.f32 %v2125_v21, %v2030_v8 }
 0x1ba   :  { %v4271_v39 = vpop.f32.mrf.mxu0  ;;  %v4273_v40 = vpop.f32.mrf.mxu1  ;;  %v1629_v5 = vadd.f32 %v1628_v38, %v4253_v17  ;;  %v1767_v43 = vadd.f32 %v1766_v24, %v4255_v29  ;;  %v2264_v51 = vadd.f32 %v2263_v7, %v2032_v56 }
 0x1bb   :  { %1468 = vst [vmem:[%s4465_s4 + $0x6c0] sm:$0xff] %v4271_v39  ;;  %1470 = vst [vmem:[%s4465_s4 + $0x6d0] sm:$0xff] %v4273_v40  ;;  %v2034_v3 = vmul.f32 %v4271_v39, %v4271_v39  ;;  %v2036_v62 = vmul.f32 %v4273_v40, %v4273_v40  ;;  %v2195_v25 = vadd.f32 %v2194_v34, %v2031_v52 }
 0x1bc   :  { %v746_v0 = vpop.f32.mrf.mxu0  ;;  %v1195_v20 = vpop.f32.mrf.mxu1  ;;  %v2333_v17 = vadd.f32 %v2332_v30, %v2033_v61  ;;  %v1561_v29 = vadd.f32 %v1560_v55, %v4271_v39  ;;  %v1699_v4 = vadd.f32 %v1698_v16, %v4273_v40 }
 0x1bd   :  { %1469 = vst [vmem:[%s4465_s4 + $0x6c8] sm:$0xff] %v746_v0  ;;  %1471 = vst [vmem:[%s4465_s4 + $0x6d8] sm:$0xff] %v1195_v20  ;;  %v2035_v63 = vmul.f32 %v746_v0, %v746_v0  ;;  %v2037_v35 = vmul.f32 %v1195_v20, %v1195_v20  ;;  %v2127_v2 = vadd.f32 %v2126_v28, %v2034_v3 }
 0x1be   :  { %v4307_v45 = vpop.f32.mrf.mxu0  ;;  %v1630_v58 = vadd.f32 %v1629_v5, %v746_v0  ;;  %v1768_v59 = vadd.f32 %v1767_v43, %v1195_v20  ;;  %v2265_v39 = vadd.f32 %v2264_v51, %v2036_v62 }
 0x1bf   :  { %v4309_v32 = vpop.f32.mrf.mxu1  ;;  %1472 = vst [vmem:[%s4465_s4 + $0x6e0] sm:$0xff] %v4307_v45  ;;  %v2038_v60 = vmul.f32 %v4307_v45, %v4307_v45  ;;  %v2196_v49 = vadd.f32 %v2195_v25, %v2035_v63  ;;  %v2334_v0 = vadd.f32 %v2333_v17, %v2037_v35  ;;  %v1562_v20 = vadd.f32 %v1561_v29, %v4307_v45 }
 0x1c0   :  { %1474 = vst [vmem:[%s4465_s4 + $0x6f0] sm:$0xff] %v4309_v32  ;;  %v752_v19 = vpop.f32.mrf.mxu0  ;;  %v2040_v47 = vmul.f32 %v4309_v32, %v4309_v32  ;;  %v1700_v6 = vadd.f32 %v1699_v4, %v4309_v32 }
 0x1c1   :  { %v1201_v54 = vpop.f32.mrf.mxu1  ;;  %1473 = vst [vmem:[%s4465_s4 + $0x6e8] sm:$0xff] %v752_v19  ;;  %v2039_v48 = vmul.f32 %v752_v19, %v752_v19  ;;  %v2128_v44 = vadd.f32 %v2127_v2, %v2038_v60  ;;  %v1631_v37 = vadd.f32 %v1630_v58, %v752_v19 }
 0x1c2   :  { %1475 = vst [vmem:[%s4465_s4 + $0x6f8] sm:$0xff] %v1201_v54  ;;  %v756_v12 = vpop.f32.mrf.mxu0  ;;  %v2041_v50 = vmul.f32 %v1201_v54, %v1201_v54  ;;  %v1769_v15 = vadd.f32 %v1768_v59, %v1201_v54  ;;  %v2266_v26 = vadd.f32 %v2265_v39, %v2040_v47 }
 0x1c3   :  { %v1205_v13 = vpop.f32.mrf.mxu1  ;;  %1476 = vst [vmem:[%s4465_s4 + $0x700] sm:$0xff] %v756_v12  ;;  %v2042_v40 = vmul.f32 %v756_v12, %v756_v12  ;;  %v2197_v8 = vadd.f32 %v2196_v49, %v2039_v48  ;;  %v1563_v27 = vadd.f32 %v1562_v20, %v756_v12 }
 0x1c4   :  { %1478 = vst [vmem:[%s4465_s4 + $0x710] sm:$0xff] %v1205_v13  ;;  %v758_v23 = vpop.f32.mrf.mxu0  ;;  %v2044_v9 = vmul.f32 %v1205_v13, %v1205_v13  ;;  %v2335_v32 = vadd.f32 %v2334_v0, %v2041_v50  ;;  %v1701_v18 = vadd.f32 %v1700_v6, %v1205_v13 }
 0x1c5   :  { %v1207_v57 = vpop.f32.mrf.mxu1  ;;  %1477 = vst [vmem:[%s4465_s4 + $0x708] sm:$0xff] %v758_v23  ;;  %v2043_v53 = vmul.f32 %v758_v23, %v758_v23  ;;  %v2129_v21 = vadd.f32 %v2128_v44, %v2042_v40  ;;  %v1632_v38 = vadd.f32 %v1631_v37, %v758_v23 }
 0x1c6   :  { %1479 = vst [vmem:[%s4465_s4 + $0x718] sm:$0xff] %v1207_v57  ;;  %v762_v41 = vpop.f32.mrf.mxu0  ;;  %v2045_v45 = vmul.f32 %v1207_v57, %v1207_v57  ;;  %v1770_v24 = vadd.f32 %v1769_v15, %v1207_v57  ;;  %v2267_v7 = vadd.f32 %v2266_v26, %v2044_v9 }
 0x1c7   :  { %v1211_v42 = vpop.f32.mrf.mxu1  ;;  %1480 = vst [vmem:[%s4465_s4 + $0x720] sm:$0xff] %v762_v41  ;;  %v2046_v11 = vmul.f32 %v762_v41, %v762_v41  ;;  %v2198_v34 = vadd.f32 %v2197_v8, %v2043_v53  ;;  %v1564_v55 = vadd.f32 %v1563_v27, %v762_v41 }
 0x1c8   :  { %1482 = vst [vmem:[%s4465_s4 + $0x730] sm:$0xff] %v1211_v42  ;;  %v764_v36 = vpop.f32.mrf.mxu0  ;;  %v2048_v56 = vmul.f32 %v1211_v42, %v1211_v42  ;;  %v2336_v30 = vadd.f32 %v2335_v32, %v2045_v45  ;;  %v1702_v16 = vadd.f32 %v1701_v18, %v1211_v42 }
 0x1c9   :  { %v1213_v1 = vpop.f32.mrf.mxu1  ;;  %1481 = vst [vmem:[%s4465_s4 + $0x728] sm:$0xff] %v764_v36  ;;  %v2047_v52 = vmul.f32 %v764_v36, %v764_v36  ;;  %v2130_v28 = vadd.f32 %v2129_v21, %v2046_v11  ;;  %v1633_v5 = vadd.f32 %v1632_v38, %v764_v36 }
 0x1ca   :  { %1483 = vst [vmem:[%s4465_s4 + $0x738] sm:$0xff] %v1213_v1  ;;  %v768_v46 = vpop.f32.mrf.mxu0  ;;  %v2049_v61 = vmul.f32 %v1213_v1, %v1213_v1  ;;  %v1771_v43 = vadd.f32 %v1770_v24, %v1213_v1  ;;  %v2268_v51 = vadd.f32 %v2267_v7, %v2048_v56 }
 0x1cb   :  { %v1217_v10 = vpop.f32.mrf.mxu1  ;;  %1484 = vst [vmem:[%s4465_s4 + $0x740] sm:$0xff] %v768_v46  ;;  %v2050_v3 = vmul.f32 %v768_v46, %v768_v46  ;;  %v2199_v25 = vadd.f32 %v2198_v34, %v2047_v52  ;;  %v1565_v29 = vadd.f32 %v1564_v55, %v768_v46 }
 0x1cc   :  { %1486 = vst [vmem:[%s4465_s4 + $0x750] sm:$0xff] %v1217_v10  ;;  %v770_v19 = vpop.f32.mrf.mxu0  ;;  %v2052_v62 = vmul.f32 %v1217_v10, %v1217_v10  ;;  %v2337_v17 = vadd.f32 %v2336_v30, %v2049_v61  ;;  %v1703_v4 = vadd.f32 %v1702_v16, %v1217_v10 }
 0x1cd   :  { %v1219_v54 = vpop.f32.mrf.mxu1  ;;  %1485 = vst [vmem:[%s4465_s4 + $0x748] sm:$0xff] %v770_v19  ;;  %v2051_v63 = vmul.f32 %v770_v19, %v770_v19  ;;  %v2131_v2 = vadd.f32 %v2130_v28, %v2050_v3  ;;  %v1634_v58 = vadd.f32 %v1633_v5, %v770_v19 }
 0x1ce   :  { %1487 = vst [vmem:[%s4465_s4 + $0x758] sm:$0xff] %v1219_v54  ;;  %v774_v12 = vpop.f32.mrf.mxu0  ;;  %v2053_v35 = vmul.f32 %v1219_v54, %v1219_v54  ;;  %v1772_v59 = vadd.f32 %v1771_v43, %v1219_v54  ;;  %v2269_v39 = vadd.f32 %v2268_v51, %v2052_v62 }
 0x1cf   :  { %v1223_v13 = vpop.f32.mrf.mxu1  ;;  %1488 = vst [vmem:[%s4465_s4 + $0x760] sm:$0xff] %v774_v12  ;;  %v2054_v60 = vmul.f32 %v774_v12, %v774_v12  ;;  %v2200_v49 = vadd.f32 %v2199_v25, %v2051_v63  ;;  %v1566_v50 = vadd.f32 %v1565_v29, %v774_v12 }
 0x1d0   :  { %1490 = vst [vmem:[%s4465_s4 + $0x770] sm:$0xff] %v1223_v13  ;;  %v776_v23 = vpop.f32.mrf.mxu0  ;;  %v2056_v47 = vmul.f32 %v1223_v13, %v1223_v13  ;;  %v2338_v0 = vadd.f32 %v2337_v17, %v2053_v35  ;;  %v1704_v44 = vadd.f32 %v1703_v4, %v1223_v13 }
 0x1d1   :  { %v1225_v57 = vpop.f32.mrf.mxu1  ;;  %1489 = vst [vmem:[%s4465_s4 + $0x768] sm:$0xff] %v776_v23  ;;  %v2055_v48 = vmul.f32 %v776_v23, %v776_v23  ;;  %v2132_v20 = vadd.f32 %v2131_v2, %v2054_v60  ;;  %v1635_v37 = vadd.f32 %v1634_v58, %v776_v23 }
 0x1d2   :  { %1491 = vst [vmem:[%s4465_s4 + $0x778] sm:$0xff] %v1225_v57  ;;  %v780_v41 = vpop.f32.mrf.mxu0  ;;  %v2057_v40 = vmul.f32 %v1225_v57, %v1225_v57  ;;  %v1773_v15 = vadd.f32 %v1772_v59, %v1225_v57  ;;  %v2270_v26 = vadd.f32 %v2269_v39, %v2056_v47 }
 0x1d3   :  { %v1229_v42 = vpop.f32.mrf.mxu1  ;;  %1492 = vst [vmem:[%s4465_s4 + $0x780] sm:$0xff] %v780_v41  ;;  %v2058_v6 = vmul.f32 %v780_v41, %v780_v41  ;;  %v2201_v8 = vadd.f32 %v2200_v49, %v2055_v48  ;;  %v1567_v27 = vadd.f32 %v1566_v50, %v780_v41 }
 0x1d4   :  { %1494 = vst [vmem:[%s4465_s4 + $0x790] sm:$0xff] %v1229_v42  ;;  %v782_v36 = vpop.f32.mrf.mxu0  ;;  %v2060_v9 = vmul.f32 %v1229_v42, %v1229_v42  ;;  %v2339_v32 = vadd.f32 %v2338_v0, %v2057_v40  ;;  %v1705_v21 = vadd.f32 %v1704_v44, %v1229_v42 }
 0x1d5   :  { %v1231_v1 = vpop.f32.mrf.mxu1  ;;  %1493 = vst [vmem:[%s4465_s4 + $0x788] sm:$0xff] %v782_v36  ;;  %v2059_v53 = vmul.f32 %v782_v36, %v782_v36  ;;  %v2133_v38 = vadd.f32 %v2132_v20, %v2058_v6  ;;  %v1636_v24 = vadd.f32 %v1635_v37, %v782_v36 }
 0x1d6   :  { %1495 = vst [vmem:[%s4465_s4 + $0x798] sm:$0xff] %v1231_v1  ;;  %v786_v46 = vpop.f32.mrf.mxu0  ;;  %v2061_v45 = vmul.f32 %v1231_v1, %v1231_v1  ;;  %v1774_v56 = vadd.f32 %v1773_v15, %v1231_v1  ;;  %v2271_v7 = vadd.f32 %v2270_v26, %v2060_v9 }
 0x1d7   :  { %v1235_v10 = vpop.f32.mrf.mxu1  ;;  %1496 = vst [vmem:[%s4465_s4 + $0x7a0] sm:$0xff] %v786_v46  ;;  %v2062_v11 = vmul.f32 %v786_v46, %v786_v46  ;;  %v2202_v34 = vadd.f32 %v2201_v8, %v2059_v53  ;;  %v1568_v61 = vadd.f32 %v1567_v27, %v786_v46 }
 0x1d8   :  { %1498 = vst [vmem:[%s4465_s4 + $0x7b0] sm:$0xff] %v1235_v10  ;;  %v2064_v18 = vmul.f32 %v1235_v10, %v1235_v10  ;;  %v788_v19 = vpop.f32.mrf.mxu0  ;;  %v2340_v30 = vadd.f32 %v2339_v32, %v2061_v45  ;;  %v1706_v28 = vadd.f32 %v1705_v21, %v1235_v10 }
 0x1d9   :  { %v1237_v54 = vpop.f32.mrf.mxu1  ;;  %1497 = vst [vmem:[%s4465_s4 + $0x7a8] sm:$0xff] %v788_v19  ;;  %v2063_v52 = vmul.f32 %v788_v19, %v788_v19  ;;  %v2134_v55 = vadd.f32 %v2133_v38, %v2062_v11  ;;  %v1637_v43 = vadd.f32 %v1636_v24, %v788_v19 }
 0x1da   :  { %1499 = vst [vmem:[%s4465_s4 + $0x7b8] sm:$0xff] %v1237_v54  ;;  %v2065_v3 = vmul.f32 %v1237_v54, %v1237_v54  ;;  %v792_v12 = vpop.f32.mrf.mxu0  ;;  %v2272_v5 = vadd.f32 %v2271_v7, %v2064_v18  ;;  %v1775_v62 = vadd.f32 %v1774_v56, %v1237_v54 }
 0x1db   :  { %v1241_v13 = vpop.f32.mrf.mxu1  ;;  %1500 = vst [vmem:[%s4465_s4 + $0x7c0] sm:$0xff] %v792_v12  ;;  %v2066_v16 = vmul.f32 %v792_v12, %v792_v12  ;;  %v2203_v51 = vadd.f32 %v2202_v34, %v2063_v52  ;;  %v1569_v25 = vadd.f32 %v1568_v61, %v792_v12 }
 0x1dc   :  { %1502 = vst [vmem:[%s4465_s4 + $0x7d0] sm:$0xff] %v1241_v13  ;;  %v2068_v63 = vmul.f32 %v1241_v13, %v1241_v13  ;;  %v794_v23 = vpop.f32.mrf.mxu0  ;;  %v1707_v35 = vadd.f32 %v1706_v28, %v1241_v13  ;;  %v2341_v17 = vadd.f32 %v2340_v30, %v2065_v3 }
 0x1dd   :  { %v1243_v57 = vpop.f32.mrf.mxu1  ;;  %1501 = vst [vmem:[%s4465_s4 + $0x7c8] sm:$0xff] %v794_v23  ;;  %v2067_v60 = vmul.f32 %v794_v23, %v794_v23  ;;  %v2135_v29 = vadd.f32 %v2134_v55, %v2066_v16  ;;  %v1638_v2 = vadd.f32 %v1637_v43, %v794_v23 }
 0x1de   :  { %1503 = vst [vmem:[%s4465_s4 + $0x7d8] sm:$0xff] %v1243_v57  ;;  %v2069_v4 = vmul.f32 %v1243_v57, %v1243_v57  ;;  %v798_v41 = vpop.f32.mrf.mxu0  ;;  %v1776_v58 = vadd.f32 %v1775_v62, %v1243_v57  ;;  %v2273_v39 = vadd.f32 %v2272_v5, %v2068_v63 }
 0x1df   :  { %v1247_v42 = vpop.f32.mrf.mxu1  ;;  %1504 = vst [vmem:[%s4465_s4 + $0x7e0] sm:$0xff] %v798_v41  ;;  %v1570_v59 = vadd.f32 %v1569_v25, %v798_v41  ;;  %v2070_v47 = vmul.f32 %v798_v41, %v798_v41  ;;  %v2204_v49 = vadd.f32 %v2203_v51, %v2067_v60  ;;  %v1795_v41 = vsub.s32 %v1792_v33, %v3806_v31 }
 0x1e0   :  { %1506 = vst [vmem:[%s4465_s4 + $0x7f0] sm:$0xff] %v1247_v42  ;;  %v1708_v48 = vadd.f32 %v1707_v35, %v1247_v42  ;;  %v2342_v50 = vadd.f32 %v2341_v17, %v2069_v4  ;;  %v2072_v40 = vmul.f32 %v1247_v42, %v1247_v42  ;;  %v800_v36 = vpop.f32.mrf.mxu0 }
 0x1e1   :  { %v1249_v1 = vpop.f32.mrf.mxu1  ;;  %v1571_v0 = vrot.slane %v1570_v59, 4  ;;  %v2136_v20 = vadd.f32 %v2135_v29, %v2070_v47  ;;  %1505 = vst [vmem:[%s4465_s4 + $0x7e8] sm:$0xff] %v800_v36  ;;  %v1639_v6 = vadd.f32 %v1638_v2, %v800_v36  ;;  %v2071_v15 = vmul.f32 %v800_v36, %v800_v36 }
 0x1e2   :  { %v1709_v44 = vrot.slane %v1708_v48, 4  ;;  %1507 = vst [vmem:[%s4465_s4 + $0x7f8] sm:$0xff] %v1249_v1  ;;  %v2274_v37 = vadd.f32 %v2273_v39, %v2072_v40  ;;  %v1777_v9 = vadd.f32 %v1776_v58, %v1249_v1  ;;  %v2073_v53 = vmul.f32 %v1249_v1, %v1249_v1 }
 0x1e3   :  { %v1572_v46 = vadd.f32 %v1571_v0, %v1570_v59  ;;  %v2137_v10 = vrot.slane %v2136_v20, 4  ;;  %v1640_v8 = vrot.slane %v1639_v6, 4  ;;  %v2205_v11 = vadd.f32 %v2204_v49, %v2071_v15 }
 0x1e4   :  { %v1710_v26 = vadd.f32 %v1709_v44, %v1708_v48  ;;  %v2275_v45 = vrot.slane %v2274_v37, 4  ;;  %v1778_v32 = vrot.slane %v1777_v9, 4  ;;  %v2343_v27 = vadd.f32 %v2342_v50, %v2073_v53 }
 0x1e5   :  { %v1573_v21 = vrot.slane %v1572_v46, 2  ;;  %v2138_v18 = vadd.f32 %v2137_v10, %v2136_v20  ;;  %v1641_v54 = vadd.f32 %v1640_v8, %v1639_v6  ;;  %v2206_v24 = vrot.slane %v2205_v11, 4 }
 0x1e6   :  { %v1711_v19 = vrot.slane %v1710_v26, 2  ;;  %v2276_v38 = vadd.f32 %v2275_v45, %v2274_v37  ;;  %v1779_v56 = vadd.f32 %v1778_v32, %v1777_v9  ;;  %v2344_v52 = vrot.slane %v2343_v27, 4 }
 0x1e7   :  { %v1574_v7 = vadd.f32 %v1573_v21, %v1572_v46  ;;  %v2139_v34 = vrot.slane %v2138_v18, 2  ;;  %v1642_v3 = vrot.slane %v1641_v54, 2  ;;  %v2207_v13 = vadd.f32 %v2206_v24, %v2205_v11 }
 0x1e8   :  { %v1712_v61 = vadd.f32 %v1711_v19, %v1710_v26  ;;  %v2277_v12 = vrot.slane %v2276_v38, 2  ;;  %v1780_v30 = vrot.slane %v1779_v56, 2  ;;  %v2345_v55 = vadd.f32 %v2344_v52, %v2343_v27 }
 0x1e9   :  { %v1575_v28 = vrot.slane %v1574_v7, 1  ;;  %v2140_v16 = vadd.f32 %v2139_v34, %v2138_v18  ;;  %v1643_v43 = vadd.f32 %v1642_v3, %v1641_v54  ;;  %v2208_v63 = vrot.slane %v2207_v13, 2 }
 0x1ea   :  { %v1713_v5 = vrot.slane %v1712_v61, 1  ;;  %v2278_v62 = vadd.f32 %v2277_v12, %v2276_v38  ;;  %v1781_v23 = vadd.f32 %v1780_v30, %v1779_v56  ;;  %v2346_v57 = vrot.slane %v2345_v55, 2 }
 0x1eb   :  { %v2141_v51 = vrot.slane %v2140_v16, 1  ;;  %v1644_v25 = vrot.slane %v1643_v43, 1  ;;  %v2209_v60 = vadd.f32 %v2208_v63, %v2207_v13  ;;  %v1576_v2 = vadd.f32 %v1575_v28, %v1574_v7 }
 0x1ec   :  { %v2279_v35 = vrot.slane %v2278_v62, 1  ;;  %v1782_v17 = vrot.slane %v1781_v23, 1  ;;  %v2347_v29 = vadd.f32 %v2346_v57, %v2345_v55  ;;  %v1714_v42 = vadd.f32 %v1713_v5, %v1712_v61 }
 0x1ed   :  { %v1645_v4 = vadd.f32 %v1644_v25, %v1643_v43  ;;  %v2210_v58 = vrot.slane %v2209_v60, 1  ;;  %v2142_v48 = vadd.f32 %v2141_v51, %v2140_v16 }
 0x1ee   :  { %v1783_v59 = vadd.f32 %v1782_v17, %v1781_v23  ;;  %v2348_v47 = vrot.slane %v2347_v29, 1  ;;  %v2280_v49 = vadd.f32 %v2279_v35, %v2278_v62 }
 0x1ef   :  { %v1788_v39 = vcombine.low %v1576_v2, %v1645_v4  ;;  %v2211_v50 = vadd.f32 %v2210_v58, %v2209_v60 }
 0x1f0   :  { %v1789_v40 = vcombine.low %v1714_v42, %v1783_v59  ;;  %v2349_v36 = vadd.f32 %v2348_v47, %v2347_v29 }
 0x1f1   :  { %v1796_v1 = vrot.slane %v1788_v39, %v1795_v41  ;;  %v2354_v0 = vcombine.low %v2142_v48, %v2211_v50 }
 0x1f2   :  { %v1803_v20 = vrot.slane %v1789_v40, %v1795_v41  ;;  %v2355_v44 = vcombine.low %v2280_v49, %v2349_v36 }
 0x1f3   :  { %v2362_v6 = vrot.slane %v2354_v0, %v1795_v41 }
 0x1f4   :  { %v1804_v37 = vcombine.low %v1796_v1, %v1803_v20  ;;  %v2369_v15 = vrot.slane %v2355_v44, %v1795_v41 }
 0x1f6   :  { %v1811_v22 = vrot.slane %v1804_v37, %v1795_v41  ;;  %v2370_v31 = vcombine.low %v2362_v6, %v2369_v15 }
 0x1f8   :  { %1817 = vst.msk [vmem:[%s4466_s5] sm:$0xf] %vm1815_vm0, %v1811_v22  ;;  %v2377_v33 = vrot.slane %v2370_v31, %v1795_v41 }
 0x1fa   :  { %2379 = vst.msk [vmem:[%s4467_s6] sm:$0xf] %vm1815_vm0, %v2377_v33 }

// kernel: bottleneck_forward.7
= control target key start
LH: loop header
LB: loop body
LE: loop exit
PB: predicated region body
PF: predicated region fallthrough
CT: control target
= control target key end

     0   :  { %v276_v0 = vlaneseq  ;;  %s3996_s0 = inlined_call_operand.vmem [shape: f32[1,512], index: 0, kind: input, shape index: {}]   ;;  %s3997_s1 = inlined_call_operand.vmem [shape: f32[1,512], index: 1, kind: input, shape index: {}]   ;;  %s3998_s2 = inlined_call_operand.vmem [shape: f32[512,512], index: 2, kind: input, shape index: {}]   ;;  %s3999_s3 = inlined_call_operand.vmem [shape: f32[512,512], index: 3, kind: input, shape index: {}]   ;;  %s4000_s4 = inlined_call_operand.hbm [shape: f32[512,512], index: 4, kind: output, shape index: {}]  }
   0x1   :  { %v274_v2 = vld [vmem:[%s3996_s0] sm:$0xf]  ;;  %v19_v6 = vld [vmem:[%s3998_s2 + $0x8] sm:$0xff]  ;;  %v20_v10 = vld [vmem:[%s3998_s2 + $0x10] sm:$0xff] }
   0x2   :  { %v277_v1 = vshrl.u32 %v276_v0, 7  ;;  %v552_v3 = vld [vmem:[%s3997_s1] sm:$0xf]  ;;  %v23_v12 = vld [vmem:[%s3998_s2 + $0x28] sm:$0xff]  ;;  %v21_v17 = vld [vmem:[%s3998_s2 + $0x18] sm:$0xff] }
   0x3   :  { %v18_v4 = vld [vmem:[%s3998_s2] sm:$0xff]  ;;  %v24_v18 = vld [vmem:[%s3998_s2 + $0x30] sm:$0xff]  ;;  %v25_v19 = vld [vmem:[%s3998_s2 + $0x38] sm:$0xff] }
   0x4   :  { %v278_v5 = vsub.s32 0, %v277_v1  ;;  %v282_v7 = vsub.s32 1, %v277_v1  ;;  %v286_v8 = vsub.s32 2, %v277_v1  ;;  %v290_v9 = vsub.s32 3, %v277_v1  ;;  %v22_v11 = vld [vmem:[%s3998_s2 + $0x20] sm:$0xff]  ;;  %v831_v27 = vld [vmem:[%s3999_s3 + $0x8] sm:$0xff] }
   0x5   :  { %v830_v25 = vld [vmem:[%s3999_s3] sm:$0xff]  ;;  %v832_v31 = vld [vmem:[%s3999_s3 + $0x10] sm:$0xff]  ;;  %v835_v34 = vld [vmem:[%s3999_s3 + $0x28] sm:$0xff] }
   0x6   :  { %v1944_v13 = vrot.slane %v274_v2, %v278_v5  ;;  %v1946_v14 = vrot.slane %v552_v3, %v278_v5  ;;  %v1948_v15 = vrot.slane %v274_v2, %v282_v7  ;;  %v1950_v16 = vrot.slane %v552_v3, %v282_v7  ;;  %v834_v33 = vld [vmem:[%s3999_s3 + $0x20] sm:$0xff]  ;;  %v833_v39 = vld [vmem:[%s3999_s3 + $0x18] sm:$0xff]  ;;  %v836_v42 = vld [vmem:[%s3999_s3 + $0x30] sm:$0xff] }
   0x7   :  { %v1961_v20 = vrot.slane %v274_v2, %v286_v8  ;;  %v1963_v21 = vrot.slane %v552_v3, %v286_v8  ;;  %v1965_v22 = vrot.slane %v274_v2, %v290_v9  ;;  %v1967_v23 = vrot.slane %v552_v3, %v290_v9  ;;  %v837_v43 = vld [vmem:[%s3999_s3 + $0x38] sm:$0xff]  ;;  %v26_v52 = vld [vmem:[%s3998_s2 + $0x40] sm:$0xff]  ;;  %v27_v53 = vld [vmem:[%s3998_s2 + $0x48] sm:$0xff] }
   0x8   :  { %v296_v24 = vmul.f32 %v1944_v13, %v18_v4  ;;  %v297_v26 = vmul.f32 %v1948_v15, %v19_v6  ;;  %v300_v28 = vmul.f32 %v1944_v13, %v22_v11  ;;  %v301_v29 = vmul.f32 %v1948_v15, %v23_v12  ;;  %v28_v54 = vld [vmem:[%s3998_s2 + $0x50] sm:$0xff]  ;;  %v29_v59 = vld [vmem:[%s3998_s2 + $0x58] sm:$0xff]  ;;  %v30_v60 = vld [vmem:[%s3998_s2 + $0x60] sm:$0xff] }
   0x9   :  { %v298_v30 = vmul.f32 %v1961_v20, %v20_v10  ;;  %v299_v32 = vmul.f32 %v1965_v22, %v21_v17  ;;  %v302_v35 = vmul.f32 %v1961_v20, %v24_v18  ;;  %v303_v36 = vmul.f32 %v1965_v22, %v25_v19  ;;  %v31_v61 = vld [vmem:[%s3998_s2 + $0x68] sm:$0xff]  ;;  %v32_v2 = vld [vmem:[%s3998_s2 + $0x70] sm:$0xff]  ;;  %v33_v3 = vld [vmem:[%s3998_s2 + $0x78] sm:$0xff] }
   0xa   :  { %v574_v37 = vadd.f32 %v1946_v14, %v296_v24  ;;  %v575_v38 = vadd.f32 %v1950_v16, %v297_v26  ;;  %v578_v40 = vadd.f32 %v1946_v14, %v300_v28  ;;  %v579_v41 = vadd.f32 %v1950_v16, %v301_v29  ;;  %v838_v9 = vld [vmem:[%s3999_s3 + $0x40] sm:$0xff]  ;;  %v839_v11 = vld [vmem:[%s3999_s3 + $0x48] sm:$0xff]  ;;  %v840_v18 = vld [vmem:[%s3999_s3 + $0x50] sm:$0xff] }
   0xb   :  { %v576_v44 = vadd.f32 %v1963_v21, %v298_v30  ;;  %v577_v45 = vadd.f32 %v1967_v23, %v299_v32  ;;  %v580_v46 = vadd.f32 %v1963_v21, %v302_v35  ;;  %v581_v47 = vadd.f32 %v1967_v23, %v303_v36  ;;  %v841_v19 = vld [vmem:[%s3999_s3 + $0x58] sm:$0xff] }
   0xc   :  { %v1086_v48 = vadd.f32 %v830_v25, %v574_v37  ;;  %v1087_v49 = vadd.f32 %v831_v27, %v575_v38  ;;  %v1090_v50 = vadd.f32 %v834_v33, %v578_v40  ;;  %v1091_v51 = vadd.f32 %v835_v34, %v579_v41  ;;  %v842_v25 = vld [vmem:[%s3999_s3 + $0x60] sm:$0xff]  ;;  %v843_v33 = vld [vmem:[%s3999_s3 + $0x68] sm:$0xff]  ;;  %v844_v34 = vld [vmem:[%s3999_s3 + $0x70] sm:$0xff] }
   0xd   :  { %v1088_v55 = vadd.f32 %v832_v31, %v576_v44  ;;  %v1089_v56 = vadd.f32 %v833_v39, %v577_v45  ;;  %v1092_v57 = vadd.f32 %v836_v42, %v580_v46  ;;  %v1093_v58 = vadd.f32 %v837_v43, %v581_v47  ;;  %v845_v35 = vld [vmem:[%s3999_s3 + $0x78] sm:$0xff]  ;;  %v34_v44 = vld [vmem:[%s3998_s2 + $0x80] sm:$0xff]  ;;  %v35_v45 = vld [vmem:[%s3998_s2 + $0x88] sm:$0xff] }
   0xe   :  { %v1342_v62 = vmax.f32 %v1086_v48, 0.0  ;;  %v1343_v63 = vmax.f32 %v1087_v49, 0.0  ;;  %v1346_v0 = vmax.f32 %v1090_v50, 0.0  ;;  %v1347_v1 = vmax.f32 %v1091_v51, 0.0  ;;  %v36_v46 = vld [vmem:[%s3998_s2 + $0x90] sm:$0xff]  ;;  %v37_v51 = vld [vmem:[%s3998_s2 + $0x98] sm:$0xff] }
   0xf   :  { %v1344_v4 = vmax.f32 %v1088_v55, 0.0  ;;  %v1345_v5 = vmax.f32 %v1089_v56, 0.0  ;;  %v1348_v6 = vmax.f32 %v1092_v57, 0.0  ;;  %v1349_v7 = vmax.f32 %v1093_v58, 0.0  ;;  %v40_v58 = vld [vmem:[%s3998_s2 + $0xb0] sm:$0xff] }
  0x10   :  { %1598 = vst [vmem:[#allocation2] sm:$0xff] %v1342_v62  ;;  %1599 = vst [vmem:[#allocation2 + $0x8] sm:$0xff] %v1343_v63  ;;  %v304_v8 = vmul.f32 %v1944_v13, %v26_v52  ;;  %v305_v10 = vmul.f32 %v1948_v15, %v27_v53  ;;  %v306_v12 = vmul.f32 %v1961_v20, %v28_v54  ;;  %v38_v52 = vld [vmem:[%s3998_s2 + $0xa0] sm:$0xff]  ;;  %v39_v53 = vld [vmem:[%s3998_s2 + $0xa8] sm:$0xff] }
  0x11   :  { %1602 = vst [vmem:[#allocation2 + $0x20] sm:$0xff] %v1346_v0  ;;  %1603 = vst [vmem:[#allocation2 + $0x28] sm:$0xff] %v1347_v1  ;;  %v307_v17 = vmul.f32 %v1965_v22, %v29_v59  ;;  %v308_v24 = vmul.f32 %v1944_v13, %v30_v60  ;;  %v309_v26 = vmul.f32 %v1948_v15, %v31_v61  ;;  %v41_v59 = vld [vmem:[%s3998_s2 + $0xb8] sm:$0xff]  ;;  %v846_v1 = vld [vmem:[%s3999_s3 + $0x80] sm:$0xff] }
  0x12   :  { %1600 = vst [vmem:[#allocation2 + $0x10] sm:$0xff] %v1344_v4  ;;  %1601 = vst [vmem:[#allocation2 + $0x18] sm:$0xff] %v1345_v5  ;;  %v310_v27 = vmul.f32 %v1961_v20, %v32_v2  ;;  %v311_v28 = vmul.f32 %v1965_v22, %v33_v3  ;;  %v582_v29 = vadd.f32 %v1946_v14, %v304_v8  ;;  %v847_v3 = vld [vmem:[%s3999_s3 + $0x88] sm:$0xff] }
  0x13   :  { %1604 = vst [vmem:[#allocation2 + $0x30] sm:$0xff] %v1348_v6  ;;  %1605 = vst [vmem:[#allocation2 + $0x38] sm:$0xff] %v1349_v7  ;;  %v583_v30 = vadd.f32 %v1950_v16, %v305_v10  ;;  %v584_v31 = vadd.f32 %v1963_v21, %v306_v12  ;;  %v585_v32 = vadd.f32 %v1967_v23, %v307_v17  ;;  %v848_v6 = vld [vmem:[%s3999_s3 + $0x90] sm:$0xff]  ;;  %v849_v7 = vld [vmem:[%s3999_s3 + $0x98] sm:$0xff] }
  0x14   :  { %v586_v36 = vadd.f32 %v1946_v14, %v308_v24  ;;  %v587_v37 = vadd.f32 %v1950_v16, %v309_v26  ;;  %v588_v38 = vadd.f32 %v1963_v21, %v310_v27  ;;  %v589_v39 = vadd.f32 %v1967_v23, %v311_v28  ;;  %v852_v26 = vld [vmem:[%s3999_s3 + $0xb0] sm:$0xff]  ;;  %v853_v27 = vld [vmem:[%s3999_s3 + $0xb8] sm:$0xff] }
  0x15   :  { %v1094_v40 = vadd.f32 %v838_v9, %v582_v29  ;;  %v1095_v41 = vadd.f32 %v839_v11, %v583_v30  ;;  %v1096_v42 = vadd.f32 %v840_v18, %v584_v31  ;;  %v1097_v43 = vadd.f32 %v841_v19, %v585_v32  ;;  %v850_v9 = vld [vmem:[%s3999_s3 + $0xa0] sm:$0xff] }
  0x16   :  { %v1098_v47 = vadd.f32 %v842_v25, %v586_v36  ;;  %v1099_v48 = vadd.f32 %v843_v33, %v587_v37  ;;  %v1100_v49 = vadd.f32 %v844_v34, %v588_v38  ;;  %v1101_v50 = vadd.f32 %v845_v35, %v589_v39  ;;  %v851_v25 = vld [vmem:[%s3999_s3 + $0xa8] sm:$0xff]  ;;  %v42_v36 = vld [vmem:[%s3998_s2 + $0xc0] sm:$0xff]  ;;  %v44_v38 = vld [vmem:[%s3998_s2 + $0xd0] sm:$0xff] }
  0x17   :  { %v1350_v54 = vmax.f32 %v1094_v40, 0.0  ;;  %v1351_v55 = vmax.f32 %v1095_v41, 0.0  ;;  %v1352_v56 = vmax.f32 %v1096_v42, 0.0  ;;  %v1353_v57 = vmax.f32 %v1097_v43, 0.0  ;;  %v43_v37 = vld [vmem:[%s3998_s2 + $0xc8] sm:$0xff]  ;;  %v45_v43 = vld [vmem:[%s3998_s2 + $0xd8] sm:$0xff] }
  0x18   :  { %v1354_v60 = vmax.f32 %v1098_v47, 0.0  ;;  %v1355_v61 = vmax.f32 %v1099_v48, 0.0  ;;  %v1356_v62 = vmax.f32 %v1100_v49, 0.0  ;;  %v1357_v63 = vmax.f32 %v1101_v50, 0.0  ;;  %v48_v50 = vld [vmem:[%s3998_s2 + $0xf0] sm:$0xff] }
  0x19   :  { %1606 = vst [vmem:[#allocation2 + $0x40] sm:$0xff] %v1350_v54  ;;  %1607 = vst [vmem:[#allocation2 + $0x48] sm:$0xff] %v1351_v55  ;;  %v312_v0 = vmul.f32 %v1944_v13, %v34_v44  ;;  %v313_v2 = vmul.f32 %v1948_v15, %v35_v45  ;;  %v314_v4 = vmul.f32 %v1961_v20, %v36_v46  ;;  %v46_v44 = vld [vmem:[%s3998_s2 + $0xe0] sm:$0xff]  ;;  %v47_v45 = vld [vmem:[%s3998_s2 + $0xe8] sm:$0xff] }
  0x1a   :  { %1608 = vst [vmem:[#allocation2 + $0x50] sm:$0xff] %v1352_v56  ;;  %1609 = vst [vmem:[#allocation2 + $0x58] sm:$0xff] %v1353_v57  ;;  %v315_v5 = vmul.f32 %v1965_v22, %v37_v51  ;;  %v316_v8 = vmul.f32 %v1944_v13, %v38_v52  ;;  %v317_v10 = vmul.f32 %v1948_v15, %v39_v53  ;;  %v49_v51 = vld [vmem:[%s3998_s2 + $0xf8] sm:$0xff]  ;;  %v854_v57 = vld [vmem:[%s3999_s3 + $0xc0] sm:$0xff] }
  0x1b   :  { %1610 = vst [vmem:[#allocation2 + $0x60] sm:$0xff] %v1354_v60  ;;  %1611 = vst [vmem:[#allocation2 + $0x68] sm:$0xff] %v1355_v61  ;;  %v318_v11 = vmul.f32 %v1961_v20, %v40_v58  ;;  %v319_v12 = vmul.f32 %v1965_v22, %v41_v59  ;;  %v590_v17 = vadd.f32 %v1946_v14, %v312_v0  ;;  %v855_v59 = vld [vmem:[%s3999_s3 + $0xc8] sm:$0xff] }
  0x1c   :  { %1612 = vst [vmem:[#allocation2 + $0x70] sm:$0xff] %v1356_v62  ;;  %1613 = vst [vmem:[#allocation2 + $0x78] sm:$0xff] %v1357_v63  ;;  %v591_v18 = vadd.f32 %v1950_v16, %v313_v2  ;;  %v592_v19 = vadd.f32 %v1963_v21, %v314_v4  ;;  %v593_v24 = vadd.f32 %v1967_v23, %v315_v5  ;;  %v856_v62 = vld [vmem:[%s3999_s3 + $0xd0] sm:$0xff]  ;;  %v857_v63 = vld [vmem:[%s3999_s3 + $0xd8] sm:$0xff] }
  0x1d   :  { %v594_v28 = vadd.f32 %v1946_v14, %v316_v8  ;;  %v595_v29 = vadd.f32 %v1950_v16, %v317_v10  ;;  %v596_v30 = vadd.f32 %v1963_v21, %v318_v11  ;;  %v597_v31 = vadd.f32 %v1967_v23, %v319_v12  ;;  %v860_v10 = vld [vmem:[%s3999_s3 + $0xf0] sm:$0xff]  ;;  %v861_v11 = vld [vmem:[%s3999_s3 + $0xf8] sm:$0xff] }
  0x1e   :  { %v1102_v32 = vadd.f32 %v846_v1, %v590_v17  ;;  %v1103_v33 = vadd.f32 %v847_v3, %v591_v18  ;;  %v1104_v34 = vadd.f32 %v848_v6, %v592_v19  ;;  %v1105_v35 = vadd.f32 %v849_v7, %v593_v24  ;;  %v858_v1 = vld [vmem:[%s3999_s3 + $0xe0] sm:$0xff] }
  0x1f   :  { %v1106_v39 = vadd.f32 %v850_v9, %v594_v28  ;;  %v1107_v40 = vadd.f32 %v851_v25, %v595_v29  ;;  %v1108_v41 = vadd.f32 %v852_v26, %v596_v30  ;;  %v1109_v42 = vadd.f32 %v853_v27, %v597_v31  ;;  %v859_v9 = vld [vmem:[%s3999_s3 + $0xe8] sm:$0xff]  ;;  %v50_v28 = vld [vmem:[%s3998_s2 + $0x100] sm:$0xff]  ;;  %v52_v30 = vld [vmem:[%s3998_s2 + $0x110] sm:$0xff] }
  0x20   :  { %v1358_v46 = vmax.f32 %v1102_v32, 0.0  ;;  %v1359_v47 = vmax.f32 %v1103_v33, 0.0  ;;  %v1360_v48 = vmax.f32 %v1104_v34, 0.0  ;;  %v1361_v49 = vmax.f32 %v1105_v35, 0.0  ;;  %v51_v29 = vld [vmem:[%s3998_s2 + $0x108] sm:$0xff]  ;;  %v53_v35 = vld [vmem:[%s3998_s2 + $0x118] sm:$0xff] }
  0x21   :  { %v1362_v52 = vmax.f32 %v1106_v39, 0.0  ;;  %v1363_v53 = vmax.f32 %v1107_v40, 0.0  ;;  %v1364_v54 = vmax.f32 %v1108_v41, 0.0  ;;  %v1365_v55 = vmax.f32 %v1109_v42, 0.0  ;;  %v56_v42 = vld [vmem:[%s3998_s2 + $0x130] sm:$0xff] }
  0x22   :  { %1614 = vst [vmem:[#allocation2 + $0x80] sm:$0xff] %v1358_v46  ;;  %1615 = vst [vmem:[#allocation2 + $0x88] sm:$0xff] %v1359_v47  ;;  %v320_v56 = vmul.f32 %v1944_v13, %v42_v36  ;;  %v321_v58 = vmul.f32 %v1948_v15, %v43_v37  ;;  %v322_v60 = vmul.f32 %v1961_v20, %v44_v38  ;;  %v54_v36 = vld [vmem:[%s3998_s2 + $0x120] sm:$0xff]  ;;  %v55_v37 = vld [vmem:[%s3998_s2 + $0x128] sm:$0xff] }
  0x23   :  { %1616 = vst [vmem:[#allocation2 + $0x90] sm:$0xff] %v1360_v48  ;;  %1617 = vst [vmem:[#allocation2 + $0x98] sm:$0xff] %v1361_v49  ;;  %v323_v61 = vmul.f32 %v1965_v22, %v45_v43  ;;  %v324_v0 = vmul.f32 %v1944_v13, %v46_v44  ;;  %v325_v2 = vmul.f32 %v1948_v15, %v47_v45  ;;  %v57_v43 = vld [vmem:[%s3998_s2 + $0x138] sm:$0xff]  ;;  %v862_v49 = vld [vmem:[%s3999_s3 + $0x100] sm:$0xff] }
  0x24   :  { %1618 = vst [vmem:[#allocation2 + $0xa0] sm:$0xff] %v1362_v52  ;;  %1619 = vst [vmem:[#allocation2 + $0xa8] sm:$0xff] %v1363_v53  ;;  %v326_v3 = vmul.f32 %v1961_v20, %v48_v50  ;;  %v327_v4 = vmul.f32 %v1965_v22, %v49_v51  ;;  %v598_v5 = vadd.f32 %v1946_v14, %v320_v56  ;;  %v863_v51 = vld [vmem:[%s3999_s3 + $0x108] sm:$0xff] }
  0x25   :  { %1620 = vst [vmem:[#allocation2 + $0xb0] sm:$0xff] %v1364_v54  ;;  %1621 = vst [vmem:[#allocation2 + $0xb8] sm:$0xff] %v1365_v55  ;;  %v599_v6 = vadd.f32 %v1950_v16, %v321_v58  ;;  %v600_v7 = vadd.f32 %v1963_v21, %v322_v60  ;;  %v601_v8 = vadd.f32 %v1967_v23, %v323_v61  ;;  %v864_v54 = vld [vmem:[%s3999_s3 + $0x110] sm:$0xff]  ;;  %v865_v55 = vld [vmem:[%s3999_s3 + $0x118] sm:$0xff] }
  0x26   :  { %v602_v12 = vadd.f32 %v1946_v14, %v324_v0  ;;  %v603_v17 = vadd.f32 %v1950_v16, %v325_v2  ;;  %v604_v18 = vadd.f32 %v1963_v21, %v326_v3  ;;  %v605_v19 = vadd.f32 %v1967_v23, %v327_v4  ;;  %v868_v2 = vld [vmem:[%s3999_s3 + $0x130] sm:$0xff]  ;;  %v869_v3 = vld [vmem:[%s3999_s3 + $0x138] sm:$0xff] }
  0x27   :  { %v1110_v24 = vadd.f32 %v854_v57, %v598_v5  ;;  %v1111_v25 = vadd.f32 %v855_v59, %v599_v6  ;;  %v1112_v26 = vadd.f32 %v856_v62, %v600_v7  ;;  %v1113_v27 = vadd.f32 %v857_v63, %v601_v8  ;;  %v866_v57 = vld [vmem:[%s3999_s3 + $0x120] sm:$0xff] }
  0x28   :  { %v1114_v31 = vadd.f32 %v858_v1, %v602_v12  ;;  %v1115_v32 = vadd.f32 %v859_v9, %v603_v17  ;;  %v1116_v33 = vadd.f32 %v860_v10, %v604_v18  ;;  %v1117_v34 = vadd.f32 %v861_v11, %v605_v19  ;;  %v867_v1 = vld [vmem:[%s3999_s3 + $0x128] sm:$0xff]  ;;  %v58_v12 = vld [vmem:[%s3998_s2 + $0x140] sm:$0xff]  ;;  %v60_v18 = vld [vmem:[%s3998_s2 + $0x150] sm:$0xff] }
  0x29   :  { %v1366_v38 = vmax.f32 %v1110_v24, 0.0  ;;  %v1367_v39 = vmax.f32 %v1111_v25, 0.0  ;;  %v1368_v40 = vmax.f32 %v1112_v26, 0.0  ;;  %v1369_v41 = vmax.f32 %v1113_v27, 0.0  ;;  %v59_v17 = vld [vmem:[%s3998_s2 + $0x148] sm:$0xff]  ;;  %v61_v27 = vld [vmem:[%s3998_s2 + $0x158] sm:$0xff] }
  0x2a   :  { %v1370_v44 = vmax.f32 %v1114_v31, 0.0  ;;  %v1371_v45 = vmax.f32 %v1115_v32, 0.0  ;;  %v1372_v46 = vmax.f32 %v1116_v33, 0.0  ;;  %v1373_v47 = vmax.f32 %v1117_v34, 0.0  ;;  %v64_v34 = vld [vmem:[%s3998_s2 + $0x170] sm:$0xff] }
  0x2b   :  { %1622 = vst [vmem:[#allocation2 + $0xc0] sm:$0xff] %v1366_v38  ;;  %1623 = vst [vmem:[#allocation2 + $0xc8] sm:$0xff] %v1367_v39  ;;  %v328_v48 = vmul.f32 %v1944_v13, %v50_v28  ;;  %v329_v50 = vmul.f32 %v1948_v15, %v51_v29  ;;  %v330_v52 = vmul.f32 %v1961_v20, %v52_v30  ;;  %v62_v28 = vld [vmem:[%s3998_s2 + $0x160] sm:$0xff]  ;;  %v63_v29 = vld [vmem:[%s3998_s2 + $0x168] sm:$0xff] }
  0x2c   :  { %1624 = vst [vmem:[#allocation2 + $0xd0] sm:$0xff] %v1368_v40  ;;  %1625 = vst [vmem:[#allocation2 + $0xd8] sm:$0xff] %v1369_v41  ;;  %v331_v53 = vmul.f32 %v1965_v22, %v53_v35  ;;  %v332_v56 = vmul.f32 %v1944_v13, %v54_v36  ;;  %v333_v58 = vmul.f32 %v1948_v15, %v55_v37  ;;  %v65_v35 = vld [vmem:[%s3998_s2 + $0x178] sm:$0xff]  ;;  %v870_v41 = vld [vmem:[%s3999_s3 + $0x140] sm:$0xff] }
  0x2d   :  { %1626 = vst [vmem:[#allocation2 + $0xe0] sm:$0xff] %v1370_v44  ;;  %1627 = vst [vmem:[#allocation2 + $0xe8] sm:$0xff] %v1371_v45  ;;  %v334_v59 = vmul.f32 %v1961_v20, %v56_v42  ;;  %v335_v60 = vmul.f32 %v1965_v22, %v57_v43  ;;  %v606_v61 = vadd.f32 %v1946_v14, %v328_v48  ;;  %v871_v43 = vld [vmem:[%s3999_s3 + $0x148] sm:$0xff] }
  0x2e   :  { %1628 = vst [vmem:[#allocation2 + $0xf0] sm:$0xff] %v1372_v46  ;;  %1629 = vst [vmem:[#allocation2 + $0xf8] sm:$0xff] %v1373_v47  ;;  %v607_v62 = vadd.f32 %v1950_v16, %v329_v50  ;;  %v608_v63 = vadd.f32 %v1963_v21, %v330_v52  ;;  %v609_v0 = vadd.f32 %v1967_v23, %v331_v53  ;;  %v872_v46 = vld [vmem:[%s3999_s3 + $0x150] sm:$0xff]  ;;  %v873_v47 = vld [vmem:[%s3999_s3 + $0x158] sm:$0xff] }
  0x2f   :  { %v610_v4 = vadd.f32 %v1946_v14, %v332_v56  ;;  %v611_v5 = vadd.f32 %v1950_v16, %v333_v58  ;;  %v612_v6 = vadd.f32 %v1963_v21, %v334_v59  ;;  %v613_v7 = vadd.f32 %v1967_v23, %v335_v60  ;;  %v876_v58 = vld [vmem:[%s3999_s3 + $0x170] sm:$0xff]  ;;  %v877_v59 = vld [vmem:[%s3999_s3 + $0x178] sm:$0xff] }
  0x30   :  { %v1118_v8 = vadd.f32 %v862_v49, %v606_v61  ;;  %v1119_v9 = vadd.f32 %v863_v51, %v607_v62  ;;  %v1120_v10 = vadd.f32 %v864_v54, %v608_v63  ;;  %v1121_v11 = vadd.f32 %v865_v55, %v609_v0  ;;  %v874_v49 = vld [vmem:[%s3999_s3 + $0x160] sm:$0xff] }
  0x31   :  { %v1122_v19 = vadd.f32 %v866_v57, %v610_v4  ;;  %v1123_v24 = vadd.f32 %v867_v1, %v611_v5  ;;  %v1124_v25 = vadd.f32 %v868_v2, %v612_v6  ;;  %v1125_v26 = vadd.f32 %v869_v3, %v613_v7  ;;  %v875_v57 = vld [vmem:[%s3999_s3 + $0x168] sm:$0xff]  ;;  %v66_v4 = vld [vmem:[%s3998_s2 + $0x180] sm:$0xff]  ;;  %v68_v6 = vld [vmem:[%s3998_s2 + $0x190] sm:$0xff] }
  0x32   :  { %v1374_v30 = vmax.f32 %v1118_v8, 0.0  ;;  %v1375_v31 = vmax.f32 %v1119_v9, 0.0  ;;  %v1376_v32 = vmax.f32 %v1120_v10, 0.0  ;;  %v1377_v33 = vmax.f32 %v1121_v11, 0.0  ;;  %v67_v5 = vld [vmem:[%s3998_s2 + $0x188] sm:$0xff]  ;;  %v69_v11 = vld [vmem:[%s3998_s2 + $0x198] sm:$0xff] }
  0x33   :  { %v1378_v36 = vmax.f32 %v1122_v19, 0.0  ;;  %v1379_v37 = vmax.f32 %v1123_v24, 0.0  ;;  %v1380_v38 = vmax.f32 %v1124_v25, 0.0  ;;  %v1381_v39 = vmax.f32 %v1125_v26, 0.0  ;;  %v72_v26 = vld [vmem:[%s3998_s2 + $0x1b0] sm:$0xff] }
  0x34   :  { %1630 = vst [vmem:[#allocation2 + $0x100] sm:$0xff] %v1374_v30  ;;  %1631 = vst [vmem:[#allocation2 + $0x108] sm:$0xff] %v1375_v31  ;;  %v336_v40 = vmul.f32 %v1944_v13, %v58_v12  ;;  %v337_v42 = vmul.f32 %v1948_v15, %v59_v17  ;;  %v338_v44 = vmul.f32 %v1961_v20, %v60_v18  ;;  %v70_v12 = vld [vmem:[%s3998_s2 + $0x1a0] sm:$0xff]  ;;  %v71_v17 = vld [vmem:[%s3998_s2 + $0x1a8] sm:$0xff] }
  0x35   :  { %1632 = vst [vmem:[#allocation2 + $0x110] sm:$0xff] %v1376_v32  ;;  %1633 = vst [vmem:[#allocation2 + $0x118] sm:$0xff] %v1377_v33  ;;  %v339_v45 = vmul.f32 %v1965_v22, %v61_v27  ;;  %v340_v48 = vmul.f32 %v1944_v13, %v62_v28  ;;  %v341_v50 = vmul.f32 %v1948_v15, %v63_v29  ;;  %v73_v27 = vld [vmem:[%s3998_s2 + $0x1b8] sm:$0xff]  ;;  %v878_v33 = vld [vmem:[%s3999_s3 + $0x180] sm:$0xff] }
  0x36   :  { %1634 = vst [vmem:[#allocation2 + $0x120] sm:$0xff] %v1378_v36  ;;  %1635 = vst [vmem:[#allocation2 + $0x128] sm:$0xff] %v1379_v37  ;;  %v342_v51 = vmul.f32 %v1961_v20, %v64_v34  ;;  %v343_v52 = vmul.f32 %v1965_v22, %v65_v35  ;;  %v614_v53 = vadd.f32 %v1946_v14, %v336_v40  ;;  %v879_v35 = vld [vmem:[%s3999_s3 + $0x188] sm:$0xff] }
  0x37   :  { %1636 = vst [vmem:[#allocation2 + $0x130] sm:$0xff] %v1380_v38  ;;  %1637 = vst [vmem:[#allocation2 + $0x138] sm:$0xff] %v1381_v39  ;;  %v615_v54 = vadd.f32 %v1950_v16, %v337_v42  ;;  %v616_v55 = vadd.f32 %v1963_v21, %v338_v44  ;;  %v617_v56 = vadd.f32 %v1967_v23, %v339_v45  ;;  %v880_v38 = vld [vmem:[%s3999_s3 + $0x190] sm:$0xff]  ;;  %v881_v39 = vld [vmem:[%s3999_s3 + $0x198] sm:$0xff] }
  0x38   :  { %v618_v60 = vadd.f32 %v1946_v14, %v340_v48  ;;  %v619_v61 = vadd.f32 %v1950_v16, %v341_v50  ;;  %v620_v62 = vadd.f32 %v1963_v21, %v342_v51  ;;  %v621_v63 = vadd.f32 %v1967_v23, %v343_v52  ;;  %v884_v50 = vld [vmem:[%s3999_s3 + $0x1b0] sm:$0xff]  ;;  %v885_v51 = vld [vmem:[%s3999_s3 + $0x1b8] sm:$0xff] }
  0x39   :  { %v1126_v0 = vadd.f32 %v870_v41, %v614_v53  ;;  %v1127_v1 = vadd.f32 %v871_v43, %v615_v54  ;;  %v1128_v2 = vadd.f32 %v872_v46, %v616_v55  ;;  %v1129_v3 = vadd.f32 %v873_v47, %v617_v56  ;;  %v882_v41 = vld [vmem:[%s3999_s3 + $0x1a0] sm:$0xff] }
  0x3a   :  { %v1130_v7 = vadd.f32 %v874_v49, %v618_v60  ;;  %v1131_v8 = vadd.f32 %v875_v57, %v619_v61  ;;  %v1132_v9 = vadd.f32 %v876_v58, %v620_v62  ;;  %v1133_v10 = vadd.f32 %v877_v59, %v621_v63  ;;  %v883_v49 = vld [vmem:[%s3999_s3 + $0x1a8] sm:$0xff]  ;;  %v74_v60 = vld [vmem:[%s3998_s2 + $0x1c0] sm:$0xff]  ;;  %v76_v62 = vld [vmem:[%s3998_s2 + $0x1d0] sm:$0xff] }
  0x3b   :  { %v1382_v18 = vmax.f32 %v1126_v0, 0.0  ;;  %v1383_v19 = vmax.f32 %v1127_v1, 0.0  ;;  %v1384_v24 = vmax.f32 %v1128_v2, 0.0  ;;  %v1385_v25 = vmax.f32 %v1129_v3, 0.0  ;;  %v75_v61 = vld [vmem:[%s3998_s2 + $0x1c8] sm:$0xff]  ;;  %v77_v3 = vld [vmem:[%s3998_s2 + $0x1d8] sm:$0xff] }
  0x3c   :  { %v1386_v28 = vmax.f32 %v1130_v7, 0.0  ;;  %v1387_v29 = vmax.f32 %v1131_v8, 0.0  ;;  %v1388_v30 = vmax.f32 %v1132_v9, 0.0  ;;  %v1389_v31 = vmax.f32 %v1133_v10, 0.0  ;;  %v80_v10 = vld [vmem:[%s3998_s2 + $0x1f0] sm:$0xff] }
  0x3d   :  { %1638 = vst [vmem:[#allocation2 + $0x140] sm:$0xff] %v1382_v18  ;;  %1639 = vst [vmem:[#allocation2 + $0x148] sm:$0xff] %v1383_v19  ;;  %v344_v32 = vmul.f32 %v1944_v13, %v66_v4  ;;  %v345_v34 = vmul.f32 %v1948_v15, %v67_v5  ;;  %v346_v36 = vmul.f32 %v1961_v20, %v68_v6  ;;  %v78_v4 = vld [vmem:[%s3998_s2 + $0x1e0] sm:$0xff]  ;;  %v79_v5 = vld [vmem:[%s3998_s2 + $0x1e8] sm:$0xff] }
  0x3e   :  { %1640 = vst [vmem:[#allocation2 + $0x150] sm:$0xff] %v1384_v24  ;;  %1641 = vst [vmem:[#allocation2 + $0x158] sm:$0xff] %v1385_v25  ;;  %v347_v37 = vmul.f32 %v1965_v22, %v69_v11  ;;  %v348_v40 = vmul.f32 %v1944_v13, %v70_v12  ;;  %v349_v42 = vmul.f32 %v1948_v15, %v71_v17  ;;  %v81_v11 = vld [vmem:[%s3998_s2 + $0x1f8] sm:$0xff]  ;;  %v886_v25 = vld [vmem:[%s3999_s3 + $0x1c0] sm:$0xff] }
  0x3f   :  { %1642 = vst [vmem:[#allocation2 + $0x160] sm:$0xff] %v1386_v28  ;;  %1643 = vst [vmem:[#allocation2 + $0x168] sm:$0xff] %v1387_v29  ;;  %v350_v43 = vmul.f32 %v1961_v20, %v72_v26  ;;  %v351_v44 = vmul.f32 %v1965_v22, %v73_v27  ;;  %v622_v45 = vadd.f32 %v1946_v14, %v344_v32  ;;  %v887_v27 = vld [vmem:[%s3999_s3 + $0x1c8] sm:$0xff] }
  0x40   :  { %1644 = vst [vmem:[#allocation2 + $0x170] sm:$0xff] %v1388_v30  ;;  %1645 = vst [vmem:[#allocation2 + $0x178] sm:$0xff] %v1389_v31  ;;  %v623_v46 = vadd.f32 %v1950_v16, %v345_v34  ;;  %v624_v47 = vadd.f32 %v1963_v21, %v346_v36  ;;  %v625_v48 = vadd.f32 %v1967_v23, %v347_v37  ;;  %v888_v30 = vld [vmem:[%s3999_s3 + $0x1d0] sm:$0xff]  ;;  %v889_v31 = vld [vmem:[%s3999_s3 + $0x1d8] sm:$0xff] }
  0x41   :  { %v626_v52 = vadd.f32 %v1946_v14, %v348_v40  ;;  %v627_v53 = vadd.f32 %v1950_v16, %v349_v42  ;;  %v628_v54 = vadd.f32 %v1963_v21, %v350_v43  ;;  %v629_v55 = vadd.f32 %v1967_v23, %v351_v44  ;;  %v892_v42 = vld [vmem:[%s3999_s3 + $0x1f0] sm:$0xff]  ;;  %v893_v43 = vld [vmem:[%s3999_s3 + $0x1f8] sm:$0xff] }
  0x42   :  { %v1134_v56 = vadd.f32 %v878_v33, %v622_v45  ;;  %v1135_v57 = vadd.f32 %v879_v35, %v623_v46  ;;  %v1136_v58 = vadd.f32 %v880_v38, %v624_v47  ;;  %v1137_v59 = vadd.f32 %v881_v39, %v625_v48  ;;  %v890_v33 = vld [vmem:[%s3999_s3 + $0x1e0] sm:$0xff] }
  0x43   :  { %v1138_v63 = vadd.f32 %v882_v41, %v626_v52  ;;  %v1139_v0 = vadd.f32 %v883_v49, %v627_v53  ;;  %v1140_v1 = vadd.f32 %v884_v50, %v628_v54  ;;  %v1141_v2 = vadd.f32 %v885_v51, %v629_v55  ;;  %v891_v41 = vld [vmem:[%s3999_s3 + $0x1e8] sm:$0xff]  ;;  %v82_v52 = vld [vmem:[%s3998_s2 + $0x200] sm:$0xff]  ;;  %v84_v54 = vld [vmem:[%s3998_s2 + $0x210] sm:$0xff] }
  0x44   :  { %v1390_v6 = vmax.f32 %v1134_v56, 0.0  ;;  %v1391_v7 = vmax.f32 %v1135_v57, 0.0  ;;  %v1392_v8 = vmax.f32 %v1136_v58, 0.0  ;;  %v1393_v9 = vmax.f32 %v1137_v59, 0.0  ;;  %v83_v53 = vld [vmem:[%s3998_s2 + $0x208] sm:$0xff]  ;;  %v85_v59 = vld [vmem:[%s3998_s2 + $0x218] sm:$0xff] }
  0x45   :  { %v1394_v12 = vmax.f32 %v1138_v63, 0.0  ;;  %v1395_v17 = vmax.f32 %v1139_v0, 0.0  ;;  %v1396_v18 = vmax.f32 %v1140_v1, 0.0  ;;  %v1397_v19 = vmax.f32 %v1141_v2, 0.0  ;;  %v88_v2 = vld [vmem:[%s3998_s2 + $0x230] sm:$0xff] }
  0x46   :  { %1646 = vst [vmem:[#allocation2 + $0x180] sm:$0xff] %v1390_v6  ;;  %1647 = vst [vmem:[#allocation2 + $0x188] sm:$0xff] %v1391_v7  ;;  %v352_v24 = vmul.f32 %v1944_v13, %v74_v60  ;;  %v353_v26 = vmul.f32 %v1948_v15, %v75_v61  ;;  %v354_v28 = vmul.f32 %v1961_v20, %v76_v62  ;;  %v86_v60 = vld [vmem:[%s3998_s2 + $0x220] sm:$0xff]  ;;  %v87_v61 = vld [vmem:[%s3998_s2 + $0x228] sm:$0xff] }
  0x47   :  { %1648 = vst [vmem:[#allocation2 + $0x190] sm:$0xff] %v1392_v8  ;;  %1649 = vst [vmem:[#allocation2 + $0x198] sm:$0xff] %v1393_v9  ;;  %v355_v29 = vmul.f32 %v1965_v22, %v77_v3  ;;  %v356_v32 = vmul.f32 %v1944_v13, %v78_v4  ;;  %v357_v34 = vmul.f32 %v1948_v15, %v79_v5  ;;  %v89_v3 = vld [vmem:[%s3998_s2 + $0x238] sm:$0xff]  ;;  %v894_v9 = vld [vmem:[%s3999_s3 + $0x200] sm:$0xff] }
  0x48   :  { %1650 = vst [vmem:[#allocation2 + $0x1a0] sm:$0xff] %v1394_v12  ;;  %1651 = vst [vmem:[#allocation2 + $0x1a8] sm:$0xff] %v1395_v17  ;;  %v358_v35 = vmul.f32 %v1961_v20, %v80_v10  ;;  %v359_v36 = vmul.f32 %v1965_v22, %v81_v11  ;;  %v630_v37 = vadd.f32 %v1946_v14, %v352_v24  ;;  %v895_v11 = vld [vmem:[%s3999_s3 + $0x208] sm:$0xff] }
  0x49   :  { %1652 = vst [vmem:[#allocation2 + $0x1b0] sm:$0xff] %v1396_v18  ;;  %1653 = vst [vmem:[#allocation2 + $0x1b8] sm:$0xff] %v1397_v19  ;;  %v631_v38 = vadd.f32 %v1950_v16, %v353_v26  ;;  %v632_v39 = vadd.f32 %v1963_v21, %v354_v28  ;;  %v633_v40 = vadd.f32 %v1967_v23, %v355_v29  ;;  %v896_v18 = vld [vmem:[%s3999_s3 + $0x210] sm:$0xff]  ;;  %v897_v19 = vld [vmem:[%s3999_s3 + $0x218] sm:$0xff] }
  0x4a   :  { %v634_v44 = vadd.f32 %v1946_v14, %v356_v32  ;;  %v635_v45 = vadd.f32 %v1950_v16, %v357_v34  ;;  %v636_v46 = vadd.f32 %v1963_v21, %v358_v35  ;;  %v637_v47 = vadd.f32 %v1967_v23, %v359_v36  ;;  %v900_v34 = vld [vmem:[%s3999_s3 + $0x230] sm:$0xff]  ;;  %v901_v35 = vld [vmem:[%s3999_s3 + $0x238] sm:$0xff] }
  0x4b   :  { %v1142_v48 = vadd.f32 %v886_v25, %v630_v37  ;;  %v1143_v49 = vadd.f32 %v887_v27, %v631_v38  ;;  %v1144_v50 = vadd.f32 %v888_v30, %v632_v39  ;;  %v1145_v51 = vadd.f32 %v889_v31, %v633_v40  ;;  %v898_v25 = vld [vmem:[%s3999_s3 + $0x220] sm:$0xff] }
  0x4c   :  { %v1146_v55 = vadd.f32 %v890_v33, %v634_v44  ;;  %v1147_v56 = vadd.f32 %v891_v41, %v635_v45  ;;  %v1148_v57 = vadd.f32 %v892_v42, %v636_v46  ;;  %v1149_v58 = vadd.f32 %v893_v43, %v637_v47  ;;  %v899_v33 = vld [vmem:[%s3999_s3 + $0x228] sm:$0xff]  ;;  %v90_v44 = vld [vmem:[%s3998_s2 + $0x240] sm:$0xff]  ;;  %v92_v46 = vld [vmem:[%s3998_s2 + $0x250] sm:$0xff] }
  0x4d   :  { %v1398_v62 = vmax.f32 %v1142_v48, 0.0  ;;  %v1399_v63 = vmax.f32 %v1143_v49, 0.0  ;;  %v1400_v0 = vmax.f32 %v1144_v50, 0.0  ;;  %v1401_v1 = vmax.f32 %v1145_v51, 0.0  ;;  %v91_v45 = vld [vmem:[%s3998_s2 + $0x248] sm:$0xff]  ;;  %v93_v51 = vld [vmem:[%s3998_s2 + $0x258] sm:$0xff] }
  0x4e   :  { %v1402_v4 = vmax.f32 %v1146_v55, 0.0  ;;  %v1403_v5 = vmax.f32 %v1147_v56, 0.0  ;;  %v1404_v6 = vmax.f32 %v1148_v57, 0.0  ;;  %v1405_v7 = vmax.f32 %v1149_v58, 0.0  ;;  %v96_v58 = vld [vmem:[%s3998_s2 + $0x270] sm:$0xff] }
  0x4f   :  { %1654 = vst [vmem:[#allocation2 + $0x1c0] sm:$0xff] %v1398_v62  ;;  %1655 = vst [vmem:[#allocation2 + $0x1c8] sm:$0xff] %v1399_v63  ;;  %v360_v8 = vmul.f32 %v1944_v13, %v82_v52  ;;  %v361_v10 = vmul.f32 %v1948_v15, %v83_v53  ;;  %v362_v12 = vmul.f32 %v1961_v20, %v84_v54  ;;  %v94_v52 = vld [vmem:[%s3998_s2 + $0x260] sm:$0xff]  ;;  %v95_v53 = vld [vmem:[%s3998_s2 + $0x268] sm:$0xff] }
  0x50   :  { %1656 = vst [vmem:[#allocation2 + $0x1d0] sm:$0xff] %v1400_v0  ;;  %1657 = vst [vmem:[#allocation2 + $0x1d8] sm:$0xff] %v1401_v1  ;;  %v363_v17 = vmul.f32 %v1965_v22, %v85_v59  ;;  %v364_v24 = vmul.f32 %v1944_v13, %v86_v60  ;;  %v365_v26 = vmul.f32 %v1948_v15, %v87_v61  ;;  %v97_v59 = vld [vmem:[%s3998_s2 + $0x278] sm:$0xff]  ;;  %v902_v1 = vld [vmem:[%s3999_s3 + $0x240] sm:$0xff] }
  0x51   :  { %1658 = vst [vmem:[#allocation2 + $0x1e0] sm:$0xff] %v1402_v4  ;;  %1659 = vst [vmem:[#allocation2 + $0x1e8] sm:$0xff] %v1403_v5  ;;  %v366_v27 = vmul.f32 %v1961_v20, %v88_v2  ;;  %v367_v28 = vmul.f32 %v1965_v22, %v89_v3  ;;  %v638_v29 = vadd.f32 %v1946_v14, %v360_v8  ;;  %v903_v3 = vld [vmem:[%s3999_s3 + $0x248] sm:$0xff] }
  0x52   :  { %1660 = vst [vmem:[#allocation2 + $0x1f0] sm:$0xff] %v1404_v6  ;;  %1661 = vst [vmem:[#allocation2 + $0x1f8] sm:$0xff] %v1405_v7  ;;  %v639_v30 = vadd.f32 %v1950_v16, %v361_v10  ;;  %v640_v31 = vadd.f32 %v1963_v21, %v362_v12  ;;  %v641_v32 = vadd.f32 %v1967_v23, %v363_v17  ;;  %v904_v6 = vld [vmem:[%s3999_s3 + $0x250] sm:$0xff]  ;;  %v905_v7 = vld [vmem:[%s3999_s3 + $0x258] sm:$0xff] }
  0x53   :  { %v642_v36 = vadd.f32 %v1946_v14, %v364_v24  ;;  %v643_v37 = vadd.f32 %v1950_v16, %v365_v26  ;;  %v644_v38 = vadd.f32 %v1963_v21, %v366_v27  ;;  %v645_v39 = vadd.f32 %v1967_v23, %v367_v28  ;;  %v908_v26 = vld [vmem:[%s3999_s3 + $0x270] sm:$0xff]  ;;  %v909_v27 = vld [vmem:[%s3999_s3 + $0x278] sm:$0xff] }
  0x54   :  { %v1150_v40 = vadd.f32 %v894_v9, %v638_v29  ;;  %v1151_v41 = vadd.f32 %v895_v11, %v639_v30  ;;  %v1152_v42 = vadd.f32 %v896_v18, %v640_v31  ;;  %v1153_v43 = vadd.f32 %v897_v19, %v641_v32  ;;  %v906_v9 = vld [vmem:[%s3999_s3 + $0x260] sm:$0xff] }
  0x55   :  { %v1154_v47 = vadd.f32 %v898_v25, %v642_v36  ;;  %v1155_v48 = vadd.f32 %v899_v33, %v643_v37  ;;  %v1156_v49 = vadd.f32 %v900_v34, %v644_v38  ;;  %v1157_v50 = vadd.f32 %v901_v35, %v645_v39  ;;  %v907_v25 = vld [vmem:[%s3999_s3 + $0x268] sm:$0xff]  ;;  %v98_v36 = vld [vmem:[%s3998_s2 + $0x280] sm:$0xff]  ;;  %v100_v38 = vld [vmem:[%s3998_s2 + $0x290] sm:$0xff] }
  0x56   :  { %v1406_v54 = vmax.f32 %v1150_v40, 0.0  ;;  %v1407_v55 = vmax.f32 %v1151_v41, 0.0  ;;  %v1408_v56 = vmax.f32 %v1152_v42, 0.0  ;;  %v1409_v57 = vmax.f32 %v1153_v43, 0.0  ;;  %v99_v37 = vld [vmem:[%s3998_s2 + $0x288] sm:$0xff]  ;;  %v101_v43 = vld [vmem:[%s3998_s2 + $0x298] sm:$0xff] }
  0x57   :  { %v1410_v60 = vmax.f32 %v1154_v47, 0.0  ;;  %v1411_v61 = vmax.f32 %v1155_v48, 0.0  ;;  %v1412_v62 = vmax.f32 %v1156_v49, 0.0  ;;  %v1413_v63 = vmax.f32 %v1157_v50, 0.0  ;;  %v104_v50 = vld [vmem:[%s3998_s2 + $0x2b0] sm:$0xff] }
  0x58   :  { %1662 = vst [vmem:[#allocation2 + $0x200] sm:$0xff] %v1406_v54  ;;  %1663 = vst [vmem:[#allocation2 + $0x208] sm:$0xff] %v1407_v55  ;;  %v368_v0 = vmul.f32 %v1944_v13, %v90_v44  ;;  %v369_v2 = vmul.f32 %v1948_v15, %v91_v45  ;;  %v370_v4 = vmul.f32 %v1961_v20, %v92_v46  ;;  %v102_v44 = vld [vmem:[%s3998_s2 + $0x2a0] sm:$0xff]  ;;  %v103_v45 = vld [vmem:[%s3998_s2 + $0x2a8] sm:$0xff] }
  0x59   :  { %1664 = vst [vmem:[#allocation2 + $0x210] sm:$0xff] %v1408_v56  ;;  %1665 = vst [vmem:[#allocation2 + $0x218] sm:$0xff] %v1409_v57  ;;  %v371_v5 = vmul.f32 %v1965_v22, %v93_v51  ;;  %v372_v8 = vmul.f32 %v1944_v13, %v94_v52  ;;  %v373_v10 = vmul.f32 %v1948_v15, %v95_v53  ;;  %v105_v51 = vld [vmem:[%s3998_s2 + $0x2b8] sm:$0xff]  ;;  %v910_v57 = vld [vmem:[%s3999_s3 + $0x280] sm:$0xff] }
  0x5a   :  { %1666 = vst [vmem:[#allocation2 + $0x220] sm:$0xff] %v1410_v60  ;;  %1667 = vst [vmem:[#allocation2 + $0x228] sm:$0xff] %v1411_v61  ;;  %v374_v11 = vmul.f32 %v1961_v20, %v96_v58  ;;  %v375_v12 = vmul.f32 %v1965_v22, %v97_v59  ;;  %v646_v17 = vadd.f32 %v1946_v14, %v368_v0  ;;  %v911_v59 = vld [vmem:[%s3999_s3 + $0x288] sm:$0xff] }
  0x5b   :  { %1668 = vst [vmem:[#allocation2 + $0x230] sm:$0xff] %v1412_v62  ;;  %1669 = vst [vmem:[#allocation2 + $0x238] sm:$0xff] %v1413_v63  ;;  %v647_v18 = vadd.f32 %v1950_v16, %v369_v2  ;;  %v648_v19 = vadd.f32 %v1963_v21, %v370_v4  ;;  %v649_v24 = vadd.f32 %v1967_v23, %v371_v5  ;;  %v912_v62 = vld [vmem:[%s3999_s3 + $0x290] sm:$0xff]  ;;  %v913_v63 = vld [vmem:[%s3999_s3 + $0x298] sm:$0xff] }
  0x5c   :  { %v650_v28 = vadd.f32 %v1946_v14, %v372_v8  ;;  %v651_v29 = vadd.f32 %v1950_v16, %v373_v10  ;;  %v652_v30 = vadd.f32 %v1963_v21, %v374_v11  ;;  %v653_v31 = vadd.f32 %v1967_v23, %v375_v12  ;;  %v916_v10 = vld [vmem:[%s3999_s3 + $0x2b0] sm:$0xff]  ;;  %v917_v11 = vld [vmem:[%s3999_s3 + $0x2b8] sm:$0xff] }
  0x5d   :  { %v1158_v32 = vadd.f32 %v902_v1, %v646_v17  ;;  %v1159_v33 = vadd.f32 %v903_v3, %v647_v18  ;;  %v1160_v34 = vadd.f32 %v904_v6, %v648_v19  ;;  %v1161_v35 = vadd.f32 %v905_v7, %v649_v24  ;;  %v914_v1 = vld [vmem:[%s3999_s3 + $0x2a0] sm:$0xff] }
  0x5e   :  { %v1162_v39 = vadd.f32 %v906_v9, %v650_v28  ;;  %v1163_v40 = vadd.f32 %v907_v25, %v651_v29  ;;  %v1164_v41 = vadd.f32 %v908_v26, %v652_v30  ;;  %v1165_v42 = vadd.f32 %v909_v27, %v653_v31  ;;  %v915_v9 = vld [vmem:[%s3999_s3 + $0x2a8] sm:$0xff]  ;;  %v106_v28 = vld [vmem:[%s3998_s2 + $0x2c0] sm:$0xff]  ;;  %v108_v30 = vld [vmem:[%s3998_s2 + $0x2d0] sm:$0xff] }
  0x5f   :  { %v1414_v46 = vmax.f32 %v1158_v32, 0.0  ;;  %v1415_v47 = vmax.f32 %v1159_v33, 0.0  ;;  %v1416_v48 = vmax.f32 %v1160_v34, 0.0  ;;  %v1417_v49 = vmax.f32 %v1161_v35, 0.0  ;;  %v107_v29 = vld [vmem:[%s3998_s2 + $0x2c8] sm:$0xff]  ;;  %v109_v35 = vld [vmem:[%s3998_s2 + $0x2d8] sm:$0xff] }
  0x60   :  { %v1418_v52 = vmax.f32 %v1162_v39, 0.0  ;;  %v1419_v53 = vmax.f32 %v1163_v40, 0.0  ;;  %v1420_v54 = vmax.f32 %v1164_v41, 0.0  ;;  %v1421_v55 = vmax.f32 %v1165_v42, 0.0  ;;  %v112_v42 = vld [vmem:[%s3998_s2 + $0x2f0] sm:$0xff] }
  0x61   :  { %1670 = vst [vmem:[#allocation2 + $0x240] sm:$0xff] %v1414_v46  ;;  %1671 = vst [vmem:[#allocation2 + $0x248] sm:$0xff] %v1415_v47  ;;  %v376_v56 = vmul.f32 %v1944_v13, %v98_v36  ;;  %v377_v58 = vmul.f32 %v1948_v15, %v99_v37  ;;  %v378_v60 = vmul.f32 %v1961_v20, %v100_v38  ;;  %v110_v36 = vld [vmem:[%s3998_s2 + $0x2e0] sm:$0xff]  ;;  %v111_v37 = vld [vmem:[%s3998_s2 + $0x2e8] sm:$0xff] }
  0x62   :  { %1672 = vst [vmem:[#allocation2 + $0x250] sm:$0xff] %v1416_v48  ;;  %1673 = vst [vmem:[#allocation2 + $0x258] sm:$0xff] %v1417_v49  ;;  %v379_v61 = vmul.f32 %v1965_v22, %v101_v43  ;;  %v380_v0 = vmul.f32 %v1944_v13, %v102_v44  ;;  %v381_v2 = vmul.f32 %v1948_v15, %v103_v45  ;;  %v113_v43 = vld [vmem:[%s3998_s2 + $0x2f8] sm:$0xff]  ;;  %v918_v49 = vld [vmem:[%s3999_s3 + $0x2c0] sm:$0xff] }
  0x63   :  { %1674 = vst [vmem:[#allocation2 + $0x260] sm:$0xff] %v1418_v52  ;;  %1675 = vst [vmem:[#allocation2 + $0x268] sm:$0xff] %v1419_v53  ;;  %v382_v3 = vmul.f32 %v1961_v20, %v104_v50  ;;  %v383_v4 = vmul.f32 %v1965_v22, %v105_v51  ;;  %v654_v5 = vadd.f32 %v1946_v14, %v376_v56  ;;  %v919_v51 = vld [vmem:[%s3999_s3 + $0x2c8] sm:$0xff] }
  0x64   :  { %1676 = vst [vmem:[#allocation2 + $0x270] sm:$0xff] %v1420_v54  ;;  %1677 = vst [vmem:[#allocation2 + $0x278] sm:$0xff] %v1421_v55  ;;  %v655_v6 = vadd.f32 %v1950_v16, %v377_v58  ;;  %v656_v7 = vadd.f32 %v1963_v21, %v378_v60  ;;  %v657_v8 = vadd.f32 %v1967_v23, %v379_v61  ;;  %v920_v54 = vld [vmem:[%s3999_s3 + $0x2d0] sm:$0xff]  ;;  %v921_v55 = vld [vmem:[%s3999_s3 + $0x2d8] sm:$0xff] }
  0x65   :  { %v658_v12 = vadd.f32 %v1946_v14, %v380_v0  ;;  %v659_v17 = vadd.f32 %v1950_v16, %v381_v2  ;;  %v660_v18 = vadd.f32 %v1963_v21, %v382_v3  ;;  %v661_v19 = vadd.f32 %v1967_v23, %v383_v4  ;;  %v924_v2 = vld [vmem:[%s3999_s3 + $0x2f0] sm:$0xff]  ;;  %v925_v3 = vld [vmem:[%s3999_s3 + $0x2f8] sm:$0xff] }
  0x66   :  { %v1166_v24 = vadd.f32 %v910_v57, %v654_v5  ;;  %v1167_v25 = vadd.f32 %v911_v59, %v655_v6  ;;  %v1168_v26 = vadd.f32 %v912_v62, %v656_v7  ;;  %v1169_v27 = vadd.f32 %v913_v63, %v657_v8  ;;  %v922_v57 = vld [vmem:[%s3999_s3 + $0x2e0] sm:$0xff] }
  0x67   :  { %v1170_v31 = vadd.f32 %v914_v1, %v658_v12  ;;  %v1171_v32 = vadd.f32 %v915_v9, %v659_v17  ;;  %v1172_v33 = vadd.f32 %v916_v10, %v660_v18  ;;  %v1173_v34 = vadd.f32 %v917_v11, %v661_v19  ;;  %v923_v1 = vld [vmem:[%s3999_s3 + $0x2e8] sm:$0xff]  ;;  %v114_v12 = vld [vmem:[%s3998_s2 + $0x300] sm:$0xff]  ;;  %v116_v18 = vld [vmem:[%s3998_s2 + $0x310] sm:$0xff] }
  0x68   :  { %v1422_v38 = vmax.f32 %v1166_v24, 0.0  ;;  %v1423_v39 = vmax.f32 %v1167_v25, 0.0  ;;  %v1424_v40 = vmax.f32 %v1168_v26, 0.0  ;;  %v1425_v41 = vmax.f32 %v1169_v27, 0.0  ;;  %v115_v17 = vld [vmem:[%s3998_s2 + $0x308] sm:$0xff]  ;;  %v117_v27 = vld [vmem:[%s3998_s2 + $0x318] sm:$0xff] }
  0x69   :  { %v1426_v44 = vmax.f32 %v1170_v31, 0.0  ;;  %v1427_v45 = vmax.f32 %v1171_v32, 0.0  ;;  %v1428_v46 = vmax.f32 %v1172_v33, 0.0  ;;  %v1429_v47 = vmax.f32 %v1173_v34, 0.0  ;;  %v120_v34 = vld [vmem:[%s3998_s2 + $0x330] sm:$0xff] }
  0x6a   :  { %1678 = vst [vmem:[#allocation2 + $0x280] sm:$0xff] %v1422_v38  ;;  %1679 = vst [vmem:[#allocation2 + $0x288] sm:$0xff] %v1423_v39  ;;  %v384_v48 = vmul.f32 %v1944_v13, %v106_v28  ;;  %v385_v50 = vmul.f32 %v1948_v15, %v107_v29  ;;  %v386_v52 = vmul.f32 %v1961_v20, %v108_v30  ;;  %v118_v28 = vld [vmem:[%s3998_s2 + $0x320] sm:$0xff]  ;;  %v119_v29 = vld [vmem:[%s3998_s2 + $0x328] sm:$0xff] }
  0x6b   :  { %1680 = vst [vmem:[#allocation2 + $0x290] sm:$0xff] %v1424_v40  ;;  %1681 = vst [vmem:[#allocation2 + $0x298] sm:$0xff] %v1425_v41  ;;  %v387_v53 = vmul.f32 %v1965_v22, %v109_v35  ;;  %v388_v56 = vmul.f32 %v1944_v13, %v110_v36  ;;  %v389_v58 = vmul.f32 %v1948_v15, %v111_v37  ;;  %v121_v35 = vld [vmem:[%s3998_s2 + $0x338] sm:$0xff]  ;;  %v926_v41 = vld [vmem:[%s3999_s3 + $0x300] sm:$0xff] }
  0x6c   :  { %1682 = vst [vmem:[#allocation2 + $0x2a0] sm:$0xff] %v1426_v44  ;;  %1683 = vst [vmem:[#allocation2 + $0x2a8] sm:$0xff] %v1427_v45  ;;  %v390_v59 = vmul.f32 %v1961_v20, %v112_v42  ;;  %v391_v60 = vmul.f32 %v1965_v22, %v113_v43  ;;  %v662_v61 = vadd.f32 %v1946_v14, %v384_v48  ;;  %v927_v43 = vld [vmem:[%s3999_s3 + $0x308] sm:$0xff] }
  0x6d   :  { %1684 = vst [vmem:[#allocation2 + $0x2b0] sm:$0xff] %v1428_v46  ;;  %1685 = vst [vmem:[#allocation2 + $0x2b8] sm:$0xff] %v1429_v47  ;;  %v663_v62 = vadd.f32 %v1950_v16, %v385_v50  ;;  %v664_v63 = vadd.f32 %v1963_v21, %v386_v52  ;;  %v665_v0 = vadd.f32 %v1967_v23, %v387_v53  ;;  %v928_v46 = vld [vmem:[%s3999_s3 + $0x310] sm:$0xff]  ;;  %v929_v47 = vld [vmem:[%s3999_s3 + $0x318] sm:$0xff] }
  0x6e   :  { %v666_v4 = vadd.f32 %v1946_v14, %v388_v56  ;;  %v667_v5 = vadd.f32 %v1950_v16, %v389_v58  ;;  %v668_v6 = vadd.f32 %v1963_v21, %v390_v59  ;;  %v669_v7 = vadd.f32 %v1967_v23, %v391_v60  ;;  %v932_v58 = vld [vmem:[%s3999_s3 + $0x330] sm:$0xff]  ;;  %v933_v59 = vld [vmem:[%s3999_s3 + $0x338] sm:$0xff] }
  0x6f   :  { %v1174_v8 = vadd.f32 %v918_v49, %v662_v61  ;;  %v1175_v9 = vadd.f32 %v919_v51, %v663_v62  ;;  %v1176_v10 = vadd.f32 %v920_v54, %v664_v63  ;;  %v1177_v11 = vadd.f32 %v921_v55, %v665_v0  ;;  %v930_v49 = vld [vmem:[%s3999_s3 + $0x320] sm:$0xff] }
  0x70   :  { %v1178_v19 = vadd.f32 %v922_v57, %v666_v4  ;;  %v1179_v24 = vadd.f32 %v923_v1, %v667_v5  ;;  %v1180_v25 = vadd.f32 %v924_v2, %v668_v6  ;;  %v1181_v26 = vadd.f32 %v925_v3, %v669_v7  ;;  %v931_v57 = vld [vmem:[%s3999_s3 + $0x328] sm:$0xff]  ;;  %v122_v4 = vld [vmem:[%s3998_s2 + $0x340] sm:$0xff]  ;;  %v124_v6 = vld [vmem:[%s3998_s2 + $0x350] sm:$0xff] }
  0x71   :  { %v1430_v30 = vmax.f32 %v1174_v8, 0.0  ;;  %v1431_v31 = vmax.f32 %v1175_v9, 0.0  ;;  %v1432_v32 = vmax.f32 %v1176_v10, 0.0  ;;  %v1433_v33 = vmax.f32 %v1177_v11, 0.0  ;;  %v123_v5 = vld [vmem:[%s3998_s2 + $0x348] sm:$0xff]  ;;  %v125_v11 = vld [vmem:[%s3998_s2 + $0x358] sm:$0xff] }
  0x72   :  { %v1434_v36 = vmax.f32 %v1178_v19, 0.0  ;;  %v1435_v37 = vmax.f32 %v1179_v24, 0.0  ;;  %v1436_v38 = vmax.f32 %v1180_v25, 0.0  ;;  %v1437_v39 = vmax.f32 %v1181_v26, 0.0  ;;  %v128_v26 = vld [vmem:[%s3998_s2 + $0x370] sm:$0xff] }
  0x73   :  { %1686 = vst [vmem:[#allocation2 + $0x2c0] sm:$0xff] %v1430_v30  ;;  %1687 = vst [vmem:[#allocation2 + $0x2c8] sm:$0xff] %v1431_v31  ;;  %v392_v40 = vmul.f32 %v1944_v13, %v114_v12  ;;  %v393_v42 = vmul.f32 %v1948_v15, %v115_v17  ;;  %v394_v44 = vmul.f32 %v1961_v20, %v116_v18  ;;  %v126_v12 = vld [vmem:[%s3998_s2 + $0x360] sm:$0xff]  ;;  %v127_v17 = vld [vmem:[%s3998_s2 + $0x368] sm:$0xff] }
  0x74   :  { %1688 = vst [vmem:[#allocation2 + $0x2d0] sm:$0xff] %v1432_v32  ;;  %1689 = vst [vmem:[#allocation2 + $0x2d8] sm:$0xff] %v1433_v33  ;;  %v395_v45 = vmul.f32 %v1965_v22, %v117_v27  ;;  %v396_v48 = vmul.f32 %v1944_v13, %v118_v28  ;;  %v397_v50 = vmul.f32 %v1948_v15, %v119_v29  ;;  %v129_v27 = vld [vmem:[%s3998_s2 + $0x378] sm:$0xff]  ;;  %v934_v33 = vld [vmem:[%s3999_s3 + $0x340] sm:$0xff] }
  0x75   :  { %1690 = vst [vmem:[#allocation2 + $0x2e0] sm:$0xff] %v1434_v36  ;;  %1691 = vst [vmem:[#allocation2 + $0x2e8] sm:$0xff] %v1435_v37  ;;  %v398_v51 = vmul.f32 %v1961_v20, %v120_v34  ;;  %v399_v52 = vmul.f32 %v1965_v22, %v121_v35  ;;  %v670_v53 = vadd.f32 %v1946_v14, %v392_v40  ;;  %v935_v35 = vld [vmem:[%s3999_s3 + $0x348] sm:$0xff] }
  0x76   :  { %1692 = vst [vmem:[#allocation2 + $0x2f0] sm:$0xff] %v1436_v38  ;;  %1693 = vst [vmem:[#allocation2 + $0x2f8] sm:$0xff] %v1437_v39  ;;  %v671_v54 = vadd.f32 %v1950_v16, %v393_v42  ;;  %v672_v55 = vadd.f32 %v1963_v21, %v394_v44  ;;  %v673_v56 = vadd.f32 %v1967_v23, %v395_v45  ;;  %v936_v38 = vld [vmem:[%s3999_s3 + $0x350] sm:$0xff]  ;;  %v937_v39 = vld [vmem:[%s3999_s3 + $0x358] sm:$0xff] }
  0x77   :  { %v674_v60 = vadd.f32 %v1946_v14, %v396_v48  ;;  %v675_v61 = vadd.f32 %v1950_v16, %v397_v50  ;;  %v676_v62 = vadd.f32 %v1963_v21, %v398_v51  ;;  %v677_v63 = vadd.f32 %v1967_v23, %v399_v52  ;;  %v940_v50 = vld [vmem:[%s3999_s3 + $0x370] sm:$0xff]  ;;  %v941_v51 = vld [vmem:[%s3999_s3 + $0x378] sm:$0xff] }
  0x78   :  { %v1182_v0 = vadd.f32 %v926_v41, %v670_v53  ;;  %v1183_v1 = vadd.f32 %v927_v43, %v671_v54  ;;  %v1184_v2 = vadd.f32 %v928_v46, %v672_v55  ;;  %v1185_v3 = vadd.f32 %v929_v47, %v673_v56  ;;  %v938_v41 = vld [vmem:[%s3999_s3 + $0x360] sm:$0xff] }
  0x79   :  { %v1186_v7 = vadd.f32 %v930_v49, %v674_v60  ;;  %v1187_v8 = vadd.f32 %v931_v57, %v675_v61  ;;  %v1188_v9 = vadd.f32 %v932_v58, %v676_v62  ;;  %v1189_v10 = vadd.f32 %v933_v59, %v677_v63  ;;  %v939_v49 = vld [vmem:[%s3999_s3 + $0x368] sm:$0xff]  ;;  %v130_v60 = vld [vmem:[%s3998_s2 + $0x380] sm:$0xff]  ;;  %v132_v62 = vld [vmem:[%s3998_s2 + $0x390] sm:$0xff] }
  0x7a   :  { %v1438_v18 = vmax.f32 %v1182_v0, 0.0  ;;  %v1439_v19 = vmax.f32 %v1183_v1, 0.0  ;;  %v1440_v24 = vmax.f32 %v1184_v2, 0.0  ;;  %v1441_v25 = vmax.f32 %v1185_v3, 0.0  ;;  %v131_v61 = vld [vmem:[%s3998_s2 + $0x388] sm:$0xff]  ;;  %v133_v3 = vld [vmem:[%s3998_s2 + $0x398] sm:$0xff] }
  0x7b   :  { %v1442_v28 = vmax.f32 %v1186_v7, 0.0  ;;  %v1443_v29 = vmax.f32 %v1187_v8, 0.0  ;;  %v1444_v30 = vmax.f32 %v1188_v9, 0.0  ;;  %v1445_v31 = vmax.f32 %v1189_v10, 0.0  ;;  %v136_v10 = vld [vmem:[%s3998_s2 + $0x3b0] sm:$0xff] }
  0x7c   :  { %1694 = vst [vmem:[#allocation2 + $0x300] sm:$0xff] %v1438_v18  ;;  %1695 = vst [vmem:[#allocation2 + $0x308] sm:$0xff] %v1439_v19  ;;  %v400_v32 = vmul.f32 %v1944_v13, %v122_v4  ;;  %v401_v34 = vmul.f32 %v1948_v15, %v123_v5  ;;  %v402_v36 = vmul.f32 %v1961_v20, %v124_v6  ;;  %v134_v4 = vld [vmem:[%s3998_s2 + $0x3a0] sm:$0xff]  ;;  %v135_v5 = vld [vmem:[%s3998_s2 + $0x3a8] sm:$0xff] }
  0x7d   :  { %1696 = vst [vmem:[#allocation2 + $0x310] sm:$0xff] %v1440_v24  ;;  %1697 = vst [vmem:[#allocation2 + $0x318] sm:$0xff] %v1441_v25  ;;  %v403_v37 = vmul.f32 %v1965_v22, %v125_v11  ;;  %v404_v40 = vmul.f32 %v1944_v13, %v126_v12  ;;  %v405_v42 = vmul.f32 %v1948_v15, %v127_v17  ;;  %v137_v11 = vld [vmem:[%s3998_s2 + $0x3b8] sm:$0xff]  ;;  %v942_v25 = vld [vmem:[%s3999_s3 + $0x380] sm:$0xff] }
  0x7e   :  { %1698 = vst [vmem:[#allocation2 + $0x320] sm:$0xff] %v1442_v28  ;;  %1699 = vst [vmem:[#allocation2 + $0x328] sm:$0xff] %v1443_v29  ;;  %v406_v43 = vmul.f32 %v1961_v20, %v128_v26  ;;  %v407_v44 = vmul.f32 %v1965_v22, %v129_v27  ;;  %v678_v45 = vadd.f32 %v1946_v14, %v400_v32  ;;  %v943_v27 = vld [vmem:[%s3999_s3 + $0x388] sm:$0xff] }
  0x7f   :  { %1700 = vst [vmem:[#allocation2 + $0x330] sm:$0xff] %v1444_v30  ;;  %1701 = vst [vmem:[#allocation2 + $0x338] sm:$0xff] %v1445_v31  ;;  %v679_v46 = vadd.f32 %v1950_v16, %v401_v34  ;;  %v680_v47 = vadd.f32 %v1963_v21, %v402_v36  ;;  %v681_v48 = vadd.f32 %v1967_v23, %v403_v37  ;;  %v944_v30 = vld [vmem:[%s3999_s3 + $0x390] sm:$0xff]  ;;  %v945_v31 = vld [vmem:[%s3999_s3 + $0x398] sm:$0xff] }
  0x80   :  { %v682_v52 = vadd.f32 %v1946_v14, %v404_v40  ;;  %v683_v53 = vadd.f32 %v1950_v16, %v405_v42  ;;  %v684_v54 = vadd.f32 %v1963_v21, %v406_v43  ;;  %v685_v55 = vadd.f32 %v1967_v23, %v407_v44  ;;  %v948_v42 = vld [vmem:[%s3999_s3 + $0x3b0] sm:$0xff]  ;;  %v949_v43 = vld [vmem:[%s3999_s3 + $0x3b8] sm:$0xff] }
  0x81   :  { %v1190_v56 = vadd.f32 %v934_v33, %v678_v45  ;;  %v1191_v57 = vadd.f32 %v935_v35, %v679_v46  ;;  %v1192_v58 = vadd.f32 %v936_v38, %v680_v47  ;;  %v1193_v59 = vadd.f32 %v937_v39, %v681_v48  ;;  %v946_v33 = vld [vmem:[%s3999_s3 + $0x3a0] sm:$0xff] }
  0x82   :  { %v1194_v63 = vadd.f32 %v938_v41, %v682_v52  ;;  %v1195_v0 = vadd.f32 %v939_v49, %v683_v53  ;;  %v1196_v1 = vadd.f32 %v940_v50, %v684_v54  ;;  %v1197_v2 = vadd.f32 %v941_v51, %v685_v55  ;;  %v947_v41 = vld [vmem:[%s3999_s3 + $0x3a8] sm:$0xff]  ;;  %v138_v52 = vld [vmem:[%s3998_s2 + $0x3c0] sm:$0xff]  ;;  %v140_v54 = vld [vmem:[%s3998_s2 + $0x3d0] sm:$0xff] }
  0x83   :  { %v1446_v6 = vmax.f32 %v1190_v56, 0.0  ;;  %v1447_v7 = vmax.f32 %v1191_v57, 0.0  ;;  %v1448_v8 = vmax.f32 %v1192_v58, 0.0  ;;  %v1449_v9 = vmax.f32 %v1193_v59, 0.0  ;;  %v139_v53 = vld [vmem:[%s3998_s2 + $0x3c8] sm:$0xff]  ;;  %v141_v59 = vld [vmem:[%s3998_s2 + $0x3d8] sm:$0xff] }
  0x84   :  { %v1450_v12 = vmax.f32 %v1194_v63, 0.0  ;;  %v1451_v17 = vmax.f32 %v1195_v0, 0.0  ;;  %v1452_v18 = vmax.f32 %v1196_v1, 0.0  ;;  %v1453_v19 = vmax.f32 %v1197_v2, 0.0  ;;  %v144_v2 = vld [vmem:[%s3998_s2 + $0x3f0] sm:$0xff] }
  0x85   :  { %1702 = vst [vmem:[#allocation2 + $0x340] sm:$0xff] %v1446_v6  ;;  %1703 = vst [vmem:[#allocation2 + $0x348] sm:$0xff] %v1447_v7  ;;  %v408_v24 = vmul.f32 %v1944_v13, %v130_v60  ;;  %v409_v26 = vmul.f32 %v1948_v15, %v131_v61  ;;  %v410_v28 = vmul.f32 %v1961_v20, %v132_v62  ;;  %v142_v60 = vld [vmem:[%s3998_s2 + $0x3e0] sm:$0xff]  ;;  %v143_v61 = vld [vmem:[%s3998_s2 + $0x3e8] sm:$0xff] }
  0x86   :  { %1704 = vst [vmem:[#allocation2 + $0x350] sm:$0xff] %v1448_v8  ;;  %1705 = vst [vmem:[#allocation2 + $0x358] sm:$0xff] %v1449_v9  ;;  %v411_v29 = vmul.f32 %v1965_v22, %v133_v3  ;;  %v412_v32 = vmul.f32 %v1944_v13, %v134_v4  ;;  %v413_v34 = vmul.f32 %v1948_v15, %v135_v5  ;;  %v145_v3 = vld [vmem:[%s3998_s2 + $0x3f8] sm:$0xff]  ;;  %v950_v9 = vld [vmem:[%s3999_s3 + $0x3c0] sm:$0xff] }
  0x87   :  { %1706 = vst [vmem:[#allocation2 + $0x360] sm:$0xff] %v1450_v12  ;;  %1707 = vst [vmem:[#allocation2 + $0x368] sm:$0xff] %v1451_v17  ;;  %v414_v35 = vmul.f32 %v1961_v20, %v136_v10  ;;  %v415_v36 = vmul.f32 %v1965_v22, %v137_v11  ;;  %v686_v37 = vadd.f32 %v1946_v14, %v408_v24  ;;  %v951_v11 = vld [vmem:[%s3999_s3 + $0x3c8] sm:$0xff] }
  0x88   :  { %1708 = vst [vmem:[#allocation2 + $0x370] sm:$0xff] %v1452_v18  ;;  %1709 = vst [vmem:[#allocation2 + $0x378] sm:$0xff] %v1453_v19  ;;  %v687_v38 = vadd.f32 %v1950_v16, %v409_v26  ;;  %v688_v39 = vadd.f32 %v1963_v21, %v410_v28  ;;  %v689_v40 = vadd.f32 %v1967_v23, %v411_v29  ;;  %v952_v18 = vld [vmem:[%s3999_s3 + $0x3d0] sm:$0xff]  ;;  %v953_v19 = vld [vmem:[%s3999_s3 + $0x3d8] sm:$0xff] }
  0x89   :  { %v690_v44 = vadd.f32 %v1946_v14, %v412_v32  ;;  %v691_v45 = vadd.f32 %v1950_v16, %v413_v34  ;;  %v692_v46 = vadd.f32 %v1963_v21, %v414_v35  ;;  %v693_v47 = vadd.f32 %v1967_v23, %v415_v36  ;;  %v956_v34 = vld [vmem:[%s3999_s3 + $0x3f0] sm:$0xff]  ;;  %v957_v35 = vld [vmem:[%s3999_s3 + $0x3f8] sm:$0xff] }
  0x8a   :  { %v1198_v48 = vadd.f32 %v942_v25, %v686_v37  ;;  %v1199_v49 = vadd.f32 %v943_v27, %v687_v38  ;;  %v1200_v50 = vadd.f32 %v944_v30, %v688_v39  ;;  %v1201_v51 = vadd.f32 %v945_v31, %v689_v40  ;;  %v954_v25 = vld [vmem:[%s3999_s3 + $0x3e0] sm:$0xff] }
  0x8b   :  { %v1202_v55 = vadd.f32 %v946_v33, %v690_v44  ;;  %v1203_v56 = vadd.f32 %v947_v41, %v691_v45  ;;  %v1204_v57 = vadd.f32 %v948_v42, %v692_v46  ;;  %v1205_v58 = vadd.f32 %v949_v43, %v693_v47  ;;  %v955_v33 = vld [vmem:[%s3999_s3 + $0x3e8] sm:$0xff]  ;;  %v146_v44 = vld [vmem:[%s3998_s2 + $0x400] sm:$0xff]  ;;  %v148_v46 = vld [vmem:[%s3998_s2 + $0x410] sm:$0xff] }
  0x8c   :  { %v1454_v62 = vmax.f32 %v1198_v48, 0.0  ;;  %v1455_v63 = vmax.f32 %v1199_v49, 0.0  ;;  %v1456_v0 = vmax.f32 %v1200_v50, 0.0  ;;  %v1457_v1 = vmax.f32 %v1201_v51, 0.0  ;;  %v147_v45 = vld [vmem:[%s3998_s2 + $0x408] sm:$0xff]  ;;  %v149_v51 = vld [vmem:[%s3998_s2 + $0x418] sm:$0xff] }
  0x8d   :  { %v1458_v4 = vmax.f32 %v1202_v55, 0.0  ;;  %v1459_v5 = vmax.f32 %v1203_v56, 0.0  ;;  %v1460_v6 = vmax.f32 %v1204_v57, 0.0  ;;  %v1461_v7 = vmax.f32 %v1205_v58, 0.0  ;;  %v152_v58 = vld [vmem:[%s3998_s2 + $0x430] sm:$0xff] }
  0x8e   :  { %1710 = vst [vmem:[#allocation2 + $0x380] sm:$0xff] %v1454_v62  ;;  %1711 = vst [vmem:[#allocation2 + $0x388] sm:$0xff] %v1455_v63  ;;  %v416_v8 = vmul.f32 %v1944_v13, %v138_v52  ;;  %v417_v10 = vmul.f32 %v1948_v15, %v139_v53  ;;  %v418_v12 = vmul.f32 %v1961_v20, %v140_v54  ;;  %v150_v52 = vld [vmem:[%s3998_s2 + $0x420] sm:$0xff]  ;;  %v151_v53 = vld [vmem:[%s3998_s2 + $0x428] sm:$0xff] }
  0x8f   :  { %1712 = vst [vmem:[#allocation2 + $0x390] sm:$0xff] %v1456_v0  ;;  %1713 = vst [vmem:[#allocation2 + $0x398] sm:$0xff] %v1457_v1  ;;  %v419_v17 = vmul.f32 %v1965_v22, %v141_v59  ;;  %v420_v24 = vmul.f32 %v1944_v13, %v142_v60  ;;  %v421_v26 = vmul.f32 %v1948_v15, %v143_v61  ;;  %v153_v59 = vld [vmem:[%s3998_s2 + $0x438] sm:$0xff]  ;;  %v958_v1 = vld [vmem:[%s3999_s3 + $0x400] sm:$0xff] }
  0x90   :  { %1714 = vst [vmem:[#allocation2 + $0x3a0] sm:$0xff] %v1458_v4  ;;  %1715 = vst [vmem:[#allocation2 + $0x3a8] sm:$0xff] %v1459_v5  ;;  %v422_v27 = vmul.f32 %v1961_v20, %v144_v2  ;;  %v423_v28 = vmul.f32 %v1965_v22, %v145_v3  ;;  %v694_v29 = vadd.f32 %v1946_v14, %v416_v8  ;;  %v959_v3 = vld [vmem:[%s3999_s3 + $0x408] sm:$0xff] }
  0x91   :  { %1716 = vst [vmem:[#allocation2 + $0x3b0] sm:$0xff] %v1460_v6  ;;  %1717 = vst [vmem:[#allocation2 + $0x3b8] sm:$0xff] %v1461_v7  ;;  %v695_v30 = vadd.f32 %v1950_v16, %v417_v10  ;;  %v696_v31 = vadd.f32 %v1963_v21, %v418_v12  ;;  %v697_v32 = vadd.f32 %v1967_v23, %v419_v17  ;;  %v960_v6 = vld [vmem:[%s3999_s3 + $0x410] sm:$0xff]  ;;  %v961_v7 = vld [vmem:[%s3999_s3 + $0x418] sm:$0xff] }
  0x92   :  { %v698_v36 = vadd.f32 %v1946_v14, %v420_v24  ;;  %v699_v37 = vadd.f32 %v1950_v16, %v421_v26  ;;  %v700_v38 = vadd.f32 %v1963_v21, %v422_v27  ;;  %v701_v39 = vadd.f32 %v1967_v23, %v423_v28  ;;  %v964_v26 = vld [vmem:[%s3999_s3 + $0x430] sm:$0xff]  ;;  %v965_v27 = vld [vmem:[%s3999_s3 + $0x438] sm:$0xff] }
  0x93   :  { %v1206_v40 = vadd.f32 %v950_v9, %v694_v29  ;;  %v1207_v41 = vadd.f32 %v951_v11, %v695_v30  ;;  %v1208_v42 = vadd.f32 %v952_v18, %v696_v31  ;;  %v1209_v43 = vadd.f32 %v953_v19, %v697_v32  ;;  %v962_v9 = vld [vmem:[%s3999_s3 + $0x420] sm:$0xff] }
  0x94   :  { %v1210_v47 = vadd.f32 %v954_v25, %v698_v36  ;;  %v1211_v48 = vadd.f32 %v955_v33, %v699_v37  ;;  %v1212_v49 = vadd.f32 %v956_v34, %v700_v38  ;;  %v1213_v50 = vadd.f32 %v957_v35, %v701_v39  ;;  %v963_v25 = vld [vmem:[%s3999_s3 + $0x428] sm:$0xff]  ;;  %v154_v36 = vld [vmem:[%s3998_s2 + $0x440] sm:$0xff]  ;;  %v156_v38 = vld [vmem:[%s3998_s2 + $0x450] sm:$0xff] }
  0x95   :  { %v1462_v54 = vmax.f32 %v1206_v40, 0.0  ;;  %v1463_v55 = vmax.f32 %v1207_v41, 0.0  ;;  %v1464_v56 = vmax.f32 %v1208_v42, 0.0  ;;  %v1465_v57 = vmax.f32 %v1209_v43, 0.0  ;;  %v155_v37 = vld [vmem:[%s3998_s2 + $0x448] sm:$0xff]  ;;  %v157_v43 = vld [vmem:[%s3998_s2 + $0x458] sm:$0xff] }
  0x96   :  { %v1466_v60 = vmax.f32 %v1210_v47, 0.0  ;;  %v1467_v61 = vmax.f32 %v1211_v48, 0.0  ;;  %v1468_v62 = vmax.f32 %v1212_v49, 0.0  ;;  %v1469_v63 = vmax.f32 %v1213_v50, 0.0  ;;  %v160_v50 = vld [vmem:[%s3998_s2 + $0x470] sm:$0xff] }
  0x97   :  { %1718 = vst [vmem:[#allocation2 + $0x3c0] sm:$0xff] %v1462_v54  ;;  %1719 = vst [vmem:[#allocation2 + $0x3c8] sm:$0xff] %v1463_v55  ;;  %v424_v0 = vmul.f32 %v1944_v13, %v146_v44  ;;  %v425_v2 = vmul.f32 %v1948_v15, %v147_v45  ;;  %v426_v4 = vmul.f32 %v1961_v20, %v148_v46  ;;  %v158_v44 = vld [vmem:[%s3998_s2 + $0x460] sm:$0xff]  ;;  %v159_v45 = vld [vmem:[%s3998_s2 + $0x468] sm:$0xff] }
  0x98   :  { %1720 = vst [vmem:[#allocation2 + $0x3d0] sm:$0xff] %v1464_v56  ;;  %1721 = vst [vmem:[#allocation2 + $0x3d8] sm:$0xff] %v1465_v57  ;;  %v427_v5 = vmul.f32 %v1965_v22, %v149_v51  ;;  %v428_v8 = vmul.f32 %v1944_v13, %v150_v52  ;;  %v429_v10 = vmul.f32 %v1948_v15, %v151_v53  ;;  %v161_v51 = vld [vmem:[%s3998_s2 + $0x478] sm:$0xff]  ;;  %v966_v57 = vld [vmem:[%s3999_s3 + $0x440] sm:$0xff] }
  0x99   :  { %1722 = vst [vmem:[#allocation2 + $0x3e0] sm:$0xff] %v1466_v60  ;;  %1723 = vst [vmem:[#allocation2 + $0x3e8] sm:$0xff] %v1467_v61  ;;  %v430_v11 = vmul.f32 %v1961_v20, %v152_v58  ;;  %v431_v12 = vmul.f32 %v1965_v22, %v153_v59  ;;  %v702_v17 = vadd.f32 %v1946_v14, %v424_v0  ;;  %v967_v59 = vld [vmem:[%s3999_s3 + $0x448] sm:$0xff] }
  0x9a   :  { %1724 = vst [vmem:[#allocation2 + $0x3f0] sm:$0xff] %v1468_v62  ;;  %1725 = vst [vmem:[#allocation2 + $0x3f8] sm:$0xff] %v1469_v63  ;;  %v703_v18 = vadd.f32 %v1950_v16, %v425_v2  ;;  %v704_v19 = vadd.f32 %v1963_v21, %v426_v4  ;;  %v705_v24 = vadd.f32 %v1967_v23, %v427_v5  ;;  %v968_v62 = vld [vmem:[%s3999_s3 + $0x450] sm:$0xff]  ;;  %v969_v63 = vld [vmem:[%s3999_s3 + $0x458] sm:$0xff] }
  0x9b   :  { %v706_v28 = vadd.f32 %v1946_v14, %v428_v8  ;;  %v707_v29 = vadd.f32 %v1950_v16, %v429_v10  ;;  %v708_v30 = vadd.f32 %v1963_v21, %v430_v11  ;;  %v709_v31 = vadd.f32 %v1967_v23, %v431_v12  ;;  %v972_v10 = vld [vmem:[%s3999_s3 + $0x470] sm:$0xff]  ;;  %v973_v11 = vld [vmem:[%s3999_s3 + $0x478] sm:$0xff] }
  0x9c   :  { %v1214_v32 = vadd.f32 %v958_v1, %v702_v17  ;;  %v1215_v33 = vadd.f32 %v959_v3, %v703_v18  ;;  %v1216_v34 = vadd.f32 %v960_v6, %v704_v19  ;;  %v1217_v35 = vadd.f32 %v961_v7, %v705_v24  ;;  %v970_v1 = vld [vmem:[%s3999_s3 + $0x460] sm:$0xff] }
  0x9d   :  { %v1218_v39 = vadd.f32 %v962_v9, %v706_v28  ;;  %v1219_v40 = vadd.f32 %v963_v25, %v707_v29  ;;  %v1220_v41 = vadd.f32 %v964_v26, %v708_v30  ;;  %v1221_v42 = vadd.f32 %v965_v27, %v709_v31  ;;  %v971_v9 = vld [vmem:[%s3999_s3 + $0x468] sm:$0xff]  ;;  %v162_v28 = vld [vmem:[%s3998_s2 + $0x480] sm:$0xff]  ;;  %v164_v30 = vld [vmem:[%s3998_s2 + $0x490] sm:$0xff] }
  0x9e   :  { %v1470_v46 = vmax.f32 %v1214_v32, 0.0  ;;  %v1471_v47 = vmax.f32 %v1215_v33, 0.0  ;;  %v1472_v48 = vmax.f32 %v1216_v34, 0.0  ;;  %v1473_v49 = vmax.f32 %v1217_v35, 0.0  ;;  %v163_v29 = vld [vmem:[%s3998_s2 + $0x488] sm:$0xff]  ;;  %v165_v35 = vld [vmem:[%s3998_s2 + $0x498] sm:$0xff] }
  0x9f   :  { %v1474_v52 = vmax.f32 %v1218_v39, 0.0  ;;  %v1475_v53 = vmax.f32 %v1219_v40, 0.0  ;;  %v1476_v54 = vmax.f32 %v1220_v41, 0.0  ;;  %v1477_v55 = vmax.f32 %v1221_v42, 0.0  ;;  %v168_v42 = vld [vmem:[%s3998_s2 + $0x4b0] sm:$0xff] }
  0xa0   :  { %1726 = vst [vmem:[#allocation2 + $0x400] sm:$0xff] %v1470_v46  ;;  %1727 = vst [vmem:[#allocation2 + $0x408] sm:$0xff] %v1471_v47  ;;  %v432_v56 = vmul.f32 %v1944_v13, %v154_v36  ;;  %v433_v58 = vmul.f32 %v1948_v15, %v155_v37  ;;  %v434_v60 = vmul.f32 %v1961_v20, %v156_v38  ;;  %v166_v36 = vld [vmem:[%s3998_s2 + $0x4a0] sm:$0xff]  ;;  %v167_v37 = vld [vmem:[%s3998_s2 + $0x4a8] sm:$0xff] }
  0xa1   :  { %1728 = vst [vmem:[#allocation2 + $0x410] sm:$0xff] %v1472_v48  ;;  %1729 = vst [vmem:[#allocation2 + $0x418] sm:$0xff] %v1473_v49  ;;  %v435_v61 = vmul.f32 %v1965_v22, %v157_v43  ;;  %v436_v0 = vmul.f32 %v1944_v13, %v158_v44  ;;  %v437_v2 = vmul.f32 %v1948_v15, %v159_v45  ;;  %v169_v43 = vld [vmem:[%s3998_s2 + $0x4b8] sm:$0xff]  ;;  %v974_v49 = vld [vmem:[%s3999_s3 + $0x480] sm:$0xff] }
  0xa2   :  { %1730 = vst [vmem:[#allocation2 + $0x420] sm:$0xff] %v1474_v52  ;;  %1731 = vst [vmem:[#allocation2 + $0x428] sm:$0xff] %v1475_v53  ;;  %v438_v3 = vmul.f32 %v1961_v20, %v160_v50  ;;  %v439_v4 = vmul.f32 %v1965_v22, %v161_v51  ;;  %v710_v5 = vadd.f32 %v1946_v14, %v432_v56  ;;  %v975_v51 = vld [vmem:[%s3999_s3 + $0x488] sm:$0xff] }
  0xa3   :  { %1732 = vst [vmem:[#allocation2 + $0x430] sm:$0xff] %v1476_v54  ;;  %1733 = vst [vmem:[#allocation2 + $0x438] sm:$0xff] %v1477_v55  ;;  %v711_v6 = vadd.f32 %v1950_v16, %v433_v58  ;;  %v712_v7 = vadd.f32 %v1963_v21, %v434_v60  ;;  %v713_v8 = vadd.f32 %v1967_v23, %v435_v61  ;;  %v976_v54 = vld [vmem:[%s3999_s3 + $0x490] sm:$0xff]  ;;  %v977_v55 = vld [vmem:[%s3999_s3 + $0x498] sm:$0xff] }
  0xa4   :  { %v714_v12 = vadd.f32 %v1946_v14, %v436_v0  ;;  %v715_v17 = vadd.f32 %v1950_v16, %v437_v2  ;;  %v716_v18 = vadd.f32 %v1963_v21, %v438_v3  ;;  %v717_v19 = vadd.f32 %v1967_v23, %v439_v4  ;;  %v980_v2 = vld [vmem:[%s3999_s3 + $0x4b0] sm:$0xff]  ;;  %v981_v3 = vld [vmem:[%s3999_s3 + $0x4b8] sm:$0xff] }
  0xa5   :  { %v1222_v24 = vadd.f32 %v966_v57, %v710_v5  ;;  %v1223_v25 = vadd.f32 %v967_v59, %v711_v6  ;;  %v1224_v26 = vadd.f32 %v968_v62, %v712_v7  ;;  %v1225_v27 = vadd.f32 %v969_v63, %v713_v8  ;;  %v978_v57 = vld [vmem:[%s3999_s3 + $0x4a0] sm:$0xff] }
  0xa6   :  { %v1226_v31 = vadd.f32 %v970_v1, %v714_v12  ;;  %v1227_v32 = vadd.f32 %v971_v9, %v715_v17  ;;  %v1228_v33 = vadd.f32 %v972_v10, %v716_v18  ;;  %v1229_v34 = vadd.f32 %v973_v11, %v717_v19  ;;  %v979_v1 = vld [vmem:[%s3999_s3 + $0x4a8] sm:$0xff]  ;;  %v170_v12 = vld [vmem:[%s3998_s2 + $0x4c0] sm:$0xff]  ;;  %v172_v18 = vld [vmem:[%s3998_s2 + $0x4d0] sm:$0xff] }
  0xa7   :  { %v1478_v38 = vmax.f32 %v1222_v24, 0.0  ;;  %v1479_v39 = vmax.f32 %v1223_v25, 0.0  ;;  %v1480_v40 = vmax.f32 %v1224_v26, 0.0  ;;  %v1481_v41 = vmax.f32 %v1225_v27, 0.0  ;;  %v171_v17 = vld [vmem:[%s3998_s2 + $0x4c8] sm:$0xff]  ;;  %v173_v27 = vld [vmem:[%s3998_s2 + $0x4d8] sm:$0xff] }
  0xa8   :  { %v1482_v44 = vmax.f32 %v1226_v31, 0.0  ;;  %v1483_v45 = vmax.f32 %v1227_v32, 0.0  ;;  %v1484_v46 = vmax.f32 %v1228_v33, 0.0  ;;  %v1485_v47 = vmax.f32 %v1229_v34, 0.0  ;;  %v176_v34 = vld [vmem:[%s3998_s2 + $0x4f0] sm:$0xff] }
  0xa9   :  { %1734 = vst [vmem:[#allocation2 + $0x440] sm:$0xff] %v1478_v38  ;;  %1735 = vst [vmem:[#allocation2 + $0x448] sm:$0xff] %v1479_v39  ;;  %v440_v48 = vmul.f32 %v1944_v13, %v162_v28  ;;  %v441_v50 = vmul.f32 %v1948_v15, %v163_v29  ;;  %v442_v52 = vmul.f32 %v1961_v20, %v164_v30  ;;  %v174_v28 = vld [vmem:[%s3998_s2 + $0x4e0] sm:$0xff]  ;;  %v175_v29 = vld [vmem:[%s3998_s2 + $0x4e8] sm:$0xff] }
  0xaa   :  { %1736 = vst [vmem:[#allocation2 + $0x450] sm:$0xff] %v1480_v40  ;;  %1737 = vst [vmem:[#allocation2 + $0x458] sm:$0xff] %v1481_v41  ;;  %v443_v53 = vmul.f32 %v1965_v22, %v165_v35  ;;  %v444_v56 = vmul.f32 %v1944_v13, %v166_v36  ;;  %v445_v58 = vmul.f32 %v1948_v15, %v167_v37  ;;  %v177_v35 = vld [vmem:[%s3998_s2 + $0x4f8] sm:$0xff]  ;;  %v982_v41 = vld [vmem:[%s3999_s3 + $0x4c0] sm:$0xff] }
  0xab   :  { %1738 = vst [vmem:[#allocation2 + $0x460] sm:$0xff] %v1482_v44  ;;  %1739 = vst [vmem:[#allocation2 + $0x468] sm:$0xff] %v1483_v45  ;;  %v446_v59 = vmul.f32 %v1961_v20, %v168_v42  ;;  %v447_v60 = vmul.f32 %v1965_v22, %v169_v43  ;;  %v718_v61 = vadd.f32 %v1946_v14, %v440_v48  ;;  %v983_v43 = vld [vmem:[%s3999_s3 + $0x4c8] sm:$0xff] }
  0xac   :  { %1740 = vst [vmem:[#allocation2 + $0x470] sm:$0xff] %v1484_v46  ;;  %1741 = vst [vmem:[#allocation2 + $0x478] sm:$0xff] %v1485_v47  ;;  %v719_v62 = vadd.f32 %v1950_v16, %v441_v50  ;;  %v720_v63 = vadd.f32 %v1963_v21, %v442_v52  ;;  %v721_v0 = vadd.f32 %v1967_v23, %v443_v53  ;;  %v984_v46 = vld [vmem:[%s3999_s3 + $0x4d0] sm:$0xff]  ;;  %v985_v47 = vld [vmem:[%s3999_s3 + $0x4d8] sm:$0xff] }
  0xad   :  { %v722_v4 = vadd.f32 %v1946_v14, %v444_v56  ;;  %v723_v5 = vadd.f32 %v1950_v16, %v445_v58  ;;  %v724_v6 = vadd.f32 %v1963_v21, %v446_v59  ;;  %v725_v7 = vadd.f32 %v1967_v23, %v447_v60  ;;  %v988_v58 = vld [vmem:[%s3999_s3 + $0x4f0] sm:$0xff]  ;;  %v989_v59 = vld [vmem:[%s3999_s3 + $0x4f8] sm:$0xff] }
  0xae   :  { %v1230_v8 = vadd.f32 %v974_v49, %v718_v61  ;;  %v1231_v9 = vadd.f32 %v975_v51, %v719_v62  ;;  %v1232_v10 = vadd.f32 %v976_v54, %v720_v63  ;;  %v1233_v11 = vadd.f32 %v977_v55, %v721_v0  ;;  %v986_v49 = vld [vmem:[%s3999_s3 + $0x4e0] sm:$0xff] }
  0xaf   :  { %v1234_v19 = vadd.f32 %v978_v57, %v722_v4  ;;  %v1235_v24 = vadd.f32 %v979_v1, %v723_v5  ;;  %v1236_v25 = vadd.f32 %v980_v2, %v724_v6  ;;  %v1237_v26 = vadd.f32 %v981_v3, %v725_v7  ;;  %v987_v57 = vld [vmem:[%s3999_s3 + $0x4e8] sm:$0xff]  ;;  %v178_v4 = vld [vmem:[%s3998_s2 + $0x500] sm:$0xff]  ;;  %v180_v6 = vld [vmem:[%s3998_s2 + $0x510] sm:$0xff] }
  0xb0   :  { %v1486_v30 = vmax.f32 %v1230_v8, 0.0  ;;  %v1487_v31 = vmax.f32 %v1231_v9, 0.0  ;;  %v1488_v32 = vmax.f32 %v1232_v10, 0.0  ;;  %v1489_v33 = vmax.f32 %v1233_v11, 0.0  ;;  %v179_v5 = vld [vmem:[%s3998_s2 + $0x508] sm:$0xff]  ;;  %v181_v11 = vld [vmem:[%s3998_s2 + $0x518] sm:$0xff] }
  0xb1   :  { %v1490_v36 = vmax.f32 %v1234_v19, 0.0  ;;  %v1491_v37 = vmax.f32 %v1235_v24, 0.0  ;;  %v1492_v38 = vmax.f32 %v1236_v25, 0.0  ;;  %v1493_v39 = vmax.f32 %v1237_v26, 0.0  ;;  %v184_v26 = vld [vmem:[%s3998_s2 + $0x530] sm:$0xff] }
  0xb2   :  { %1742 = vst [vmem:[#allocation2 + $0x480] sm:$0xff] %v1486_v30  ;;  %1743 = vst [vmem:[#allocation2 + $0x488] sm:$0xff] %v1487_v31  ;;  %v448_v40 = vmul.f32 %v1944_v13, %v170_v12  ;;  %v449_v42 = vmul.f32 %v1948_v15, %v171_v17  ;;  %v450_v44 = vmul.f32 %v1961_v20, %v172_v18  ;;  %v182_v12 = vld [vmem:[%s3998_s2 + $0x520] sm:$0xff]  ;;  %v183_v17 = vld [vmem:[%s3998_s2 + $0x528] sm:$0xff] }
  0xb3   :  { %1744 = vst [vmem:[#allocation2 + $0x490] sm:$0xff] %v1488_v32  ;;  %1745 = vst [vmem:[#allocation2 + $0x498] sm:$0xff] %v1489_v33  ;;  %v451_v45 = vmul.f32 %v1965_v22, %v173_v27  ;;  %v452_v48 = vmul.f32 %v1944_v13, %v174_v28  ;;  %v453_v50 = vmul.f32 %v1948_v15, %v175_v29  ;;  %v185_v27 = vld [vmem:[%s3998_s2 + $0x538] sm:$0xff]  ;;  %v990_v33 = vld [vmem:[%s3999_s3 + $0x500] sm:$0xff] }
  0xb4   :  { %1746 = vst [vmem:[#allocation2 + $0x4a0] sm:$0xff] %v1490_v36  ;;  %1747 = vst [vmem:[#allocation2 + $0x4a8] sm:$0xff] %v1491_v37  ;;  %v454_v51 = vmul.f32 %v1961_v20, %v176_v34  ;;  %v455_v52 = vmul.f32 %v1965_v22, %v177_v35  ;;  %v726_v53 = vadd.f32 %v1946_v14, %v448_v40  ;;  %v991_v35 = vld [vmem:[%s3999_s3 + $0x508] sm:$0xff] }
  0xb5   :  { %1748 = vst [vmem:[#allocation2 + $0x4b0] sm:$0xff] %v1492_v38  ;;  %1749 = vst [vmem:[#allocation2 + $0x4b8] sm:$0xff] %v1493_v39  ;;  %v727_v54 = vadd.f32 %v1950_v16, %v449_v42  ;;  %v728_v55 = vadd.f32 %v1963_v21, %v450_v44  ;;  %v729_v56 = vadd.f32 %v1967_v23, %v451_v45  ;;  %v992_v38 = vld [vmem:[%s3999_s3 + $0x510] sm:$0xff]  ;;  %v993_v39 = vld [vmem:[%s3999_s3 + $0x518] sm:$0xff] }
  0xb6   :  { %v730_v60 = vadd.f32 %v1946_v14, %v452_v48  ;;  %v731_v61 = vadd.f32 %v1950_v16, %v453_v50  ;;  %v732_v62 = vadd.f32 %v1963_v21, %v454_v51  ;;  %v733_v63 = vadd.f32 %v1967_v23, %v455_v52  ;;  %v996_v50 = vld [vmem:[%s3999_s3 + $0x530] sm:$0xff]  ;;  %v997_v51 = vld [vmem:[%s3999_s3 + $0x538] sm:$0xff] }
  0xb7   :  { %v1238_v0 = vadd.f32 %v982_v41, %v726_v53  ;;  %v1239_v1 = vadd.f32 %v983_v43, %v727_v54  ;;  %v1240_v2 = vadd.f32 %v984_v46, %v728_v55  ;;  %v1241_v3 = vadd.f32 %v985_v47, %v729_v56  ;;  %v994_v41 = vld [vmem:[%s3999_s3 + $0x520] sm:$0xff] }
  0xb8   :  { %v1242_v7 = vadd.f32 %v986_v49, %v730_v60  ;;  %v1243_v8 = vadd.f32 %v987_v57, %v731_v61  ;;  %v1244_v9 = vadd.f32 %v988_v58, %v732_v62  ;;  %v1245_v10 = vadd.f32 %v989_v59, %v733_v63  ;;  %v995_v49 = vld [vmem:[%s3999_s3 + $0x528] sm:$0xff]  ;;  %v186_v60 = vld [vmem:[%s3998_s2 + $0x540] sm:$0xff]  ;;  %v188_v62 = vld [vmem:[%s3998_s2 + $0x550] sm:$0xff] }
  0xb9   :  { %v1494_v18 = vmax.f32 %v1238_v0, 0.0  ;;  %v1495_v19 = vmax.f32 %v1239_v1, 0.0  ;;  %v1496_v24 = vmax.f32 %v1240_v2, 0.0  ;;  %v1497_v25 = vmax.f32 %v1241_v3, 0.0  ;;  %v187_v61 = vld [vmem:[%s3998_s2 + $0x548] sm:$0xff]  ;;  %v189_v3 = vld [vmem:[%s3998_s2 + $0x558] sm:$0xff] }
  0xba   :  { %v1498_v28 = vmax.f32 %v1242_v7, 0.0  ;;  %v1499_v29 = vmax.f32 %v1243_v8, 0.0  ;;  %v1500_v30 = vmax.f32 %v1244_v9, 0.0  ;;  %v1501_v31 = vmax.f32 %v1245_v10, 0.0  ;;  %v192_v10 = vld [vmem:[%s3998_s2 + $0x570] sm:$0xff] }
  0xbb   :  { %1750 = vst [vmem:[#allocation2 + $0x4c0] sm:$0xff] %v1494_v18  ;;  %1751 = vst [vmem:[#allocation2 + $0x4c8] sm:$0xff] %v1495_v19  ;;  %v456_v32 = vmul.f32 %v1944_v13, %v178_v4  ;;  %v457_v34 = vmul.f32 %v1948_v15, %v179_v5  ;;  %v458_v36 = vmul.f32 %v1961_v20, %v180_v6  ;;  %v190_v4 = vld [vmem:[%s3998_s2 + $0x560] sm:$0xff]  ;;  %v191_v5 = vld [vmem:[%s3998_s2 + $0x568] sm:$0xff] }
  0xbc   :  { %1752 = vst [vmem:[#allocation2 + $0x4d0] sm:$0xff] %v1496_v24  ;;  %1753 = vst [vmem:[#allocation2 + $0x4d8] sm:$0xff] %v1497_v25  ;;  %v459_v37 = vmul.f32 %v1965_v22, %v181_v11  ;;  %v460_v40 = vmul.f32 %v1944_v13, %v182_v12  ;;  %v461_v42 = vmul.f32 %v1948_v15, %v183_v17  ;;  %v193_v11 = vld [vmem:[%s3998_s2 + $0x578] sm:$0xff]  ;;  %v998_v25 = vld [vmem:[%s3999_s3 + $0x540] sm:$0xff] }
  0xbd   :  { %1754 = vst [vmem:[#allocation2 + $0x4e0] sm:$0xff] %v1498_v28  ;;  %1755 = vst [vmem:[#allocation2 + $0x4e8] sm:$0xff] %v1499_v29  ;;  %v462_v43 = vmul.f32 %v1961_v20, %v184_v26  ;;  %v463_v44 = vmul.f32 %v1965_v22, %v185_v27  ;;  %v734_v45 = vadd.f32 %v1946_v14, %v456_v32  ;;  %v999_v27 = vld [vmem:[%s3999_s3 + $0x548] sm:$0xff] }
  0xbe   :  { %1756 = vst [vmem:[#allocation2 + $0x4f0] sm:$0xff] %v1500_v30  ;;  %1757 = vst [vmem:[#allocation2 + $0x4f8] sm:$0xff] %v1501_v31  ;;  %v735_v46 = vadd.f32 %v1950_v16, %v457_v34  ;;  %v736_v47 = vadd.f32 %v1963_v21, %v458_v36  ;;  %v737_v48 = vadd.f32 %v1967_v23, %v459_v37  ;;  %v1000_v30 = vld [vmem:[%s3999_s3 + $0x550] sm:$0xff]  ;;  %v1001_v31 = vld [vmem:[%s3999_s3 + $0x558] sm:$0xff] }
  0xbf   :  { %v738_v52 = vadd.f32 %v1946_v14, %v460_v40  ;;  %v739_v53 = vadd.f32 %v1950_v16, %v461_v42  ;;  %v740_v54 = vadd.f32 %v1963_v21, %v462_v43  ;;  %v741_v55 = vadd.f32 %v1967_v23, %v463_v44  ;;  %v1004_v42 = vld [vmem:[%s3999_s3 + $0x570] sm:$0xff]  ;;  %v1005_v43 = vld [vmem:[%s3999_s3 + $0x578] sm:$0xff] }
  0xc0   :  { %v1246_v56 = vadd.f32 %v990_v33, %v734_v45  ;;  %v1247_v57 = vadd.f32 %v991_v35, %v735_v46  ;;  %v1248_v58 = vadd.f32 %v992_v38, %v736_v47  ;;  %v1249_v59 = vadd.f32 %v993_v39, %v737_v48  ;;  %v1002_v33 = vld [vmem:[%s3999_s3 + $0x560] sm:$0xff] }
  0xc1   :  { %v1250_v63 = vadd.f32 %v994_v41, %v738_v52  ;;  %v1251_v0 = vadd.f32 %v995_v49, %v739_v53  ;;  %v1252_v1 = vadd.f32 %v996_v50, %v740_v54  ;;  %v1253_v2 = vadd.f32 %v997_v51, %v741_v55  ;;  %v1003_v41 = vld [vmem:[%s3999_s3 + $0x568] sm:$0xff]  ;;  %v194_v52 = vld [vmem:[%s3998_s2 + $0x580] sm:$0xff]  ;;  %v196_v54 = vld [vmem:[%s3998_s2 + $0x590] sm:$0xff] }
  0xc2   :  { %v1502_v6 = vmax.f32 %v1246_v56, 0.0  ;;  %v1503_v7 = vmax.f32 %v1247_v57, 0.0  ;;  %v1504_v8 = vmax.f32 %v1248_v58, 0.0  ;;  %v1505_v9 = vmax.f32 %v1249_v59, 0.0  ;;  %v195_v53 = vld [vmem:[%s3998_s2 + $0x588] sm:$0xff]  ;;  %v197_v59 = vld [vmem:[%s3998_s2 + $0x598] sm:$0xff] }
  0xc3   :  { %v1506_v12 = vmax.f32 %v1250_v63, 0.0  ;;  %v1507_v17 = vmax.f32 %v1251_v0, 0.0  ;;  %v1508_v18 = vmax.f32 %v1252_v1, 0.0  ;;  %v1509_v19 = vmax.f32 %v1253_v2, 0.0  ;;  %v200_v2 = vld [vmem:[%s3998_s2 + $0x5b0] sm:$0xff] }
  0xc4   :  { %1758 = vst [vmem:[#allocation2 + $0x500] sm:$0xff] %v1502_v6  ;;  %1759 = vst [vmem:[#allocation2 + $0x508] sm:$0xff] %v1503_v7  ;;  %v464_v24 = vmul.f32 %v1944_v13, %v186_v60  ;;  %v465_v26 = vmul.f32 %v1948_v15, %v187_v61  ;;  %v466_v28 = vmul.f32 %v1961_v20, %v188_v62  ;;  %v198_v60 = vld [vmem:[%s3998_s2 + $0x5a0] sm:$0xff]  ;;  %v199_v61 = vld [vmem:[%s3998_s2 + $0x5a8] sm:$0xff] }
  0xc5   :  { %1760 = vst [vmem:[#allocation2 + $0x510] sm:$0xff] %v1504_v8  ;;  %1761 = vst [vmem:[#allocation2 + $0x518] sm:$0xff] %v1505_v9  ;;  %v467_v29 = vmul.f32 %v1965_v22, %v189_v3  ;;  %v468_v32 = vmul.f32 %v1944_v13, %v190_v4  ;;  %v469_v34 = vmul.f32 %v1948_v15, %v191_v5  ;;  %v201_v3 = vld [vmem:[%s3998_s2 + $0x5b8] sm:$0xff]  ;;  %v1006_v9 = vld [vmem:[%s3999_s3 + $0x580] sm:$0xff] }
  0xc6   :  { %1762 = vst [vmem:[#allocation2 + $0x520] sm:$0xff] %v1506_v12  ;;  %1763 = vst [vmem:[#allocation2 + $0x528] sm:$0xff] %v1507_v17  ;;  %v470_v35 = vmul.f32 %v1961_v20, %v192_v10  ;;  %v471_v36 = vmul.f32 %v1965_v22, %v193_v11  ;;  %v742_v37 = vadd.f32 %v1946_v14, %v464_v24  ;;  %v1007_v11 = vld [vmem:[%s3999_s3 + $0x588] sm:$0xff]  ;;  %v1008_v17 = vld [vmem:[%s3999_s3 + $0x590] sm:$0xff] }
  0xc7   :  { %1764 = vst [vmem:[#allocation2 + $0x530] sm:$0xff] %v1508_v18  ;;  %1765 = vst [vmem:[#allocation2 + $0x538] sm:$0xff] %v1509_v19  ;;  %v743_v38 = vadd.f32 %v1950_v16, %v465_v26  ;;  %v744_v39 = vadd.f32 %v1963_v21, %v466_v28  ;;  %v745_v40 = vadd.f32 %v1967_v23, %v467_v29  ;;  %v1009_v19 = vld [vmem:[%s3999_s3 + $0x598] sm:$0xff] }
  0xc8   :  { %v746_v44 = vadd.f32 %v1946_v14, %v468_v32  ;;  %v747_v45 = vadd.f32 %v1950_v16, %v469_v34  ;;  %v748_v46 = vadd.f32 %v1963_v21, %v470_v35  ;;  %v749_v47 = vadd.f32 %v1967_v23, %v471_v36  ;;  %v1012_v34 = vld [vmem:[%s3999_s3 + $0x5b0] sm:$0xff]  ;;  %v1013_v35 = vld [vmem:[%s3999_s3 + $0x5b8] sm:$0xff] }
  0xc9   :  { %v1254_v48 = vadd.f32 %v998_v25, %v742_v37  ;;  %v1255_v49 = vadd.f32 %v999_v27, %v743_v38  ;;  %v1256_v50 = vadd.f32 %v1000_v30, %v744_v39  ;;  %v1257_v51 = vadd.f32 %v1001_v31, %v745_v40  ;;  %v1010_v25 = vld [vmem:[%s3999_s3 + $0x5a0] sm:$0xff]  ;;  %v1011_v27 = vld [vmem:[%s3999_s3 + $0x5a8] sm:$0xff] }
  0xca   :  { %v1258_v55 = vadd.f32 %v1002_v33, %v746_v44  ;;  %v1259_v56 = vadd.f32 %v1003_v41, %v747_v45  ;;  %v1260_v57 = vadd.f32 %v1004_v42, %v748_v46  ;;  %v1261_v58 = vadd.f32 %v1005_v43, %v749_v47 }
  0xcb   :  { %v1510_v62 = vmax.f32 %v1254_v48, 0.0  ;;  %v1511_v63 = vmax.f32 %v1255_v49, 0.0  ;;  %v1512_v0 = vmax.f32 %v1256_v50, 0.0  ;;  %v1513_v1 = vmax.f32 %v1257_v51, 0.0 }
  0xcc   :  { %v1514_v4 = vmax.f32 %v1258_v55, 0.0  ;;  %v1515_v5 = vmax.f32 %v1259_v56, 0.0  ;;  %v1516_v6 = vmax.f32 %v1260_v57, 0.0  ;;  %v1517_v7 = vmax.f32 %v1261_v58, 0.0 }
  0xcd   :  { %1766 = vst [vmem:[#allocation2 + $0x540] sm:$0xff] %v1510_v62  ;;  %1767 = vst [vmem:[#allocation2 + $0x548] sm:$0xff] %v1511_v63  ;;  %v472_v8 = vmul.f32 %v1944_v13, %v194_v52  ;;  %v473_v10 = vmul.f32 %v1948_v15, %v195_v53  ;;  %v474_v12 = vmul.f32 %v1961_v20, %v196_v54 }
  0xce   :  { %1768 = vst [vmem:[#allocation2 + $0x550] sm:$0xff] %v1512_v0  ;;  %1769 = vst [vmem:[#allocation2 + $0x558] sm:$0xff] %v1513_v1  ;;  %v475_v18 = vmul.f32 %v1965_v22, %v197_v59  ;;  %v476_v24 = vmul.f32 %v1944_v13, %v198_v60  ;;  %v477_v26 = vmul.f32 %v1948_v15, %v199_v61 }
  0xcf   :  { %1770 = vst [vmem:[#allocation2 + $0x560] sm:$0xff] %v1514_v4  ;;  %1771 = vst [vmem:[#allocation2 + $0x568] sm:$0xff] %v1515_v5  ;;  %v478_v28 = vmul.f32 %v1961_v20, %v200_v2  ;;  %v479_v29 = vmul.f32 %v1965_v22, %v201_v3  ;;  %v750_v30 = vadd.f32 %v1946_v14, %v472_v8 }
  0xd0   :  { %1772 = vst [vmem:[#allocation2 + $0x570] sm:$0xff] %v1516_v6  ;;  %1773 = vst [vmem:[#allocation2 + $0x578] sm:$0xff] %v1517_v7  ;;  %v751_v31 = vadd.f32 %v1950_v16, %v473_v10  ;;  %v752_v32 = vadd.f32 %v1963_v21, %v474_v12  ;;  %v753_v33 = vadd.f32 %v1967_v23, %v475_v18 }
  0xd1   :  { %9 = vsyncpa [#allocation3], 0  ;;  %v754_v36 = vadd.f32 %v1946_v14, %v476_v24  ;;  %v755_v37 = vadd.f32 %v1950_v16, %v477_v26  ;;  %v756_v38 = vadd.f32 %v1963_v21, %v478_v28  ;;  %v757_v39 = vadd.f32 %v1967_v23, %v479_v29  ;;  %v202_v44 = vld [vmem:[%s3998_s2 + $0x5c0] sm:$0xff]  ;;  %v203_v45 = vld [vmem:[%s3998_s2 + $0x5c8] sm:$0xff]  ;;  %s1895_s6 = smov [#allocation2]  }
  0xd2   :  { %v1262_v40 = vadd.f32 %v1006_v9, %v750_v30  ;;  %v1263_v41 = vadd.f32 %v1007_v11, %v751_v31  ;;  %v1264_v42 = vadd.f32 %v1008_v17, %v752_v32  ;;  %v1265_v43 = vadd.f32 %v1009_v19, %v753_v33  ;;  %v204_v46 = vld [vmem:[%s3998_s2 + $0x5d0] sm:$0xff]  ;;  %v205_v51 = vld [vmem:[%s3998_s2 + $0x5d8] sm:$0xff]  ;;  %v206_v52 = vld [vmem:[%s3998_s2 + $0x5e0] sm:$0xff]  ;;  %s1859_s7 = sshll.u32 %s1895_s6, 4  ;;  %s1860_s7 = int_to_ptr.vmem [resolvable:$true] %s1859_s7 }
  0xd3   :  { %v1266_v47 = vadd.f32 %v1010_v25, %v754_v36  ;;  %v1267_v48 = vadd.f32 %v1011_v27, %v755_v37  ;;  %v1268_v49 = vadd.f32 %v1012_v34, %v756_v38  ;;  %v1269_v50 = vadd.f32 %v1013_v35, %v757_v39  ;;  %v207_v53 = vld [vmem:[%s3998_s2 + $0x5e8] sm:$0xff]  ;;  %v208_v58 = vld [vmem:[%s3998_s2 + $0x5f0] sm:$0xff]  ;;  %v209_v59 = vld [vmem:[%s3998_s2 + $0x5f8] sm:$0xff]  ;;  %p1878_p1 = scmp.lt.s32.totalorder %s1860_s7, %s1860_s7 }
  0xd4   :  { %v1518_v54 = vmax.f32 %v1262_v40, 0.0  ;;  %v1519_v55 = vmax.f32 %v1263_v41, 0.0  ;;  %v1520_v56 = vmax.f32 %v1264_v42, 0.0  ;;  %v1521_v57 = vmax.f32 %v1265_v43, 0.0  ;;  %v1014_v1 = vld [vmem:[%s3999_s3 + $0x5c0] sm:$0xff]  ;;  %v1015_v3 = vld [vmem:[%s3999_s3 + $0x5c8] sm:$0xff] }
  0xd5   :  { %v1522_v60 = vmax.f32 %v1266_v47, 0.0  ;;  %v1523_v61 = vmax.f32 %v1267_v48, 0.0  ;;  %v1524_v62 = vmax.f32 %v1268_v49, 0.0  ;;  %v1525_v63 = vmax.f32 %v1269_v50, 0.0  ;;  %v1016_v6 = vld [vmem:[%s3999_s3 + $0x5d0] sm:$0xff]  ;;  %v1017_v7 = vld [vmem:[%s3999_s3 + $0x5d8] sm:$0xff] }
  0xd6   :  { %1774 = vst [vmem:[#allocation2 + $0x580] sm:$0xff] %v1518_v54  ;;  %1775 = vst [vmem:[#allocation2 + $0x588] sm:$0xff] %v1519_v55  ;;  %v480_v0 = vmul.f32 %v1944_v13, %v202_v44  ;;  %v481_v2 = vmul.f32 %v1948_v15, %v203_v45  ;;  %v482_v4 = vmul.f32 %v1961_v20, %v204_v46  ;;  %v1018_v9 = vld [vmem:[%s3999_s3 + $0x5e0] sm:$0xff]  ;;  %v1019_v25 = vld [vmem:[%s3999_s3 + $0x5e8] sm:$0xff] }
  0xd7   :  { %1776 = vst [vmem:[#allocation2 + $0x590] sm:$0xff] %v1520_v56  ;;  %1777 = vst [vmem:[#allocation2 + $0x598] sm:$0xff] %v1521_v57  ;;  %v483_v5 = vmul.f32 %v1965_v22, %v205_v51  ;;  %v484_v8 = vmul.f32 %v1944_v13, %v206_v52  ;;  %v485_v10 = vmul.f32 %v1948_v15, %v207_v53  ;;  %v1020_v26 = vld [vmem:[%s3999_s3 + $0x5f0] sm:$0xff]  ;;  %v1021_v27 = vld [vmem:[%s3999_s3 + $0x5f8] sm:$0xff] }
  0xd8   :  { %1778 = vst [vmem:[#allocation2 + $0x5a0] sm:$0xff] %v1522_v60  ;;  %1779 = vst [vmem:[#allocation2 + $0x5a8] sm:$0xff] %v1523_v61  ;;  %v486_v11 = vmul.f32 %v1961_v20, %v208_v58  ;;  %v487_v12 = vmul.f32 %v1965_v22, %v209_v59  ;;  %v758_v17 = vadd.f32 %v1946_v14, %v480_v0  ;;  %v210_v36 = vld [vmem:[%s3998_s2 + $0x600] sm:$0xff]  ;;  %v211_v37 = vld [vmem:[%s3998_s2 + $0x608] sm:$0xff] }
  0xd9   :  { %1780 = vst [vmem:[#allocation2 + $0x5b0] sm:$0xff] %v1524_v62  ;;  %1781 = vst [vmem:[#allocation2 + $0x5b8] sm:$0xff] %v1525_v63  ;;  %v759_v18 = vadd.f32 %v1950_v16, %v481_v2  ;;  %v760_v19 = vadd.f32 %v1963_v21, %v482_v4  ;;  %v761_v24 = vadd.f32 %v1967_v23, %v483_v5  ;;  %v212_v38 = vld [vmem:[%s3998_s2 + $0x610] sm:$0xff]  ;;  %v213_v43 = vld [vmem:[%s3998_s2 + $0x618] sm:$0xff] }
  0xda   :  { %v762_v28 = vadd.f32 %v1946_v14, %v484_v8  ;;  %v763_v29 = vadd.f32 %v1950_v16, %v485_v10  ;;  %v764_v30 = vadd.f32 %v1963_v21, %v486_v11  ;;  %v765_v31 = vadd.f32 %v1967_v23, %v487_v12  ;;  %v214_v44 = vld [vmem:[%s3998_s2 + $0x620] sm:$0xff]  ;;  %v215_v45 = vld [vmem:[%s3998_s2 + $0x628] sm:$0xff]  ;;  %v216_v50 = vld [vmem:[%s3998_s2 + $0x630] sm:$0xff] }
  0xdb   :  { %v1270_v32 = vadd.f32 %v1014_v1, %v758_v17  ;;  %v1271_v33 = vadd.f32 %v1015_v3, %v759_v18  ;;  %v1272_v34 = vadd.f32 %v1016_v6, %v760_v19  ;;  %v1273_v35 = vadd.f32 %v1017_v7, %v761_v24  ;;  %v217_v51 = vld [vmem:[%s3998_s2 + $0x638] sm:$0xff]  ;;  %v1022_v57 = vld [vmem:[%s3999_s3 + $0x600] sm:$0xff]  ;;  %v1023_v59 = vld [vmem:[%s3999_s3 + $0x608] sm:$0xff] }
  0xdc   :  { %v1274_v39 = vadd.f32 %v1018_v9, %v762_v28  ;;  %v1275_v40 = vadd.f32 %v1019_v25, %v763_v29  ;;  %v1276_v41 = vadd.f32 %v1020_v26, %v764_v30  ;;  %v1277_v42 = vadd.f32 %v1021_v27, %v765_v31  ;;  %v1024_v62 = vld [vmem:[%s3999_s3 + $0x610] sm:$0xff]  ;;  %v1025_v63 = vld [vmem:[%s3999_s3 + $0x618] sm:$0xff]  ;;  %v1026_v1 = vld [vmem:[%s3999_s3 + $0x620] sm:$0xff] }
  0xdd   :  { %v1526_v46 = vmax.f32 %v1270_v32, 0.0  ;;  %v1527_v47 = vmax.f32 %v1271_v33, 0.0  ;;  %v1528_v48 = vmax.f32 %v1272_v34, 0.0  ;;  %v1529_v49 = vmax.f32 %v1273_v35, 0.0  ;;  %v1027_v9 = vld [vmem:[%s3999_s3 + $0x628] sm:$0xff]  ;;  %v1028_v10 = vld [vmem:[%s3999_s3 + $0x630] sm:$0xff] }
  0xde   :  { %v1530_v52 = vmax.f32 %v1274_v39, 0.0  ;;  %v1531_v53 = vmax.f32 %v1275_v40, 0.0  ;;  %v1532_v54 = vmax.f32 %v1276_v41, 0.0  ;;  %v1533_v55 = vmax.f32 %v1277_v42, 0.0  ;;  %v1029_v11 = vld [vmem:[%s3999_s3 + $0x638] sm:$0xff]  ;;  %v218_v28 = vld [vmem:[%s3998_s2 + $0x640] sm:$0xff] }
  0xdf   :  { %1782 = vst [vmem:[#allocation2 + $0x5c0] sm:$0xff] %v1526_v46  ;;  %1783 = vst [vmem:[#allocation2 + $0x5c8] sm:$0xff] %v1527_v47  ;;  %v488_v56 = vmul.f32 %v1944_v13, %v210_v36  ;;  %v489_v58 = vmul.f32 %v1948_v15, %v211_v37  ;;  %v490_v60 = vmul.f32 %v1961_v20, %v212_v38  ;;  %v219_v29 = vld [vmem:[%s3998_s2 + $0x648] sm:$0xff]  ;;  %v220_v30 = vld [vmem:[%s3998_s2 + $0x650] sm:$0xff] }
  0xe0   :  { %1784 = vst [vmem:[#allocation2 + $0x5d0] sm:$0xff] %v1528_v48  ;;  %1785 = vst [vmem:[#allocation2 + $0x5d8] sm:$0xff] %v1529_v49  ;;  %v491_v61 = vmul.f32 %v1965_v22, %v213_v43  ;;  %v492_v0 = vmul.f32 %v1944_v13, %v214_v44  ;;  %v493_v2 = vmul.f32 %v1948_v15, %v215_v45  ;;  %v221_v35 = vld [vmem:[%s3998_s2 + $0x658] sm:$0xff]  ;;  %v222_v36 = vld [vmem:[%s3998_s2 + $0x660] sm:$0xff] }
  0xe1   :  { %1786 = vst [vmem:[#allocation2 + $0x5e0] sm:$0xff] %v1530_v52  ;;  %1787 = vst [vmem:[#allocation2 + $0x5e8] sm:$0xff] %v1531_v53  ;;  %v494_v3 = vmul.f32 %v1961_v20, %v216_v50  ;;  %v495_v4 = vmul.f32 %v1965_v22, %v217_v51  ;;  %v766_v5 = vadd.f32 %v1946_v14, %v488_v56  ;;  %v223_v37 = vld [vmem:[%s3998_s2 + $0x668] sm:$0xff]  ;;  %v224_v42 = vld [vmem:[%s3998_s2 + $0x670] sm:$0xff] }
  0xe2   :  { %1788 = vst [vmem:[#allocation2 + $0x5f0] sm:$0xff] %v1532_v54  ;;  %1789 = vst [vmem:[#allocation2 + $0x5f8] sm:$0xff] %v1533_v55  ;;  %v767_v6 = vadd.f32 %v1950_v16, %v489_v58  ;;  %v768_v7 = vadd.f32 %v1963_v21, %v490_v60  ;;  %v769_v8 = vadd.f32 %v1967_v23, %v491_v61  ;;  %v225_v43 = vld [vmem:[%s3998_s2 + $0x678] sm:$0xff]  ;;  %v1030_v49 = vld [vmem:[%s3999_s3 + $0x640] sm:$0xff] }
  0xe3   :  { %v770_v12 = vadd.f32 %v1946_v14, %v492_v0  ;;  %v771_v17 = vadd.f32 %v1950_v16, %v493_v2  ;;  %v772_v18 = vadd.f32 %v1963_v21, %v494_v3  ;;  %v773_v19 = vadd.f32 %v1967_v23, %v495_v4  ;;  %v1031_v51 = vld [vmem:[%s3999_s3 + $0x648] sm:$0xff]  ;;  %v1032_v54 = vld [vmem:[%s3999_s3 + $0x650] sm:$0xff]  ;;  %v1033_v55 = vld [vmem:[%s3999_s3 + $0x658] sm:$0xff] }
  0xe4   :  { %v1278_v24 = vadd.f32 %v1022_v57, %v766_v5  ;;  %v1279_v25 = vadd.f32 %v1023_v59, %v767_v6  ;;  %v1280_v26 = vadd.f32 %v1024_v62, %v768_v7  ;;  %v1281_v27 = vadd.f32 %v1025_v63, %v769_v8  ;;  %v1034_v57 = vld [vmem:[%s3999_s3 + $0x660] sm:$0xff]  ;;  %v1036_v2 = vld [vmem:[%s3999_s3 + $0x670] sm:$0xff]  ;;  %v1037_v3 = vld [vmem:[%s3999_s3 + $0x678] sm:$0xff] }
  0xe5   :  { %v1282_v31 = vadd.f32 %v1026_v1, %v770_v12  ;;  %v1283_v32 = vadd.f32 %v1027_v9, %v771_v17  ;;  %v1284_v33 = vadd.f32 %v1028_v10, %v772_v18  ;;  %v1285_v34 = vadd.f32 %v1029_v11, %v773_v19  ;;  %v1035_v1 = vld [vmem:[%s3999_s3 + $0x668] sm:$0xff]  ;;  %v226_v12 = vld [vmem:[%s3998_s2 + $0x680] sm:$0xff]  ;;  %v228_v18 = vld [vmem:[%s3998_s2 + $0x690] sm:$0xff] }
  0xe6   :  { %v1534_v38 = vmax.f32 %v1278_v24, 0.0  ;;  %v1535_v39 = vmax.f32 %v1279_v25, 0.0  ;;  %v1536_v40 = vmax.f32 %v1280_v26, 0.0  ;;  %v1537_v41 = vmax.f32 %v1281_v27, 0.0  ;;  %v227_v17 = vld [vmem:[%s3998_s2 + $0x688] sm:$0xff]  ;;  %v229_v27 = vld [vmem:[%s3998_s2 + $0x698] sm:$0xff] }
  0xe7   :  { %v1538_v44 = vmax.f32 %v1282_v31, 0.0  ;;  %v1539_v45 = vmax.f32 %v1283_v32, 0.0  ;;  %v1540_v46 = vmax.f32 %v1284_v33, 0.0  ;;  %v1541_v47 = vmax.f32 %v1285_v34, 0.0  ;;  %v232_v34 = vld [vmem:[%s3998_s2 + $0x6b0] sm:$0xff] }
  0xe8   :  { %1790 = vst [vmem:[#allocation2 + $0x600] sm:$0xff] %v1534_v38  ;;  %1791 = vst [vmem:[#allocation2 + $0x608] sm:$0xff] %v1535_v39  ;;  %v496_v48 = vmul.f32 %v1944_v13, %v218_v28  ;;  %v497_v50 = vmul.f32 %v1948_v15, %v219_v29  ;;  %v498_v52 = vmul.f32 %v1961_v20, %v220_v30  ;;  %v230_v28 = vld [vmem:[%s3998_s2 + $0x6a0] sm:$0xff]  ;;  %v231_v29 = vld [vmem:[%s3998_s2 + $0x6a8] sm:$0xff] }
  0xe9   :  { %1792 = vst [vmem:[#allocation2 + $0x610] sm:$0xff] %v1536_v40  ;;  %1793 = vst [vmem:[#allocation2 + $0x618] sm:$0xff] %v1537_v41  ;;  %v499_v53 = vmul.f32 %v1965_v22, %v221_v35  ;;  %v500_v56 = vmul.f32 %v1944_v13, %v222_v36  ;;  %v501_v58 = vmul.f32 %v1948_v15, %v223_v37  ;;  %v233_v35 = vld [vmem:[%s3998_s2 + $0x6b8] sm:$0xff]  ;;  %v1038_v41 = vld [vmem:[%s3999_s3 + $0x680] sm:$0xff] }
  0xea   :  { %1794 = vst [vmem:[#allocation2 + $0x620] sm:$0xff] %v1538_v44  ;;  %1795 = vst [vmem:[#allocation2 + $0x628] sm:$0xff] %v1539_v45  ;;  %v502_v59 = vmul.f32 %v1961_v20, %v224_v42  ;;  %v503_v60 = vmul.f32 %v1965_v22, %v225_v43  ;;  %v774_v61 = vadd.f32 %v1946_v14, %v496_v48  ;;  %v1039_v43 = vld [vmem:[%s3999_s3 + $0x688] sm:$0xff] }
  0xeb   :  { %1796 = vst [vmem:[#allocation2 + $0x630] sm:$0xff] %v1540_v46  ;;  %1797 = vst [vmem:[#allocation2 + $0x638] sm:$0xff] %v1541_v47  ;;  %v775_v62 = vadd.f32 %v1950_v16, %v497_v50  ;;  %v776_v63 = vadd.f32 %v1963_v21, %v498_v52  ;;  %v777_v0 = vadd.f32 %v1967_v23, %v499_v53  ;;  %v1040_v46 = vld [vmem:[%s3999_s3 + $0x690] sm:$0xff]  ;;  %v1041_v47 = vld [vmem:[%s3999_s3 + $0x698] sm:$0xff] }
  0xec   :  { %v778_v4 = vadd.f32 %v1946_v14, %v500_v56  ;;  %v779_v5 = vadd.f32 %v1950_v16, %v501_v58  ;;  %v780_v6 = vadd.f32 %v1963_v21, %v502_v59  ;;  %v781_v7 = vadd.f32 %v1967_v23, %v503_v60  ;;  %v1044_v58 = vld [vmem:[%s3999_s3 + $0x6b0] sm:$0xff]  ;;  %v1045_v59 = vld [vmem:[%s3999_s3 + $0x6b8] sm:$0xff] }
  0xed   :  { %v1286_v8 = vadd.f32 %v1030_v49, %v774_v61  ;;  %v1287_v9 = vadd.f32 %v1031_v51, %v775_v62  ;;  %v1288_v10 = vadd.f32 %v1032_v54, %v776_v63  ;;  %v1289_v11 = vadd.f32 %v1033_v55, %v777_v0  ;;  %v1042_v49 = vld [vmem:[%s3999_s3 + $0x6a0] sm:$0xff] }
  0xee   :  { %v1290_v19 = vadd.f32 %v1034_v57, %v778_v4  ;;  %v1291_v24 = vadd.f32 %v1035_v1, %v779_v5  ;;  %v1292_v25 = vadd.f32 %v1036_v2, %v780_v6  ;;  %v1293_v26 = vadd.f32 %v1037_v3, %v781_v7  ;;  %v1043_v57 = vld [vmem:[%s3999_s3 + $0x6a8] sm:$0xff]  ;;  %v234_v4 = vld [vmem:[%s3998_s2 + $0x6c0] sm:$0xff]  ;;  %v236_v6 = vld [vmem:[%s3998_s2 + $0x6d0] sm:$0xff] }
  0xef   :  { %v1542_v30 = vmax.f32 %v1286_v8, 0.0  ;;  %v1543_v31 = vmax.f32 %v1287_v9, 0.0  ;;  %v1544_v32 = vmax.f32 %v1288_v10, 0.0  ;;  %v1545_v33 = vmax.f32 %v1289_v11, 0.0  ;;  %v235_v5 = vld [vmem:[%s3998_s2 + $0x6c8] sm:$0xff]  ;;  %v237_v11 = vld [vmem:[%s3998_s2 + $0x6d8] sm:$0xff] }
  0xf0   :  { %v1546_v36 = vmax.f32 %v1290_v19, 0.0  ;;  %v1547_v37 = vmax.f32 %v1291_v24, 0.0  ;;  %v1548_v38 = vmax.f32 %v1292_v25, 0.0  ;;  %v1549_v39 = vmax.f32 %v1293_v26, 0.0  ;;  %v240_v26 = vld [vmem:[%s3998_s2 + $0x6f0] sm:$0xff] }
  0xf1   :  { %1798 = vst [vmem:[#allocation2 + $0x640] sm:$0xff] %v1542_v30  ;;  %1799 = vst [vmem:[#allocation2 + $0x648] sm:$0xff] %v1543_v31  ;;  %v504_v40 = vmul.f32 %v1944_v13, %v226_v12  ;;  %v505_v42 = vmul.f32 %v1948_v15, %v227_v17  ;;  %v506_v44 = vmul.f32 %v1961_v20, %v228_v18  ;;  %v238_v12 = vld [vmem:[%s3998_s2 + $0x6e0] sm:$0xff]  ;;  %v239_v17 = vld [vmem:[%s3998_s2 + $0x6e8] sm:$0xff] }
  0xf2   :  { %1800 = vst [vmem:[#allocation2 + $0x650] sm:$0xff] %v1544_v32  ;;  %1801 = vst [vmem:[#allocation2 + $0x658] sm:$0xff] %v1545_v33  ;;  %v507_v45 = vmul.f32 %v1965_v22, %v229_v27  ;;  %v508_v48 = vmul.f32 %v1944_v13, %v230_v28  ;;  %v509_v50 = vmul.f32 %v1948_v15, %v231_v29  ;;  %v241_v27 = vld [vmem:[%s3998_s2 + $0x6f8] sm:$0xff]  ;;  %v1046_v33 = vld [vmem:[%s3999_s3 + $0x6c0] sm:$0xff] }
  0xf3   :  { %1802 = vst [vmem:[#allocation2 + $0x660] sm:$0xff] %v1546_v36  ;;  %1803 = vst [vmem:[#allocation2 + $0x668] sm:$0xff] %v1547_v37  ;;  %v510_v51 = vmul.f32 %v1961_v20, %v232_v34  ;;  %v511_v52 = vmul.f32 %v1965_v22, %v233_v35  ;;  %v782_v53 = vadd.f32 %v1946_v14, %v504_v40  ;;  %v1047_v35 = vld [vmem:[%s3999_s3 + $0x6c8] sm:$0xff] }
  0xf4   :  { %1804 = vst [vmem:[#allocation2 + $0x670] sm:$0xff] %v1548_v38  ;;  %1805 = vst [vmem:[#allocation2 + $0x678] sm:$0xff] %v1549_v39  ;;  %v783_v54 = vadd.f32 %v1950_v16, %v505_v42  ;;  %v784_v55 = vadd.f32 %v1963_v21, %v506_v44  ;;  %v785_v56 = vadd.f32 %v1967_v23, %v507_v45  ;;  %v1048_v38 = vld [vmem:[%s3999_s3 + $0x6d0] sm:$0xff]  ;;  %v1049_v39 = vld [vmem:[%s3999_s3 + $0x6d8] sm:$0xff] }
  0xf5   :  { %v786_v60 = vadd.f32 %v1946_v14, %v508_v48  ;;  %v787_v61 = vadd.f32 %v1950_v16, %v509_v50  ;;  %v788_v62 = vadd.f32 %v1963_v21, %v510_v51  ;;  %v789_v63 = vadd.f32 %v1967_v23, %v511_v52  ;;  %v1052_v50 = vld [vmem:[%s3999_s3 + $0x6f0] sm:$0xff]  ;;  %v1053_v51 = vld [vmem:[%s3999_s3 + $0x6f8] sm:$0xff] }
  0xf6   :  { %v1294_v0 = vadd.f32 %v1038_v41, %v782_v53  ;;  %v1295_v1 = vadd.f32 %v1039_v43, %v783_v54  ;;  %v1296_v2 = vadd.f32 %v1040_v46, %v784_v55  ;;  %v1297_v3 = vadd.f32 %v1041_v47, %v785_v56  ;;  %v1050_v41 = vld [vmem:[%s3999_s3 + $0x6e0] sm:$0xff] }
  0xf7   :  { %v1298_v7 = vadd.f32 %v1042_v49, %v786_v60  ;;  %v1299_v8 = vadd.f32 %v1043_v57, %v787_v61  ;;  %v1300_v9 = vadd.f32 %v1044_v58, %v788_v62  ;;  %v1301_v10 = vadd.f32 %v1045_v59, %v789_v63  ;;  %v1051_v49 = vld [vmem:[%s3999_s3 + $0x6e8] sm:$0xff]  ;;  %v242_v60 = vld [vmem:[%s3998_s2 + $0x700] sm:$0xff]  ;;  %v244_v62 = vld [vmem:[%s3998_s2 + $0x710] sm:$0xff] }
  0xf8   :  { %v1550_v18 = vmax.f32 %v1294_v0, 0.0  ;;  %v1551_v19 = vmax.f32 %v1295_v1, 0.0  ;;  %v1552_v24 = vmax.f32 %v1296_v2, 0.0  ;;  %v1553_v25 = vmax.f32 %v1297_v3, 0.0  ;;  %v243_v61 = vld [vmem:[%s3998_s2 + $0x708] sm:$0xff]  ;;  %v245_v3 = vld [vmem:[%s3998_s2 + $0x718] sm:$0xff] }
  0xf9   :  { %v1554_v28 = vmax.f32 %v1298_v7, 0.0  ;;  %v1555_v29 = vmax.f32 %v1299_v8, 0.0  ;;  %v1556_v30 = vmax.f32 %v1300_v9, 0.0  ;;  %v1557_v31 = vmax.f32 %v1301_v10, 0.0  ;;  %v248_v10 = vld [vmem:[%s3998_s2 + $0x730] sm:$0xff] }
  0xfa   :  { %1806 = vst [vmem:[#allocation2 + $0x680] sm:$0xff] %v1550_v18  ;;  %1807 = vst [vmem:[#allocation2 + $0x688] sm:$0xff] %v1551_v19  ;;  %v512_v32 = vmul.f32 %v1944_v13, %v234_v4  ;;  %v513_v34 = vmul.f32 %v1948_v15, %v235_v5  ;;  %v514_v36 = vmul.f32 %v1961_v20, %v236_v6  ;;  %v246_v4 = vld [vmem:[%s3998_s2 + $0x720] sm:$0xff]  ;;  %v247_v5 = vld [vmem:[%s3998_s2 + $0x728] sm:$0xff] }
  0xfb   :  { %1808 = vst [vmem:[#allocation2 + $0x690] sm:$0xff] %v1552_v24  ;;  %1809 = vst [vmem:[#allocation2 + $0x698] sm:$0xff] %v1553_v25  ;;  %v515_v37 = vmul.f32 %v1965_v22, %v237_v11  ;;  %v516_v40 = vmul.f32 %v1944_v13, %v238_v12  ;;  %v517_v42 = vmul.f32 %v1948_v15, %v239_v17  ;;  %v249_v11 = vld [vmem:[%s3998_s2 + $0x738] sm:$0xff]  ;;  %v1054_v25 = vld [vmem:[%s3999_s3 + $0x700] sm:$0xff] }
  0xfc   :  { %1810 = vst [vmem:[#allocation2 + $0x6a0] sm:$0xff] %v1554_v28  ;;  %1811 = vst [vmem:[#allocation2 + $0x6a8] sm:$0xff] %v1555_v29  ;;  %v518_v43 = vmul.f32 %v1961_v20, %v240_v26  ;;  %v519_v44 = vmul.f32 %v1965_v22, %v241_v27  ;;  %v790_v45 = vadd.f32 %v1946_v14, %v512_v32  ;;  %v1055_v27 = vld [vmem:[%s3999_s3 + $0x708] sm:$0xff] }
  0xfd   :  { %1812 = vst [vmem:[#allocation2 + $0x6b0] sm:$0xff] %v1556_v30  ;;  %1813 = vst [vmem:[#allocation2 + $0x6b8] sm:$0xff] %v1557_v31  ;;  %v791_v46 = vadd.f32 %v1950_v16, %v513_v34  ;;  %v792_v47 = vadd.f32 %v1963_v21, %v514_v36  ;;  %v793_v48 = vadd.f32 %v1967_v23, %v515_v37  ;;  %v1056_v30 = vld [vmem:[%s3999_s3 + $0x710] sm:$0xff]  ;;  %v1057_v31 = vld [vmem:[%s3999_s3 + $0x718] sm:$0xff] }
  0xfe   :  { %v794_v52 = vadd.f32 %v1946_v14, %v516_v40  ;;  %v795_v53 = vadd.f32 %v1950_v16, %v517_v42  ;;  %v796_v54 = vadd.f32 %v1963_v21, %v518_v43  ;;  %v797_v55 = vadd.f32 %v1967_v23, %v519_v44  ;;  %v1060_v42 = vld [vmem:[%s3999_s3 + $0x730] sm:$0xff]  ;;  %v1061_v43 = vld [vmem:[%s3999_s3 + $0x738] sm:$0xff] }
  0xff   :  { %v1302_v56 = vadd.f32 %v1046_v33, %v790_v45  ;;  %v1303_v57 = vadd.f32 %v1047_v35, %v791_v46  ;;  %v1304_v58 = vadd.f32 %v1048_v38, %v792_v47  ;;  %v1305_v59 = vadd.f32 %v1049_v39, %v793_v48  ;;  %v1058_v33 = vld [vmem:[%s3999_s3 + $0x720] sm:$0xff] }
 0x100   :  { %v1306_v63 = vadd.f32 %v1050_v41, %v794_v52  ;;  %v1307_v0 = vadd.f32 %v1051_v49, %v795_v53  ;;  %v1308_v1 = vadd.f32 %v1052_v50, %v796_v54  ;;  %v1309_v2 = vadd.f32 %v1053_v51, %v797_v55  ;;  %v1059_v41 = vld [vmem:[%s3999_s3 + $0x728] sm:$0xff]  ;;  %v250_v52 = vld [vmem:[%s3998_s2 + $0x740] sm:$0xff]  ;;  %v252_v54 = vld [vmem:[%s3998_s2 + $0x750] sm:$0xff] }
 0x101   :  { %v1558_v6 = vmax.f32 %v1302_v56, 0.0  ;;  %v1559_v7 = vmax.f32 %v1303_v57, 0.0  ;;  %v1560_v8 = vmax.f32 %v1304_v58, 0.0  ;;  %v1561_v9 = vmax.f32 %v1305_v59, 0.0  ;;  %v251_v53 = vld [vmem:[%s3998_s2 + $0x748] sm:$0xff]  ;;  %v253_v59 = vld [vmem:[%s3998_s2 + $0x758] sm:$0xff] }
 0x102   :  { %v1562_v12 = vmax.f32 %v1306_v63, 0.0  ;;  %v1563_v17 = vmax.f32 %v1307_v0, 0.0  ;;  %v1564_v18 = vmax.f32 %v1308_v1, 0.0  ;;  %v1565_v19 = vmax.f32 %v1309_v2, 0.0  ;;  %v256_v2 = vld [vmem:[%s3998_s2 + $0x770] sm:$0xff] }
 0x103   :  { %1814 = vst [vmem:[#allocation2 + $0x6c0] sm:$0xff] %v1558_v6  ;;  %1815 = vst [vmem:[#allocation2 + $0x6c8] sm:$0xff] %v1559_v7  ;;  %v520_v24 = vmul.f32 %v1944_v13, %v242_v60  ;;  %v521_v26 = vmul.f32 %v1948_v15, %v243_v61  ;;  %v522_v28 = vmul.f32 %v1961_v20, %v244_v62  ;;  %v254_v60 = vld [vmem:[%s3998_s2 + $0x760] sm:$0xff]  ;;  %v255_v61 = vld [vmem:[%s3998_s2 + $0x768] sm:$0xff] }
 0x104   :  { %1816 = vst [vmem:[#allocation2 + $0x6d0] sm:$0xff] %v1560_v8  ;;  %1817 = vst [vmem:[#allocation2 + $0x6d8] sm:$0xff] %v1561_v9  ;;  %v523_v29 = vmul.f32 %v1965_v22, %v245_v3  ;;  %v524_v32 = vmul.f32 %v1944_v13, %v246_v4  ;;  %v525_v34 = vmul.f32 %v1948_v15, %v247_v5  ;;  %v257_v3 = vld [vmem:[%s3998_s2 + $0x778] sm:$0xff]  ;;  %v1062_v9 = vld [vmem:[%s3999_s3 + $0x740] sm:$0xff] }
 0x105   :  { %1818 = vst [vmem:[#allocation2 + $0x6e0] sm:$0xff] %v1562_v12  ;;  %1819 = vst [vmem:[#allocation2 + $0x6e8] sm:$0xff] %v1563_v17  ;;  %v526_v35 = vmul.f32 %v1961_v20, %v248_v10  ;;  %v527_v36 = vmul.f32 %v1965_v22, %v249_v11  ;;  %v798_v37 = vadd.f32 %v1946_v14, %v520_v24  ;;  %v1063_v11 = vld [vmem:[%s3999_s3 + $0x748] sm:$0xff] }
 0x106   :  { %1820 = vst [vmem:[#allocation2 + $0x6f0] sm:$0xff] %v1564_v18  ;;  %1821 = vst [vmem:[#allocation2 + $0x6f8] sm:$0xff] %v1565_v19  ;;  %v799_v38 = vadd.f32 %v1950_v16, %v521_v26  ;;  %v800_v39 = vadd.f32 %v1963_v21, %v522_v28  ;;  %v801_v40 = vadd.f32 %v1967_v23, %v523_v29  ;;  %v1064_v18 = vld [vmem:[%s3999_s3 + $0x750] sm:$0xff]  ;;  %v1065_v19 = vld [vmem:[%s3999_s3 + $0x758] sm:$0xff] }
 0x107   :  { %v802_v44 = vadd.f32 %v1946_v14, %v524_v32  ;;  %v803_v45 = vadd.f32 %v1950_v16, %v525_v34  ;;  %v804_v46 = vadd.f32 %v1963_v21, %v526_v35  ;;  %v805_v47 = vadd.f32 %v1967_v23, %v527_v36  ;;  %v1068_v34 = vld [vmem:[%s3999_s3 + $0x770] sm:$0xff]  ;;  %v1069_v35 = vld [vmem:[%s3999_s3 + $0x778] sm:$0xff] }
 0x108   :  { %v1310_v48 = vadd.f32 %v1054_v25, %v798_v37  ;;  %v1311_v49 = vadd.f32 %v1055_v27, %v799_v38  ;;  %v1312_v50 = vadd.f32 %v1056_v30, %v800_v39  ;;  %v1313_v51 = vadd.f32 %v1057_v31, %v801_v40  ;;  %v1066_v25 = vld [vmem:[%s3999_s3 + $0x760] sm:$0xff] }
 0x109   :  { %v1314_v55 = vadd.f32 %v1058_v33, %v802_v44  ;;  %v1315_v56 = vadd.f32 %v1059_v41, %v803_v45  ;;  %v1316_v57 = vadd.f32 %v1060_v42, %v804_v46  ;;  %v1317_v58 = vadd.f32 %v1061_v43, %v805_v47  ;;  %v1067_v33 = vld [vmem:[%s3999_s3 + $0x768] sm:$0xff]  ;;  %v258_v44 = vld [vmem:[%s3998_s2 + $0x780] sm:$0xff]  ;;  %v260_v46 = vld [vmem:[%s3998_s2 + $0x790] sm:$0xff] }
 0x10a   :  { %v1566_v62 = vmax.f32 %v1310_v48, 0.0  ;;  %v1567_v63 = vmax.f32 %v1311_v49, 0.0  ;;  %v1568_v0 = vmax.f32 %v1312_v50, 0.0  ;;  %v1569_v1 = vmax.f32 %v1313_v51, 0.0  ;;  %v259_v45 = vld [vmem:[%s3998_s2 + $0x788] sm:$0xff]  ;;  %v261_v51 = vld [vmem:[%s3998_s2 + $0x798] sm:$0xff] }
 0x10b   :  { %v1570_v4 = vmax.f32 %v1314_v55, 0.0  ;;  %v1571_v5 = vmax.f32 %v1315_v56, 0.0  ;;  %v1572_v6 = vmax.f32 %v1316_v57, 0.0  ;;  %v1573_v7 = vmax.f32 %v1317_v58, 0.0  ;;  %v264_v58 = vld [vmem:[%s3998_s2 + $0x7b0] sm:$0xff] }
 0x10c   :  { %1822 = vst [vmem:[#allocation2 + $0x700] sm:$0xff] %v1566_v62  ;;  %1823 = vst [vmem:[#allocation2 + $0x708] sm:$0xff] %v1567_v63  ;;  %v528_v8 = vmul.f32 %v1944_v13, %v250_v52  ;;  %v529_v10 = vmul.f32 %v1948_v15, %v251_v53  ;;  %v530_v12 = vmul.f32 %v1961_v20, %v252_v54  ;;  %v262_v52 = vld [vmem:[%s3998_s2 + $0x7a0] sm:$0xff]  ;;  %v263_v53 = vld [vmem:[%s3998_s2 + $0x7a8] sm:$0xff] }
 0x10d   :  { %1824 = vst [vmem:[#allocation2 + $0x710] sm:$0xff] %v1568_v0  ;;  %1825 = vst [vmem:[#allocation2 + $0x718] sm:$0xff] %v1569_v1  ;;  %v531_v17 = vmul.f32 %v1965_v22, %v253_v59  ;;  %v532_v24 = vmul.f32 %v1944_v13, %v254_v60  ;;  %v533_v26 = vmul.f32 %v1948_v15, %v255_v61  ;;  %v265_v59 = vld [vmem:[%s3998_s2 + $0x7b8] sm:$0xff]  ;;  %v1070_v1 = vld [vmem:[%s3999_s3 + $0x780] sm:$0xff] }
 0x10e   :  { %1826 = vst [vmem:[#allocation2 + $0x720] sm:$0xff] %v1570_v4  ;;  %1827 = vst [vmem:[#allocation2 + $0x728] sm:$0xff] %v1571_v5  ;;  %v534_v27 = vmul.f32 %v1961_v20, %v256_v2  ;;  %v535_v28 = vmul.f32 %v1965_v22, %v257_v3  ;;  %v806_v29 = vadd.f32 %v1946_v14, %v528_v8  ;;  %v1071_v3 = vld [vmem:[%s3999_s3 + $0x788] sm:$0xff] }
 0x10f   :  { %1828 = vst [vmem:[#allocation2 + $0x730] sm:$0xff] %v1572_v6  ;;  %1829 = vst [vmem:[#allocation2 + $0x738] sm:$0xff] %v1573_v7  ;;  %v807_v30 = vadd.f32 %v1950_v16, %v529_v10  ;;  %v808_v31 = vadd.f32 %v1963_v21, %v530_v12  ;;  %v809_v32 = vadd.f32 %v1967_v23, %v531_v17  ;;  %v1072_v6 = vld [vmem:[%s3999_s3 + $0x790] sm:$0xff]  ;;  %v1073_v7 = vld [vmem:[%s3999_s3 + $0x798] sm:$0xff] }
 0x110   :  { %v810_v36 = vadd.f32 %v1946_v14, %v532_v24  ;;  %v811_v37 = vadd.f32 %v1950_v16, %v533_v26  ;;  %v812_v38 = vadd.f32 %v1963_v21, %v534_v27  ;;  %v813_v39 = vadd.f32 %v1967_v23, %v535_v28  ;;  %v1076_v26 = vld [vmem:[%s3999_s3 + $0x7b0] sm:$0xff]  ;;  %v1077_v27 = vld [vmem:[%s3999_s3 + $0x7b8] sm:$0xff] }
 0x111   :  { %v1318_v40 = vadd.f32 %v1062_v9, %v806_v29  ;;  %v1319_v41 = vadd.f32 %v1063_v11, %v807_v30  ;;  %v1320_v42 = vadd.f32 %v1064_v18, %v808_v31  ;;  %v1321_v43 = vadd.f32 %v1065_v19, %v809_v32  ;;  %v1074_v9 = vld [vmem:[%s3999_s3 + $0x7a0] sm:$0xff] }
 0x112   :  { %v1322_v47 = vadd.f32 %v1066_v25, %v810_v36  ;;  %v1323_v48 = vadd.f32 %v1067_v33, %v811_v37  ;;  %v1324_v49 = vadd.f32 %v1068_v34, %v812_v38  ;;  %v1325_v50 = vadd.f32 %v1069_v35, %v813_v39  ;;  %v1075_v25 = vld [vmem:[%s3999_s3 + $0x7a8] sm:$0xff]  ;;  %v266_v36 = vld [vmem:[%s3998_s2 + $0x7c0] sm:$0xff]  ;;  %v268_v38 = vld [vmem:[%s3998_s2 + $0x7d0] sm:$0xff] }
 0x113   :  { %v1574_v54 = vmax.f32 %v1318_v40, 0.0  ;;  %v1575_v55 = vmax.f32 %v1319_v41, 0.0  ;;  %v1576_v56 = vmax.f32 %v1320_v42, 0.0  ;;  %v1577_v57 = vmax.f32 %v1321_v43, 0.0  ;;  %v267_v37 = vld [vmem:[%s3998_s2 + $0x7c8] sm:$0xff]  ;;  %v269_v43 = vld [vmem:[%s3998_s2 + $0x7d8] sm:$0xff] }
 0x114   :  { %v1578_v60 = vmax.f32 %v1322_v47, 0.0  ;;  %v1579_v61 = vmax.f32 %v1323_v48, 0.0  ;;  %v1580_v62 = vmax.f32 %v1324_v49, 0.0  ;;  %v1581_v63 = vmax.f32 %v1325_v50, 0.0  ;;  %v272_v50 = vld [vmem:[%s3998_s2 + $0x7f0] sm:$0xff] }
 0x115   :  { %1830 = vst [vmem:[#allocation2 + $0x740] sm:$0xff] %v1574_v54  ;;  %1831 = vst [vmem:[#allocation2 + $0x748] sm:$0xff] %v1575_v55  ;;  %v536_v0 = vmul.f32 %v1944_v13, %v258_v44  ;;  %v537_v2 = vmul.f32 %v1948_v15, %v259_v45  ;;  %v538_v4 = vmul.f32 %v1961_v20, %v260_v46  ;;  %v270_v44 = vld [vmem:[%s3998_s2 + $0x7e0] sm:$0xff]  ;;  %v271_v45 = vld [vmem:[%s3998_s2 + $0x7e8] sm:$0xff] }
 0x116   :  { %1832 = vst [vmem:[#allocation2 + $0x750] sm:$0xff] %v1576_v56  ;;  %1833 = vst [vmem:[#allocation2 + $0x758] sm:$0xff] %v1577_v57  ;;  %v539_v5 = vmul.f32 %v1965_v22, %v261_v51  ;;  %v540_v8 = vmul.f32 %v1944_v13, %v262_v52  ;;  %v541_v10 = vmul.f32 %v1948_v15, %v263_v53  ;;  %v273_v51 = vld [vmem:[%s3998_s2 + $0x7f8] sm:$0xff]  ;;  %v1078_v57 = vld [vmem:[%s3999_s3 + $0x7c0] sm:$0xff] }
 0x117   :  { %1834 = vst [vmem:[#allocation2 + $0x760] sm:$0xff] %v1578_v60  ;;  %1835 = vst [vmem:[#allocation2 + $0x768] sm:$0xff] %v1579_v61  ;;  %v542_v11 = vmul.f32 %v1961_v20, %v264_v58  ;;  %v543_v12 = vmul.f32 %v1965_v22, %v265_v59  ;;  %v814_v17 = vadd.f32 %v1946_v14, %v536_v0  ;;  %v1079_v59 = vld [vmem:[%s3999_s3 + $0x7c8] sm:$0xff] }
 0x118   :  { %1836 = vst [vmem:[#allocation2 + $0x770] sm:$0xff] %v1580_v62  ;;  %1837 = vst [vmem:[#allocation2 + $0x778] sm:$0xff] %v1581_v63  ;;  %v815_v18 = vadd.f32 %v1950_v16, %v537_v2  ;;  %v816_v19 = vadd.f32 %v1963_v21, %v538_v4  ;;  %v817_v24 = vadd.f32 %v1967_v23, %v539_v5  ;;  %v1080_v62 = vld [vmem:[%s3999_s3 + $0x7d0] sm:$0xff]  ;;  %v1081_v63 = vld [vmem:[%s3999_s3 + $0x7d8] sm:$0xff] }
 0x119   :  { %v818_v28 = vadd.f32 %v1946_v14, %v540_v8  ;;  %v819_v29 = vadd.f32 %v1950_v16, %v541_v10  ;;  %v820_v30 = vadd.f32 %v1963_v21, %v542_v11  ;;  %v821_v31 = vadd.f32 %v1967_v23, %v543_v12 }
 0x11a   :  { %v1326_v32 = vadd.f32 %v1070_v1, %v814_v17  ;;  %v1327_v33 = vadd.f32 %v1071_v3, %v815_v18  ;;  %v1328_v34 = vadd.f32 %v1072_v6, %v816_v19  ;;  %v1329_v35 = vadd.f32 %v1073_v7, %v817_v24  ;;  %v1082_v1 = vld [vmem:[%s3999_s3 + $0x7e0] sm:$0xff] }
 0x11b   :  { %v1330_v39 = vadd.f32 %v1074_v9, %v818_v28  ;;  %v1331_v40 = vadd.f32 %v1075_v25, %v819_v29  ;;  %v1332_v41 = vadd.f32 %v1076_v26, %v820_v30  ;;  %v1333_v42 = vadd.f32 %v1077_v27, %v821_v31 }
 0x11c   :  { %v1582_v46 = vmax.f32 %v1326_v32, 0.0  ;;  %v1583_v47 = vmax.f32 %v1327_v33, 0.0  ;;  %v1584_v48 = vmax.f32 %v1328_v34, 0.0  ;;  %v1585_v49 = vmax.f32 %v1329_v35, 0.0 }
 0x11d   :  { %v1586_v52 = vmax.f32 %v1330_v39, 0.0  ;;  %v1587_v53 = vmax.f32 %v1331_v40, 0.0  ;;  %v1588_v54 = vmax.f32 %v1332_v41, 0.0  ;;  %v1589_v55 = vmax.f32 %v1333_v42, 0.0 }
 0x11e   :  { %1838 = vst [vmem:[#allocation2 + $0x780] sm:$0xff] %v1582_v46  ;;  %1839 = vst [vmem:[#allocation2 + $0x788] sm:$0xff] %v1583_v47  ;;  %v544_v56 = vmul.f32 %v1944_v13, %v266_v36  ;;  %v545_v58 = vmul.f32 %v1948_v15, %v267_v37  ;;  %v546_v60 = vmul.f32 %v1961_v20, %v268_v38 }
 0x11f   :  { %1840 = vst [vmem:[#allocation2 + $0x790] sm:$0xff] %v1584_v48  ;;  %1841 = vst [vmem:[#allocation2 + $0x798] sm:$0xff] %v1585_v49  ;;  %v547_v61 = vmul.f32 %v1965_v22, %v269_v43  ;;  %v548_v0 = vmul.f32 %v1944_v13, %v270_v44  ;;  %v549_v2 = vmul.f32 %v1948_v15, %v271_v45  ;;  %v1083_v13 = vld [vmem:[%s3999_s3 + $0x7e8] sm:$0xff]  ;;  %v1084_v15 = vld [vmem:[%s3999_s3 + $0x7f0] sm:$0xff] }
 0x120   :  { %1842 = vst [vmem:[#allocation2 + $0x7a0] sm:$0xff] %v1586_v52  ;;  %1843 = vst [vmem:[#allocation2 + $0x7a8] sm:$0xff] %v1587_v53  ;;  %v550_v3 = vmul.f32 %v1961_v20, %v272_v50  ;;  %v551_v4 = vmul.f32 %v1965_v22, %v273_v51  ;;  %v822_v5 = vadd.f32 %v1946_v14, %v544_v56  ;;  %v1085_v20 = vld [vmem:[%s3999_s3 + $0x7f8] sm:$0xff]  ;;  %s1873_s3 = scalar_lea.vmem %s1860_s7, 32768 }
 0x121   :  { %1844 = vst [vmem:[#allocation2 + $0x7b0] sm:$0xff] %v1588_v54  ;;  %1845 = vst [vmem:[#allocation2 + $0x7b8] sm:$0xff] %v1589_v55  ;;  %v823_v6 = vadd.f32 %v1950_v16, %v545_v58  ;;  %v824_v7 = vadd.f32 %v1963_v21, %v546_v60  ;;  %v825_v8 = vadd.f32 %v1967_v23, %v547_v61  ;;  %p1874_p0 = scmp.ne.s32.totalorder %s1860_s7, %s1873_s3  ;;  %p1879_p2 = scmp.lt.s32.totalorder %s1873_s3, %s1873_s3 }
 0x122   :  { %v826_v22 = vadd.f32 %v1946_v14, %v548_v0  ;;  %v827_v9 = vadd.f32 %v1950_v16, %v549_v2  ;;  %v828_v10 = vadd.f32 %v1963_v21, %v550_v3  ;;  %v829_v11 = vadd.f32 %v1967_v23, %v551_v4 }
 0x123   :  { %v1334_v12 = vadd.f32 %v1078_v57, %v822_v5  ;;  %v1335_v17 = vadd.f32 %v1079_v59, %v823_v6  ;;  %v1336_v18 = vadd.f32 %v1080_v62, %v824_v7  ;;  %v1337_v19 = vadd.f32 %v1081_v63, %v825_v8  ;;  %p1880_p3 = por %p1879_p2, %p1878_p1 }
 0x124   :  { %v1338_v24 = vadd.f32 %v1082_v1, %v826_v22  ;;  %v1339_v25 = vadd.f32 %v1083_v13, %v827_v9  ;;  %v1340_v26 = vadd.f32 %v1084_v15, %v828_v10  ;;  %v1341_v27 = vadd.f32 %v1085_v20, %v829_v11 }
 0x125   :  { %v1590_v28 = vmax.f32 %v1334_v12, 0.0  ;;  %v1591_v29 = vmax.f32 %v1335_v17, 0.0  ;;  %v1592_v30 = vmax.f32 %v1336_v18, 0.0  ;;  %v1593_v14 = vmax.f32 %v1337_v19, 0.0  ;;  %p1881_p4 = pnand %p1880_p3, %p1874_p0 }
 0x126   :  { %v1594_v31 = vmax.f32 %v1338_v24, 0.0  ;;  %v1595_v16 = vmax.f32 %v1339_v25, 0.0  ;;  %v1596_v32 = vmax.f32 %v1340_v26, 0.0  ;;  %v1597_v21 = vmax.f32 %v1341_v27, 0.0 }
 0x127   :  { %1846 = vst [vmem:[#allocation2 + $0x7c0] sm:$0xff] %v1590_v28  ;;  %1847 = vst [vmem:[#allocation2 + $0x7c8] sm:$0xff] %v1591_v29 }
 0x128   :  { %1848 = vst [vmem:[#allocation2 + $0x7d0] sm:$0xff] %v1592_v30  ;;  %1849 = vst [vmem:[#allocation2 + $0x7d8] sm:$0xff] %v1593_v14 }
 0x129   :  { %1850 = vst [vmem:[#allocation2 + $0x7e0] sm:$0xff] %v1594_v31  ;;  %1851 = vst [vmem:[#allocation2 + $0x7e8] sm:$0xff] %v1595_v16 }
 0x12a   :  { %1852 = vst [vmem:[#allocation2 + $0x7f0] sm:$0xff] %v1596_v32  ;;  %1853 = vst [vmem:[#allocation2 + $0x7f8] sm:$0xff] %v1597_v21 }
 0x12b   :  { %1884 = shalt.err (!%p1881_p4)
}
 0x12c   :  { %s1896_s8 = smov 512   ;;  %s1897_s9 = smov 32  }
 0x12d   :  { %1865 = dma.vmem_to_hbm [thread:$0]  %s1860_s7, 32768, %s4000_s4, [#allocation3], %s1896_s8, %s1896_s8, %s1897_s9  }
 0x12e   :  { %1893 = dma.done.wait [#allocation3], 32768  }
 0x12f   :  { %1894 = vsyncadd [#allocation3], 4294934528 }
 0x130   :  { %1869 = vsyncpa [#allocation3], 1 }

// kernel: bottleneck_forward.5
= control target key start
LH: loop header
LB: loop body
LE: loop exit
PB: predicated region body
PF: predicated region fallthrough
CT: control target
= control target key end

     0   :  { %12 = vsyncpa [#allocation5], 0  ;;  %s3378_s21 = smov 0   ;;  %s3380_s22 = smov 0   ;;  %s4526_s0 = inlined_call_operand.vmem [shape: f32[1,128], index: 0, kind: input, shape index: {}]   ;;  %s4527_s1 = inlined_call_operand.vmem [shape: f32[1,128], index: 1, kind: input, shape index: {}]   ;;  %s4528_s2 = inlined_call_operand.vmem [shape: f32[2,16,16,128], index: 2, kind: input, shape index: {}]   ;;  %s4529_s3 = inlined_call_operand.hbm [shape: f32[1152,128], index: 3, kind: input, shape index: {}]   ;;  %s4530_s4 = inlined_call_operand.vmem [shape: f32[2,16,16,128], index: 4, kind: output, shape index: {0}]   ;;  %s4531_s5 = inlined_call_operand.vmem [shape: f32[2,1,1,128], index: 5, kind: output, shape index: {1}]   ;;  %s4532_s6 = inlined_call_operand.vmem [shape: f32[2,1,1,128], index: 6, kind: output, shape index: {2}]  }
   0x1   :  { %s3382_s23 = smov 0  }
   0x2 LB: > { %s3043_s24 = sadd.s32 4294967295, %s3337_s23   ;;  %s30_s25 = sadd.s32 1, %s3333_s22  ;;  %s3337_s23 = sphi %s3382_s23, %s18_s23   ;;  %s3333_s22 = sphi %s3380_s22, %s4576_s22   ;;  %s3329_s21 = sphi %s3378_s21, %s4575_s21  }
   0x3   : > { %p32_p0 = scmp.ge.s32.totalorder %s30_s25, 2  ;;  %p3045_p1 = scmp.ge.s32.totalorder %s3337_s23, 1 }
   0x4   : > { %p208_p2 = scmp.lt.s32.totalorder %s3337_s23, 3  ;;  %p3403_p4 = scmp.eq.s32.totalorder %s3043_s24, 0 }
   0x5   : > { %s4578_s25 = smov (%p32_p0, %s30_s25), 0  ;;  %s3339_s28 = smov [#allocation4]  }
   0x6   : > { %p3399_p3 = pnand %p3045_p1, %p208_p2  ;;  %s226_s29 = sshll.u32 %s3339_s28, 4  ;;  %s227_s29 = int_to_ptr.vmem [resolvable:$true] %s226_s29 }
   0x7   : > { %s3296_s30 = scalar_lea.vmem %s227_s29, 18432  ;;  %p3304_p11 = scmp.lt.s32.totalorder %s227_s29, %s227_s29 }
   0x8   : > { %p3228_p5 = pneg %p3399_p3  ;;  %p3297_p8 = scmp.ne.s32.totalorder %s227_s29, %s3296_s30 }
   0x9   : > { %p3305_p12 = scmp.lt.s32.totalorder %s3296_s30, %s3296_s30 }
   0xa   : > { %p3229_p6 = pnand %p3403_p4, %p3228_p5 }
   0xb   : > { %p3306_p13 = por %p3305_p12, %p3304_p11 }
   0xc   : > { %p3287_p7 = pneg %p3229_p6 }
   0xe   : > { %p3299_p9 = pnand %p3297_p8, %p3287_p7 }
  0x10   : > { %p3300_p10 = pneg %p3299_p9 }
  0x12   : > { %p3307_p0 = pnand %p3306_p13, %p3300_p10 }
  0x14   : > { %3310 = shalt.err (!%p3307_p0)
}
  0x15   : > { %s3340_s7 = smov 128   ;;  %s3341_s8 = smov 8  }
  0x16   : > { %3231 = dma.hbm_to_vmem [thread:$0]  (!%p3229_p6), %s4529_s3, 18432, %s227_s29, [#allocation5], %s3340_s7, %s3340_s7, %s3341_s8  }
  0x17   : > { %250 = sbr.rel (%p3399_p3) target bundleno = 627 (0x273), region = 36 }
  0x1c   : > { %3324 = dma.done.wait (%p3403_p4), [#allocation5], 18432  }
  0x1d   : > { %3326 = vsyncadd (%p3403_p4), [#allocation5], 4294948864  ;;  %v3342_v0 = vmov 0.0   ;;  %v1472_v1 = vld [vmem:[#allocation4 + $0x78] sm:$0xff]  ;;  %v1471_v3 = vld [vmem:[#allocation4 + $0x70] sm:$0xff]  ;;  %p297_p1 = scmp.lt.s32.totalorder %s3329_s21, 1 }
  0x1e   : > { %1601 = vmatprep.subr.mxu0 %v3342_v0  ;;  %328 = vst [vmem:[#allocation2] sm:$0xff] %v3342_v0  ;;  %329 = vst [vmem:[#allocation2 + $0x8] sm:$0xff] %v3342_v0  ;;  %1826 = vmatprep.subr.mxu1 %v3342_v0  ;;  %v1504_v2 = vld [vmem:[#allocation4 + $0x178] sm:$0xff]  ;;  %v1503_v4 = vld [vmem:[#allocation4 + $0x170] sm:$0xff] }
  0x1f   : > { %330 = vst [vmem:[#allocation2 + $0x10] sm:$0xff] %v3342_v0  ;;  %331 = vst [vmem:[#allocation2 + $0x18] sm:$0xff] %v3342_v0  ;;  %1602 = vmatpush1.msra.mxu0 %v1472_v1  ;;  %1827 = vmatpush1.msra.mxu1 %v1504_v2  ;;  %v1470_v5 = vld [vmem:[#allocation4 + $0x68] sm:$0xff]  ;;  %v1469_v7 = vld [vmem:[#allocation4 + $0x60] sm:$0xff]  ;;  %s4580_s21 = smov (!%p297_p1, %s3329_s21), 1 }
  0x20   : > { %332 = vst [vmem:[#allocation2 + $0x20] sm:$0xff] %v3342_v0  ;;  %333 = vst [vmem:[#allocation2 + $0x28] sm:$0xff] %v3342_v0  ;;  %1603 = vmatprep.subr.mxu0 %v3342_v0  ;;  %1828 = vmatprep.subr.mxu1 %v3342_v0  ;;  %v1502_v6 = vld [vmem:[#allocation4 + $0x168] sm:$0xff]  ;;  %v1501_v8 = vld [vmem:[#allocation4 + $0x160] sm:$0xff]  ;;  %s3062_s11 = sshll.u32 %s4580_s21, 8  ;;  %s318_s28 = scalar_lea.vmem %s4531_s5, %s4580_s21 }
  0x21   : > { %334 = vst [vmem:[#allocation2 + $0x30] sm:$0xff] %v3342_v0  ;;  %335 = vst [vmem:[#allocation2 + $0x38] sm:$0xff] %v3342_v0  ;;  %1604 = vmatpush1.msra.mxu0 %v1471_v3  ;;  %1829 = vmatpush1.msra.mxu1 %v1503_v4  ;;  %v1468_v9 = vld [vmem:[#allocation4 + $0x58] sm:$0xff]  ;;  %v1467_v11 = vld [vmem:[#allocation4 + $0x50] sm:$0xff]  ;;  %s3504_s14 = scalar_lea.vmem %s4528_s2, %s3062_s11  ;;  %s4331_s24 = scalar_lea.vmem %s4530_s4, %s3062_s11 }
  0x22   : > { %336 = vst [vmem:[#allocation2 + $0x40] sm:$0xff] %v3342_v0  ;;  %337 = vst [vmem:[#allocation2 + $0x48] sm:$0xff] %v3342_v0  ;;  %1605 = vmatprep.subr.mxu0 %v3342_v0  ;;  %1830 = vmatprep.subr.mxu1 %v3342_v0  ;;  %v1500_v10 = vld [vmem:[#allocation4 + $0x158] sm:$0xff]  ;;  %v1499_v12 = vld [vmem:[#allocation4 + $0x150] sm:$0xff]  ;;  %s324_s7 = scalar_lea.vmem %s4532_s6, %s4580_s21 }
  0x23   : > { %338 = vst [vmem:[#allocation2 + $0x50] sm:$0xff] %v3342_v0  ;;  %339 = vst [vmem:[#allocation2 + $0x58] sm:$0xff] %v3342_v0  ;;  %1606 = vmatpush1.msra.mxu0 %v1470_v5  ;;  %1831 = vmatpush1.msra.mxu1 %v1502_v6  ;;  %v1466_v13 = vld [vmem:[#allocation4 + $0x48] sm:$0xff]  ;;  %v1465_v15 = vld [vmem:[#allocation4 + $0x40] sm:$0xff] }
  0x24   : > { %340 = vst [vmem:[#allocation2 + $0x60] sm:$0xff] %v3342_v0  ;;  %341 = vst [vmem:[#allocation2 + $0x68] sm:$0xff] %v3342_v0  ;;  %1607 = vmatprep.subr.mxu0 %v3342_v0  ;;  %1832 = vmatprep.subr.mxu1 %v3342_v0  ;;  %v1498_v14 = vld [vmem:[#allocation4 + $0x148] sm:$0xff]  ;;  %v1497_v16 = vld [vmem:[#allocation4 + $0x140] sm:$0xff] }
  0x25   : > { %342 = vst [vmem:[#allocation2 + $0x70] sm:$0xff] %v3342_v0  ;;  %343 = vst [vmem:[#allocation2 + $0x78] sm:$0xff] %v3342_v0  ;;  %1608 = vmatpush1.msra.mxu0 %v1469_v7  ;;  %1833 = vmatpush1.msra.mxu1 %v1501_v8  ;;  %v1464_v17 = vld [vmem:[#allocation4 + $0x38] sm:$0xff]  ;;  %v1463_v19 = vld [vmem:[#allocation4 + $0x30] sm:$0xff] }
  0x26   : > { %344 = vst [vmem:[#allocation2 + $0x80] sm:$0xff] %v3342_v0  ;;  %345 = vst [vmem:[#allocation2 + $0x88] sm:$0xff] %v3342_v0  ;;  %1609 = vmatprep.subr.mxu0 %v3342_v0  ;;  %1834 = vmatprep.subr.mxu1 %v3342_v0  ;;  %v1496_v18 = vld [vmem:[#allocation4 + $0x138] sm:$0xff]  ;;  %v1495_v20 = vld [vmem:[#allocation4 + $0x130] sm:$0xff] }
  0x27   : > { %346 = vst [vmem:[#allocation2 + $0x90] sm:$0xff] %v3342_v0  ;;  %347 = vst [vmem:[#allocation2 + $0x98] sm:$0xff] %v3342_v0  ;;  %1610 = vmatpush1.msra.mxu0 %v1468_v9  ;;  %1835 = vmatpush1.msra.mxu1 %v1500_v10  ;;  %v1462_v21 = vld [vmem:[#allocation4 + $0x28] sm:$0xff]  ;;  %v1461_v23 = vld [vmem:[#allocation4 + $0x20] sm:$0xff] }
  0x28   : > { %348 = vst [vmem:[#allocation2 + $0xa0] sm:$0xff] %v3342_v0  ;;  %349 = vst [vmem:[#allocation2 + $0xa8] sm:$0xff] %v3342_v0  ;;  %1611 = vmatprep.subr.mxu0 %v3342_v0  ;;  %1836 = vmatprep.subr.mxu1 %v3342_v0  ;;  %v1494_v22 = vld [vmem:[#allocation4 + $0x128] sm:$0xff]  ;;  %v1493_v24 = vld [vmem:[#allocation4 + $0x120] sm:$0xff] }
  0x29   : > { %350 = vst [vmem:[#allocation2 + $0xb0] sm:$0xff] %v3342_v0  ;;  %351 = vst [vmem:[#allocation2 + $0xb8] sm:$0xff] %v3342_v0  ;;  %1612 = vmatpush1.msra.mxu0 %v1467_v11  ;;  %1837 = vmatpush1.msra.mxu1 %v1499_v12  ;;  %v1460_v25 = vld [vmem:[#allocation4 + $0x18] sm:$0xff]  ;;  %v3511_v26 = vld [vmem:[%s4526_s0] ss:$0 sm:$0xff] }
  0x2a   : > { %352 = vst [vmem:[#allocation2 + $0xc0] sm:$0xff] %v3342_v0  ;;  %353 = vst [vmem:[#allocation2 + $0xc8] sm:$0xff] %v3342_v0  ;;  %1613 = vmatprep.subr.mxu0 %v3342_v0  ;;  %1838 = vmatprep.subr.mxu1 %v3342_v0  ;;  %v1492_v27 = vld [vmem:[#allocation4 + $0x118] sm:$0xff]  ;;  %v3518_v28 = vld [vmem:[%s4527_s1] ss:$0 sm:$0xff] }
  0x2b   : > { %354 = vst [vmem:[#allocation2 + $0xd0] sm:$0xff] %v3342_v0  ;;  %355 = vst [vmem:[#allocation2 + $0xd8] sm:$0xff] %v3342_v0  ;;  %1614 = vmatpush1.msra.mxu0 %v1466_v13  ;;  %1839 = vmatpush1.msra.mxu1 %v1498_v14  ;;  %v384_v29 = vld [vmem:[%s3504_s14] sm:$0xff]  ;;  %v385_v31 = vld [vmem:[%s3504_s14 + $0x8] sm:$0xff] }
  0x2c   : > { %356 = vst [vmem:[#allocation2 + $0xe0] sm:$0xff] %v3342_v0  ;;  %357 = vst [vmem:[#allocation2 + $0xe8] sm:$0xff] %v3342_v0  ;;  %1615 = vmatprep.subr.mxu0 %v3342_v0  ;;  %1840 = vmatprep.subr.mxu1 %v3342_v0  ;;  %v422_v30 = vmul.f32 %v3511_v26, %v384_v29  ;;  %v1459_v32 = vld [vmem:[#allocation4 + $0x10] sm:$0xff]  ;;  %v423_v34 = vmul.f32 %v3511_v26, %v385_v31  ;;  %v386_v35 = vld [vmem:[%s3504_s14 + $0x10] sm:$0xff] }
  0x2d   : > { %358 = vst [vmem:[#allocation2 + $0xf0] sm:$0xff] %v3342_v0  ;;  %359 = vst [vmem:[#allocation2 + $0xf8] sm:$0xff] %v3342_v0  ;;  %1616 = vmatpush1.msra.mxu0 %v1465_v15  ;;  %1841 = vmatpush1.msra.mxu1 %v1497_v16  ;;  %v1491_v33 = vld [vmem:[#allocation4 + $0x110] sm:$0xff]  ;;  %v1458_v36 = vld [vmem:[#allocation4 + $0x8] sm:$0xff]  ;;  %v424_v38 = vmul.f32 %v3511_v26, %v386_v35 }
  0x2e   : > { %360 = vst [vmem:[#allocation2 + $0x100] sm:$0xff] %v3342_v0  ;;  %361 = vst [vmem:[#allocation2 + $0x108] sm:$0xff] %v3342_v0  ;;  %1617 = vmatprep.subr.mxu0 %v3342_v0  ;;  %1842 = vmatprep.subr.mxu1 %v3342_v0  ;;  %v3528_v37 = vadd.f32 %v3518_v28, %v422_v30  ;;  %v387_v39 = vld [vmem:[%s3504_s14 + $0x18] sm:$0xff]  ;;  %v3535_v41 = vadd.f32 %v3518_v28, %v423_v34  ;;  %v388_v43 = vld [vmem:[%s3504_s14 + $0x20] sm:$0xff] }
  0x2f   : > { %362 = vst [vmem:[#allocation2 + $0x110] sm:$0xff] %v3342_v0  ;;  %363 = vst [vmem:[#allocation2 + $0x118] sm:$0xff] %v3342_v0  ;;  %1618 = vmatpush1.msra.mxu0 %v1464_v17  ;;  %1843 = vmatpush1.msra.mxu1 %v1496_v18  ;;  %v1490_v40 = vld [vmem:[#allocation4 + $0x108] sm:$0xff]  ;;  %v425_v42 = vmul.f32 %v3511_v26, %v387_v39  ;;  %v389_v44 = vld [vmem:[%s3504_s14 + $0x28] sm:$0xff]  ;;  %v3542_v47 = vadd.f32 %v3518_v28, %v424_v38 }
  0x30   : > { %364 = vst [vmem:[#allocation2 + $0x120] sm:$0xff] %v3342_v0  ;;  %365 = vst [vmem:[#allocation2 + $0x128] sm:$0xff] %v3342_v0  ;;  %1619 = vmatprep.subr.mxu0 %v3342_v0  ;;  %1844 = vmatprep.subr.mxu1 %v3342_v0  ;;  %v1457_v45 = vld [vmem:[#allocation4] sm:$0xff]  ;;  %v492_v46 = vmax.f32 %v3528_v37, 0.0  ;;  %v426_v48 = vmul.f32 %v3511_v26, %v388_v43  ;;  %v427_v49 = vmul.f32 %v3511_v26, %v389_v44  ;;  %v391_v55 = vld [vmem:[%s3504_s14 + $0x38] sm:$0xff] }
  0x31   : > { %366 = vst [vmem:[#allocation2 + $0x130] sm:$0xff] %v3342_v0  ;;  %367 = vst [vmem:[#allocation2 + $0x138] sm:$0xff] %v3342_v0  ;;  %1620 = vmatpush1.msra.mxu0 %v1463_v19  ;;  %1845 = vmatpush1.msra.mxu1 %v1495_v20  ;;  %v390_v50 = vld [vmem:[%s3504_s14 + $0x30] sm:$0xff]  ;;  %v493_v52 = vmax.f32 %v3535_v41, 0.0  ;;  %v3551_v53 = vadd.f32 %v3518_v28, %v425_v42  ;;  %v392_v56 = vld [vmem:[%s3504_s14 + $0x40] sm:$0xff]  ;;  %v494_v57 = vmax.f32 %v3542_v47, 0.0 }
  0x32   : > { %368 = vst [vmem:[#allocation2 + $0x140] sm:$0xff] %v3342_v0  ;;  %369 = vst [vmem:[#allocation2 + $0x148] sm:$0xff] %v3342_v0  ;;  %1621 = vmatprep.subr.mxu0 %v3342_v0  ;;  %1846 = vmatprep.subr.mxu1 %v3342_v0  ;;  %v1489_v51 = vld [vmem:[#allocation4 + $0x100] sm:$0xff]  ;;  %v428_v54 = vmul.f32 %v3511_v26, %v390_v50  ;;  %v3560_v58 = vadd.f32 %v3518_v28, %v426_v48  ;;  %v393_v61 = vld [vmem:[%s3504_s14 + $0x48] sm:$0xff] }
  0x33   : > { %370 = vst [vmem:[#allocation2 + $0x150] sm:$0xff] %v3342_v0  ;;  %371 = vst [vmem:[#allocation2 + $0x158] sm:$0xff] %v3342_v0  ;;  %1622 = vmatpush1.msra.mxu0 %v1462_v21  ;;  %1847 = vmatpush1.msra.mxu1 %v1494_v22  ;;  %v3563_v59 = vadd.f32 %v3518_v28, %v427_v49  ;;  %v429_v60 = vmul.f32 %v3511_v26, %v391_v55  ;;  %v1488_v62 = vld [vmem:[#allocation4 + $0xf8] sm:$0xff]  ;;  %v495_v1 = vmax.f32 %v3551_v53, 0.0  ;;  %v394_v5 = vld [vmem:[%s3504_s14 + $0x50] sm:$0xff] }
  0x34   : > { %372 = vst [vmem:[#allocation2 + $0x160] sm:$0xff] %v3342_v0  ;;  %373 = vst [vmem:[#allocation2 + $0x168] sm:$0xff] %v3342_v0  ;;  %1623 = vmatprep.subr.mxu0 %v3342_v0  ;;  %1848 = vmatprep.subr.mxu1 %v3342_v0  ;;  %v1520_v63 = vld [vmem:[#allocation4 + $0x1f8] sm:$0xff]  ;;  %v3573_v2 = vadd.f32 %v3518_v28, %v428_v54  ;;  %v430_v3 = vmul.f32 %v3511_v26, %v392_v56  ;;  %v496_v6 = vmax.f32 %v3560_v58, 0.0  ;;  %v395_v10 = vld [vmem:[%s3504_s14 + $0x58] sm:$0xff] }
  0x35   : > { %374 = vst [vmem:[#allocation2 + $0x170] sm:$0xff] %v3342_v0  ;;  %375 = vst [vmem:[#allocation2 + $0x178] sm:$0xff] %v3342_v0  ;;  %1624 = vmatpush1.msra.mxu0 %v1461_v23  ;;  %1849 = vmatpush1.msra.mxu1 %v1493_v24  ;;  %v431_v4 = vmul.f32 %v3511_v26, %v393_v61  ;;  %v497_v7 = vmax.f32 %v3563_v59, 0.0  ;;  %v3583_v8 = vadd.f32 %v3518_v28, %v429_v60  ;;  %v1487_v11 = vld [vmem:[#allocation4 + $0xf0] sm:$0xff]  ;;  %v397_v21 = vld [vmem:[%s3504_s14 + $0x68] sm:$0xff] }
  0x36   : > { %376 = vst [vmem:[#allocation2 + $0x180] sm:$0xff] %v3342_v0  ;;  %377 = vst [vmem:[#allocation2 + $0x188] sm:$0xff] %v3342_v0  ;;  %1625 = vmatprep.subr.mxu0 %v3342_v0  ;;  %1850 = vmatprep.subr.mxu1 %v3342_v0  ;;  %v432_v9 = vmul.f32 %v3511_v26, %v394_v5  ;;  %v1519_v12 = vld [vmem:[#allocation4 + $0x1f0] sm:$0xff]  ;;  %v498_v13 = vmax.f32 %v3573_v2, 0.0  ;;  %v3593_v14 = vadd.f32 %v3518_v28, %v430_v3  ;;  %v1486_v22 = vld [vmem:[#allocation4 + $0xe8] sm:$0xff] }
  0x37   : > { %378 = vst [vmem:[#allocation2 + $0x190] sm:$0xff] %v3342_v0  ;;  %379 = vst [vmem:[#allocation2 + $0x198] sm:$0xff] %v3342_v0  ;;  %1626 = vmatpush1.msra.mxu0 %v1460_v25  ;;  %1851 = vmatpush1.msra.mxu1 %v1492_v27  ;;  %v3596_v15 = vadd.f32 %v3518_v28, %v431_v4  ;;  %v433_v16 = vmul.f32 %v3511_v26, %v395_v10  ;;  %v396_v17 = vld [vmem:[%s3504_s14 + $0x60] sm:$0xff]  ;;  %v499_v18 = vmax.f32 %v3583_v8, 0.0  ;;  %v1518_v23 = vld [vmem:[#allocation4 + $0x1e8] sm:$0xff] }
  0x38   : > { %380 = vst [vmem:[#allocation2 + $0x1a0] sm:$0xff] %v3342_v0  ;;  %381 = vst [vmem:[#allocation2 + $0x1a8] sm:$0xff] %v3342_v0  ;;  %1627 = vmatprep.subr.mxu0 %v3342_v0  ;;  %1852 = vmatprep.subr.mxu1 %v3342_v0  ;;  %v3606_v19 = vadd.f32 %v3518_v28, %v432_v9  ;;  %v434_v20 = vmul.f32 %v3511_v26, %v396_v17  ;;  %v500_v24 = vmax.f32 %v3593_v14, 0.0  ;;  %v398_v30 = vld [vmem:[%s3504_s14 + $0x70] sm:$0xff]  ;;  %v399_v34 = vld [vmem:[%s3504_s14 + $0x78] sm:$0xff] }
  0x39   : > { %1628 = vmatpush1.msra.mxu0 %v1459_v32  ;;  %1853 = vmatpush1.msra.mxu1 %v1491_v33  ;;  %525 = vst [vmem:[#allocation2 + $0x19] sm:$0xff] %v492_v46  ;;  %526 = vst [vmem:[#allocation2 + $0x21] sm:$0xff] %v493_v52  ;;  %v501_v25 = vmax.f32 %v3596_v15, 0.0  ;;  %v3617_v27 = vadd.f32 %v3518_v28, %v433_v16  ;;  %v435_v29 = vmul.f32 %v3511_v26, %v397_v21  ;;  %v1485_v35 = vld [vmem:[#allocation4 + $0xe0] sm:$0xff]  ;;  %v1484_v44 = vld [vmem:[#allocation4 + $0xd8] sm:$0xff] }
  0x3a   : > { %1629 = vmatprep.subr.mxu0 %v3342_v0  ;;  %1854 = vmatprep.subr.mxu1 %v3342_v0  ;;  %527 = vst [vmem:[#allocation2 + $0x31] sm:$0xff] %v494_v57  ;;  %528 = vst [vmem:[#allocation2 + $0x39] sm:$0xff] %v495_v1  ;;  %v502_v31 = vmax.f32 %v3606_v19, 0.0  ;;  %v3625_v32 = vadd.f32 %v3518_v28, %v434_v20  ;;  %v436_v33 = vmul.f32 %v3511_v26, %v398_v30  ;;  %v400_v50 = vld [vmem:[%s3504_s14 + $0x80] sm:$0xff]  ;;  %v1481_v4 = vld [vmem:[#allocation4 + $0xc0] sm:$0xff] }
  0x3b   : > { %1630 = vmatpush1.msra.mxu0 %v1458_v36  ;;  %1855 = vmatpush1.msra.mxu1 %v1490_v40  ;;  %529 = vst [vmem:[#allocation2 + $0x49] sm:$0xff] %v496_v6  ;;  %530 = vst [vmem:[#allocation2 + $0x51] sm:$0xff] %v497_v7  ;;  %v1517_v36 = vld [vmem:[#allocation4 + $0x1e0] sm:$0xff]  ;;  %v503_v38 = vmax.f32 %v3617_v27, 0.0  ;;  %v3637_v39 = vadd.f32 %v3518_v28, %v435_v29  ;;  %v437_v40 = vmul.f32 %v3511_v26, %v399_v34  ;;  %v1483_v55 = vld [vmem:[#allocation4 + $0xd0] sm:$0xff] }
  0x3c   : > { %1631 = vmatprep.subr.mxu0 %v3342_v0  ;;  %1856 = vmatprep.subr.mxu1 %v3342_v0  ;;  %531 = vst [vmem:[#allocation2 + $0x61] sm:$0xff] %v498_v13  ;;  %532 = vst [vmem:[#allocation2 + $0x69] sm:$0xff] %v499_v18  ;;  %v504_v42 = vmax.f32 %v3625_v32, 0.0  ;;  %v3644_v43 = vadd.f32 %v3518_v28, %v436_v33  ;;  %v438_v54 = vmul.f32 %v3511_v26, %v400_v50  ;;  %v1515_v56 = vld [vmem:[#allocation4 + $0x1d0] sm:$0xff]  ;;  %v1513_v5 = vld [vmem:[#allocation4 + $0x1c0] sm:$0xff] }
  0x3d   : > { %1632 = vmatpush1.msra.mxu0 %v1457_v45  ;;  %1857 = vmatpush1.msra.mxu1 %v1489_v51  ;;  %533 = vst [vmem:[#allocation2 + $0x79] sm:$0xff] %v500_v24  ;;  %534 = vst [vmem:[#allocation2 + $0x81] sm:$0xff] %v501_v25  ;;  %v1516_v45 = vld [vmem:[#allocation4 + $0x1d8] sm:$0xff]  ;;  %v505_v48 = vmax.f32 %v3637_v39, 0.0  ;;  %v3652_v49 = vadd.f32 %v3518_v28, %v437_v40  ;;  %v1479_v17 = vld [vmem:[#allocation4 + $0xb0] sm:$0xff] }
  0x3e   : > { %1633 = vmatprep.subr.mxu0 %v3342_v0  ;;  %1858 = vmatprep.subr.mxu1 %v3342_v0  ;;  %535 = vst [vmem:[#allocation2 + $0x91] sm:$0xff] %v502_v31  ;;  %536 = vst [vmem:[#allocation2 + $0x99] sm:$0xff] %v503_v38  ;;  %v506_v51 = vmax.f32 %v3644_v43, 0.0  ;;  %v3667_v61 = vadd.f32 %v3518_v28, %v438_v54  ;;  %v401_v9 = vld [vmem:[%s3504_s14 + $0x88] sm:$0xff]  ;;  %v1511_v20 = vld [vmem:[#allocation4 + $0x1b0] sm:$0xff] }
  0x3f   : > { %1634 = vmatpush2.msra.mxu0 %v1488_v62  ;;  %1859 = vmatpush2.msra.mxu1 %v1520_v63  ;;  %537 = vst [vmem:[#allocation2 + $0xa9] sm:$0xff] %v504_v42  ;;  %538 = vst [vmem:[#allocation2 + $0xb1] sm:$0xff] %v505_v48  ;;  %v507_v60 = vmax.f32 %v3652_v49, 0.0  ;;  %v1482_v62 = vld [vmem:[#allocation4 + $0xc8] sm:$0xff]  ;;  %v439_v10 = vmul.f32 %v3511_v26, %v401_v9  ;;  %v402_v21 = vld [vmem:[%s3504_s14 + $0x90] sm:$0xff] }
  0x40   : > { %1635 = vmatprep.subr.mxu0 %v3342_v0  ;;  %1860 = vmatprep.subr.mxu1 %v3342_v0  ;;  %539 = vst [vmem:[#allocation2 + $0xc1] sm:$0xff] %v506_v51  ;;  %v1514_v63 = vld [vmem:[#allocation4 + $0x1c8] sm:$0xff]  ;;  %v508_v3 = vmax.f32 %v3667_v61, 0.0  ;;  %v1477_v40 = vld [vmem:[#allocation4 + $0xa0] sm:$0xff]  ;;  %v405_v50 = vld [vmem:[%s3504_s14 + $0xa8] sm:$0xff] }
  0x41   : > { %1636 = vmatpush2.msra.mxu0 %v1487_v11  ;;  %1861 = vmatpush2.msra.mxu1 %v1519_v12  ;;  %540 = vst [vmem:[#allocation2 + $0xc9] sm:$0xff] %v507_v60  ;;  %v1480_v11 = vld [vmem:[#allocation4 + $0xb8] sm:$0xff]  ;;  %v3683_v16 = vadd.f32 %v3518_v28, %v439_v10  ;;  %v1478_v29 = vld [vmem:[#allocation4 + $0xa8] sm:$0xff]  ;;  %v1533_v37 = vld [vmem:[#allocation4 + $0x260] sm:$0xff] }
  0x42   : > { %1637 = vmatprep.subr.mxu0 %v3342_v0  ;;  %1862 = vmatprep.subr.mxu1 %v3342_v0  ;;  %541 = vst [vmem:[#allocation2 + $0xd9] sm:$0xff] %v508_v3  ;;  %v1512_v12 = vld [vmem:[#allocation4 + $0x1b8] sm:$0xff]  ;;  %v1510_v30 = vld [vmem:[#allocation4 + $0x1a8] sm:$0xff]  ;;  %v3840_v2 = vld [vmem:[#allocation2] sm:$0xff] }
  0x43   : > { %1638 = vmatpush2.msra.mxu0 %v1486_v22  ;;  %1863 = vmatpush2.msra.mxu1 %v1518_v23  ;;  %v4544_v22 = vmax.f32 %v3683_v16, 0.0  ;;  %v440_v23 = vmul.f32 %v3511_v26, %v402_v21  ;;  %v403_v33 = vld [vmem:[%s3504_s14 + $0x98] sm:$0xff]  ;;  %v1475_v21 = vld [vmem:[#allocation4 + $0x90] sm:$0xff]  ;;  %v791_v53 = vld [vmem:[#allocation2 + $0x68] sm:$0xff]  ;;  %v4548_v61 = vmax.f32 %v3683_v16, 0.0 }
  0x44   : > { %1639 = vmatprep.subr.mxu0 %v3342_v0  ;;  %1864 = vmatprep.subr.mxu1 %v3342_v0  ;;  %v407_v10 = vld [vmem:[%s3504_s14 + $0xb8] sm:$0xff]  ;;  %v793_v59 = vld [vmem:[#allocation2 + $0x80] sm:$0xff] }
  0x45   : > { %1640 = vmatpush2.msra.mxu0 %v1485_v35  ;;  %1865 = vmatpush2.msra.mxu1 %v1517_v36  ;;  %542 = vst [vmem:[#allocation2 + $0xe1] sm:$0xff] %v4544_v22  ;;  %v3696_v34 = vadd.f32 %v3518_v28, %v440_v23  ;;  %v441_v35 = vmul.f32 %v3511_v26, %v403_v33  ;;  %v404_v36 = vld [vmem:[%s3504_s14 + $0xa0] sm:$0xff]  ;;  %v724_v41 = vld [vmem:[#allocation2 + $0x32] sm:$0xff] }
  0x46   : > { %1641 = vmatprep.subr.mxu0 %v3342_v0  ;;  %1866 = vmatprep.subr.mxu1 %v3342_v0  ;;  %v1507_v23 = vld [vmem:[#allocation4 + $0x190] sm:$0xff]  ;;  %v792_v58 = vld [vmem:[#allocation2 + $0x78] sm:$0xff]  ;;  %v3887_v27 = vld [vmem:[#allocation2 + $0xaa] sm:$0xff] }
  0x47   : > { %1642 = vmatpush2.msra.mxu0 %v1484_v44  ;;  %1867 = vmatpush2.msra.mxu1 %v1516_v45  ;;  %v1509_v44 = vld [vmem:[#allocation4 + $0x1a0] sm:$0xff]  ;;  %v442_v45 = vmul.f32 %v3511_v26, %v404_v36  ;;  %v4538_v54 = vmax.f32 %v3696_v34, 0.0  ;;  %v725_v47 = vld [vmem:[#allocation2 + $0x3a] sm:$0xff]  ;;  %v3856_v14 = vld [vmem:[#allocation2 + $0x82] sm:$0xff]  ;;  %v4549_v16 = vmax.f32 %v3696_v34, 0.0 }
  0x48   : > { %1643 = vmatprep.subr.mxu0 %v3342_v0  ;;  %1868 = vmatprep.subr.mxu1 %v3342_v0  ;;  %v3846_v8 = vld [vmem:[#allocation2 + $0x7a] sm:$0xff]  ;;  %v3866_v15 = vld [vmem:[#allocation2 + $0x92] sm:$0xff]  ;;  %v3909_v39 = vld [vmem:[#allocation2 + $0xc2] sm:$0xff] }
  0x49   : > { %1644 = vmatpush2.msra.mxu0 %v1483_v55  ;;  %1869 = vmatpush2.msra.mxu1 %v1515_v56  ;;  %v3706_v55 = vadd.f32 %v3518_v28, %v441_v35  ;;  %v443_v56 = vmul.f32 %v3511_v26, %v405_v50  ;;  %543 = vst [vmem:[#allocation2 + $0xf1] sm:$0xff] %v4538_v54  ;;  %v409_v35 = vld [vmem:[%s3504_s14 + $0xc8] sm:$0xff]  ;;  %v1506_v50 = vld [vmem:[#allocation4 + $0x188] sm:$0xff]  ;;  %v785_v54 = vld [vmem:[#allocation2 + $0x20] sm:$0xff] }
  0x4a   : > { %1645 = vmatprep.subr.mxu0 %v3342_v0  ;;  %1870 = vmatprep.subr.mxu1 %v3342_v0  ;;  %v3876_v19 = vld [vmem:[#allocation2 + $0x9a] sm:$0xff]  ;;  %v3898_v32 = vld [vmem:[#allocation2 + $0xb2] sm:$0xff]  ;;  %v3920_v43 = vld [vmem:[#allocation2 + $0xca] sm:$0xff] }
  0x4b   : > { %1646 = vmatpush2.msra.mxu0 %v1482_v62  ;;  %1871 = vmatpush2.msra.mxu1 %v1514_v63  ;;  %v406_v62 = vld [vmem:[%s3504_s14 + $0xb0] sm:$0xff]  ;;  %v1476_v63 = vld [vmem:[#allocation4 + $0x98] sm:$0xff]  ;;  %v4550_v34 = vmax.f32 %v3706_v55, 0.0 }
  0x4c   : > { %1647 = vmatprep.subr.mxu0 %v3342_v0  ;;  %1872 = vmatprep.subr.mxu1 %v3342_v0  ;;  %v444_v9 = vmul.f32 %v3511_v26, %v406_v62  ;;  %v3931_v49 = vld [vmem:[#allocation2 + $0xda] sm:$0xff] }
  0x4d   : > { %1648 = vmatpush2.msra.mxu0 %v1481_v4  ;;  %1873 = vmatpush2.msra.mxu1 %v1513_v5  ;;  %v1508_v4 = vld [vmem:[#allocation4 + $0x198] sm:$0xff]  ;;  %v3713_v5 = vadd.f32 %v3518_v28, %v442_v45  ;;  %v1474_v45 = vld [vmem:[#allocation4 + $0x88] sm:$0xff] }
  0x4e   : > { %1649 = vmatprep.subr.mxu0 %v3342_v0  ;;  %1874 = vmatprep.subr.mxu1 %v3342_v0 }
  0x4f   : > { %1650 = vmatpush2.msra.mxu0 %v1480_v11  ;;  %1875 = vmatpush2.msra.mxu1 %v1512_v12  ;;  %v4537_v11 = vmax.f32 %v3706_v55, 0.0  ;;  %v3721_v12 = vadd.f32 %v3518_v28, %v443_v56  ;;  %v4551_v55 = vmax.f32 %v3713_v5, 0.0 }
  0x50   : > { %1651 = vmatprep.subr.mxu0 %v3342_v0  ;;  %1876 = vmatprep.subr.mxu1 %v3342_v0 }
  0x51   : > { %1652 = vmatpush2.msra.mxu0 %v1479_v17  ;;  %1877 = vmatpush2.msra.mxu1 %v1511_v20  ;;  %v445_v17 = vmul.f32 %v3511_v26, %v407_v10  ;;  %v408_v20 = vld [vmem:[%s3504_s14 + $0xc0] sm:$0xff]  ;;  %544 = vst [vmem:[#allocation2 + $0xf9] sm:$0xff] %v4537_v11  ;;  %v4533_v36 = vmax.f32 %v3721_v12, 0.0  ;;  %v1473_v10 = vld [vmem:[#allocation4 + $0x80] sm:$0xff]  ;;  %v1536_v11 = vld [vmem:[#allocation4 + $0x278] sm:$0xff] }
  0x52   : > { %1653 = vmatprep.subr.mxu0 %v3342_v0  ;;  %1878 = vmatprep.subr.mxu1 %v3342_v0  ;;  %v446_v33 = vmul.f32 %v3511_v26, %v408_v20 }
  0x53   : > { %1654 = vmatpush2.msra.mxu0 %v1478_v29  ;;  %1879 = vmatpush2.msra.mxu1 %v1510_v30  ;;  %v4534_v29 = vmax.f32 %v3713_v5, 0.0  ;;  %v3729_v30 = vadd.f32 %v3518_v28, %v444_v9  ;;  %546 = vst [vmem:[#allocation2 + $0x111] sm:$0xff] %v4533_v36  ;;  %v410_v9 = vld [vmem:[%s3504_s14 + $0xd0] sm:$0xff]  ;;  %v4552_v5 = vmax.f32 %v3721_v12, 0.0 }
  0x54   : > { %1655 = vmatprep.subr.mxu0 %v3342_v0  ;;  %1880 = vmatprep.subr.mxu1 %v3342_v0  ;;  %v3746_v62 = vadd.f32 %v3518_v28, %v446_v33  ;;  %v1505_v33 = vld [vmem:[#allocation4 + $0x180] sm:$0xff] }
  0x55   : > { %1656 = vmatpush2.msra.mxu0 %v1477_v40  ;;  %1881 = vmatpush2.msra.mxu1 %v1509_v44  ;;  %v3737_v40 = vadd.f32 %v3518_v28, %v445_v17  ;;  %v447_v44 = vmul.f32 %v3511_v26, %v409_v35  ;;  %545 = vst [vmem:[#allocation2 + $0x109] sm:$0xff] %v4534_v29  ;;  %v4535_v56 = vmax.f32 %v3729_v30, 0.0  ;;  %v656_v17 = vld [vmem:[#allocation2 + $0x1] sm:$0xff]  ;;  %v784_v35 = vld [vmem:[#allocation2 + $0x18] sm:$0xff]  ;;  %v4553_v12 = vmax.f32 %v3729_v30, 0.0 }
  0x56   : > { %1657 = vmatprep.subr.mxu0 %v3342_v0  ;;  %1882 = vmatprep.subr.mxu1 %v3342_v0  ;;  %v4539_v20 = vmax.f32 %v3746_v62, 0.0  ;;  %v412_v29 = vld [vmem:[%s3504_s14 + $0xe0] sm:$0xff] }
  0x57   : > { %1658 = vmatpush2.msra.mxu0 %v1476_v63  ;;  %1883 = vmatpush2.msra.mxu1 %v1508_v4  ;;  %v4536_v63 = vmax.f32 %v3737_v40, 0.0  ;;  %v3752_v4 = vadd.f32 %v3518_v28, %v447_v44  ;;  %547 = vst [vmem:[#allocation2 + $0x121] sm:$0xff] %v4535_v56  ;;  %v720_v56 = vld [vmem:[#allocation2 + $0x2] sm:$0xff]  ;;  %v4554_v30 = vmax.f32 %v3737_v40, 0.0  ;;  %v4555_v40 = vmax.f32 %v3746_v62, 0.0 }
  0x58   : > { %1659 = vmatprep.subr.mxu0 %v3342_v0  ;;  %1884 = vmatprep.subr.mxu1 %v3342_v0  ;;  %549 = vst [vmem:[#allocation2 + $0x139] sm:$0xff] %v4539_v20 }
  0x59   : > { %1660 = vmatpush2.msra.mxu0 %v1475_v21  ;;  %1885 = vmatpush2.msra.mxu1 %v1507_v23  ;;  %v448_v21 = vmul.f32 %v3511_v26, %v410_v9  ;;  %v411_v23 = vld [vmem:[%s3504_s14 + $0xd8] sm:$0xff]  ;;  %548 = vst [vmem:[#allocation2 + $0x129] sm:$0xff] %v4536_v63  ;;  %v4542_v44 = vmax.f32 %v3752_v4, 0.0  ;;  %v657_v9 = vld [vmem:[#allocation2 + $0x9] sm:$0xff]  ;;  %v4556_v62 = vmax.f32 %v3752_v4, 0.0 }
  0x5a   : > { %1661 = vmatprep.subr.mxu0 %v3342_v0  ;;  %1886 = vmatprep.subr.mxu1 %v3342_v0  ;;  %v449_v36 = vmul.f32 %v3511_v26, %v411_v23  ;;  %v413_v63 = vld [vmem:[%s3504_s14 + $0xe8] sm:$0xff] }
  0x5b   : > { %1662 = vmatpush2.msra.mxu0 %v1474_v45  ;;  %1887 = vmatpush2.msra.mxu1 %v1506_v50  ;;  %v3772_v45 = vadd.f32 %v3518_v28, %v448_v21  ;;  %v450_v50 = vmul.f32 %v3511_v26, %v412_v29  ;;  %550 = vst [vmem:[#allocation2 + $0x141] sm:$0xff] %v4542_v44 }
  0x5c   : > { %1663 = vmatprep.subr.mxu0 %v3342_v0  ;;  %1888 = vmatprep.subr.mxu1 %v3342_v0  ;;  %v3778_v23 = vadd.f32 %v3518_v28, %v449_v36  ;;  %v451_v29 = vmul.f32 %v3511_v26, %v413_v63  ;;  %v721_v36 = vld [vmem:[#allocation2 + $0xa] sm:$0xff]  ;;  %v1535_v63 = vld [vmem:[#allocation4 + $0x270] sm:$0xff] }
  0x5d   : > { %1664 = vmatpush2.msra.mxu0 %v1473_v10  ;;  %1665 = vmatprep.mubr.f32.mxu0 %v656_v17  ;;  %v4540_v20 = vmax.f32 %v3772_v45, 0.0  ;;  %v3783_v21 = vadd.f32 %v3518_v28, %v450_v50  ;;  %v786_v50 = vld [vmem:[#allocation2 + $0x30] sm:$0xff]  ;;  %v4557_v4 = vmax.f32 %v3772_v45, 0.0 }
  0x5e   : > { %1889 = vmatpush2.msra.mxu1 %v1505_v33  ;;  %1890 = vmatprep.mubr.f32.mxu1 %v784_v35  ;;  %v4541_v10 = vmax.f32 %v3778_v23, 0.0  ;;  %v3793_v33 = vadd.f32 %v3518_v28, %v451_v29  ;;  %v4558_v45 = vmax.f32 %v3778_v23, 0.0 }
  0x5f   : > { %1666 = vmatmul.mubr.f32.vlgmr.msra.gmra.mxu0 %v3342_v0  ;;  %1891 = vmatmul.mubr.f32.vlgmr.msra.gmra.mxu1 %v720_v56  ;;  %551 = vst [vmem:[#allocation2 + $0x151] sm:$0xff] %v4540_v20  ;;  %v4543_v17 = vmax.f32 %v3783_v21, 0.0  ;;  %v414_v56 = vld [vmem:[%s3504_s14 + $0xf0] sm:$0xff]  ;;  %v1568_v20 = vld [vmem:[#allocation4 + $0x378] sm:$0xff]  ;;  %v4559_v23 = vmax.f32 %v3783_v21, 0.0 }
  0x60   : > { %2051 = vmatprep.subr.mxu0 %v3342_v0  ;;  %1670 = vmatprep.mubr.f32.mxu0 %v657_v9  ;;  %552 = vst [vmem:[#allocation2 + $0x159] sm:$0xff] %v4541_v10  ;;  %v4545_v9 = vmax.f32 %v3793_v33, 0.0  ;;  %v452_v29 = vmul.f32 %v3511_v26, %v414_v56  ;;  %v722_v10 = vld [vmem:[#allocation2 + $0x1a] sm:$0xff]  ;;  %v4560_v21 = vmax.f32 %v3793_v33, 0.0 }
  0x61   : > { %2052 = vmatpush1.msra.mxu0 %v1536_v11  ;;  %1895 = vmatprep.mubr.f32.mxu1 %v785_v54  ;;  %553 = vst [vmem:[#allocation2 + $0x169] sm:$0xff] %v4543_v17  ;;  %v1534_v11 = vld [vmem:[#allocation4 + $0x268] sm:$0xff] }
  0x62   : > { %2053 = vmatprep.subr.mxu0 %v3342_v0  ;;  %2276 = vmatprep.subr.mxu1 %v3342_v0  ;;  %554 = vst [vmem:[#allocation2 + $0x171] sm:$0xff] %v4545_v9  ;;  %v490_v44 = vadd.f32 %v3518_v28, %v452_v29  ;;  %v787_v17 = vld [vmem:[#allocation2 + $0x38] sm:$0xff]  ;;  %v788_v9 = vld [vmem:[#allocation2 + $0x48] sm:$0xff] }
  0x63   : > { %1671 = vmatmul.mubr.f32.gmra.mxu0 %v3342_v0  ;;  %1896 = vmatmul.mubr.f32.gmra.mxu1 %v721_v36  ;;  %v415_v56 = vld [vmem:[%s3504_s14 + $0xf8] sm:$0xff] }
  0x64   : > { %2054 = vmatpush1.msra.mxu0 %v1535_v63  ;;  %1675 = vmatprep.mubr.f32.mxu0 %v492_v46  ;;  %v522_v36 = vmax.f32 %v490_v44, 0.0  ;;  %v453_v22 = vmul.f32 %v3511_v26, %v415_v56  ;;  %v1567_v46 = vld [vmem:[#allocation4 + $0x370] sm:$0xff]  ;;  %v1564_v44 = vld [vmem:[#allocation4 + $0x358] sm:$0xff]  ;;  %v1561_v56 = vld [vmem:[#allocation4 + $0x340] sm:$0xff] }
  0x65   : > { %1900 = vmatprep.mubr.f32.mxu1 %v786_v50  ;;  %2055 = vmatprep.subr.mxu0 %v3342_v0  ;;  %v723_v63 = vld [vmem:[#allocation2 + $0x22] sm:$0xff]  ;;  %v848_v33 = vld [vmem:[#allocation2 + $0x19] sm:$0xff] }
  0x66   : > { %2056 = vmatpush1.msra.mxu0 %v1534_v11  ;;  %2277 = vmatpush1.msra.mxu1 %v1568_v20  ;;  %555 = vst [vmem:[#allocation2 + $0x181] sm:$0xff] %v522_v36  ;;  %v491_v29 = vadd.f32 %v3518_v28, %v453_v22  ;;  %v1532_v20 = vld [vmem:[#allocation4 + $0x258] sm:$0xff]  ;;  %v789_v28 = vld [vmem:[#allocation2 + $0x50] sm:$0xff]  ;;  %v1562_v11 = vld [vmem:[#allocation4 + $0x348] sm:$0xff] }
  0x67   : > { %1676 = vmatmul.mubr.f32.gmra.mxu0 %v784_v35  ;;  %1901 = vmatmul.mubr.f32.gmra.mxu1 %v722_v10  ;;  %v1566_v35 = vld [vmem:[#allocation4 + $0x368] sm:$0xff]  ;;  %v1565_v22 = vld [vmem:[#allocation4 + $0x360] sm:$0xff] }
  0x68   : > { %1680 = vmatprep.mubr.f32.mxu0 %v493_v52  ;;  %1905 = vmatprep.mubr.f32.mxu1 %v787_v17  ;;  %v523_v26 = vmax.f32 %v491_v29, 0.0  ;;  %v1531_v52 = vld [vmem:[#allocation4 + $0x250] sm:$0xff]  ;;  %v726_v10 = vld [vmem:[#allocation2 + $0x4a] sm:$0xff] }
  0x69   : > { %2057 = vmatprep.subr.mxu0 %v3342_v0  ;;  %2278 = vmatprep.subr.mxu1 %v3342_v0  ;;  %v729_v36 = vld [vmem:[#allocation2 + $0x6a] sm:$0xff] }
  0x6a   : > { %2058 = vmatpush1.msra.mxu0 %v1533_v37  ;;  %2279 = vmatpush1.msra.mxu1 %v1567_v46  ;;  %556 = vst [vmem:[#allocation2 + $0x189] sm:$0xff] %v523_v26  ;;  %v1560_v37 = vld [vmem:[#allocation4 + $0x338] sm:$0xff]  ;;  %v1525_v46 = vld [vmem:[#allocation4 + $0x220] sm:$0xff]  ;;  %v1558_v26 = vld [vmem:[#allocation4 + $0x328] sm:$0xff] }
  0x6b   : > { %1681 = vmatmul.mubr.f32.gmra.mxu0 %v785_v54  ;;  %1906 = vmatmul.mubr.f32.gmra.mxu1 %v723_v63  ;;  %v1530_v54 = vld [vmem:[#allocation4 + $0x248] sm:$0xff]  ;;  %v1559_v63 = vld [vmem:[#allocation4 + $0x330] sm:$0xff]  ;;  %v1524_v29 = vld [vmem:[#allocation4 + $0x218] sm:$0xff] }
  0x6c   : > { %1685 = vmatprep.mubr.f32.mxu0 %v494_v57  ;;  %1910 = vmatprep.mubr.f32.mxu1 %v788_v9  ;;  %v790_v57 = vld [vmem:[#allocation2 + $0x60] sm:$0xff] }
  0x6d   : > { %2059 = vmatprep.subr.mxu0 %v3342_v0  ;;  %2280 = vmatprep.subr.mxu1 %v3342_v0 }
  0x6e   : > { %2060 = vmatpush1.msra.mxu0 %v1532_v20  ;;  %2281 = vmatpush1.msra.mxu1 %v1566_v35  ;;  %v1523_v20 = vld [vmem:[#allocation4 + $0x210] sm:$0xff]  ;;  %v1557_v35 = vld [vmem:[#allocation4 + $0x320] sm:$0xff] }
  0x6f   : > { %1686 = vmatmul.mubr.f32.gmra.mxu0 %v786_v50  ;;  %1911 = vmatmul.mubr.f32.gmra.mxu1 %v724_v41  ;;  %v1563_v50 = vld [vmem:[#allocation4 + $0x350] sm:$0xff]  ;;  %v1522_v41 = vld [vmem:[#allocation4 + $0x208] sm:$0xff] }
  0x70   : > { %1690 = vmatprep.mubr.f32.mxu0 %v495_v1  ;;  %1915 = vmatprep.mubr.f32.mxu1 %v789_v28  ;;  %v1529_v1 = vld [vmem:[#allocation4 + $0x240] sm:$0xff] }
  0x71   : > { %2061 = vmatprep.subr.mxu0 %v3342_v0  ;;  %2282 = vmatprep.subr.mxu1 %v3342_v0 }
  0x72   : > { %2062 = vmatpush1.msra.mxu0 %v1531_v52  ;;  %2283 = vmatpush1.msra.mxu1 %v1565_v22  ;;  %v1521_v52 = vld [vmem:[#allocation4 + $0x200] sm:$0xff]  ;;  %v1555_v22 = vld [vmem:[#allocation4 + $0x310] sm:$0xff] }
  0x73   : > { %1691 = vmatmul.mubr.f32.gmra.mxu0 %v787_v17  ;;  %1916 = vmatmul.mubr.f32.gmra.mxu1 %v725_v47  ;;  %v727_v17 = vld [vmem:[#allocation2 + $0x52] sm:$0xff]  ;;  %v1552_v47 = vld [vmem:[#allocation4 + $0x2f8] sm:$0xff] }
  0x74   : > { %1695 = vmatprep.mubr.f32.mxu0 %v496_v6  ;;  %1920 = vmatprep.mubr.f32.mxu1 %v790_v57  ;;  %v1528_v6 = vld [vmem:[#allocation4 + $0x238] sm:$0xff] }
  0x75   : > { %2063 = vmatprep.subr.mxu0 %v3342_v0  ;;  %2284 = vmatprep.subr.mxu1 %v3342_v0 }
  0x76   : > { %2064 = vmatpush1.msra.mxu0 %v1530_v54  ;;  %2285 = vmatpush1.msra.mxu1 %v1564_v44  ;;  %v1551_v54 = vld [vmem:[#allocation4 + $0x2f0] sm:$0xff]  ;;  %v1553_v44 = vld [vmem:[#allocation4 + $0x300] sm:$0xff] }
  0x77   : > { %1696 = vmatmul.mubr.f32.gmra.mxu0 %v788_v9  ;;  %1921 = vmatmul.mubr.f32.gmra.mxu1 %v726_v10  ;;  %v728_v9 = vld [vmem:[#allocation2 + $0x62] sm:$0xff]  ;;  %v1550_v10 = vld [vmem:[#allocation4 + $0x2e8] sm:$0xff] }
  0x78   : > { %1700 = vmatprep.mubr.f32.mxu0 %v497_v7  ;;  %1925 = vmatprep.mubr.f32.mxu1 %v791_v53  ;;  %v1527_v7 = vld [vmem:[#allocation4 + $0x230] sm:$0xff] }
  0x79   : > { %2065 = vmatprep.subr.mxu0 %v3342_v0  ;;  %2286 = vmatprep.subr.mxu1 %v3342_v0 }
  0x7a   : > { %2066 = vmatpush1.msra.mxu0 %v1529_v1  ;;  %2287 = vmatpush1.msra.mxu1 %v1563_v50  ;;  %v1549_v1 = vld [vmem:[#allocation4 + $0x2e0] sm:$0xff]  ;;  %v1583_v50 = vld [vmem:[#allocation4 + $0x3f0] sm:$0xff] }
  0x7b   : > { %1701 = vmatmul.mubr.f32.gmra.mxu0 %v789_v28  ;;  %1926 = vmatmul.mubr.f32.gmra.mxu1 %v727_v17  ;;  %v1556_v28 = vld [vmem:[#allocation4 + $0x318] sm:$0xff] }
  0x7c   : > { %1705 = vmatprep.mubr.f32.mxu0 %v498_v13  ;;  %1930 = vmatprep.mubr.f32.mxu1 %v792_v58  ;;  %v794_v13 = vld [vmem:[#allocation2 + $0x90] sm:$0xff]  ;;  %v3945_v17 = vld [vmem:[#allocation2 + $0x108] sm:$0xff] }
  0x7d   : > { %2067 = vmatprep.subr.mxu0 %v3342_v0  ;;  %2288 = vmatprep.subr.mxu1 %v3342_v0  ;;  %v1526_v0 = vld [vmem:[#allocation4 + $0x228] sm:$0xff] }
  0x7e   : > { %2068 = vmatpush1.msra.mxu0 %v1528_v6  ;;  %2289 = vmatpush1.msra.mxu1 %v1562_v11  ;;  %v1582_v6 = vld [vmem:[#allocation4 + $0x3e8] sm:$0xff] }
  0x7f   : > { %1706 = vmatmul.mubr.f32.gmra.mxu0 %v790_v57  ;;  %1931 = vmatmul.mubr.f32.gmra.mxu1 %v728_v9  ;;  %v1554_v57 = vld [vmem:[#allocation4 + $0x308] sm:$0xff]  ;;  %v3956_v9 = vld [vmem:[#allocation2 + $0x110] sm:$0xff] }
  0x80   : > { %1710 = vmatprep.mubr.f32.mxu0 %v499_v18  ;;  %1935 = vmatprep.mubr.f32.mxu1 %v793_v59  ;;  %v3849_v18 = vld [vmem:[#allocation2 + $0x98] sm:$0xff] }
  0x81   : > { %2069 = vmatprep.subr.mxu0 %v3840_v2  ;;  %2290 = vmatprep.subr.mxu1 %v3840_v2  ;;  %v3953_v11 = vld [vmem:[#allocation2 + $0xf2] sm:$0xff] }
  0x82   : > { %2070 = vmatpush1.msra.mxu0 %v1527_v7  ;;  %2291 = vmatpush1.msra.mxu1 %v1561_v56  ;;  %v1581_v7 = vld [vmem:[#allocation4 + $0x3e0] sm:$0xff]  ;;  %v3964_v56 = vld [vmem:[#allocation2 + $0xfa] sm:$0xff] }
  0x83   : > { %1711 = vmatmul.mubr.f32.gmra.mxu0 %v791_v53  ;;  %1936 = vmatmul.mubr.f32.gmra.mxu1 %v729_v36  ;;  %v1584_v53 = vld [vmem:[#allocation4 + $0x3f8] sm:$0xff]  ;;  %v3967_v36 = vld [vmem:[#allocation2 + $0x120] sm:$0xff] }
  0x84   : > { %1715 = vmatprep.mubr.f32.mxu0 %v500_v24  ;;  %1940 = vmatprep.mubr.f32.mxu1 %v794_v13  ;;  %v3859_v24 = vld [vmem:[#allocation2 + $0xa8] sm:$0xff] }
  0x85   : > { %2071 = vmatprep.subr.mxu0 %v3840_v2  ;;  %2292 = vmatprep.subr.mxu1 %v3840_v2 }
  0x86   : > { %2072 = vmatpush1.msra.mxu0 %v1526_v0  ;;  %2293 = vmatpush1.msra.mxu1 %v1560_v37  ;;  %v1580_v0 = vld [vmem:[#allocation4 + $0x3d8] sm:$0xff] }
  0x87   : > { %1716 = vmatmul.mubr.f32.gmra.mxu0 %v792_v58  ;;  %1941 = vmatmul.mubr.f32.gmra.mxu1 %v3846_v8  ;;  %v1548_v58 = vld [vmem:[#allocation4 + $0x2d8] sm:$0xff] }
  0x88   : > { %1720 = vmatprep.mubr.f32.mxu0 %v501_v25  ;;  %1945 = vmatprep.mubr.f32.mxu1 %v3849_v18  ;;  %v3869_v25 = vld [vmem:[#allocation2 + $0xb0] sm:$0xff] }
  0x89   : > { %2073 = vmatprep.subr.mxu0 %v3840_v2  ;;  %2294 = vmatprep.subr.mxu1 %v3840_v2  ;;  %v3975_v37 = vld [vmem:[#allocation2 + $0x10a] sm:$0xff] }
  0x8a   : > { %2074 = vmatpush1.msra.mxu0 %v1525_v46  ;;  %2295 = vmatpush1.msra.mxu1 %v1559_v63  ;;  %v3978_v46 = vld [vmem:[#allocation2 + $0x128] sm:$0xff]  ;;  %v1545_v63 = vld [vmem:[#allocation4 + $0x2c0] sm:$0xff] }
  0x8b   : > { %1721 = vmatmul.mubr.f32.gmra.mxu0 %v793_v59  ;;  %1946 = vmatmul.mubr.f32.gmra.mxu1 %v3856_v14  ;;  %v1547_v59 = vld [vmem:[#allocation4 + $0x2d0] sm:$0xff] }
  0x8c   : > { %1725 = vmatprep.mubr.f32.mxu0 %v502_v31  ;;  %1950 = vmatprep.mubr.f32.mxu1 %v3859_v24  ;;  %v3879_v31 = vld [vmem:[#allocation2 + $0xc0] sm:$0xff] }
  0x8d   : > { %2075 = vmatprep.subr.mxu0 %v3840_v2  ;;  %2296 = vmatprep.subr.mxu1 %v3840_v2 }
  0x8e   : > { %2076 = vmatpush1.msra.mxu0 %v1524_v29  ;;  %2297 = vmatpush1.msra.mxu1 %v1558_v26  ;;  %v1579_v29 = vld [vmem:[#allocation4 + $0x3d0] sm:$0xff]  ;;  %v3986_v26 = vld [vmem:[#allocation2 + $0x112] sm:$0xff] }
  0x8f   : > { %1726 = vmatmul.mubr.f32.gmra.mxu0 %v794_v13  ;;  %1951 = vmatmul.mubr.f32.gmra.mxu1 %v3866_v15  ;;  %v1546_v13 = vld [vmem:[#allocation4 + $0x2c8] sm:$0xff] }
  0x90   : > { %1730 = vmatprep.mubr.f32.mxu0 %v503_v38  ;;  %1955 = vmatprep.mubr.f32.mxu1 %v3869_v25  ;;  %v3890_v38 = vld [vmem:[#allocation2 + $0xc8] sm:$0xff] }
  0x91   : > { %2077 = vmatprep.subr.mxu0 %v3840_v2  ;;  %2298 = vmatprep.subr.mxu1 %v3840_v2 }
  0x92   : > { %2078 = vmatpush1.msra.mxu0 %v1523_v20  ;;  %2299 = vmatpush1.msra.mxu1 %v1557_v35  ;;  %v3989_v20 = vld [vmem:[#allocation2 + $0x138] sm:$0xff]  ;;  %v1544_v35 = vld [vmem:[#allocation4 + $0x2b8] sm:$0xff] }
  0x93   : > { %1731 = vmatmul.mubr.f32.gmra.mxu0 %v3849_v18  ;;  %1956 = vmatmul.mubr.f32.gmra.mxu1 %v3876_v19 }
  0x94   : > { %1735 = vmatprep.mubr.f32.mxu0 %v504_v42  ;;  %1960 = vmatprep.mubr.f32.mxu1 %v3879_v31  ;;  %v3901_v42 = vld [vmem:[#allocation2 + $0xd8] sm:$0xff] }
  0x95   : > { %2079 = vmatprep.subr.mxu0 %v3840_v2  ;;  %2300 = vmatprep.subr.mxu1 %v3840_v2 }
  0x96   : > { %2080 = vmatpush1.msra.mxu0 %v1522_v41  ;;  %2301 = vmatpush1.msra.mxu1 %v1556_v28  ;;  %v1578_v41 = vld [vmem:[#allocation4 + $0x3c8] sm:$0xff]  ;;  %v3997_v28 = vld [vmem:[#allocation2 + $0x122] sm:$0xff] }
  0x97   : > { %1736 = vmatmul.mubr.f32.gmra.mxu0 %v3859_v24  ;;  %1961 = vmatmul.mubr.f32.gmra.mxu1 %v3887_v27 }
  0x98   : > { %1740 = vmatprep.mubr.f32.mxu0 %v505_v48  ;;  %1965 = vmatprep.mubr.f32.mxu1 %v3890_v38  ;;  %v3912_v48 = vld [vmem:[#allocation2 + $0xe0] sm:$0xff] }
  0x99   : > { %2081 = vmatprep.subr.mxu0 %v3840_v2  ;;  %2302 = vmatprep.subr.mxu1 %v3840_v2 }
  0x9a   : > { %2082 = vmatpush1.msra.mxu0 %v1521_v52  ;;  %2303 = vmatpush1.msra.mxu1 %v1555_v22  ;;  %v4000_v52 = vld [vmem:[#allocation2 + $0x140] sm:$0xff] }
  0x9b   : > { %1741 = vmatmul.mubr.f32.gmra.mxu0 %v3869_v25  ;;  %1966 = vmatmul.mubr.f32.gmra.mxu1 %v3898_v32  ;;  %v1543_v22 = vld [vmem:[#allocation4 + $0x2b0] sm:$0xff] }
  0x9c   : > { %1745 = vmatprep.mubr.f32.mxu0 %v506_v51  ;;  %1970 = vmatprep.mubr.f32.mxu1 %v3901_v42  ;;  %v3923_v51 = vld [vmem:[#allocation2 + $0xf0] sm:$0xff] }
  0x9d   : > { %2083 = vmatprep.subr.mxu0 %v3840_v2  ;;  %2304 = vmatprep.subr.mxu1 %v3840_v2 }
  0x9e   : > { %2084 = vmatpush2.msra.mxu0 %v1552_v47  ;;  %2305 = vmatpush1.msra.mxu1 %v1554_v57  ;;  %v1577_v47 = vld [vmem:[#allocation4 + $0x3c0] sm:$0xff] }
  0x9f   : > { %1746 = vmatmul.mubr.f32.gmra.mxu0 %v3879_v31  ;;  %1971 = vmatmul.mubr.f32.gmra.mxu1 %v3909_v39  ;;  %v4008_v57 = vld [vmem:[#allocation2 + $0x12a] sm:$0xff] }
  0xa0   : > { %1750 = vmatprep.mubr.f32.mxu0 %v507_v60  ;;  %1975 = vmatprep.mubr.f32.mxu1 %v3912_v48  ;;  %v3934_v60 = vld [vmem:[#allocation2 + $0xf8] sm:$0xff] }
  0xa1   : > { %2085 = vmatprep.subr.mxu0 %v3840_v2  ;;  %2306 = vmatprep.subr.mxu1 %v3840_v2 }
  0xa2   : > { %2086 = vmatpush2.msra.mxu0 %v1551_v54  ;;  %2307 = vmatpush1.msra.mxu1 %v1553_v44  ;;  %v4011_v54 = vld [vmem:[#allocation2 + $0x150] sm:$0xff]  ;;  %v1542_v44 = vld [vmem:[#allocation4 + $0x2a8] sm:$0xff] }
  0xa3   : > { %1751 = vmatmul.mubr.f32.gmra.mxu0 %v3890_v38  ;;  %1976 = vmatmul.mubr.f32.gmra.mxu1 %v3920_v43 }
  0xa4   : > { %1755 = vmatprep.mubr.f32.mxu0 %v508_v3  ;;  %1980 = vmatprep.mubr.f32.mxu1 %v3923_v51  ;;  %v3942_v3 = vld [vmem:[#allocation2 + $0xe2] sm:$0xff] }
  0xa5   : > { %2087 = vmatprep.subr.mxu0 %v3840_v2  ;;  %2308 = vmatprep.subr.mxu1 %v3840_v2 }
  0xa6   : > { %2088 = vmatpush2.msra.mxu0 %v1550_v10  ;;  %2309 = vmatpush2.msra.mxu1 %v1584_v53  ;;  %v1576_v10 = vld [vmem:[#allocation4 + $0x3b8] sm:$0xff]  ;;  %v4019_v53 = vld [vmem:[#allocation2 + $0x13a] sm:$0xff] }
  0xa7   : > { %1756 = vmatmul.mubr.f32.gmra.mxu0 %v3901_v42  ;;  %1981 = vmatmul.mubr.f32.gmra.mxu1 %v3931_v49 }
  0xa8   : > { %1760 = vmatprep.mubr.f32.mxu0 %v4548_v61  ;;  %1985 = vmatprep.mubr.f32.mxu1 %v3934_v60  ;;  %v1575_v61 = vld [vmem:[#allocation4 + $0x3b0] sm:$0xff] }
  0xa9   : > { %2089 = vmatprep.subr.mxu0 %v3840_v2  ;;  %2310 = vmatprep.subr.mxu1 %v3840_v2 }
  0xaa   : > { %2090 = vmatpush2.msra.mxu0 %v1549_v1  ;;  %2311 = vmatpush2.msra.mxu1 %v1583_v50  ;;  %v4022_v1 = vld [vmem:[#allocation2 + $0x158] sm:$0xff]  ;;  %v1541_v50 = vld [vmem:[#allocation4 + $0x2a0] sm:$0xff] }
  0xab   : > { %1761 = vmatmul.mubr.f32.gmra.mxu0 %v3912_v48  ;;  %1986 = vmatmul.mubr.f32.gmra.mxu1 %v3942_v3 }
  0xac   : > { %1765 = vmatprep.mubr.f32.mxu0 %v4549_v16  ;;  %1990 = vmatprep.mubr.f32.mxu1 %v3945_v17  ;;  %v1540_v16 = vld [vmem:[#allocation4 + $0x298] sm:$0xff] }
  0xad   : > { %2091 = vmatprep.subr.mxu0 %v3840_v2  ;;  %2312 = vmatprep.subr.mxu1 %v3840_v2 }
  0xae   : > { %2092 = vmatpush2.msra.mxu0 %v1548_v58  ;;  %2313 = vmatpush2.msra.mxu1 %v1582_v6  ;;  %v4030_v58 = vld [vmem:[#allocation2 + $0x142] sm:$0xff] }
  0xaf   : > { %1766 = vmatmul.mubr.f32.gmra.mxu0 %v3923_v51  ;;  %1991 = vmatmul.mubr.f32.gmra.mxu1 %v3953_v11  ;;  %v4033_v6 = vld [vmem:[#allocation2 + $0x168] sm:$0xff] }
  0xb0   : > { %1770 = vmatprep.mubr.f32.mxu0 %v4550_v34  ;;  %1995 = vmatprep.mubr.f32.mxu1 %v3956_v9  ;;  %v4044_v34 = vld [vmem:[#allocation2 + $0x170] sm:$0xff] }
  0xb1   : > { %2093 = vmatprep.subr.mxu0 %v3840_v2  ;;  %2314 = vmatprep.subr.mxu1 %v3840_v2 }
  0xb2   : > { %2094 = vmatpush2.msra.mxu0 %v1547_v59  ;;  %2315 = vmatpush2.msra.mxu1 %v1581_v7  ;;  %v1574_v59 = vld [vmem:[#allocation4 + $0x3a8] sm:$0xff] }
  0xb3   : > { %1771 = vmatmul.mubr.f32.gmra.mxu0 %v3934_v60  ;;  %1996 = vmatmul.mubr.f32.gmra.mxu1 %v3964_v56  ;;  %v4041_v7 = vld [vmem:[#allocation2 + $0x152] sm:$0xff] }
  0xb4   : > { %1775 = vmatprep.mubr.f32.mxu0 %v4551_v55  ;;  %2000 = vmatprep.mubr.f32.mxu1 %v3967_v36  ;;  %v4052_v55 = vld [vmem:[#allocation2 + $0x15a] sm:$0xff] }
  0xb5   : > { %2095 = vmatprep.subr.mxu0 %v3840_v2  ;;  %2316 = vmatprep.subr.mxu1 %v3840_v2 }
  0xb6   : > { %2096 = vmatpush2.msra.mxu0 %v1546_v13  ;;  %2317 = vmatpush2.msra.mxu1 %v1580_v0  ;;  %v1539_v13 = vld [vmem:[#allocation4 + $0x290] sm:$0xff]  ;;  %v1573_v0 = vld [vmem:[#allocation4 + $0x3a0] sm:$0xff] }
  0xb7   : > { %1776 = vmatmul.mubr.f32.gmra.mxu0 %v3945_v17  ;;  %2001 = vmatmul.mubr.f32.gmra.mxu1 %v3975_v37 }
  0xb8   : > { %1780 = vmatprep.mubr.f32.mxu0 %v4552_v5  ;;  %2005 = vmatprep.mubr.f32.mxu1 %v3978_v46  ;;  %v1572_v5 = vld [vmem:[#allocation4 + $0x398] sm:$0xff] }
  0xb9   : > { %2097 = vmatprep.subr.mxu0 %v3840_v2  ;;  %2318 = vmatprep.subr.mxu1 %v3840_v2 }
  0xba   : > { %2098 = vmatpush2.msra.mxu0 %v1545_v63  ;;  %2319 = vmatpush2.msra.mxu1 %v1579_v29  ;;  %v4056_v63 = vld [vmem:[#allocation2 + $0x180] sm:$0xff]  ;;  %v1538_v29 = vld [vmem:[#allocation4 + $0x288] sm:$0xff] }
  0xbb   : > { %1781 = vmatmul.mubr.f32.gmra.mxu0 %v3956_v9  ;;  %2006 = vmatmul.mubr.f32.gmra.mxu1 %v3986_v26 }
  0xbc   : > { %1785 = vmatprep.mubr.f32.mxu0 %v4553_v12  ;;  %2010 = vmatprep.mubr.f32.mxu1 %v3989_v20  ;;  %v1571_v12 = vld [vmem:[#allocation4 + $0x390] sm:$0xff] }
  0xbd   : > { %2099 = vmatprep.subr.mxu0 %v3840_v2  ;;  %2320 = vmatprep.subr.mxu1 %v3840_v2 }
  0xbe   : > { %2100 = vmatpush2.msra.mxu0 %v1544_v35  ;;  %2321 = vmatpush2.msra.mxu1 %v1578_v41  ;;  %v4063_v35 = vld [vmem:[#allocation2 + $0x16a] sm:$0xff] }
  0xbf   : > { %1786 = vmatmul.mubr.f32.gmra.mxu0 %v3967_v36  ;;  %2011 = vmatmul.mubr.f32.gmra.mxu1 %v3997_v28  ;;  %v4067_v41 = vld [vmem:[#allocation2 + $0x188] sm:$0xff] }
  0xc0   : > { %1790 = vmatprep.mubr.f32.mxu0 %v4554_v30  ;;  %2015 = vmatprep.mubr.f32.mxu1 %v4000_v52  ;;  %v1570_v30 = vld [vmem:[#allocation4 + $0x388] sm:$0xff] }
  0xc1   : > { %2101 = vmatprep.subr.mxu0 %v3840_v2  ;;  %2322 = vmatprep.subr.mxu1 %v3840_v2 }
  0xc2   : > { %2102 = vmatpush2.msra.mxu0 %v1543_v22  ;;  %2323 = vmatpush2.msra.mxu1 %v1577_v47  ;;  %v4074_v22 = vld [vmem:[#allocation2 + $0x172] sm:$0xff] }
  0xc3   : > { %1791 = vmatmul.mubr.f32.gmra.mxu0 %v3978_v46  ;;  %2016 = vmatmul.mubr.f32.gmra.mxu1 %v4008_v57  ;;  %v1537_v47 = vld [vmem:[#allocation4 + $0x280] sm:$0xff] }
  0xc4   : > { %1795 = vmatprep.mubr.f32.mxu0 %v4555_v40  ;;  %2020 = vmatprep.mubr.f32.mxu1 %v4011_v54  ;;  %v1041_v40 = vld [vmem:[#allocation2 + $0x31] sm:$0xff] }
  0xc5   : > { %2103 = vmatprep.subr.mxu0 %v3840_v2  ;;  %2324 = vmatprep.subr.mxu1 %v3840_v2 }
  0xc6   : > { %2104 = vmatpush2.msra.mxu0 %v1542_v44  ;;  %2325 = vmatpush2.msra.mxu1 %v1576_v10  ;;  %v912_v44 = vld [vmem:[#allocation2 + $0x1a] sm:$0xff]  ;;  %v1569_v10 = vld [vmem:[#allocation4 + $0x380] sm:$0xff] }
  0xc7   : > { %1796 = vmatmul.mubr.f32.gmra.mxu0 %v3989_v20  ;;  %2021 = vmatmul.mubr.f32.gmra.mxu1 %v4019_v53 }
  0xc8   : > { %1800 = vmatprep.mubr.f32.mxu0 %v4556_v62  ;;  %2025 = vmatprep.mubr.f32.mxu1 %v4022_v1  ;;  %v913_v62 = vld [vmem:[#allocation2 + $0x22] sm:$0xff] }
  0xc9   : > { %2105 = vmatprep.subr.mxu0 %v3840_v2  ;;  %2326 = vmatprep.subr.mxu1 %v3840_v2 }
  0xca   : > { %2106 = vmatpush2.msra.mxu0 %v1541_v50  ;;  %2327 = vmatpush2.msra.mxu1 %v1575_v61  ;;  %v977_v50 = vld [vmem:[#allocation2 + $0x30] sm:$0xff]  ;;  %v1600_v61 = vld [vmem:[#allocation4 + $0x478] sm:$0xff] }
  0xcb   : > { %1801 = vmatmul.mubr.f32.gmra.mxu0 %v4000_v52  ;;  %2026 = vmatmul.mubr.f32.gmra.mxu1 %v4030_v58 }
  0xcc   : > { %1805 = vmatprep.mubr.f32.mxu0 %v4557_v4  ;;  %2030 = vmatprep.mubr.f32.mxu1 %v4033_v6  ;;  %v849_v4 = vld [vmem:[#allocation2 + $0x21] sm:$0xff] }
  0xcd   : > { %2107 = vmatprep.subr.mxu0 %v3840_v2  ;;  %2328 = vmatprep.subr.mxu1 %v3840_v2 }
  0xce   : > { %2108 = vmatpush2.msra.mxu0 %v1540_v16  ;;  %2329 = vmatpush2.msra.mxu1 %v1574_v59  ;;  %v1042_v16 = vld [vmem:[#allocation2 + $0x39] sm:$0xff] }
  0xcf   : > { %1806 = vmatmul.mubr.f32.gmra.mxu0 %v4011_v54  ;;  %2031 = vmatmul.mubr.f32.gmra.mxu1 %v4041_v7  ;;  %v1599_v59 = vld [vmem:[#allocation4 + $0x470] sm:$0xff] }
  0xd0   : > { %1810 = vmatprep.mubr.f32.mxu0 %v4558_v45  ;;  %2035 = vmatprep.mubr.f32.mxu1 %v4044_v34  ;;  %v1043_v45 = vld [vmem:[#allocation2 + $0x49] sm:$0xff] }
  0xd1   : > { %2109 = vmatprep.subr.mxu0 %v3840_v2  ;;  %2330 = vmatprep.subr.mxu1 %v3840_v2 }
  0xd2   : > { %2110 = vmatpush2.msra.mxu0 %v1539_v13  ;;  %2331 = vmatpush2.msra.mxu1 %v1573_v0  ;;  %v978_v13 = vld [vmem:[#allocation2 + $0x38] sm:$0xff] }
  0xd3   : > { %1811 = vmatmul.mubr.f32.gmra.mxu0 %v4022_v1  ;;  %2036 = vmatmul.mubr.f32.gmra.mxu1 %v4052_v55  ;;  %v4082_v0 = vld [vmem:[#allocation2 + $0x32] sm:$0xff] }
  0xd4   : > { %1815 = vmatprep.mubr.f32.mxu0 %v4559_v23  ;;  %2040 = vmatprep.mubr.f32.mxu1 %v4056_v63  ;;  %v1044_v23 = vld [vmem:[#allocation2 + $0x51] sm:$0xff] }
  0xd5   : > { %2111 = vmatprep.subr.mxu0 %v3840_v2  ;;  %2332 = vmatprep.subr.mxu1 %v3840_v2 }
  0xd6   : > { %2112 = vmatpush2.msra.mxu0 %v1538_v29  ;;  %2333 = vmatpush2.msra.mxu1 %v1572_v5  ;;  %v979_v29 = vld [vmem:[#allocation2 + $0x48] sm:$0xff]  ;;  %v4085_v5 = vld [vmem:[#allocation2 + $0x3a] sm:$0xff] }
  0xd7   : > { %1816 = vmatmul.mubr.f32.gmra.mxu0 %v4033_v6  ;;  %2041 = vmatmul.mubr.f32.gmra.mxu1 %v4063_v35 }
  0xd8   : > { %2334 = vmatprep.subr.mxu1 %v3840_v2  ;;  %1820 = vmatprep.mubr.f32.mxu0 %v4560_v21  ;;  %v980_v21 = vld [vmem:[#allocation2 + $0x50] sm:$0xff] }
  0xd9   : > { %2045 = vmatprep.mubr.f32.mxu1 %v4067_v41  ;;  %2335 = vmatpush2.msra.mxu1 %v1571_v12  ;;  %v1597_v12 = vld [vmem:[#allocation4 + $0x460] sm:$0xff] }
  0xda   : > { %2113 = vmatprep.subr.mxu0 %v3840_v2  ;;  %2336 = vmatprep.subr.mxu1 %v3840_v2 }
  0xdb   : > { %1821 = vmatmul.mubr.f32.gmra.mxu0 %v4044_v34  ;;  %2046 = vmatmul.mubr.f32.gmra.mxu1 %v4074_v22 }
  0xdc   : > { %2114 = vmatpush2.msra.mxu0 %v1537_v47  ;;  %2337 = vmatpush2.msra.mxu1 %v1570_v30  ;;  %v4088_v47 = vld [vmem:[#allocation2 + $0x4a] sm:$0xff]  ;;  %v1045_v30 = vld [vmem:[#allocation2 + $0x61] sm:$0xff] }
  0xdd   : > { %2338 = vmatprep.subr.mxu1 %v3840_v2  ;;  %2115 = vmatprep.mubr.f32.mxu0 %v912_v44  ;;  %v1598_v2 = vld [vmem:[#allocation4 + $0x468] sm:$0xff]  ;;  %v1596_v44 = vld [vmem:[#allocation4 + $0x458] sm:$0xff] }
  0xde   : > { %2339 = vmatpush2.msra.mxu1 %v1569_v10  ;;  %2340 = vmatprep.mubr.f32.mxu1 %v1041_v40  ;;  %v981_v10 = vld [vmem:[#allocation2 + $0x60] sm:$0xff] }
  0xdf   : > { %2116 = vmatmul.mubr.f32.vlgmr.msra.gmra.mxu0 %v848_v33  ;;  %2341 = vmatmul.mubr.f32.vlgmr.msra.gmra.mxu1 %v977_v50  ;;  %v1046_v33 = vld [vmem:[#allocation2 + $0x69] sm:$0xff]  ;;  %v1595_v50 = vld [vmem:[#allocation4 + $0x450] sm:$0xff] }
  0xe0   : > { %3112 = vmatprep.subr.mxu0 %v1600_v61  ;;  %2120 = vmatprep.mubr.f32.mxu0 %v913_v62  ;;  %v4094_v62 = vld [vmem:[#allocation2 + $0x62] sm:$0xff] }
  0xe1   : > { %3113 = vmatpush3.msra.mxu0 %v1600_v61  ;;  %2345 = vmatprep.mubr.f32.mxu1 %v1042_v16 }
  0xe2   : > { %3114 = vmatprep.subr.mxu0 %v1599_v59  ;;  %3192 = vmatprep.subr.mxu1 %v1600_v61 }
  0xe3   : > { %2121 = vmatmul.mubr.f32.gmra.mxu0 %v849_v4  ;;  %2346 = vmatmul.mubr.f32.gmra.mxu1 %v978_v13  ;;  %v983_v4 = vld [vmem:[#allocation2 + $0x78] sm:$0xff]  ;;  %v4097_v13 = vld [vmem:[#allocation2 + $0x6a] sm:$0xff] }
  0xe4   : > { %2125 = vmatprep.mubr.f32.mxu0 %v4082_v0  ;;  %2350 = vmatprep.mubr.f32.mxu1 %v1043_v45 }
  0xe5   : > { %3115 = vmatpush3.msra.mxu0 %v1599_v59  ;;  %3208 = vmatpush3.msra.mxu1 %v1600_v61  ;;  %v982_v61 = vld [vmem:[#allocation2 + $0x68] sm:$0xff] }
  0xe6   : > { %3116 = vmatprep.subr.mxu0 %v1598_v2  ;;  %3193 = vmatprep.subr.mxu1 %v1599_v59 }
  0xe7   : > { %2126 = vmatmul.mubr.f32.gmra.mxu0 %v1041_v40  ;;  %2351 = vmatmul.mubr.f32.gmra.mxu1 %v979_v29  ;;  %v4091_v40 = vld [vmem:[#allocation2 + $0x52] sm:$0xff]  ;;  %v984_v29 = vld [vmem:[#allocation2 + $0x80] sm:$0xff] }
  0xe8   : > { %2130 = vmatprep.mubr.f32.mxu0 %v4085_v5  ;;  %2355 = vmatprep.mubr.f32.mxu1 %v1044_v23 }
  0xe9   : > { %3117 = vmatpush3.msra.mxu0 %v1598_v2  ;;  %3209 = vmatpush3.msra.mxu1 %v1599_v59  ;;  %v1594_v59 = vld [vmem:[#allocation4 + $0x448] sm:$0xff] }
  0xea   : > { %3118 = vmatprep.subr.mxu0 %v1597_v12  ;;  %3194 = vmatprep.subr.mxu1 %v1598_v2 }
  0xeb   : > { %2131 = vmatmul.mubr.f32.gmra.mxu0 %v1042_v16  ;;  %2356 = vmatmul.mubr.f32.gmra.mxu1 %v980_v21  ;;  %v1047_v16 = vld [vmem:[#allocation2 + $0x79] sm:$0xff]  ;;  %v985_v21 = vld [vmem:[#allocation2 + $0x90] sm:$0xff] }
  0xec   : > { %2135 = vmatprep.mubr.f32.mxu0 %v4088_v47  ;;  %2360 = vmatprep.mubr.f32.mxu1 %v1045_v30 }
  0xed   : > { %3119 = vmatpush3.msra.mxu0 %v1597_v12  ;;  %3210 = vmatpush3.msra.mxu1 %v1598_v2  ;;  %v1593_v2 = vld [vmem:[#allocation4 + $0x440] sm:$0xff] }
  0xee   : > { %3120 = vmatprep.subr.mxu0 %v1596_v44  ;;  %3195 = vmatprep.subr.mxu1 %v1597_v12 }
  0xef   : > { %2136 = vmatmul.mubr.f32.gmra.mxu0 %v1043_v45  ;;  %2361 = vmatmul.mubr.f32.gmra.mxu1 %v981_v10  ;;  %v1048_v45 = vld [vmem:[#allocation2 + $0x81] sm:$0xff]  ;;  %v3264_v10 = vld [vmem:[#allocation2 + $0xa9] sm:$0xff] }
  0xf0   : > { %2140 = vmatprep.mubr.f32.mxu0 %v4091_v40  ;;  %2365 = vmatprep.mubr.f32.mxu1 %v1046_v33 }
  0xf1   : > { %3121 = vmatpush3.msra.mxu0 %v1596_v44  ;;  %3211 = vmatpush3.msra.mxu1 %v1597_v12  ;;  %v1592_v12 = vld [vmem:[#allocation4 + $0x438] sm:$0xff] }
  0xf2   : > { %3122 = vmatprep.subr.mxu0 %v1595_v50  ;;  %3196 = vmatprep.subr.mxu1 %v1596_v44 }
  0xf3   : > { %2141 = vmatmul.mubr.f32.gmra.mxu0 %v1044_v23  ;;  %2366 = vmatmul.mubr.f32.gmra.mxu1 %v982_v61  ;;  %v1049_v23 = vld [vmem:[#allocation2 + $0x91] sm:$0xff]  ;;  %v860_v61 = vld [vmem:[#allocation2 + $0xa9] sm:$0xff] }
  0xf4   : > { %2145 = vmatprep.mubr.f32.mxu0 %v4094_v62  ;;  %2370 = vmatprep.mubr.f32.mxu1 %v1047_v16 }
  0xf5   : > { %3123 = vmatpush3.msra.mxu0 %v1595_v50  ;;  %3212 = vmatpush3.msra.mxu1 %v1596_v44  ;;  %v3263_v44 = vld [vmem:[#allocation2 + $0x99] sm:$0xff] }
  0xf6   : > { %3124 = vmatprep.subr.mxu0 %v1594_v59  ;;  %3197 = vmatprep.subr.mxu1 %v1595_v50 }
  0xf7   : > { %2146 = vmatmul.mubr.f32.gmra.mxu0 %v1045_v30  ;;  %2371 = vmatmul.mubr.f32.gmra.mxu1 %v983_v4  ;;  %v1591_v30 = vld [vmem:[#allocation4 + $0x430] sm:$0xff] }
  0xf8   : > { %2150 = vmatprep.mubr.f32.mxu0 %v4097_v13  ;;  %2375 = vmatprep.mubr.f32.mxu1 %v1048_v45 }
  0xf9   : > { %3125 = vmatpush3.msra.mxu0 %v1594_v59  ;;  %3213 = vmatpush3.msra.mxu1 %v1595_v50  ;;  %v859_v50 = vld [vmem:[#allocation2 + $0x99] sm:$0xff] }
  0xfa   : > { %3126 = vmatprep.subr.mxu0 %v1593_v2  ;;  %3198 = vmatprep.subr.mxu1 %v1594_v59 }
  0xfb   : > { %2151 = vmatmul.mubr.f32.gmra.mxu0 %v1046_v33  ;;  %2376 = vmatmul.mubr.f32.gmra.mxu1 %v984_v29  ;;  %v3265_v33 = vld [vmem:[#allocation2 + $0xb1] sm:$0xff]  ;;  %v3272_v29 = vld [vmem:[#allocation2 + $0x109] sm:$0xff] }
  0xfc   : > { %2155 = vmatprep.mubr.f32.mxu0 %v3846_v8  ;;  %2380 = vmatprep.mubr.f32.mxu1 %v1049_v23  ;;  %v1590_v8 = vld [vmem:[#allocation4 + $0x428] sm:$0xff] }
  0xfd   : > { %3127 = vmatpush3.msra.mxu0 %v1593_v2  ;;  %3214 = vmatpush3.msra.mxu1 %v1594_v59  ;;  %v3271_v59 = vld [vmem:[#allocation2 + $0xf9] sm:$0xff] }
  0xfe   : > { %3128 = vmatprep.subr.mxu0 %v1592_v12  ;;  %3199 = vmatprep.subr.mxu1 %v1593_v2 }
  0xff   : > { %2156 = vmatmul.mubr.f32.gmra.mxu0 %v1047_v16  ;;  %2381 = vmatmul.mubr.f32.gmra.mxu1 %v985_v21  ;;  %v861_v16 = vld [vmem:[#allocation2 + $0xb1] sm:$0xff] }
 0x100   : > { %2160 = vmatprep.mubr.f32.mxu0 %v3856_v14  ;;  %2385 = vmatprep.mubr.f32.mxu1 %v3263_v44  ;;  %v1589_v14 = vld [vmem:[#allocation4 + $0x420] sm:$0xff] }
 0x101   : > { %3129 = vmatpush3.msra.mxu0 %v1592_v12  ;;  %3215 = vmatpush3.msra.mxu1 %v1593_v2 }
 0x102   : > { %3130 = vmatprep.subr.mxu0 %v1591_v30  ;;  %3200 = vmatprep.subr.mxu1 %v1592_v12 }
 0x103   : > { %2161 = vmatmul.mubr.f32.gmra.mxu0 %v1048_v45  ;;  %2386 = vmatmul.mubr.f32.gmra.mxu1 %v3849_v18  ;;  %v1588_v18 = vld [vmem:[#allocation4 + $0x418] sm:$0xff] }
 0x104   : > { %2165 = vmatprep.mubr.f32.mxu0 %v3866_v15  ;;  %2390 = vmatprep.mubr.f32.mxu1 %v3264_v10  ;;  %v3266_v15 = vld [vmem:[#allocation2 + $0xc1] sm:$0xff] }
 0x105   : > { %3131 = vmatpush3.msra.mxu0 %v1591_v30  ;;  %3216 = vmatpush3.msra.mxu1 %v1592_v12 }
 0x106   : > { %3132 = vmatprep.subr.mxu0 %v1590_v8  ;;  %3201 = vmatprep.subr.mxu1 %v1591_v30 }
 0x107   : > { %2166 = vmatmul.mubr.f32.gmra.mxu0 %v1049_v23  ;;  %2391 = vmatmul.mubr.f32.gmra.mxu1 %v3859_v24  ;;  %v1587_v24 = vld [vmem:[#allocation4 + $0x410] sm:$0xff] }
 0x108   : > { %2170 = vmatprep.mubr.f32.mxu0 %v3876_v19  ;;  %2395 = vmatprep.mubr.f32.mxu1 %v3265_v33  ;;  %v3267_v19 = vld [vmem:[#allocation2 + $0xc9] sm:$0xff] }
 0x109   : > { %3133 = vmatpush3.msra.mxu0 %v1590_v8  ;;  %3217 = vmatpush3.msra.mxu1 %v1591_v30  ;;  %v3273_v30 = vld [vmem:[#allocation2 + $0x111] sm:$0xff] }
 0x10a   : > { %3134 = vmatprep.subr.mxu0 %v1589_v14  ;;  %3202 = vmatprep.subr.mxu1 %v1590_v8 }
 0x10b   : > { %2171 = vmatmul.mubr.f32.gmra.mxu0 %v859_v50  ;;  %2396 = vmatmul.mubr.f32.gmra.mxu1 %v3869_v25  ;;  %v1586_v25 = vld [vmem:[#allocation4 + $0x408] sm:$0xff] }
 0x10c   : > { %2175 = vmatprep.mubr.f32.mxu0 %v3887_v27  ;;  %2400 = vmatprep.mubr.f32.mxu1 %v3266_v15  ;;  %v3268_v27 = vld [vmem:[#allocation2 + $0xd9] sm:$0xff] }
 0x10d   : > { %3135 = vmatpush3.msra.mxu0 %v1589_v14  ;;  %3218 = vmatpush3.msra.mxu1 %v1590_v8 }
 0x10e   : > { %3136 = vmatprep.subr.mxu0 %v1588_v18  ;;  %3203 = vmatprep.subr.mxu1 %v1589_v14 }
 0x10f   : > { %2176 = vmatmul.mubr.f32.gmra.mxu0 %v860_v61  ;;  %2401 = vmatmul.mubr.f32.gmra.mxu1 %v3879_v31  ;;  %v1585_v31 = vld [vmem:[#allocation4 + $0x400] sm:$0xff] }
 0x110   : > { %2180 = vmatprep.mubr.f32.mxu0 %v3898_v32  ;;  %2405 = vmatprep.mubr.f32.mxu1 %v3267_v19  ;;  %v3269_v32 = vld [vmem:[#allocation2 + $0xe1] sm:$0xff] }
 0x111   : > { %3137 = vmatpush3.msra.mxu0 %v1588_v18  ;;  %3219 = vmatpush3.msra.mxu1 %v1589_v14  ;;  %v3274_v14 = vld [vmem:[#allocation2 + $0x121] sm:$0xff] }
 0x112   : > { %3138 = vmatprep.subr.mxu0 %v1587_v24  ;;  %3204 = vmatprep.subr.mxu1 %v1588_v18 }
 0x113   : > { %2181 = vmatmul.mubr.f32.gmra.mxu0 %v861_v16  ;;  %2406 = vmatmul.mubr.f32.gmra.mxu1 %v3890_v38  ;;  %v3270_v38 = vld [vmem:[#allocation2 + $0xf1] sm:$0xff]  ;;  %v3276_v16 = vld [vmem:[#allocation2 + $0x139] sm:$0xff] }
 0x114   : > { %2185 = vmatprep.mubr.f32.mxu0 %v3909_v39  ;;  %2410 = vmatprep.mubr.f32.mxu1 %v3268_v27 }
 0x115   : > { %3139 = vmatpush3.msra.mxu0 %v1587_v24  ;;  %3220 = vmatpush3.msra.mxu1 %v1588_v18 }
 0x116   : > { %3140 = vmatprep.subr.mxu0 %v1586_v25  ;;  %3205 = vmatprep.subr.mxu1 %v1587_v24 }
 0x117   : > { %2186 = vmatmul.mubr.f32.gmra.mxu0 %v3266_v15  ;;  %2411 = vmatmul.mubr.f32.gmra.mxu1 %v3901_v42  ;;  %v3275_v15 = vld [vmem:[#allocation2 + $0x129] sm:$0xff] }
 0x118   : > { %2190 = vmatprep.mubr.f32.mxu0 %v3920_v43  ;;  %2415 = vmatprep.mubr.f32.mxu1 %v3269_v32 }
 0x119   : > { %3141 = vmatpush3.msra.mxu0 %v1586_v25  ;;  %3221 = vmatpush3.msra.mxu1 %v1587_v24 }
 0x11a   : > { %3142 = vmatprep.subr.mxu0 %v1585_v31  ;;  %3206 = vmatprep.subr.mxu1 %v1586_v25 }
 0x11b   : > { %2191 = vmatmul.mubr.f32.gmra.mxu0 %v3267_v19  ;;  %2416 = vmatmul.mubr.f32.gmra.mxu1 %v3912_v48 }
 0x11c   : > { %2195 = vmatprep.mubr.f32.mxu0 %v3931_v49  ;;  %2420 = vmatprep.mubr.f32.mxu1 %v3270_v38 }
 0x11d   : > { %3143 = vmatpush3.msra.mxu0 %v1585_v31  ;;  %3222 = vmatpush3.msra.mxu1 %v1586_v25 }
 0x11e   : > { %3207 = vmatprep.subr.mxu1 %v1585_v31 }
 0x11f   : > { %v1667_v42 = vpop.f32.mrf.mxu0  ;;  %v1892_v39 = vpop.f32.mrf.mxu1  ;;  %2196 = vmatmul.mubr.f32.gmra.mxu0 %v3268_v27  ;;  %2421 = vmatmul.mubr.f32.gmra.mxu1 %v3923_v51 }
 0x120   : > { %v4117_v43 = vadd.f32 %v1892_v39, %v1667_v42  ;;  %2200 = vmatprep.mubr.f32.mxu0 %v3942_v3  ;;  %2425 = vmatprep.mubr.f32.mxu1 %v3271_v59 }
 0x121   : > { %v1669_v4 = vpop.f32.mrf.mxu0  ;;  %v1894_v48 = vpop.f32.mrf.mxu1  ;;  %3223 = vmatpush3.msra.mxu1 %v1585_v31 }
 0x123   : > { %v1672_v49 = vpop.f32.mrf.mxu0  ;;  %v1897_v45 = vpop.f32.mrf.mxu1  ;;  %2201 = vmatmul.mubr.f32.gmra.mxu0 %v3269_v32  ;;  %2426 = vmatmul.mubr.f32.gmra.mxu1 %v3934_v60  ;;  %v3277_v32 = vld [vmem:[#allocation2 + $0x141] sm:$0xff] }
 0x124   : > { %v4121_v2 = vadd.f32 %v1897_v45, %v1672_v49  ;;  %2205 = vmatprep.mubr.f32.mxu0 %v3953_v11  ;;  %2430 = vmatprep.mubr.f32.mxu1 %v3272_v29  ;;  %v3279_v45 = vld [vmem:[#allocation2 + $0x159] sm:$0xff] }
 0x125   : > { %v1674_v51 = vpop.f32.mrf.mxu0  ;;  %v1899_v23 = vpop.f32.mrf.mxu1 }
 0x127   : > { %v1677_v12 = vpop.f32.mrf.mxu0  ;;  %v1902_v3 = vpop.f32.mrf.mxu1  ;;  %2206 = vmatmul.mubr.f32.gmra.mxu0 %v3270_v38  ;;  %2431 = vmatmul.mubr.f32.gmra.mxu1 %v3945_v17 }
 0x128   : > { %v4125_v21 = vadd.f32 %v1902_v3, %v1677_v12  ;;  %2210 = vmatprep.mubr.f32.mxu0 %v3964_v56  ;;  %2435 = vmatprep.mubr.f32.mxu1 %v3273_v30  ;;  %v3280_v12 = vld [vmem:[#allocation2 + $0x169] sm:$0xff] }
 0x129   : > { %v1679_v60 = vpop.f32.mrf.mxu0  ;;  %v1904_v44 = vpop.f32.mrf.mxu1 }
 0x12a   : > { %v3281_v44 = vld [vmem:[#allocation2 + $0x171] sm:$0xff] }
 0x12b   : > { %v1682_v8 = vpop.f32.mrf.mxu0  ;;  %v1907_v10 = vpop.f32.mrf.mxu1  ;;  %2211 = vmatmul.mubr.f32.gmra.mxu0 %v3271_v59  ;;  %2436 = vmatmul.mubr.f32.gmra.mxu1 %v3956_v9  ;;  %v3278_v59 = vld [vmem:[#allocation2 + $0x151] sm:$0xff] }
 0x12c   : > { %v4129_v11 = vadd.f32 %v1907_v10, %v1682_v8  ;;  %2215 = vmatprep.mubr.f32.mxu0 %v3975_v37  ;;  %2440 = vmatprep.mubr.f32.mxu1 %v3274_v14 }
 0x12d   : > { %v1684_v17 = vpop.f32.mrf.mxu0  ;;  %v1909_v33 = vpop.f32.mrf.mxu1 }
 0x12e   : > { %v3282_v17 = vld [vmem:[#allocation2 + $0x181] sm:$0xff] }
 0x12f   : > { %v1687_v50 = vpop.f32.mrf.mxu0  ;;  %v1912_v18 = vpop.f32.mrf.mxu1  ;;  %2216 = vmatmul.mubr.f32.gmra.mxu0 %v3272_v29  ;;  %2441 = vmatmul.mubr.f32.gmra.mxu1 %v3967_v36 }
 0x130   : > { %v4133_v56 = vadd.f32 %v1912_v18, %v1687_v50  ;;  %2220 = vmatprep.mubr.f32.mxu0 %v3986_v26  ;;  %2445 = vmatprep.mubr.f32.mxu1 %v3275_v15 }
 0x131   : > { %v1689_v9 = vpop.f32.mrf.mxu0  ;;  %v1914_v61 = vpop.f32.mrf.mxu1 }
 0x132   : > { %v4168_v61 = vld [vmem:[#allocation2 + $0x182] sm:$0xff] }
 0x133   : > { %v1692_v24 = vpop.f32.mrf.mxu0  ;;  %v1917_v19 = vpop.f32.mrf.mxu1  ;;  %2221 = vmatmul.mubr.f32.gmra.mxu0 %v3273_v30  ;;  %2446 = vmatmul.mubr.f32.gmra.mxu1 %v3978_v46 }
 0x134   : > { %v4137_v37 = vadd.f32 %v1917_v19, %v1692_v24  ;;  %2225 = vmatprep.mubr.f32.mxu0 %v3997_v28  ;;  %2450 = vmatprep.mubr.f32.mxu1 %v3276_v16 }
 0x135   : > { %v1694_v36 = vpop.f32.mrf.mxu0  ;;  %v1919_v25 = vpop.f32.mrf.mxu1 }
 0x136   : > { %v4174_v25 = vld [vmem:[#allocation2 + $0x18a] sm:$0xff] }
 0x137   : > { %v1697_v27 = vpop.f32.mrf.mxu0  ;;  %v1922_v31 = vpop.f32.mrf.mxu1  ;;  %2226 = vmatmul.mubr.f32.gmra.mxu0 %v3274_v14  ;;  %2451 = vmatmul.mubr.f32.gmra.mxu1 %v3989_v20 }
 0x138   : > { %v4141_v26 = vadd.f32 %v1922_v31, %v1697_v27  ;;  %2230 = vmatprep.mubr.f32.mxu0 %v4008_v57  ;;  %2455 = vmatprep.mubr.f32.mxu1 %v3277_v32  ;;  %v1072_v27 = vld [vmem:[#allocation2 + $0x1a1] sm:$0xff] }
 0x139   : > { %v1699_v46 = vpop.f32.mrf.mxu0  ;;  %v1924_v38 = vpop.f32.mrf.mxu1 }
 0x13a   : > { %v3284_v46 = vld [vmem:[#allocation2] sm:$0xff] }
 0x13b   : > { %v1702_v42 = vpop.f32.mrf.mxu0  ;;  %v1927_v39 = vpop.f32.mrf.mxu1  ;;  %2231 = vmatmul.mubr.f32.gmra.mxu0 %v3275_v15  ;;  %2456 = vmatmul.mubr.f32.gmra.mxu1 %v4000_v52  ;;  %v3283_v15 = vld [vmem:[#allocation2 + $0x189] sm:$0xff] }
 0x13c   : > { %v4145_v28 = vadd.f32 %v1927_v39, %v1702_v42  ;;  %2235 = vmatprep.mubr.f32.mxu0 %v4019_v53  ;;  %2460 = vmatprep.mubr.f32.mxu1 %v3278_v59  ;;  %v1121_v39 = vld [vmem:[#allocation2 + $0xf2] sm:$0xff] }
 0x13d   : > { %v1704_v20 = vpop.f32.mrf.mxu0  ;;  %v1929_v4 = vpop.f32.mrf.mxu1 }
 0x13f   : > { %v1707_v48 = vpop.f32.mrf.mxu0  ;;  %v1932_v49 = vpop.f32.mrf.mxu1  ;;  %2236 = vmatmul.mubr.f32.gmra.mxu0 %v3276_v16  ;;  %2461 = vmatmul.mubr.f32.gmra.mxu1 %v4011_v54 }
 0x140   : > { %v4149_v57 = vadd.f32 %v1932_v49, %v1707_v48  ;;  %2240 = vmatprep.mubr.f32.mxu0 %v4030_v58  ;;  %2465 = vmatprep.mubr.f32.mxu1 %v3279_v45  ;;  %v1122_v48 = vld [vmem:[#allocation2 + $0xfa] sm:$0xff] }
 0x141   : > { %v1709_v52 = vpop.f32.mrf.mxu0  ;;  %v1934_v29 = vpop.f32.mrf.mxu1 }
 0x142   : > { %v1123_v52 = vld [vmem:[#allocation2 + $0x10a] sm:$0xff] }
 0x143   : > { %v1712_v51 = vpop.f32.mrf.mxu0  ;;  %v1937_v23 = vpop.f32.mrf.mxu1  ;;  %2241 = vmatmul.mubr.f32.gmra.mxu0 %v3277_v32  ;;  %2466 = vmatmul.mubr.f32.gmra.mxu1 %v4022_v1 }
 0x144   : > { %v4153_v53 = vadd.f32 %v1937_v23, %v1712_v51  ;;  %2245 = vmatprep.mubr.f32.mxu0 %v4041_v7  ;;  %2470 = vmatprep.mubr.f32.mxu1 %v3280_v12 }
 0x145   : > { %v1714_v54 = vpop.f32.mrf.mxu0  ;;  %v1939_v3 = vpop.f32.mrf.mxu1 }
 0x147   : > { %v1717_v30 = vpop.f32.mrf.mxu0  ;;  %v1942_v60 = vpop.f32.mrf.mxu1  ;;  %2246 = vmatmul.mubr.f32.gmra.mxu0 %v3278_v59  ;;  %2471 = vmatmul.mubr.f32.gmra.mxu1 %v4033_v6 }
 0x148   : > { %v4157_v58 = vadd.f32 %v1942_v60, %v1717_v30  ;;  %2250 = vmatprep.mubr.f32.mxu0 %v4052_v55  ;;  %2475 = vmatprep.mubr.f32.mxu1 %v3281_v44  ;;  %v1125_v30 = vld [vmem:[#allocation2 + $0x122] sm:$0xff] }
 0x149   : > { %v1719_v1 = vpop.f32.mrf.mxu0  ;;  %v1944_v8 = vpop.f32.mrf.mxu1 }
 0x14b   : > { %v1722_v10 = vpop.f32.mrf.mxu0  ;;  %v1947_v14 = vpop.f32.mrf.mxu1  ;;  %2251 = vmatmul.mubr.f32.gmra.mxu0 %v3279_v45  ;;  %2476 = vmatmul.mubr.f32.gmra.mxu1 %v4044_v34 }
 0x14c   : > { %v4161_v7 = vadd.f32 %v1947_v14, %v1722_v10  ;;  %2255 = vmatprep.mubr.f32.mxu0 %v4063_v35  ;;  %2480 = vmatprep.mubr.f32.mxu1 %v3282_v17  ;;  %v1071_v35 = vld [vmem:[#allocation2 + $0x199] sm:$0xff] }
 0x14d   : > { %v1724_v6 = vpop.f32.mrf.mxu0  ;;  %v1949_v33 = vpop.f32.mrf.mxu1  ;;  %v1111_v10 = vld [vmem:[#allocation2 + $0x7a] sm:$0xff] }
 0x14e   : > { %v1128_v33 = vld [vmem:[#allocation2 + $0x142] sm:$0xff] }
 0x14f   : > { %v1727_v50 = vpop.f32.mrf.mxu0  ;;  %v1952_v18 = vpop.f32.mrf.mxu1  ;;  %2256 = vmatmul.mubr.f32.gmra.mxu0 %v3280_v12  ;;  %2481 = vmatmul.mubr.f32.gmra.mxu1 %v4056_v63  ;;  %v1124_v12 = vld [vmem:[#allocation2 + $0x112] sm:$0xff] }
 0x150   : > { %v4165_v55 = vadd.f32 %v1952_v18, %v1727_v50  ;;  %2260 = vmatprep.mubr.f32.mxu0 %v4074_v22  ;;  %2485 = vmatprep.mubr.f32.mxu1 %v3283_v15 }
 0x151   : > { %v1729_v34 = vpop.f32.mrf.mxu0  ;;  %v1954_v9 = vpop.f32.mrf.mxu1 }
 0x153   : > { %v1732_v24 = vpop.f32.mrf.mxu0  ;;  %v1957_v19 = vpop.f32.mrf.mxu1  ;;  %2261 = vmatmul.mubr.f32.gmra.mxu0 %v3281_v44  ;;  %2486 = vmatmul.mubr.f32.gmra.mxu1 %v4067_v41 }
 0x154   : > { %v4171_v16 = vadd.f32 %v1957_v19, %v1732_v24  ;;  %2265 = vmatprep.mubr.f32.mxu0 %v4168_v61  ;;  %2490 = vmatprep.mubr.f32.mxu1 %v1071_v35  ;;  %v1130_v24 = vld [vmem:[#allocation2 + $0x15a] sm:$0xff] }
 0x155   : > { %v1734_v63 = vpop.f32.mrf.mxu0  ;;  %v1959_v36 = vpop.f32.mrf.mxu1 }
 0x156   : > { %v1115_v36 = vld [vmem:[#allocation2 + $0xaa] sm:$0xff] }
 0x157   : > { %v1737_v31 = vpop.f32.mrf.mxu0  ;;  %v1962_v32 = vpop.f32.mrf.mxu1  ;;  %2266 = vmatmul.mubr.f32.gmra.mxu0 %v3282_v17  ;;  %2491 = vmatmul.mubr.f32.gmra.mxu1 %v3284_v46 }
 0x158   : > { %v4176_v38 = vadd.f32 %v1962_v32, %v1737_v31  ;;  %2270 = vmatprep.mubr.f32.mxu0 %v4174_v25  ;;  %2495 = vmatprep.mubr.f32.mxu1 %v1072_v27  ;;  %v1131_v27 = vld [vmem:[#allocation2 + $0x16a] sm:$0xff] }
 0x159   : > { %v1739_v41 = vpop.f32.mrf.mxu0  ;;  %v1964_v42 = vpop.f32.mrf.mxu1 }
 0x15a   : > { %v1116_v41 = vld [vmem:[#allocation2 + $0xb2] sm:$0xff] }
 0x15b   : > { %v1742_v59 = vpop.f32.mrf.mxu0  ;;  %v1967_v20 = vpop.f32.mrf.mxu1  ;;  %2271 = vmatmul.mubr.f32.gmra.mxu0 %v3283_v15  ;;  %2496 = vmatmul.mubr.f32.gmra.mxu1 %v3284_v46  ;;  %v1129_v15 = vld [vmem:[#allocation2 + $0x152] sm:$0xff] }
 0x15c   : > { %v4179_v4 = vadd.f32 %v1967_v20, %v1742_v59  ;;  %3144 = vmatprep.mubr.f32.mxu0 %v4082_v0  ;;  %3168 = vmatprep.mubr.f32.mxu1 %v1121_v39  ;;  %v1117_v59 = vld [vmem:[#allocation2 + $0xc2] sm:$0xff] }
 0x15d   : > { %v1744_v49 = vpop.f32.mrf.mxu0  ;;  %v1969_v45 = vpop.f32.mrf.mxu1 }
 0x15e   : > { %v1118_v45 = vld [vmem:[#allocation2 + $0xca] sm:$0xff] }
 0x15f   : > { %v1747_v29 = vpop.f32.mrf.mxu0  ;;  %v1972_v51 = vpop.f32.mrf.mxu1  ;;  %3145 = vmatmul.mubr.f32.vlgmr.msra.gmra.mxu0 %v4085_v5  ;;  %3169 = vmatmul.mubr.f32.vlgmr.msra.gmra.mxu1 %v1122_v48  ;;  %v1126_v5 = vld [vmem:[#allocation2 + $0x12a] sm:$0xff] }
 0x160   : > { %v4183_v23 = vadd.f32 %v1972_v51, %v1747_v29  ;;  %3147 = vmatprep.mubr.f32.mxu0 %v4088_v47  ;;  %3171 = vmatprep.mubr.f32.mxu1 %v1123_v52  ;;  %v1127_v47 = vld [vmem:[#allocation2 + $0x13a] sm:$0xff] }
 0x161   : > { %v1749_v54 = vpop.f32.mrf.mxu0  ;;  %v1974_v3 = vpop.f32.mrf.mxu1  ;;  %v1119_v51 = vld [vmem:[#allocation2 + $0xda] sm:$0xff] }
 0x163   : > { %v1752_v0 = vpop.f32.mrf.mxu0  ;;  %v1977_v60 = vpop.f32.mrf.mxu1  ;;  %3148 = vmatmul.mubr.f32.gmra.mxu0 %v4091_v40  ;;  %3172 = vmatmul.mubr.f32.gmra.mxu1 %v1124_v12  ;;  %v1112_v40 = vld [vmem:[#allocation2 + $0x82] sm:$0xff]  ;;  %v1135_v12 = vld [vmem:[#allocation2 + $0x19a] sm:$0xff] }
 0x164   : > { %v4187_v44 = vadd.f32 %v1977_v60, %v1752_v0  ;;  %3150 = vmatprep.mubr.f32.mxu0 %v4094_v62  ;;  %3174 = vmatprep.mubr.f32.mxu1 %v1125_v30  ;;  %v1113_v62 = vld [vmem:[#allocation2 + $0x92] sm:$0xff]  ;;  %v1136_v0 = vld [vmem:[#allocation2 + $0x1a2] sm:$0xff] }
 0x165   : > { %v1754_v1 = vpop.f32.mrf.mxu0  ;;  %v1979_v8 = vpop.f32.mrf.mxu1 }
 0x167   : > { %v1757_v14 = vpop.f32.mrf.mxu0  ;;  %v1982_v17 = vpop.f32.mrf.mxu1  ;;  %3151 = vmatmul.mubr.f32.gmra.mxu0 %v4097_v13  ;;  %3175 = vmatmul.mubr.f32.gmra.mxu1 %v1126_v5  ;;  %v1114_v13 = vld [vmem:[#allocation2 + $0x9a] sm:$0xff] }
 0x168   : > { %v4191_v6 = vadd.f32 %v1982_v17, %v1757_v14  ;;  %3153 = vmatprep.mubr.f32.mxu0 %v1111_v10  ;;  %3177 = vmatprep.mubr.f32.mxu1 %v1127_v47 }
 0x169   : > { %v1759_v50 = vpop.f32.mrf.mxu0  ;;  %v1984_v18 = vpop.f32.mrf.mxu1 }
 0x16b   : > { %v1762_v34 = vpop.f32.mrf.mxu0  ;;  %v1987_v9 = vpop.f32.mrf.mxu1  ;;  %3154 = vmatmul.mubr.f32.gmra.mxu0 %v1112_v40  ;;  %3178 = vmatmul.mubr.f32.gmra.mxu1 %v1128_v33 }
 0x16c   : > { %v4193_v35 = vadd.f32 %v1987_v9, %v1762_v34  ;;  %3156 = vmatprep.mubr.f32.mxu0 %v1113_v62  ;;  %3180 = vmatprep.mubr.f32.mxu1 %v1129_v15 }
 0x16d   : > { %v1764_v19 = vpop.f32.mrf.mxu0  ;;  %v1989_v63 = vpop.f32.mrf.mxu1 }
 0x16f   : > { %v1767_v31 = vpop.f32.mrf.mxu0  ;;  %v1992_v32 = vpop.f32.mrf.mxu1  ;;  %3157 = vmatmul.mubr.f32.gmra.mxu0 %v1114_v13  ;;  %3181 = vmatmul.mubr.f32.gmra.mxu1 %v1130_v24 }
 0x170   : > { %v4195_v46 = vadd.f32 %v1992_v32, %v1767_v31  ;;  %3159 = vmatprep.mubr.f32.mxu0 %v1115_v36  ;;  %3183 = vmatprep.mubr.f32.mxu1 %v1131_v27 }
 0x171   : > { %v1769_v42 = vpop.f32.mrf.mxu0  ;;  %v1994_v39 = vpop.f32.mrf.mxu1 }
 0x173   : > { %v1772_v20 = vpop.f32.mrf.mxu0  ;;  %v1997_v48 = vpop.f32.mrf.mxu1  ;;  %3160 = vmatmul.mubr.f32.gmra.mxu0 %v1116_v41  ;;  %3184 = vmatmul.mubr.f32.gmra.mxu1 %v4074_v22  ;;  %v1120_v22 = vld [vmem:[#allocation2 + $0xe2] sm:$0xff] }
 0x174   : > { %v4198_v49 = vadd.f32 %v1997_v48, %v1772_v20  ;;  %3162 = vmatprep.mubr.f32.mxu0 %v1117_v59  ;;  %3186 = vmatprep.mubr.f32.mxu1 %v4168_v61 }
 0x175   : > { %v1774_v52 = vpop.f32.mrf.mxu0  ;;  %v1999_v29 = vpop.f32.mrf.mxu1 }
 0x177   : > { %v1777_v54 = vpop.f32.mrf.mxu0  ;;  %v2002_v3 = vpop.f32.mrf.mxu1  ;;  %3163 = vmatmul.mubr.f32.gmra.mxu0 %v1118_v45  ;;  %3187 = vmatmul.mubr.f32.gmra.mxu1 %v4174_v25 }
 0x178   : > { %v4202_v30 = vadd.f32 %v2002_v3, %v1777_v54  ;;  %3165 = vmatprep.mubr.f32.mxu0 %v1119_v51  ;;  %3189 = vmatprep.mubr.f32.mxu1 %v1135_v12 }
 0x179   : > { %v1779_v60 = vpop.f32.mrf.mxu0  ;;  %v2004_v5 = vpop.f32.mrf.mxu1 }
 0x17b   : > { %v1782_v1 = vpop.f32.mrf.mxu0  ;;  %v2007_v61 = vpop.f32.mrf.mxu1  ;;  %3166 = vmatmul.mubr.f32.gmra.mxu0 %v1120_v22  ;;  %3190 = vmatmul.mubr.f32.gmra.mxu1 %v1136_v0 }
 0x17c   : > { %v4204_v8 = vadd.f32 %v2007_v61, %v1782_v1 }
 0x17d   : > { %v1784_v10 = vpop.f32.mrf.mxu0  ;;  %v2009_v47 = vpop.f32.mrf.mxu1 }
 0x17f   : > { %v1787_v14 = vpop.f32.mrf.mxu0  ;;  %v2012_v17 = vpop.f32.mrf.mxu1 }
 0x180   : > { %v4206_v40 = vadd.f32 %v2012_v17, %v1787_v14 }
 0x181   : > { %v1789_v25 = vpop.f32.mrf.mxu0  ;;  %v2014_v33 = vpop.f32.mrf.mxu1 }
 0x183   : > { %v1792_v50 = vpop.f32.mrf.mxu0  ;;  %v2017_v18 = vpop.f32.mrf.mxu1 }
 0x184   : > { %v4208_v62 = vadd.f32 %v2017_v18, %v1792_v50 }
 0x185   : > { %v1794_v15 = vpop.f32.mrf.mxu0  ;;  %v2019_v34 = vpop.f32.mrf.mxu1 }
 0x187   : > { %v1797_v9 = vpop.f32.mrf.mxu0  ;;  %v2022_v13 = vpop.f32.mrf.mxu1 }
 0x188   : > { %v4210_v24 = vadd.f32 %v2022_v13, %v1797_v9 }
 0x189   : > { %v1799_v19 = vpop.f32.mrf.mxu0  ;;  %v2024_v63 = vpop.f32.mrf.mxu1 }
 0x18b   : > { %v1802_v36 = vpop.f32.mrf.mxu0  ;;  %v2027_v27 = vpop.f32.mrf.mxu1 }
 0x18c   : > { %v4212_v31 = vadd.f32 %v2027_v27, %v1802_v36 }
 0x18d   : > { %v1804_v32 = vpop.f32.mrf.mxu0  ;;  %v2029_v41 = vpop.f32.mrf.mxu1 }
 0x18f   : > { %v1807_v42 = vpop.f32.mrf.mxu0  ;;  %v2032_v39 = vpop.f32.mrf.mxu1 }
 0x190   : > { %v4214_v59 = vadd.f32 %v2032_v39, %v1807_v42 }
 0x191   : > { %v1809_v20 = vpop.f32.mrf.mxu0  ;;  %v2034_v48 = vpop.f32.mrf.mxu1 }
 0x193   : > { %v1812_v45 = vpop.f32.mrf.mxu0  ;;  %v2037_v52 = vpop.f32.mrf.mxu1 }
 0x194   : > { %v4216_v29 = vadd.f32 %v2037_v52, %v1812_v45 }
 0x195   : > { %v1814_v51 = vpop.f32.mrf.mxu0  ;;  %v2039_v12 = vpop.f32.mrf.mxu1 }
 0x197   : > { %v1817_v54 = vpop.f32.mrf.mxu0  ;;  %v2042_v3 = vpop.f32.mrf.mxu1 }
 0x198   : > { %v4218_v22 = vadd.f32 %v2042_v3, %v1817_v54 }
 0x199   : > { %v1819_v0 = vpop.f32.mrf.mxu0  ;;  %v2044_v60 = vpop.f32.mrf.mxu1 }
 0x19a   : > { %4561 = vst [vmem:[#allocation7_spill] sm:$0xff] %v4218_v22 }
 0x19b   : > { %v1822_v5 = vpop.f32.mrf.mxu0  ;;  %v2047_v1 = vpop.f32.mrf.mxu1 }
 0x19c   : > { %v4220_v61 = vadd.f32 %v2047_v1, %v1822_v5 }
 0x19d   : > { %v1824_v10 = vpop.f32.mrf.mxu0  ;;  %v2049_v47 = vpop.f32.mrf.mxu1 }
 0x19e   : > { %4562 = vst [vmem:[#allocation8_spill] sm:$0xff] %v4220_v61 }
 0x19f   : > { %v2117_v14 = vpop.f32.mrf.mxu0  ;;  %v2342_v17 = vpop.f32.mrf.mxu1 }
 0x1a0   : > { %v2118_v25 = vadd.f32 %v2117_v14, %v4117_v43 }
 0x1a1   : > { %v2119_v33 = vpop.f32.mrf.mxu0  ;;  %v2344_v50 = vpop.f32.mrf.mxu1 }
 0x1a2   : > { %v4223_v18 = vadd.f32 %v2342_v17, %v2118_v25 }
 0x1a3   : > { %v2122_v15 = vpop.f32.mrf.mxu0  ;;  %v2347_v34 = vpop.f32.mrf.mxu1 }
 0x1a4   : > { %v2123_v9 = vadd.f32 %v2122_v15, %v4121_v2 }
 0x1a5   : > { %v2124_v13 = vpop.f32.mrf.mxu0  ;;  %v2349_v19 = vpop.f32.mrf.mxu1 }
 0x1a6   : > { %v4226_v63 = vadd.f32 %v2347_v34, %v2123_v9 }
 0x1a7   : > { %v2127_v36 = vpop.f32.mrf.mxu0  ;;  %v2352_v27 = vpop.f32.mrf.mxu1 }
 0x1a8   : > { %v2128_v32 = vadd.f32 %v2127_v36, %v4125_v21 }
 0x1a9   : > { %v2129_v41 = vpop.f32.mrf.mxu0  ;;  %v2354_v42 = vpop.f32.mrf.mxu1 }
 0x1aa   : > { %v4229_v39 = vadd.f32 %v2352_v27, %v2128_v32 }
 0x1ab   : > { %v2132_v43 = vpop.f32.mrf.mxu0  ;;  %v2357_v20 = vpop.f32.mrf.mxu1 }
 0x1ac   : > { %v2133_v48 = vadd.f32 %v2132_v43, %v4129_v11 }
 0x1ad   : > { %v2134_v45 = vpop.f32.mrf.mxu0  ;;  %v2359_v52 = vpop.f32.mrf.mxu1 }
 0x1ae   : > { %v4232_v51 = vadd.f32 %v2357_v20, %v2133_v48 }
 0x1af   : > { %v2137_v2 = vpop.f32.mrf.mxu0  ;;  %v2362_v12 = vpop.f32.mrf.mxu1 }
 0x1b0   : > { %v2138_v54 = vadd.f32 %v2137_v2, %v4133_v56 }
 0x1b1   : > { %v2139_v3 = vpop.f32.mrf.mxu0  ;;  %v2364_v0 = vpop.f32.mrf.mxu1 }
 0x1b2   : > { %v4235_v60 = vadd.f32 %v2362_v12, %v2138_v54 }
 0x1b3   : > { %v2142_v21 = vpop.f32.mrf.mxu0  ;;  %v2367_v5 = vpop.f32.mrf.mxu1 }
 0x1b4   : > { %v2143_v1 = vadd.f32 %v2142_v21, %v4137_v37 }
 0x1b5   : > { %v2144_v10 = vpop.f32.mrf.mxu0  ;;  %v2369_v47 = vpop.f32.mrf.mxu1 }
 0x1b6   : > { %v4238_v14 = vadd.f32 %v2367_v5, %v2143_v1 }
 0x1b7   : > { %v2147_v11 = vpop.f32.mrf.mxu0  ;;  %v2372_v17 = vpop.f32.mrf.mxu1 }
 0x1b8   : > { %v2148_v25 = vadd.f32 %v2147_v11, %v4141_v26 }
 0x1b9   : > { %v2149_v33 = vpop.f32.mrf.mxu0  ;;  %v2374_v50 = vpop.f32.mrf.mxu1 }
 0x1ba   : > { %v4241_v15 = vadd.f32 %v2372_v17, %v2148_v25 }
 0x1bb   : > { %v2152_v56 = vpop.f32.mrf.mxu0  ;;  %v2377_v34 = vpop.f32.mrf.mxu1 }
 0x1bc   : > { %v2153_v9 = vadd.f32 %v2152_v56, %v4145_v28 }
 0x1bd   : > { %v2154_v13 = vpop.f32.mrf.mxu0  ;;  %v2379_v19 = vpop.f32.mrf.mxu1 }
 0x1be   : > { %v4244_v36 = vadd.f32 %v2377_v34, %v2153_v9 }
 0x1bf   : > { %v2157_v37 = vpop.f32.mrf.mxu0  ;;  %v2382_v27 = vpop.f32.mrf.mxu1 }
 0x1c0   : > { %v2158_v32 = vadd.f32 %v2157_v37, %v4149_v57 }
 0x1c1   : > { %v2159_v41 = vpop.f32.mrf.mxu0  ;;  %v2384_v42 = vpop.f32.mrf.mxu1 }
 0x1c2   : > { %v4247_v43 = vadd.f32 %v2382_v27, %v2158_v32 }
 0x1c3   : > { %v2162_v26 = vpop.f32.mrf.mxu0  ;;  %v2387_v20 = vpop.f32.mrf.mxu1 }
 0x1c4   : > { %v2163_v48 = vadd.f32 %v2162_v26, %v4153_v53 }
 0x1c5   : > { %v2164_v45 = vpop.f32.mrf.mxu0  ;;  %v2389_v52 = vpop.f32.mrf.mxu1 }
 0x1c6   : > { %v4250_v2 = vadd.f32 %v2387_v20, %v2163_v48 }
 0x1c7   : > { %v2167_v28 = vpop.f32.mrf.mxu0  ;;  %v2392_v12 = vpop.f32.mrf.mxu1 }
 0x1c8   : > { %v2168_v54 = vadd.f32 %v2167_v28, %v4157_v58 }
 0x1c9   : > { %v2169_v3 = vpop.f32.mrf.mxu0  ;;  %v2394_v0 = vpop.f32.mrf.mxu1 }
 0x1ca   : > { %v4253_v21 = vadd.f32 %v2392_v12, %v2168_v54 }
 0x1cb   : > { %v2172_v57 = vpop.f32.mrf.mxu0  ;;  %v2397_v5 = vpop.f32.mrf.mxu1 }
 0x1cc   : > { %v2173_v1 = vadd.f32 %v2172_v57, %v4161_v7 }
 0x1cd   : > { %v2174_v10 = vpop.f32.mrf.mxu0  ;;  %v2399_v47 = vpop.f32.mrf.mxu1 }
 0x1ce   : > { %v4256_v11 = vadd.f32 %v2397_v5, %v2173_v1 }
 0x1cf   : > { %v2177_v53 = vpop.f32.mrf.mxu0  ;;  %v2402_v17 = vpop.f32.mrf.mxu1 }
 0x1d0   : > { %v2178_v25 = vadd.f32 %v2177_v53, %v4165_v55 }
 0x1d1   : > { %v2179_v33 = vpop.f32.mrf.mxu0  ;;  %v2404_v50 = vpop.f32.mrf.mxu1 }
 0x1d2   : > { %v4259_v56 = vadd.f32 %v2402_v17, %v2178_v25 }
 0x1d3   : > { %v2182_v58 = vpop.f32.mrf.mxu0  ;;  %v2407_v34 = vpop.f32.mrf.mxu1 }
 0x1d4   : > { %4563 = vst [vmem:[#allocation9_spill] sm:$0xff] %v4259_v56  ;;  %v2183_v9 = vadd.f32 %v2182_v58, %v4171_v16 }
 0x1d5   : > { %v2184_v13 = vpop.f32.mrf.mxu0  ;;  %v2409_v19 = vpop.f32.mrf.mxu1 }
 0x1d6   : > { %v4262_v37 = vadd.f32 %v2407_v34, %v2183_v9 }
 0x1d7   : > { %v2187_v7 = vpop.f32.mrf.mxu0  ;;  %v2412_v27 = vpop.f32.mrf.mxu1 }
 0x1d8   : > { %4564 = vst [vmem:[#allocation10_spill] sm:$0xff] %v4262_v37  ;;  %v2188_v32 = vadd.f32 %v2187_v7, %v4176_v38 }
 0x1d9   : > { %v2189_v41 = vpop.f32.mrf.mxu0  ;;  %v2414_v42 = vpop.f32.mrf.mxu1 }
 0x1da   : > { %v4265_v26 = vadd.f32 %v2412_v27, %v2188_v32 }
 0x1db   : > { %v2192_v55 = vpop.f32.mrf.mxu0  ;;  %v2417_v20 = vpop.f32.mrf.mxu1 }
 0x1dc   : > { %4565 = vst [vmem:[#allocation11_spill] sm:$0xff] %v4265_v26  ;;  %v2193_v48 = vadd.f32 %v2192_v55, %v4179_v4 }
 0x1dd   : > { %v2194_v45 = vpop.f32.mrf.mxu0  ;;  %v2419_v52 = vpop.f32.mrf.mxu1 }
 0x1de   : > { %v4268_v28 = vadd.f32 %v2417_v20, %v2193_v48 }
 0x1df   : > { %v2197_v16 = vpop.f32.mrf.mxu0  ;;  %v2422_v12 = vpop.f32.mrf.mxu1 }
 0x1e0   : > { %4566 = vst [vmem:[#allocation12_spill] sm:$0xff] %v4268_v28  ;;  %v2198_v54 = vadd.f32 %v2197_v16, %v4183_v23 }
 0x1e1   : > { %v2199_v3 = vpop.f32.mrf.mxu0  ;;  %v2424_v0 = vpop.f32.mrf.mxu1 }
 0x1e2   : > { %v4271_v57 = vadd.f32 %v2422_v12, %v2198_v54 }
 0x1e3   : > { %v2202_v38 = vpop.f32.mrf.mxu0  ;;  %v2427_v5 = vpop.f32.mrf.mxu1 }
 0x1e5   : > { %v2204_v1 = vpop.f32.mrf.mxu0  ;;  %v2429_v10 = vpop.f32.mrf.mxu1 }
 0x1e7   : > { %v2207_v47 = vpop.f32.mrf.mxu0  ;;  %v4273_v53 = vpop.f32.mrf.mxu1 }
 0x1e8   : > { %v2208_v61 = vadd.f32 %v2207_v47, %v4191_v6 }
 0x1e9   : > { %v2209_v4 = vpop.f32.mrf.mxu0  ;;  %v2434_v17 = vpop.f32.mrf.mxu1 }
 0x1eb   : > { %v2212_v25 = vpop.f32.mrf.mxu0  ;;  %v4275_v33 = vpop.f32.mrf.mxu1 }
 0x1ed   : > { %v2214_v50 = vpop.f32.mrf.mxu0  ;;  %v2439_v58 = vpop.f32.mrf.mxu1 }
 0x1ef   : > { %v4277_v34 = vpop.f32.mrf.mxu0  ;;  %v4279_v23 = vpop.f32.mrf.mxu1 }
 0x1f1   : > { %v2219_v9 = vpop.f32.mrf.mxu0  ;;  %v2444_v13 = vpop.f32.mrf.mxu1 }
 0x1f3   : > { %v2222_v19 = vpop.f32.mrf.mxu0  ;;  %v4281_v7 = vpop.f32.mrf.mxu1 }
 0x1f5   : > { %v2224_v27 = vpop.f32.mrf.mxu0  ;;  %v2449_v32 = vpop.f32.mrf.mxu1 }
 0x1f7   : > { %v4283_v41 = vpop.f32.mrf.mxu0  ;;  %v4285_v42 = vpop.f32.mrf.mxu1 }
 0x1f9   : > { %v2229_v55 = vpop.f32.mrf.mxu0  ;;  %v2454_v20 = vpop.f32.mrf.mxu1 }
 0x1fb   : > { %v4287_v48 = vpop.f32.mrf.mxu0  ;;  %v4289_v45 = vpop.f32.mrf.mxu1 }
 0x1fd   : > { %v2234_v52 = vpop.f32.mrf.mxu0  ;;  %v2459_v16 = vpop.f32.mrf.mxu1 }
 0x1ff   : > { %v4291_v12 = vpop.f32.mrf.mxu0  ;;  %v4293_v54 = vpop.f32.mrf.mxu1 }
 0x201   : > { %v2239_v3 = vpop.f32.mrf.mxu0  ;;  %v2464_v0 = vpop.f32.mrf.mxu1 }
 0x203   : > { %v4295_v1 = vpop.f32.mrf.mxu0  ;;  %v4297_v10 = vpop.f32.mrf.mxu1 }
 0x205   : > { %v2244_v4 = vpop.f32.mrf.mxu0  ;;  %v2469_v17 = vpop.f32.mrf.mxu1 }
 0x207   : > { %v4299_v50 = vpop.f32.mrf.mxu0  ;;  %v4301_v58 = vpop.f32.mrf.mxu1 }
 0x209   : > { %v2249_v9 = vpop.f32.mrf.mxu0  ;;  %v2474_v13 = vpop.f32.mrf.mxu1 }
 0x20b   : > { %v4303_v27 = vpop.f32.mrf.mxu0  ;;  %v4305_v32 = vpop.f32.mrf.mxu1 }
 0x20d   : > { %v2254_v55 = vpop.f32.mrf.mxu0  ;;  %v2479_v20 = vpop.f32.mrf.mxu1 }
 0x20e   : > { %v2203_v20 = vadd.f32 %v2202_v38, %v4187_v44 }
 0x20f   : > { %v4307_v52 = vpop.f32.mrf.mxu0  ;;  %v4309_v16 = vpop.f32.mrf.mxu1 }
 0x210   : > { %4567 = vst [vmem:[#allocation13_spill] sm:$0xff] %v4309_v16  ;;  %v2428_v37 = vadd.f32 %v2427_v5, %v2203_v20 }
 0x211   : > { %v2259_v3 = vpop.f32.mrf.mxu0  ;;  %v2484_v0 = vpop.f32.mrf.mxu1 }
 0x213   : > { %v4311_v4 = vpop.f32.mrf.mxu0  ;;  %v4313_v17 = vpop.f32.mrf.mxu1 }
 0x215   : > { %v2264_v26 = vpop.f32.mrf.mxu0  ;;  %v2489_v9 = vpop.f32.mrf.mxu1 }
 0x216   : > { %v2213_v26 = vadd.f32 %v2212_v25, %v4193_v35  ;;  %v2433_v25 = vadd.f32 %v4273_v53, %v2208_v61  ;;  %v2218_v61 = vadd.f32 %v4277_v34, %v4195_v46 }
 0x217   : > { %v4315_v13 = vpop.f32.mrf.mxu0  ;;  %v4317_v28 = vpop.f32.mrf.mxu1 }
 0x219   : > { %v2269_v56 = vpop.f32.mrf.mxu0  ;;  %v2494_v55 = vpop.f32.mrf.mxu1 }
 0x21a   : > { %v2438_v55 = vadd.f32 %v4275_v33, %v2213_v26 }
 0x21b   : > { %v4320_v22 = vpop.f32.mrf.mxu0  ;;  %v4322_v16 = vpop.f32.mrf.mxu1 }
 0x21d   : > { %v2274_v3 = vpop.f32.mrf.mxu0  ;;  %v2499_v0 = vpop.f32.mrf.mxu1 }
 0x21f   : > { %v3146_v44 = vpop.f32.mrf.mxu0  ;;  %v3170_v56 = vpop.f32.mrf.mxu1 }
 0x220   : > { %v2573_v38 = vadd.f32 %v3146_v44, %v4226_v63  ;;  %v4334_v9 = vadd.f32 %v3170_v56, %v2428_v37  ;;  %v2223_v63 = vadd.f32 %v2222_v19, %v4198_v49 }
 0x221   : > { %v2567_v5 = vpop.f32.mrf.mxu0  ;;  %v2647_v6 = vpop.f32.mrf.mxu1 }
 0x222   : > { %2727 = vst [vmem:[%s4331_s24 + $0x8] sm:$0xff] %v2573_v38  ;;  %2743 = vst [vmem:[%s4331_s24 + $0x88] sm:$0xff] %v4334_v9  ;;  %v2568_v35 = vadd.f32 %v2567_v5, %v4223_v18  ;;  %v4341_v47 = vadd.f32 %v2647_v6, %v4271_v57  ;;  %v2797_v3 = vmul.f32 %v2573_v38, %v2573_v38 }
 0x223   : > { %v3149_v37 = vpop.f32.mrf.mxu0  ;;  %v3173_v20 = vpop.f32.mrf.mxu1  ;;  %v2448_v56 = vadd.f32 %v4281_v7, %v2223_v63  ;;  %v2443_v6 = vadd.f32 %v4279_v23, %v2218_v61  ;;  %v2228_v7 = vadd.f32 %v4283_v41, %v4202_v30 }
 0x224   : > { %2726 = vst [vmem:[%s4331_s24] sm:$0xff] %v2568_v35  ;;  %v2758_v0 = vadd.f32 %v2573_v38, %v2568_v35  ;;  %v2796_v44 = vmul.f32 %v2568_v35, %v2568_v35  ;;  %2742 = vst [vmem:[%s4331_s24 + $0x80] sm:$0xff] %v4341_v47  ;;  %v2583_v18 = vadd.f32 %v3149_v37, %v4232_v51 }
 0x225   : > { %v4352_v57 = vadd.f32 %v3173_v20, %v2438_v55  ;;  %v2577_v53 = vpop.f32.mrf.mxu0  ;;  %v2657_v49 = vpop.f32.mrf.mxu1  ;;  %v2233_v38 = vadd.f32 %v4287_v48, %v4204_v8 }
 0x226   : > { %v2828_v33 = vadd.f32 %v2797_v3, %v2796_v44  ;;  %2729 = vst [vmem:[%s4331_s24 + $0x18] sm:$0xff] %v2583_v18  ;;  %v2578_v19 = vadd.f32 %v2577_v53, %v4229_v39  ;;  %v4356_v26 = vadd.f32 %v2657_v49, %v2433_v25  ;;  %v2799_v25 = vmul.f32 %v2583_v18, %v2583_v18 }
 0x227   : > { %2745 = vst [vmem:[%s4331_s24 + $0x98] sm:$0xff] %v4352_v57  ;;  %v3152_v46 = vpop.f32.mrf.mxu0  ;;  %v3176_v51 = vpop.f32.mrf.mxu1  ;;  %v2458_v20 = vadd.f32 %v4289_v45, %v2233_v38  ;;  %v2238_v45 = vadd.f32 %v4291_v12, %v4206_v40 }
 0x228   : > { %2728 = vst [vmem:[%s4331_s24 + $0x10] sm:$0xff] %v2578_v19  ;;  %v2759_v34 = vadd.f32 %v2758_v0, %v2578_v19  ;;  %v2798_v5 = vmul.f32 %v2578_v19, %v2578_v19  ;;  %2744 = vst [vmem:[%s4331_s24 + $0x90] sm:$0xff] %v4356_v26  ;;  %v2593_v39 = vadd.f32 %v3152_v46, %v4238_v14 }
 0x229   : > { %v4370_v8 = vadd.f32 %v3176_v51, %v2448_v56  ;;  %v2587_v48 = vpop.f32.mrf.mxu0  ;;  %v2667_v35 = vpop.f32.mrf.mxu1  ;;  %v2243_v14 = vadd.f32 %v4295_v1, %v4208_v62 }
 0x22a   : > { %v2829_v55 = vadd.f32 %v2828_v33, %v2798_v5  ;;  %2731 = vst [vmem:[%s4331_s24 + $0x28] sm:$0xff] %v2593_v39  ;;  %v2588_v63 = vadd.f32 %v2587_v48, %v4235_v60  ;;  %v2760_v37 = vadd.f32 %v2759_v34, %v2583_v18  ;;  %v4379_v23 = vadd.f32 %v2667_v35, %v2443_v6 }
 0x22b   : > { %2747 = vst [vmem:[%s4331_s24 + $0xa8] sm:$0xff] %v4370_v8  ;;  %v3155_v30 = vpop.f32.mrf.mxu0  ;;  %v3179_v41 = vpop.f32.mrf.mxu1  ;;  %v2453_v18 = vadd.f32 %v4285_v42, %v2228_v7  ;;  %v2801_v53 = vmul.f32 %v2593_v39, %v2593_v39  ;;  %v2253_v42 = vadd.f32 %v4303_v27, %v4212_v31  ;;  %v2463_v34 = vadd.f32 %v4293_v54, %v2238_v45 }
 0x22c   : > { %2730 = vst [vmem:[%s4331_s24 + $0x20] sm:$0xff] %v2588_v63  ;;  %v2761_v3 = vadd.f32 %v2760_v37, %v2588_v63  ;;  %v2800_v0 = vmul.f32 %v2588_v63, %v2588_v63  ;;  %v2830_v44 = vadd.f32 %v2829_v55, %v2799_v25  ;;  %v2603_v60 = vadd.f32 %v3155_v30, %v4244_v36 }
 0x22d   : > { %2746 = vst [vmem:[%s4331_s24 + $0xa0] sm:$0xff] %v4379_v23  ;;  %v4388_v62 = vadd.f32 %v3179_v41, %v2458_v20  ;;  %v2597_v1 = vpop.f32.mrf.mxu0  ;;  %v2677_v61 = vpop.f32.mrf.mxu1  ;;  %v2468_v36 = vadd.f32 %v4297_v10, %v2243_v14  ;;  %v2248_v10 = vadd.f32 %v4299_v50, %v4210_v24  ;;  %v2263_v54 = vadd.f32 %v4311_v4, %v4216_v29 }
 0x22e   : > { %v2831_v49 = vadd.f32 %v2830_v44, %v2800_v0  ;;  %2733 = vst [vmem:[%s4331_s24 + $0x38] sm:$0xff] %v2603_v60  ;;  %v2598_v33 = vadd.f32 %v2597_v1, %v4241_v15  ;;  %v2762_v19 = vadd.f32 %v2761_v3, %v2593_v39  ;;  %v4397_v40 = vadd.f32 %v2677_v61, %v2453_v18  ;;  %v4569_v1 = vld [vmem:[#allocation10_spill] sm:$0xff]  ;;  %v4570_v61 = vld [vmem:[#allocation13_spill] sm:$0xff] }
 0x22f   : > { %2749 = vst [vmem:[%s4331_s24 + $0xb8] sm:$0xff] %v4388_v62  ;;  %v3158_v12 = vpop.f32.mrf.mxu0  ;;  %v3182_v56 = vpop.f32.mrf.mxu1  ;;  %v2803_v39 = vmul.f32 %v2603_v60, %v2603_v60  ;;  %v2473_v37 = vadd.f32 %v4301_v58, %v2248_v10  ;;  %v4568_v58 = vld [vmem:[#allocation8_spill] sm:$0xff] }
 0x230   : > { %2732 = vst [vmem:[%s4331_s24 + $0x30] sm:$0xff] %v2598_v33  ;;  %v2763_v38 = vadd.f32 %v2762_v19, %v2598_v33  ;;  %v2802_v46 = vmul.f32 %v2598_v33, %v2598_v33  ;;  %v2832_v51 = vadd.f32 %v2831_v49, %v2801_v53  ;;  %v2613_v15 = vadd.f32 %v3158_v12, %v4250_v2  ;;  %v4572_v12 = vld [vmem:[#allocation9_spill] sm:$0xff] }
 0x231   : > { %2748 = vst [vmem:[%s4331_s24 + $0xb0] sm:$0xff] %v4397_v40  ;;  %v4406_v31 = vadd.f32 %v3182_v56, %v2468_v36  ;;  %v2607_v27 = vpop.f32.mrf.mxu0  ;;  %v2687_v5 = vpop.f32.mrf.mxu1  ;;  %v2478_v2 = vadd.f32 %v4305_v32, %v2253_v42  ;;  %v2258_v32 = vadd.f32 %v4307_v52, %v4214_v59  ;;  %v2273_v0 = vadd.f32 %v4320_v22, %v4568_v58 }
 0x232   : > { %v2833_v6 = vadd.f32 %v2832_v51, %v2802_v46  ;;  %2735 = vst [vmem:[%s4331_s24 + $0x48] sm:$0xff] %v2613_v15  ;;  %v2608_v7 = vadd.f32 %v2607_v27, %v4247_v43  ;;  %v2764_v48 = vadd.f32 %v2763_v38, %v2603_v60  ;;  %v4415_v24 = vadd.f32 %v2687_v5, %v2463_v34  ;;  %v4573_v5 = vld [vmem:[#allocation12_spill] sm:$0xff] }
 0x233   : > { %2751 = vst [vmem:[%s4331_s24 + $0xc8] sm:$0xff] %v4406_v31  ;;  %v3161_v50 = vpop.f32.mrf.mxu0  ;;  %v3185_v35 = vpop.f32.mrf.mxu1  ;;  %v2805_v14 = vmul.f32 %v2613_v15, %v2613_v15  ;;  %v2483_v53 = vadd.f32 %v4570_v61, %v2258_v32  ;;  %v2498_v46 = vadd.f32 %v4322_v16, %v2273_v0  ;;  %v2814_v58 = vmul.f32 %v4356_v26, %v4356_v26 }
 0x234   : > { %2734 = vst [vmem:[%s4331_s24 + $0x40] sm:$0xff] %v2608_v7  ;;  %v2765_v25 = vadd.f32 %v2764_v48, %v2608_v7  ;;  %v2804_v55 = vmul.f32 %v2608_v7, %v2608_v7  ;;  %v2834_v63 = vadd.f32 %v2833_v6, %v2803_v39  ;;  %v2623_v43 = vadd.f32 %v3161_v50, %v4256_v11  ;;  %v4574_v50 = vld [vmem:[#allocation11_spill] sm:$0xff] }
 0x235   : > { %2750 = vst [vmem:[%s4331_s24 + $0xc0] sm:$0xff] %v4415_v24  ;;  %v4424_v29 = vadd.f32 %v3185_v35, %v2478_v2  ;;  %v2617_v4 = vpop.f32.mrf.mxu0  ;;  %v2697_v20 = vpop.f32.mrf.mxu1  ;;  %v2488_v11 = vadd.f32 %v4313_v17, %v2263_v54  ;;  %v4571_v17 = vld [vmem:[#allocation7_spill] sm:$0xff] }
 0x236   : > { %v2835_v30 = vadd.f32 %v2834_v63, %v2804_v55  ;;  %2737 = vst [vmem:[%s4331_s24 + $0x58] sm:$0xff] %v2623_v43  ;;  %v2618_v41 = vadd.f32 %v2617_v4, %v4253_v21  ;;  %v2766_v3 = vadd.f32 %v2765_v25, %v2613_v15  ;;  %v4433_v59 = vadd.f32 %v2697_v20, %v2473_v37 }
 0x237   : > { %2753 = vst [vmem:[%s4331_s24 + $0xd8] sm:$0xff] %v4424_v29  ;;  %v3164_v52 = vpop.f32.mrf.mxu0  ;;  %v3188_v44 = vpop.f32.mrf.mxu1  ;;  %v2268_v22 = vadd.f32 %v4315_v13, %v4571_v17  ;;  %v2807_v36 = vmul.f32 %v2623_v43, %v2623_v43  ;;  %v2812_v20 = vmul.f32 %v4341_v47, %v4341_v47 }
 0x238   : > { %2736 = vst [vmem:[%s4331_s24 + $0x50] sm:$0xff] %v2618_v41  ;;  %v2767_v60 = vadd.f32 %v2766_v3, %v2618_v41  ;;  %v2806_v18 = vmul.f32 %v2618_v41, %v2618_v41  ;;  %v2836_v45 = vadd.f32 %v2835_v30, %v2805_v14  ;;  %v2633_v21 = vadd.f32 %v3164_v52, %v4569_v1 }
 0x239   : > { %2752 = vst [vmem:[%s4331_s24 + $0xd0] sm:$0xff] %v4433_v59  ;;  %v4442_v49 = vadd.f32 %v3188_v44, %v2488_v11  ;;  %v2627_v33 = vpop.f32.mrf.mxu0  ;;  %v2707_v19 = vpop.f32.mrf.mxu1  ;;  %v2493_v6 = vadd.f32 %v4317_v28, %v2268_v22  ;;  %v2813_v41 = vmul.f32 %v4334_v9, %v4334_v9  ;;  %v2815_v44 = vmul.f32 %v4352_v57, %v4352_v57 }
 0x23a   : > { %v2837_v42 = vadd.f32 %v2836_v45, %v2806_v18  ;;  %2739 = vst [vmem:[%s4331_s24 + $0x68] sm:$0xff] %v2633_v21  ;;  %v2628_v56 = vadd.f32 %v2627_v33, %v4572_v12  ;;  %v2768_v38 = vadd.f32 %v2767_v60, %v2623_v43  ;;  %v4449_v51 = vadd.f32 %v2707_v19, %v2483_v53 }
 0x23b   : > { %2755 = vst [vmem:[%s4331_s24 + $0xe8] sm:$0xff] %v4442_v49  ;;  %v3167_v13 = vpop.f32.mrf.mxu0  ;;  %v3191_v15 = vpop.f32.mrf.mxu1  ;;  %v2809_v2 = vmul.f32 %v2633_v21, %v2633_v21 }
 0x23c   : > { %2738 = vst [vmem:[%s4331_s24 + $0x60] sm:$0xff] %v2628_v56  ;;  %v2769_v34 = vadd.f32 %v2768_v38, %v2628_v56  ;;  %v2808_v10 = vmul.f32 %v2628_v56, %v2628_v56  ;;  %v2838_v27 = vadd.f32 %v2837_v42, %v2807_v36  ;;  %v2643_v39 = vadd.f32 %v3167_v13, %v4573_v5 }
 0x23d   : > { %2754 = vst [vmem:[%s4331_s24 + $0xe0] sm:$0xff] %v4449_v51  ;;  %v4456_v16 = vadd.f32 %v3191_v15, %v2498_v46  ;;  %v2637_v7 = vpop.f32.mrf.mxu0  ;;  %v2717_v48 = vpop.f32.mrf.mxu1 }
 0x23e   : > { %v2839_v54 = vadd.f32 %v2838_v27, %v2808_v10  ;;  %2741 = vst [vmem:[%s4331_s24 + $0x78] sm:$0xff] %v2643_v39  ;;  %v2638_v35 = vadd.f32 %v2637_v7, %v4574_v50  ;;  %v2770_v25 = vadd.f32 %v2769_v34, %v2633_v21  ;;  %v2718_v55 = vadd.f32 %v2717_v48, %v2493_v6 }
 0x23f   : > { %2757 = vst [vmem:[%s4331_s24 + $0xf8] sm:$0xff] %v4456_v16  ;;  %v2811_v37 = vmul.f32 %v2643_v39, %v2643_v39 }
 0x240   : > { %2740 = vst [vmem:[%s4331_s24 + $0x70] sm:$0xff] %v2638_v35  ;;  %v2771_v63 = vadd.f32 %v2770_v25, %v2638_v35  ;;  %v2810_v43 = vmul.f32 %v2638_v35, %v2638_v35  ;;  %v2840_v28 = vadd.f32 %v2839_v54, %v2809_v2  ;;  %2756 = vst [vmem:[%s4331_s24 + $0xf0] sm:$0xff] %v2718_v55 }
 0x241   : > { %v2826_v5 = vmul.f32 %v2718_v55, %v2718_v55 }
 0x242   : > { %v2772_v32 = vadd.f32 %v2771_v63, %v2643_v39  ;;  %v2841_v4 = vadd.f32 %v2840_v28, %v2810_v43 }
 0x244   : > { %v2773_v14 = vadd.f32 %v2772_v32, %v4341_v47  ;;  %v2842_v30 = vadd.f32 %v2841_v4, %v2811_v37  ;;  %v2816_v47 = vmul.f32 %v4379_v23, %v4379_v23 }
 0x246   : > { %v2774_v3 = vadd.f32 %v2773_v14, %v4334_v9  ;;  %v2843_v11 = vadd.f32 %v2842_v30, %v2812_v20  ;;  %v2817_v9 = vmul.f32 %v4370_v8, %v4370_v8 }
 0x248   : > { %v2775_v0 = vadd.f32 %v2774_v3, %v4356_v26  ;;  %v2844_v52 = vadd.f32 %v2843_v11, %v2813_v41  ;;  %v2818_v26 = vmul.f32 %v4397_v40, %v4397_v40 }
 0x24a   : > { %v2776_v60 = vadd.f32 %v2775_v0, %v4352_v57  ;;  %v2845_v18 = vadd.f32 %v2844_v52, %v2814_v58  ;;  %v2819_v57 = vmul.f32 %v4388_v62, %v4388_v62 }
 0x24c   : > { %v2777_v45 = vadd.f32 %v2776_v60, %v4379_v23  ;;  %v2846_v1 = vadd.f32 %v2845_v18, %v2815_v44  ;;  %v2820_v23 = vmul.f32 %v4415_v24, %v4415_v24 }
 0x24e   : > { %v2778_v21 = vadd.f32 %v2777_v45, %v4370_v8  ;;  %v2847_v61 = vadd.f32 %v2846_v1, %v2816_v47  ;;  %v2821_v8 = vmul.f32 %v4406_v31, %v4406_v31 }
 0x250   : > { %v2848_v53 = vadd.f32 %v2847_v61, %v2817_v9  ;;  %v2779_v17 = vadd.f32 %v2778_v21, %v4397_v40  ;;  %v2822_v40 = vmul.f32 %v4433_v59, %v4433_v59 }
 0x252   : > { %v2780_v22 = vadd.f32 %v2779_v17, %v4388_v62  ;;  %v2849_v33 = vadd.f32 %v2848_v53, %v2818_v26  ;;  %v2823_v62 = vmul.f32 %v4424_v29, %v4424_v29 }
 0x254   : > { %v2781_v19 = vadd.f32 %v2780_v22, %v4415_v24  ;;  %v2850_v36 = vadd.f32 %v2849_v33, %v2819_v57  ;;  %v2824_v24 = vmul.f32 %v4449_v51, %v4449_v51 }
 0x256   : > { %v2782_v42 = vadd.f32 %v2781_v19, %v4406_v31  ;;  %v2851_v12 = vadd.f32 %v2850_v36, %v2820_v23  ;;  %v2825_v31 = vmul.f32 %v4442_v49, %v4442_v49 }
 0x258   : > { %v2783_v56 = vadd.f32 %v2782_v42, %v4433_v59  ;;  %v2852_v38 = vadd.f32 %v2851_v12, %v2821_v8 }
 0x25a   : > { %v2784_v46 = vadd.f32 %v2783_v56, %v4424_v29  ;;  %v2853_v13 = vadd.f32 %v2852_v38, %v2822_v40  ;;  %v2827_v29 = vmul.f32 %v4456_v16, %v4456_v16 }
 0x25c   : > { %v2785_v15 = vadd.f32 %v2784_v46, %v4449_v51  ;;  %v2854_v34 = vadd.f32 %v2853_v13, %v2823_v62 }
 0x25e   : > { %v2786_v10 = vadd.f32 %v2785_v15, %v4442_v49  ;;  %v2855_v27 = vadd.f32 %v2854_v34, %v2824_v24 }
 0x260   : > { %v2787_v59 = vadd.f32 %v2786_v10, %v2718_v55  ;;  %v2856_v39 = vadd.f32 %v2855_v27, %v2825_v31 }
 0x262   : > { %v2788_v6 = vadd.f32 %v2787_v59, %v4456_v16  ;;  %v2857_v7 = vadd.f32 %v2856_v39, %v2826_v5 }
 0x264   : > { %v2789_v48 = vrot.slane %v2788_v6, 4  ;;  %v2858_v51 = vadd.f32 %v2857_v7, %v2827_v29 }
 0x266   : > { %v2790_v2 = vadd.f32 %v2789_v48, %v2788_v6  ;;  %v2859_v54 = vrot.slane %v2858_v51, 4 }
 0x268   : > { %v2791_v50 = vrot.slane %v2790_v2, 2  ;;  %v2860_v35 = vadd.f32 %v2859_v54, %v2858_v51 }
 0x26a   : > { %v2792_v25 = vadd.f32 %v2791_v50, %v2790_v2  ;;  %v2861_v49 = vrot.slane %v2860_v35, 2 }
 0x26c   : > { %v2793_v63 = vrot.slane %v2792_v25, 1  ;;  %v2862_v43 = vadd.f32 %v2861_v49, %v2860_v35 }
 0x26e   : > { %v2794_v55 = vadd.f32 %v2793_v63, %v2792_v25  ;;  %v2863_v28 = vrot.slane %v2862_v43, 1 }
 0x270   : > { %2795 = vst [vmem:[%s318_s28] sm:$0x1] %v2794_v55  ;;  %v2864_v16 = vadd.f32 %v2863_v28, %v2862_v43 }
 0x272   : > { %2865 = vst [vmem:[%s324_s7] sm:$0x1] %v2864_v16 }
 0x273 PF: > { %s18_s23 = sadd.s32 1, %s3337_s23   ;;  %s4575_s21 = smov %s3333_s22 }
 0x274   : > { %p15_p2 = scmp.ge.s32.totalorder %s18_s23, 4   ;;  %s4576_s22 = smov %s4578_s25 }
 0x276   :  { %17 = sbr.rel (!%p15_p2) target bundleno = 2 (0x2), region = 109 }
 0x27b   :  { %2934 = vsyncpa [#allocation5], 1 }
 0x27c   :  { %2936 = vsyncpa [#allocation5 + $0x1], 1 }

</bundles_post_ra>
